<compile_context>
chip_gen: v7x
topology: tpu7x:2x2x1
jax: 0.10.0
libtpu: 0.0.40
codegen_flags: <defaults>
</compile_context>

<pallas_src>
import functools

import jax
import jax.numpy as jnp
from jax.experimental import pallas as pl
from jax.experimental.pallas import tpu as pltpu


# ---------------------------------------------------------------------------
# Fused kernel: 1x1 conv -> flatten(1800) -> Linear -> ReLU -> Linear
# One grid step per hidden-dim split (1 split on v5e/v6e, 2 on v7x).
# ---------------------------------------------------------------------------
def _lane_cls_kernel(x_ref, wp_ref, bp_ref, w1_ref, b1_ref, w2_ref, b2_ref, o_ref):
    # x_ref : (B, C, HW)   f32   input features (NCHW with HW flattened)
    # wp_ref: (P, C)       f32   1x1-conv weight (P = 8)
    # bp_ref: (P, 1)       f32   1x1-conv bias
    # w1_ref: (P, HW, HH)  bf16  Linear(1800, 2048) weight, channel-major view;
    #                            HH = hidden slice handled by this grid step
    # b1_ref: (1, HH)      f32
    # w2_ref: (HH, D)      bf16  Linear(2048, D) weight slice
    # b2_ref: (1, D)       f32
    # o_ref : (1, B, D)    f32   partial output of this hidden split
    B, C, HW = x_ref.shape
    n_pool = w1_ref.shape[0]

    # ---- 1x1 conv ("pool"): per-batch (P, C) @ (C, HW) on the MXU. ----------
    pooled = [
        jnp.dot(wp_ref[...], x_ref[b], preferred_element_type=jnp.float32)
        + bp_ref[...]
        for b in range(B)
    ]                                                       # B x (P, HW), f32

    # ---- Linear(1800, HH): accumulate over the P channel slabs of W1.  This
    # ---- realises the channel-major flatten .view(-1, 1800) with no reshape.
    h = jnp.zeros((B, w1_ref.shape[2]), jnp.float32)
    for c in range(n_pool):
        xc = jnp.concatenate([p[c:c + 1, :] for p in pooled], axis=0)  # (B, HW)
        h = h + jnp.dot(xc.astype(w1_ref.dtype), w1_ref[c],
                        preferred_element_type=jnp.float32)

    # ---- bias + ReLU + Linear(HH, D) slab. -----------------------------------
    h = jnp.maximum(h + b1_ref[...], 0.0)
    out = jnp.dot(h.astype(w2_ref.dtype), w2_ref[...],
                  preferred_element_type=jnp.float32)                  # (B, D)

    # b2 is added exactly once (split 0); other splits emit partial products.
    @pl.when(pl.program_id(0) == 0)
    def _():
        o_ref[0] = out + b2_ref[...]

    @pl.when(pl.program_id(0) != 0)
    def _():
        o_ref[0] = out


def _default_hid_splits():
    # v7x has 2 TensorCores per chip: split the bandwidth-bound weight stream
    # across both.  Single-TC chips (v5e/v6e) use one grid step so the full W1
    # slab is a single contiguous DMA with zero per-step overhead.
    try:
        kind = jax.devices()[0].device_kind.lower()
    except Exception:
        return 1
    return 2 if ("v7" in kind or "7x" in kind) else 1


# ---------------------------------------------------------------------------
# LaneCls forward wrapper.
# ---------------------------------------------------------------------------
@functools.partial(jax.jit, static_argnames=("dim", "hid_splits"))
def lane_cls_forward(feats_last, params, dim, hid_splits=None):
    B, C, H, W = feats_last.shape
    HW = H * W
    wp, bp = params["w_pool"], params["b_pool"]
    w1, b1 = params["w1"], params["b1"]
    w2, b2 = params["w2"], params["b2"]
    n_pool = wp.shape[0]
    IN, HID = w1.shape
    D = w2.shape[1]
    assert IN == n_pool * HW, "pool-channels * H * W must equal 1800"

    S = _default_hid_splits() if hid_splits is None else int(hid_splits)
    assert HID % S == 0 and (HID // S) % 128 == 0
    HH = HID // S

    # View-level layout plumbing only (no data movement).
    x = feats_last.reshape(B, C, HW)
    w1_3d = w1.reshape(n_pool, HW, HID)
    bp_col = bp.reshape(n_pool, 1)
    b1_row = b1.reshape(1, HID)
    b2_row = b2.reshape(1, D)

    # Right-sized VMEM limit: 2x (double-buffered) blocks + activations + slack.
    block_bytes = (B * C * HW * 4 + n_pool * (C + 1) * 4
                   + n_pool * HW * HH * w1.dtype.itemsize + HH * 4
                   + HH * D * w2.dtype.itemsize + D * 4 + B * D * 4)
    vmem_limit = int(2 * block_bytes + (8 << 20))

    parts = pl.pallas_call(
        _lane_cls_kernel,
        out_shape=jax.ShapeDtypeStruct((S, B, D), jnp.float32),
        grid=(S,),
        in_specs=[
            pl.BlockSpec((B, C, HW), lambda s: (0, 0, 0)),
            pl.BlockSpec((n_pool, C), lambda s: (0, 0)),
            pl.BlockSpec((n_pool, 1), lambda s: (0, 0)),
            pl.BlockSpec((n_pool, HW, HH), lambda s: (0, 0, s)),
            pl.BlockSpec((1, HH), lambda s: (0, s)),
            pl.BlockSpec((HH, D), lambda s: (s, 0)),
            pl.BlockSpec((1, D), lambda s: (0, 0)),
        ],
        out_specs=pl.BlockSpec((1, B, D), lambda s: (s, 0, 0)),
        compiler_params=pltpu.CompilerParams(
            dimension_semantics=("parallel",),
            vmem_limit_bytes=vmem_limit,
        ),
    )(x, wp, bp_col, w1_3d, b1_row, w2, b2_row)

    cls = parts[0] if S == 1 else jnp.sum(parts, axis=0)
    return {"cls": cls.reshape((-1,) + tuple(dim))}


# ---------------------------------------------------------------------------
# References.
# ---------------------------------------------------------------------------
def _reference_forward(feats_last, params, dim):
    """Matches the kernel's numerics: weight-dtype (bf16) inputs, f32 accumulation."""
    pooled = (jnp.einsum("oc,bchw->bohw", params["w_pool"], feats_last)
              + params["b_pool"][None, :, None, None])
    xf = pooled.reshape(feats_last.shape[0], -1)                 # (B, 1800)
    w1, w2 = params["w1"], params["w2"]
    h = jnp.dot(xf.astype(w1.dtype), w1,
                preferred_element_type=jnp.float32) + params["b1"]
    h = jnp.maximum(h, 0.0)
    out = jnp.dot(h.astype(w2.dtype), w2,
                  preferred_element_type=jnp.float32) + params["b2"]
    return out.reshape((-1,) + tuple(dim))


def _reference_forward_f32(feats_last, params, dim):
    """Pure-f32 semantics of the original PyTorch module (weights upcast)."""
    pooled = (jnp.einsum("oc,bchw->bohw", params["w_pool"], feats_last)
              + params["b_pool"][None, :, None, None])
    xf = pooled.reshape(feats_last.shape[0], -1)
    h = jnp.maximum(xf @ params["w1"].astype(jnp.float32) + params["b1"], 0.0)
    out = h @ params["w2"].astype(jnp.float32) + params["b2"]
    return out.reshape((-1,) + tuple(dim))


if __name__ == "__main__":
    # Small shapes consistent with the module: 8 * H * W must equal 1800.
    B, C, H, W = 2, 16, 9, 25               # cfg.featuremap_out_channel = 16
    dim = (9, 4, 2)                          # (griding_num+1, rows, lanes); prod = 72
    total_dim = 9 * 4 * 2
    HIDDEN = 2048

    key = jax.random.PRNGKey(0)
    k0, k1, k2, k3, k4, k5 = jax.random.split(key, 6)

    params = {
        "w_pool": jax.random.normal(k0, (8, C), jnp.float32) * 0.1,
        "b_pool": jax.random.normal(k1, (8,), jnp.float32) * 0.1,
        # Weights are *stored* in bf16 (half the HBM bytes to stream);
        # the kernel accumulates in f32 on the MXU.
        "w1": (jax.random.normal(k2, (1800, HIDDEN), jnp.float32) * 0.02
               ).astype(jnp.bfloat16),
        "b1": jax.random.normal(k3, (HIDDEN,), jnp.float32) * 0.02,
        "w2": (jax.random.normal(k4, (HIDDEN, total_dim), jnp.float32) * 0.02
               ).astype(jnp.bfloat16),
        "b2": jax.random.normal(k5, (total_dim,), jnp.float32) * 0.02,
    }

    # The module receives a list/tuple of feature maps and uses x[-1].
    feats = (jax.random.normal(jax.random.PRNGKey(42), (B, C, H, W), jnp.float32),)

    ref = _reference_forward(feats[-1], params, dim)
    ref_f32 = _reference_forward_f32(feats[-1], params, dim)

    # Auto split count (1 on v5e/v6e, 2 on v7x).
    out = lane_cls_forward(feats[-1], params, dim)
    cls = jax.block_until_ready(out["cls"])
    assert cls.shape == (B,) + dim, cls.shape
    assert jnp.allclose(cls, ref, atol=2e-3, rtol=2e-3), \
        float(jnp.max(jnp.abs(cls - ref)))
    assert jnp.allclose(cls, ref_f32, atol=2e-2, rtol=2e-2), \
        float(jnp.max(jnp.abs(cls - ref_f32)))

    # Exercise both the single-step (v5e/v6e) and the two-TensorCore partial-sum
    # (v7x) paths regardless of which chip the sandbox runs on.
    for s in (1, 2):
        cls_s = jax.block_until_ready(
            lane_cls_forward(feats[-1], params, dim, hid_splits=s)["cls"])
        assert jnp.allclose(cls_s, ref, atol=2e-3, rtol=2e-3), \
            (s, float(jnp.max(jnp.abs(cls_s - ref))))

    print("KERNEL_OK")
</pallas_src>

<mosaic_0001>
module attributes {stable_mosaic.version = 11 : i64} {
  func.func @_lane_cls_kernel(%arg0: i32, %arg1: memref<2x16x225xf32, #tpu.memory_space<vmem>>, %arg2: memref<8x16xf32, #tpu.memory_space<vmem>>, %arg3: memref<8x1xf32, #tpu.memory_space<vmem>>, %arg4: memref<8x225x2048xbf16, #tpu.memory_space<vmem>>, %arg5: memref<1x2048xf32, #tpu.memory_space<vmem>>, %arg6: memref<2048x72xbf16, #tpu.memory_space<vmem>>, %arg7: memref<1x72xf32, #tpu.memory_space<vmem>>, %arg8: memref<1x2x72xf32, #tpu.memory_space<vmem>>) attributes {dimension_semantics = [#tpu.dimension_semantics<parallel>], iteration_bounds = array<i64: 1>, scalar_prefetch = 0 : i64, scratch_operands = 0 : i64, tpu.core_type = #tpu.core_type<tc>, window_params = [{pipeline_mode = #tpu.pipeline_mode<synchronous>, transform_indices = @transform_0, window_bounds = array<i64: 2, 16, 225>}, {pipeline_mode = #tpu.pipeline_mode<synchronous>, transform_indices = @transform_1, window_bounds = array<i64: 8, 16>}, {pipeline_mode = #tpu.pipeline_mode<synchronous>, transform_indices = @transform_2, window_bounds = array<i64: 8, 1>}, {transform_indices = @transform_3, window_bounds = array<i64: 8, 225, 2048>}, {transform_indices = @transform_4, window_bounds = array<i64: 1, 2048>}, {transform_indices = @transform_5, window_bounds = array<i64: 2048, 72>}, {pipeline_mode = #tpu.pipeline_mode<synchronous>, transform_indices = @transform_6, window_bounds = array<i64: 1, 72>}, {transform_indices = @transform_7, window_bounds = array<i64: 1, 2, 72>}]} {
    %c0 = arith.constant 0 : index
    %c0_0 = arith.constant 0 : index
    %0 = vector.load %arg2[%c0, %c0_0] : memref<8x16xf32, #tpu.memory_space<vmem>>, vector<8x16xf32>
    %c0_1 = arith.constant 0 : index
    %c0_2 = arith.constant 0 : index
    %c0_3 = arith.constant 0 : index
    %1 = vector.load %arg1[%c0_1, %c0_2, %c0_3] : memref<2x16x225xf32, #tpu.memory_space<vmem>>, vector<1x16x225xf32>
    %2 = vector.shape_cast %1 : vector<1x16x225xf32> to vector<16x225xf32>
    %cst = arith.constant dense<0.000000e+00> : vector<8x225xf32>
    %3 = tpu.matmul %0, %2, %cst {dimension_numbers = #tpu.dot_dimension_numbers<[1], [0], [0], [1], [0, 0, 1, 1], [], []>} : vector<8x16xf32>, vector<16x225xf32>, vector<8x225xf32> -> vector<8x225xf32>
    %c0_4 = arith.constant 0 : index
    %c0_5 = arith.constant 0 : index
    %4 = vector.load %arg3[%c0_4, %c0_5] : memref<8x1xf32, #tpu.memory_space<vmem>>, vector<8x1xf32>
    %5 = vector.broadcast %4 : vector<8x1xf32> to vector<8x225xf32>
    %6 = arith.addf %3, %5 : vector<8x225xf32>
    %c0_6 = arith.constant 0 : index
    %c0_7 = arith.constant 0 : index
    %7 = vector.load %arg2[%c0_6, %c0_7] : memref<8x16xf32, #tpu.memory_space<vmem>>, vector<8x16xf32>
    %c1 = arith.constant 1 : index
    %c0_8 = arith.constant 0 : index
    %c0_9 = arith.constant 0 : index
    %8 = vector.load %arg1[%c1, %c0_8, %c0_9] : memref<2x16x225xf32, #tpu.memory_space<vmem>>, vector<1x16x225xf32>
    %9 = vector.shape_cast %8 : vector<1x16x225xf32> to vector<16x225xf32>
    %cst_10 = arith.constant dense<0.000000e+00> : vector<8x225xf32>
    %10 = tpu.matmul %7, %9, %cst_10 {dimension_numbers = #tpu.dot_dimension_numbers<[1], [0], [0], [1], [0, 0, 1, 1], [], []>} : vector<8x16xf32>, vector<16x225xf32>, vector<8x225xf32> -> vector<8x225xf32>
    %c0_11 = arith.constant 0 : index
    %c0_12 = arith.constant 0 : index
    %11 = vector.load %arg3[%c0_11, %c0_12] : memref<8x1xf32, #tpu.memory_space<vmem>>, vector<8x1xf32>
    %12 = vector.broadcast %11 : vector<8x1xf32> to vector<8x225xf32>
    %13 = arith.addf %10, %12 : vector<8x225xf32>
    %cst_13 = arith.constant 0.000000e+00 : f32
    %14 = vector.broadcast %cst_13 : f32 to vector<2x2048xf32>
    %15 = vector.extract_strided_slice %6 {offsets = [0, 0], sizes = [1, 225], strides = [1, 1]} : vector<8x225xf32> to vector<1x225xf32>
    %16 = vector.extract_strided_slice %13 {offsets = [0, 0], sizes = [1, 225], strides = [1, 1]} : vector<8x225xf32> to vector<1x225xf32>
    %17 = tpu.concatenate %15, %16 in 0 : vector<1x225xf32>, vector<1x225xf32> -> vector<2x225xf32>
    %18 = arith.truncf %17 : vector<2x225xf32> to vector<2x225xbf16>
    %c0_14 = arith.constant 0 : index
    %c0_15 = arith.constant 0 : index
    %c0_16 = arith.constant 0 : index
    %19 = vector.load %arg4[%c0_14, %c0_15, %c0_16] : memref<8x225x2048xbf16, #tpu.memory_space<vmem>>, vector<1x225x2048xbf16>
    %20 = vector.shape_cast %19 : vector<1x225x2048xbf16> to vector<225x2048xbf16>
    %cst_17 = arith.constant dense<0.000000e+00> : vector<2x2048xf32>
    %21 = tpu.matmul %18, %20, %cst_17 {dimension_numbers = #tpu.dot_dimension_numbers<[1], [0], [0], [1], [0, 0, 1, 1], [], []>} : vector<2x225xbf16>, vector<225x2048xbf16>, vector<2x2048xf32> -> vector<2x2048xf32>
    %22 = arith.addf %14, %21 : vector<2x2048xf32>
    %23 = vector.extract_strided_slice %6 {offsets = [1, 0], sizes = [1, 225], strides = [1, 1]} : vector<8x225xf32> to vector<1x225xf32>
    %24 = vector.extract_strided_slice %13 {offsets = [1, 0], sizes = [1, 225], strides = [1, 1]} : vector<8x225xf32> to vector<1x225xf32>
    %25 = tpu.concatenate %23, %24 in 0 : vector<1x225xf32>, vector<1x225xf32> -> vector<2x225xf32>
    %26 = arith.truncf %25 : vector<2x225xf32> to vector<2x225xbf16>
    %c1_18 = arith.constant 1 : index
    %c0_19 = arith.constant 0 : index
    %c0_20 = arith.constant 0 : index
    %27 = vector.load %arg4[%c1_18, %c0_19, %c0_20] : memref<8x225x2048xbf16, #tpu.memory_space<vmem>>, vector<1x225x2048xbf16>
    %28 = vector.shape_cast %27 : vector<1x225x2048xbf16> to vector<225x2048xbf16>
    %cst_21 = arith.constant dense<0.000000e+00> : vector<2x2048xf32>
    %29 = tpu.matmul %26, %28, %cst_21 {dimension_numbers = #tpu.dot_dimension_numbers<[1], [0], [0], [1], [0, 0, 1, 1], [], []>} : vector<2x225xbf16>, vector<225x2048xbf16>, vector<2x2048xf32> -> vector<2x2048xf32>
    %30 = arith.addf %22, %29 : vector<2x2048xf32>
    %31 = vector.extract_strided_slice %6 {offsets = [2, 0], sizes = [1, 225], strides = [1, 1]} : vector<8x225xf32> to vector<1x225xf32>
    %32 = vector.extract_strided_slice %13 {offsets = [2, 0], sizes = [1, 225], strides = [1, 1]} : vector<8x225xf32> to vector<1x225xf32>
    %33 = tpu.concatenate %31, %32 in 0 : vector<1x225xf32>, vector<1x225xf32> -> vector<2x225xf32>
    %34 = arith.truncf %33 : vector<2x225xf32> to vector<2x225xbf16>
    %c2 = arith.constant 2 : index
    %c0_22 = arith.constant 0 : index
    %c0_23 = arith.constant 0 : index
    %35 = vector.load %arg4[%c2, %c0_22, %c0_23] : memref<8x225x2048xbf16, #tpu.memory_space<vmem>>, vector<1x225x2048xbf16>
    %36 = vector.shape_cast %35 : vector<1x225x2048xbf16> to vector<225x2048xbf16>
    %cst_24 = arith.constant dense<0.000000e+00> : vector<2x2048xf32>
    %37 = tpu.matmul %34, %36, %cst_24 {dimension_numbers = #tpu.dot_dimension_numbers<[1], [0], [0], [1], [0, 0, 1, 1], [], []>} : vector<2x225xbf16>, vector<225x2048xbf16>, vector<2x2048xf32> -> vector<2x2048xf32>
    %38 = arith.addf %30, %37 : vector<2x2048xf32>
    %39 = vector.extract_strided_slice %6 {offsets = [3, 0], sizes = [1, 225], strides = [1, 1]} : vector<8x225xf32> to vector<1x225xf32>
    %40 = vector.extract_strided_slice %13 {offsets = [3, 0], sizes = [1, 225], strides = [1, 1]} : vector<8x225xf32> to vector<1x225xf32>
    %41 = tpu.concatenate %39, %40 in 0 : vector<1x225xf32>, vector<1x225xf32> -> vector<2x225xf32>
    %42 = arith.truncf %41 : vector<2x225xf32> to vector<2x225xbf16>
    %c3 = arith.constant 3 : index
    %c0_25 = arith.constant 0 : index
    %c0_26 = arith.constant 0 : index
    %43 = vector.load %arg4[%c3, %c0_25, %c0_26] : memref<8x225x2048xbf16, #tpu.memory_space<vmem>>, vector<1x225x2048xbf16>
    %44 = vector.shape_cast %43 : vector<1x225x2048xbf16> to vector<225x2048xbf16>
    %cst_27 = arith.constant dense<0.000000e+00> : vector<2x2048xf32>
    %45 = tpu.matmul %42, %44, %cst_27 {dimension_numbers = #tpu.dot_dimension_numbers<[1], [0], [0], [1], [0, 0, 1, 1], [], []>} : vector<2x225xbf16>, vector<225x2048xbf16>, vector<2x2048xf32> -> vector<2x2048xf32>
    %46 = arith.addf %38, %45 : vector<2x2048xf32>
    %47 = vector.extract_strided_slice %6 {offsets = [4, 0], sizes = [1, 225], strides = [1, 1]} : vector<8x225xf32> to vector<1x225xf32>
    %48 = vector.extract_strided_slice %13 {offsets = [4, 0], sizes = [1, 225], strides = [1, 1]} : vector<8x225xf32> to vector<1x225xf32>
    %49 = tpu.concatenate %47, %48 in 0 : vector<1x225xf32>, vector<1x225xf32> -> vector<2x225xf32>
    %50 = arith.truncf %49 : vector<2x225xf32> to vector<2x225xbf16>
    %c4 = arith.constant 4 : index
    %c0_28 = arith.constant 0 : index
    %c0_29 = arith.constant 0 : index
    %51 = vector.load %arg4[%c4, %c0_28, %c0_29] : memref<8x225x2048xbf16, #tpu.memory_space<vmem>>, vector<1x225x2048xbf16>
    %52 = vector.shape_cast %51 : vector<1x225x2048xbf16> to vector<225x2048xbf16>
    %cst_30 = arith.constant dense<0.000000e+00> : vector<2x2048xf32>
    %53 = tpu.matmul %50, %52, %cst_30 {dimension_numbers = #tpu.dot_dimension_numbers<[1], [0], [0], [1], [0, 0, 1, 1], [], []>} : vector<2x225xbf16>, vector<225x2048xbf16>, vector<2x2048xf32> -> vector<2x2048xf32>
    %54 = arith.addf %46, %53 : vector<2x2048xf32>
    %55 = vector.extract_strided_slice %6 {offsets = [5, 0], sizes = [1, 225], strides = [1, 1]} : vector<8x225xf32> to vector<1x225xf32>
    %56 = vector.extract_strided_slice %13 {offsets = [5, 0], sizes = [1, 225], strides = [1, 1]} : vector<8x225xf32> to vector<1x225xf32>
    %57 = tpu.concatenate %55, %56 in 0 : vector<1x225xf32>, vector<1x225xf32> -> vector<2x225xf32>
    %58 = arith.truncf %57 : vector<2x225xf32> to vector<2x225xbf16>
    %c5 = arith.constant 5 : index
    %c0_31 = arith.constant 0 : index
    %c0_32 = arith.constant 0 : index
    %59 = vector.load %arg4[%c5, %c0_31, %c0_32] : memref<8x225x2048xbf16, #tpu.memory_space<vmem>>, vector<1x225x2048xbf16>
    %60 = vector.shape_cast %59 : vector<1x225x2048xbf16> to vector<225x2048xbf16>
    %cst_33 = arith.constant dense<0.000000e+00> : vector<2x2048xf32>
    %61 = tpu.matmul %58, %60, %cst_33 {dimension_numbers = #tpu.dot_dimension_numbers<[1], [0], [0], [1], [0, 0, 1, 1], [], []>} : vector<2x225xbf16>, vector<225x2048xbf16>, vector<2x2048xf32> -> vector<2x2048xf32>
    %62 = arith.addf %54, %61 : vector<2x2048xf32>
    %63 = vector.extract_strided_slice %6 {offsets = [6, 0], sizes = [1, 225], strides = [1, 1]} : vector<8x225xf32> to vector<1x225xf32>
    %64 = vector.extract_strided_slice %13 {offsets = [6, 0], sizes = [1, 225], strides = [1, 1]} : vector<8x225xf32> to vector<1x225xf32>
    %65 = tpu.concatenate %63, %64 in 0 : vector<1x225xf32>, vector<1x225xf32> -> vector<2x225xf32>
    %66 = arith.truncf %65 : vector<2x225xf32> to vector<2x225xbf16>
    %c6 = arith.constant 6 : index
    %c0_34 = arith.constant 0 : index
    %c0_35 = arith.constant 0 : index
    %67 = vector.load %arg4[%c6, %c0_34, %c0_35] : memref<8x225x2048xbf16, #tpu.memory_space<vmem>>, vector<1x225x2048xbf16>
    %68 = vector.shape_cast %67 : vector<1x225x2048xbf16> to vector<225x2048xbf16>
    %cst_36 = arith.constant dense<0.000000e+00> : vector<2x2048xf32>
    %69 = tpu.matmul %66, %68, %cst_36 {dimension_numbers = #tpu.dot_dimension_numbers<[1], [0], [0], [1], [0, 0, 1, 1], [], []>} : vector<2x225xbf16>, vector<225x2048xbf16>, vector<2x2048xf32> -> vector<2x2048xf32>
    %70 = arith.addf %62, %69 : vector<2x2048xf32>
    %71 = vector.extract_strided_slice %6 {offsets = [7, 0], sizes = [1, 225], strides = [1, 1]} : vector<8x225xf32> to vector<1x225xf32>
    %72 = vector.extract_strided_slice %13 {offsets = [7, 0], sizes = [1, 225], strides = [1, 1]} : vector<8x225xf32> to vector<1x225xf32>
    %73 = tpu.concatenate %71, %72 in 0 : vector<1x225xf32>, vector<1x225xf32> -> vector<2x225xf32>
    %74 = arith.truncf %73 : vector<2x225xf32> to vector<2x225xbf16>
    %c7 = arith.constant 7 : index
    %c0_37 = arith.constant 0 : index
    %c0_38 = arith.constant 0 : index
    %75 = vector.load %arg4[%c7, %c0_37, %c0_38] : memref<8x225x2048xbf16, #tpu.memory_space<vmem>>, vector<1x225x2048xbf16>
    %76 = vector.shape_cast %75 : vector<1x225x2048xbf16> to vector<225x2048xbf16>
    %cst_39 = arith.constant dense<0.000000e+00> : vector<2x2048xf32>
    %77 = tpu.matmul %74, %76, %cst_39 {dimension_numbers = #tpu.dot_dimension_numbers<[1], [0], [0], [1], [0, 0, 1, 1], [], []>} : vector<2x225xbf16>, vector<225x2048xbf16>, vector<2x2048xf32> -> vector<2x2048xf32>
    %78 = arith.addf %70, %77 : vector<2x2048xf32>
    %c0_40 = arith.constant 0 : index
    %c0_41 = arith.constant 0 : index
    %79 = vector.load %arg5[%c0_40, %c0_41] : memref<1x2048xf32, #tpu.memory_space<vmem>>, vector<1x2048xf32>
    %80 = vector.broadcast %79 : vector<1x2048xf32> to vector<2x2048xf32>
    %81 = arith.addf %78, %80 : vector<2x2048xf32>
    %cst_42 = arith.constant 0.000000e+00 : f32
    %82 = vector.broadcast %cst_42 : f32 to vector<2x2048xf32>
    %83 = arith.maximumf %81, %82 : vector<2x2048xf32>
    %84 = arith.truncf %83 : vector<2x2048xf32> to vector<2x2048xbf16>
    %c0_43 = arith.constant 0 : index
    %c0_44 = arith.constant 0 : index
    %85 = vector.load %arg6[%c0_43, %c0_44] : memref<2048x72xbf16, #tpu.memory_space<vmem>>, vector<2048x72xbf16>
    %cst_45 = arith.constant dense<0.000000e+00> : vector<2x72xf32>
    %86 = tpu.matmul %84, %85, %cst_45 {dimension_numbers = #tpu.dot_dimension_numbers<[1], [0], [0], [1], [0, 0, 1, 1], [], []>} : vector<2x2048xbf16>, vector<2048x72xbf16>, vector<2x72xf32> -> vector<2x72xf32>
    %c0_i32 = arith.constant 0 : i32
    %87 = arith.cmpi eq, %arg0, %c0_i32 : i32
    %88 = arith.extui %87 : i1 to i32
    %c0_i32_46 = arith.constant 0 : i32
    %89 = arith.cmpi ne, %88, %c0_i32_46 : i32
    scf.if %89 {
      %c0_49 = arith.constant 0 : index
      %c0_50 = arith.constant 0 : index
      %93 = vector.load %arg7[%c0_49, %c0_50] : memref<1x72xf32, #tpu.memory_space<vmem>>, vector<1x72xf32>
      %94 = vector.broadcast %93 : vector<1x72xf32> to vector<2x72xf32>
      %95 = arith.addf %86, %94 : vector<2x72xf32>
      %c0_51 = arith.constant 0 : index
      %c0_52 = arith.constant 0 : index
      %c0_53 = arith.constant 0 : index
      %96 = vector.load %arg8[%c0_51, %c0_52, %c0_53] : memref<1x2x72xf32, #tpu.memory_space<vmem>>, vector<1x2x72xf32>
      %97 = vector.shape_cast %96 : vector<1x2x72xf32> to vector<2x72xf32>
      %98 = vector.shape_cast %95 : vector<2x72xf32> to vector<1x2x72xf32>
      tpu.vector_store %arg8[%c0_51, %c0_52, %c0_53], %98 {strides = array<i32>} : memref<1x2x72xf32, #tpu.memory_space<vmem>>, vector<1x2x72xf32>,
    } else {
    }
    %c0_i32_47 = arith.constant 0 : i32
    %90 = arith.cmpi ne, %arg0, %c0_i32_47 : i32
    %91 = arith.extui %90 : i1 to i32
    %c0_i32_48 = arith.constant 0 : i32
    %92 = arith.cmpi ne, %91, %c0_i32_48 : i32
    scf.if %92 {
      %c0_49 = arith.constant 0 : index
      %c0_50 = arith.constant 0 : index
      %c0_51 = arith.constant 0 : index
      %93 = vector.load %arg8[%c0_49, %c0_50, %c0_51] : memref<1x2x72xf32, #tpu.memory_space<vmem>>, vector<1x2x72xf32>
      %94 = vector.shape_cast %93 : vector<1x2x72xf32> to vector<2x72xf32>
      %95 = vector.shape_cast %86 : vector<2x72xf32> to vector<1x2x72xf32>
      tpu.vector_store %arg8[%c0_49, %c0_50, %c0_51], %95 {strides = array<i32>} : memref<1x2x72xf32, #tpu.memory_space<vmem>>, vector<1x2x72xf32>,
    } else {
    }
    return
  }
  func.func @transform_0(%arg0: i32) -> (i32, i32, i32) {
    %c0_i32 = arith.constant 0 : i32
    %c0_i32_0 = arith.constant 0 : i32
    %c0_i32_1 = arith.constant 0 : i32
    %c0_i32_2 = arith.constant 0 : i32
    return %c0_i32, %c0_i32_0, %c0_i32_1 : i32, i32, i32
  }
  func.func @transform_1(%arg0: i32) -> (i32, i32) {
    %c0_i32 = arith.constant 0 : i32
    %c0_i32_0 = arith.constant 0 : i32
    %c0_i32_1 = arith.constant 0 : i32
    return %c0_i32, %c0_i32_0 : i32, i32
  }
  func.func @transform_2(%arg0: i32) -> (i32, i32) {
    %c0_i32 = arith.constant 0 : i32
    %c0_i32_0 = arith.constant 0 : i32
    %c0_i32_1 = arith.constant 0 : i32
    return %c0_i32, %c0_i32_0 : i32, i32
  }
  func.func @transform_3(%arg0: i32) -> (i32, i32, i32) {
    %c0_i32 = arith.constant 0 : i32
    %c0_i32_0 = arith.constant 0 : i32
    %c0_i32_1 = arith.constant 0 : i32
    return %c0_i32, %c0_i32_0, %arg0 : i32, i32, i32
  }
  func.func @transform_4(%arg0: i32) -> (i32, i32) {
    %c0_i32 = arith.constant 0 : i32
    %c0_i32_0 = arith.constant 0 : i32
    return %c0_i32, %arg0 : i32, i32
  }
  func.func @transform_5(%arg0: i32) -> (i32, i32) {
    %c0_i32 = arith.constant 0 : i32
    %c0_i32_0 = arith.constant 0 : i32
    return %arg0, %c0_i32 : i32, i32
  }
  func.func @transform_6(%arg0: i32) -> (i32, i32) {
    %c0_i32 = arith.constant 0 : i32
    %c0_i32_0 = arith.constant 0 : i32
    %c0_i32_1 = arith.constant 0 : i32
    return %c0_i32, %c0_i32_0 : i32, i32
  }
  func.func @transform_7(%arg0: i32) -> (i32, i32, i32) {
    %c0_i32 = arith.constant 0 : i32
    %c0_i32_0 = arith.constant 0 : i32
    %c0_i32_1 = arith.constant 0 : i32
    return %arg0, %c0_i32, %c0_i32_0 : i32, i32, i32
  }
}

</mosaic_0001>

<bundles_post_ra>
// kernel: squeeze.1
= control target key start
LH: loop header
LB: loop body
LE: loop exit
PB: predicated region body
PF: predicated region fallthrough
CT: control target
= control target key end

     0   :  { %s411_s8 = smov 122   ;;  %s412_s9 = smov 124   ;;  %vm7_vm0 = vcmask 15360   ;;  %s548_s0 = inlined_call_operand.vmem [shape: f32[1,2,72], index: 0, kind: input, shape index: {}]   ;;  %s549_s1 = inlined_call_operand.vmem [shape: f32[2,9,4,2], index: 1, kind: output, shape index: {}]  }
   0x1   :  { %v4_v0 = vld [vmem:[%s548_s0] sm:$0x3]  ;;  %s410_s0 = smov 126   ;;  %s413_s10 = smov 120  }
   0x2   :  { %5 = vst [vmem:[#allocation1] sm:$0x3] %v4_v0  ;;  %s414_s11 = smov 118   ;;  %s415_s12 = smov 116  }
   0x3   :  { %s416_s13 = smov 114   ;;  %s417_s14 = smov 112  }
   0x4   :  { %s76_s15 = smov 3  ;;  %s418_s16 = smov 110  }
   0x5   :  { %s419_s17 = smov 108   ;;  %s84_s18 = smov 3 }
   0x6   :  { %s92_s19 = smov 3  ;;  %s420_s20 = smov 106  }
   0x7   :  { %s421_s21 = smov 104   ;;  %s100_s22 = smov 3 }
   0x8   :  { %s422_s23 = smov 102   ;;  %s423_s24 = smov 100  }
   0x9   :  { %v9_v1 = vld [vmem:[#allocation1] sm:$0x3]   ;;  %s424_s25 = smov 98   ;;  %s425_s26 = smov 96  }
   0xa   :  { %v21_v2 = vld [vmem:[#allocation1] sm:$0x3]   ;;  %10 = vrot.lane.b32.xlu0 %v9_v1, %s410_s0  ;;  %s426_s27 = smov 94   ;;  %s427_s28 = smov 92  }
   0xb   :  { %22 = vrot.lane.b32.xlu1 %v21_v2, %s411_s8  ;;  %v15_v3 = vld [vmem:[#allocation1] sm:$0x3]   ;;  %s428_s29 = smov 90   ;;  %s429_s30 = smov 88  }
   0xc   :  { %v27_v4 = vld [vmem:[#allocation1] sm:$0x3]   ;;  %s430_s2 = smov 86   ;;  %s431_s3 = smov 84  }
   0xd   :  { %v33_v5 = vld [vmem:[#allocation1] sm:$0x3]   ;;  %s432_s4 = smov 82   ;;  %s433_s5 = smov 80  }
   0xe   :  { %16 = vrot.lane.b32.xlu0 %v15_v3, %s412_s9  ;;  %v39_v6 = vld [vmem:[#allocation1] sm:$0x3]   ;;  %s180_s6 = smov 3  ;;  %s434_s7 = smov 78  }
   0xf   :  { %28 = vrot.lane.b32.xlu1 %v27_v4, %s413_s10  ;;  %v45_v7 = vld [vmem:[#allocation1] sm:$0x3]   ;;  %s435_s0 = smov 76   ;;  %s188_s8 = smov 3 }
  0x10   :  { %v51_v8 = vld [vmem:[#allocation1] sm:$0x3]   ;;  %s196_s9 = smov 3  ;;  %s436_s10 = smov 74  }
  0x11   :  { %v57_v9 = vld [vmem:[#allocation1] sm:$0x3]  }
  0x12   :  { %34 = vrot.lane.b32.xlu0 %v33_v5, %s414_s11  ;;  %v63_v10 = vld [vmem:[#allocation1] sm:$0x3]   ;;  %s437_s11 = smov 72  }
  0x13   :  { %40 = vrot.lane.b32.xlu1 %v39_v6, %s415_s12  ;;  %v6_v11 = vld [vmem:[#allocation1] sm:$0x3]   ;;  %s204_s12 = smov 3 }
  0x14   :  { %8 = vst.msk [vmem:[#allocation0] ss:$72 sm:$0x3] %vm7_vm0, %v6_v11   ;;  %v69_v12 = vld [vmem:[#allocation1] sm:$0x3]  }
  0x15   :  { %v77_v13 = vld [vmem:[#allocation1 + $0x1] ss:$-1 sm:%s76_s15]   ;;  %s440_s15 = smov 66  }
  0x16   :  { %46 = vrot.lane.b32.xlu0 %v45_v7, %s416_s13  ;;  %v85_v14 = vld [vmem:[#allocation1 + $0x1] ss:$-1 sm:%s84_s18]   ;;  %s438_s13 = smov 70   ;;  %s443_s18 = smov 60  }
  0x17   :  { %52 = vrot.lane.b32.xlu1 %v51_v8, %s417_s14  ;;  %v93_v15 = vld [vmem:[#allocation1 + $0x1] ss:$-1 sm:%s92_s19]   ;;  %s439_s14 = smov 68   ;;  %s444_s19 = smov 58  }
  0x18   :  { %v101_v16 = vld [vmem:[#allocation1 + $0x1] ss:$-1 sm:%s100_s22]  }
  0x19   :  { %v107_v17 = vld [vmem:[#allocation1] sm:$0x3]  }
  0x1a   :  { %58 = vrot.lane.b32.xlu0 %v57_v9, %s418_s16  ;;  %v113_v18 = vld [vmem:[#allocation1] sm:$0x3]   ;;  %s441_s16 = smov 64  }
  0x1b   :  { %64 = vrot.lane.b32.xlu1 %v63_v10, %s419_s17  ;;  %v119_v19 = vld [vmem:[#allocation1] sm:$0x3]   ;;  %s442_s17 = smov 62  }
  0x1c   :  { %v125_v20 = vld [vmem:[#allocation1] sm:$0x3]  }
  0x1d   :  { %v131_v21 = vld [vmem:[#allocation1] sm:$0x3]  }
  0x1e   :  { %70 = vrot.lane.b32.xlu0 %v69_v12, %s420_s20  ;;  %v137_v22 = vld [vmem:[#allocation1] sm:$0x3]  }
  0x1f   :  { %78 = vrot.lane.b32.xlu1 %v77_v13, %s421_s21  ;;  %v143_v23 = vld [vmem:[#allocation1] sm:$0x3]  }
  0x20   :  { %v149_v24 = vld [vmem:[#allocation1] sm:$0x3]  }
  0x21   :  { %v155_v25 = vld [vmem:[#allocation1] sm:$0x3]  }
  0x22   :  { %86 = vrot.lane.b32.xlu0 %v85_v14, %s422_s23  ;;  %v161_v26 = vld [vmem:[#allocation1] sm:$0x3]  }
  0x23   :  { %94 = vrot.lane.b32.xlu1 %v93_v15, %s423_s24  ;;  %v167_v27 = vld [vmem:[#allocation1] sm:$0x3]  }
  0x24   :  { %v173_v28 = vld [vmem:[#allocation1] sm:$0x3]  }
  0x25   :  { %v181_v29 = vld [vmem:[#allocation1 + $0x1] ss:$-1 sm:%s180_s6]  }
  0x26   :  { %102 = vrot.lane.b32.xlu0 %v101_v16, %s424_s25  ;;  %v189_v30 = vld [vmem:[#allocation1 + $0x1] ss:$-1 sm:%s188_s8]  }
  0x27   :  { %108 = vrot.lane.b32.xlu1 %v107_v17, %s425_s26  ;;  %v197_v31 = vld [vmem:[#allocation1 + $0x1] ss:$-1 sm:%s196_s9]  }
  0x28   :  { %v205_v32 = vld [vmem:[#allocation1 + $0x1] ss:$-1 sm:%s204_s12]  }
  0x29   :  { %v211_v33 = vld [vmem:[#allocation1] sm:$0x3]  }
  0x2a   :  { %114 = vrot.lane.b32.xlu0 %v113_v18, %s426_s27  ;;  %v217_v34 = vld [vmem:[#allocation1] sm:$0x3]  }
  0x2b   :  { %120 = vrot.lane.b32.xlu1 %v119_v19, %s427_s28  ;;  %v223_v35 = vld [vmem:[#allocation1] sm:$0x3]  }
  0x2c   :  { %v229_v36 = vld [vmem:[#allocation1] sm:$0x3]  }
  0x2e   :  { %126 = vrot.lane.b32.xlu0 %v125_v20, %s428_s29 }
  0x2f   :  { %132 = vrot.lane.b32.xlu1 %v131_v21, %s429_s30 }
  0x32   :  { %138 = vrot.lane.b32.xlu0 %v137_v22, %s430_s2 }
  0x33   :  { %144 = vrot.lane.b32.xlu1 %v143_v23, %s431_s3 }
  0x36   :  { %150 = vrot.lane.b32.xlu0 %v149_v24, %s432_s4 }
  0x37   :  { %156 = vrot.lane.b32.xlu1 %v155_v25, %s433_s5 }
  0x3a   :  { %162 = vrot.lane.b32.xlu0 %v161_v26, %s434_s7 }
  0x3b   :  { %168 = vrot.lane.b32.xlu1 %v167_v27, %s435_s0 }
  0x3e   :  { %174 = vrot.lane.b32.xlu0 %v173_v28, %s436_s10 }
  0x3f   :  { %182 = vrot.lane.b32.xlu1 %v181_v29, %s437_s11 }
  0x42   :  { %190 = vrot.lane.b32.xlu0 %v189_v30, %s438_s13 }
  0x43   :  { %198 = vrot.lane.b32.xlu1 %v197_v31, %s439_s14 }
  0x46   :  { %206 = vrot.lane.b32.xlu0 %v205_v32, %s440_s15 }
  0x47   :  { %212 = vrot.lane.b32.xlu1 %v211_v33, %s441_s16 }
  0x4a   :  { %218 = vrot.lane.b32.xlu0 %v217_v34, %s442_s17 }
  0x4b   :  { %224 = vrot.lane.b32.xlu1 %v223_v35, %s443_s18 }
  0x4e   :  { %230 = vrot.lane.b32.xlu0 %v229_v36, %s444_s19 }
  0x7c   :  { %v11_v37 = vpop.permute.xlu0 %10  }
  0x7d   :  { %v23_v38 = vpop.permute.xlu1 %22   ;;  %14 = vst.msk [vmem:[#allocation0 + $0x1] ss:$72 sm:$0x3] %vm7_vm0, %v11_v37  }
  0x7e   :  { %26 = vst.msk [vmem:[#allocation0 + $0x3] ss:$72 sm:$0x3] %vm7_vm0, %v23_v38  }
  0x80   :  { %v17_v39 = vpop.permute.xlu0 %16  }
  0x81   :  { %v29_v40 = vpop.permute.xlu1 %28   ;;  %20 = vst.msk [vmem:[#allocation0 + $0x2] ss:$72 sm:$0x3] %vm7_vm0, %v17_v39  }
  0x82   :  { %32 = vst.msk [vmem:[#allocation0 + $0x8] ss:$72 sm:$0x3] %vm7_vm0, %v29_v40  }
  0x84   :  { %v35_v41 = vpop.permute.xlu0 %34  }
  0x85   :  { %v41_v42 = vpop.permute.xlu1 %40   ;;  %38 = vst.msk [vmem:[#allocation0 + $0x9] ss:$72 sm:$0x3] %vm7_vm0, %v35_v41  }
  0x86   :  { %44 = vst.msk [vmem:[#allocation0 + $0xa] ss:$72 sm:$0x3] %vm7_vm0, %v41_v42  }
  0x88   :  { %v238_v43 = vld [vmem:[#allocation0] sm:$0xf]  ;;  %v289_v44 = vld [vmem:[#allocation0 + $0x48] sm:$0xf]  ;;  %v47_v45 = vpop.permute.xlu0 %46  }
  0x89   :  { %v53_v46 = vpop.permute.xlu1 %52   ;;  %240 = vst [vmem:[%s549_s1] sm:$0xf] %v238_v43  ;;  %366 = vst [vmem:[%s549_s1 + $0x24] sm:$0xf] %v289_v44 }
  0x8a   :  { %50 = vst.msk [vmem:[#allocation0 + $0xb] ss:$72 sm:$0x3] %vm7_vm0, %v47_v45   ;;  %56 = vst.msk [vmem:[#allocation0 + $0x10] ss:$72 sm:$0x3] %vm7_vm0, %v53_v46  }
  0x8c   :  { %v59_v47 = vpop.permute.xlu0 %58  }
  0x8d   :  { %v65_v48 = vpop.permute.xlu1 %64   ;;  %62 = vst.msk [vmem:[#allocation0 + $0x11] ss:$72 sm:$0x3] %vm7_vm0, %v59_v47  }
  0x8e   :  { %68 = vst.msk [vmem:[#allocation0 + $0x12] ss:$72 sm:$0x3] %vm7_vm0, %v65_v48  }
  0x90   :  { %v71_v51 = vpop.permute.xlu0 %70  }
  0x91   :  { %v242_v49 = vld [vmem:[#allocation0 + $0x8] sm:$0xf]  ;;  %v295_v50 = vld [vmem:[#allocation0 + $0x50] sm:$0xf]  ;;  %v79_v52 = vpop.permute.xlu1 %78  }
  0x92   :  { %358 = vst [vmem:[%s549_s1 + $0x4] sm:$0xf] %v242_v49  ;;  %367 = vst [vmem:[%s549_s1 + $0x28] sm:$0xf] %v295_v50 }
  0x93   :  { %74 = vst.msk [vmem:[#allocation0 + $0x13] ss:$72 sm:$0x3] %vm7_vm0, %v71_v51   ;;  %82 = vst.msk [vmem:[#allocation0 + $0x60] ss:$-72 sm:$0x3] %vm7_vm0, %v79_v52  }
  0x94   :  { %v87_v53 = vpop.permute.xlu0 %86  }
  0x95   :  { %v95_v54 = vpop.permute.xlu1 %94   ;;  %90 = vst.msk [vmem:[#allocation0 + $0x61] ss:$-72 sm:$0x3] %vm7_vm0, %v87_v53  }
  0x96   :  { %98 = vst.msk [vmem:[#allocation0 + $0x62] ss:$-72 sm:$0x3] %vm7_vm0, %v95_v54  }
  0x98   :  { %v103_v57 = vpop.permute.xlu0 %102  }
  0x99   :  { %v109_v58 = vpop.permute.xlu1 %108   ;;  %106 = vst.msk [vmem:[#allocation0 + $0x63] ss:$-72 sm:$0x3] %vm7_vm0, %v103_v57  }
  0x9a   :  { %v247_v55 = vld [vmem:[#allocation0 + $0x10] sm:$0xf]  ;;  %v301_v56 = vld [vmem:[#allocation0 + $0x58] sm:$0xf] }
  0x9b   :  { %359 = vst [vmem:[%s549_s1 + $0x8] sm:$0xf] %v247_v55  ;;  %368 = vst [vmem:[%s549_s1 + $0x2c] sm:$0xf] %v301_v56 }
  0x9c   :  { %112 = vst.msk [vmem:[#allocation0 + $0x20] ss:$72 sm:$0x3] %vm7_vm0, %v109_v58   ;;  %v115_v59 = vpop.permute.xlu0 %114  }
  0x9d   :  { %v121_v60 = vpop.permute.xlu1 %120   ;;  %118 = vst.msk [vmem:[#allocation0 + $0x21] ss:$72 sm:$0x3] %vm7_vm0, %v115_v59  }
  0x9e   :  { %124 = vst.msk [vmem:[#allocation0 + $0x22] ss:$72 sm:$0x3] %vm7_vm0, %v121_v60  }
  0xa0   :  { %v253_v61 = vld [vmem:[#allocation0 + $0x18] sm:$0xf]  ;;  %v307_v62 = vld [vmem:[#allocation0 + $0x60] sm:$0xf]  ;;  %v127_v63 = vpop.permute.xlu0 %126  }
  0xa1   :  { %v133_v0 = vpop.permute.xlu1 %132   ;;  %360 = vst [vmem:[%s549_s1 + $0xc] sm:$0xf] %v253_v61  ;;  %369 = vst [vmem:[%s549_s1 + $0x30] sm:$0xf] %v307_v62 }
  0xa2   :  { %130 = vst.msk [vmem:[#allocation0 + $0x23] ss:$72 sm:$0x3] %vm7_vm0, %v127_v63   ;;  %136 = vst.msk [vmem:[#allocation0 + $0x28] ss:$72 sm:$0x3] %vm7_vm0, %v133_v0  }
  0xa4   :  { %v139_v1 = vpop.permute.xlu0 %138  }
  0xa5   :  { %v145_v2 = vpop.permute.xlu1 %144   ;;  %142 = vst.msk [vmem:[#allocation0 + $0x29] ss:$72 sm:$0x3] %vm7_vm0, %v139_v1  }
  0xa6   :  { %148 = vst.msk [vmem:[#allocation0 + $0x2a] ss:$72 sm:$0x3] %vm7_vm0, %v145_v2  }
  0xa8   :  { %v151_v5 = vpop.permute.xlu0 %150  }
  0xa9   :  { %v259_v3 = vld [vmem:[#allocation0 + $0x20] sm:$0xf]  ;;  %v313_v4 = vld [vmem:[#allocation0 + $0x68] sm:$0xf]  ;;  %v157_v6 = vpop.permute.xlu1 %156  }
  0xaa   :  { %361 = vst [vmem:[%s549_s1 + $0x10] sm:$0xf] %v259_v3  ;;  %370 = vst [vmem:[%s549_s1 + $0x34] sm:$0xf] %v313_v4 }
  0xab   :  { %154 = vst.msk [vmem:[#allocation0 + $0x2b] ss:$72 sm:$0x3] %vm7_vm0, %v151_v5   ;;  %160 = vst.msk [vmem:[#allocation0 + $0x30] ss:$72 sm:$0x3] %vm7_vm0, %v157_v6  }
  0xac   :  { %v163_v7 = vpop.permute.xlu0 %162  }
  0xad   :  { %v169_v8 = vpop.permute.xlu1 %168   ;;  %166 = vst.msk [vmem:[#allocation0 + $0x31] ss:$72 sm:$0x3] %vm7_vm0, %v163_v7  }
  0xae   :  { %172 = vst.msk [vmem:[#allocation0 + $0x32] ss:$72 sm:$0x3] %vm7_vm0, %v169_v8  }
  0xb0   :  { %v175_v11 = vpop.permute.xlu0 %174  }
  0xb1   :  { %v183_v12 = vpop.permute.xlu1 %182   ;;  %178 = vst.msk [vmem:[#allocation0 + $0x33] ss:$72 sm:$0x3] %vm7_vm0, %v175_v11  }
  0xb2   :  { %v265_v9 = vld [vmem:[#allocation0 + $0x28] sm:$0xf]  ;;  %v319_v10 = vld [vmem:[#allocation0 + $0x70] sm:$0xf] }
  0xb3   :  { %362 = vst [vmem:[%s549_s1 + $0x14] sm:$0xf] %v265_v9  ;;  %371 = vst [vmem:[%s549_s1 + $0x38] sm:$0xf] %v319_v10 }
  0xb4   :  { %186 = vst.msk [vmem:[#allocation0 + $0x80] ss:$-72 sm:$0x3] %vm7_vm0, %v183_v12   ;;  %v191_v13 = vpop.permute.xlu0 %190  }
  0xb5   :  { %v199_v14 = vpop.permute.xlu1 %198   ;;  %194 = vst.msk [vmem:[#allocation0 + $0x81] ss:$-72 sm:$0x3] %vm7_vm0, %v191_v13  }
  0xb6   :  { %202 = vst.msk [vmem:[#allocation0 + $0x82] ss:$-72 sm:$0x3] %vm7_vm0, %v199_v14  }
  0xb8   :  { %v271_v15 = vld [vmem:[#allocation0 + $0x30] sm:$0xf]  ;;  %v325_v16 = vld [vmem:[#allocation0 + $0x78] sm:$0xf]  ;;  %v207_v17 = vpop.permute.xlu0 %206  }
  0xb9   :  { %v213_v18 = vpop.permute.xlu1 %212   ;;  %363 = vst [vmem:[%s549_s1 + $0x18] sm:$0xf] %v271_v15  ;;  %372 = vst [vmem:[%s549_s1 + $0x3c] sm:$0xf] %v325_v16 }
  0xba   :  { %210 = vst.msk [vmem:[#allocation0 + $0x83] ss:$-72 sm:$0x3] %vm7_vm0, %v207_v17   ;;  %216 = vst.msk [vmem:[#allocation0 + $0x40] ss:$72 sm:$0x3] %vm7_vm0, %v213_v18  }
  0xbc   :  { %v219_v19 = vpop.permute.xlu0 %218  }
  0xbd   :  { %v225_v20 = vpop.permute.xlu1 %224   ;;  %222 = vst.msk [vmem:[#allocation0 + $0x41] ss:$72 sm:$0x3] %vm7_vm0, %v219_v19  }
  0xbe   :  { %228 = vst.msk [vmem:[#allocation0 + $0x42] ss:$72 sm:$0x3] %vm7_vm0, %v225_v20  }
  0xc0   :  { %v231_v23 = vpop.permute.xlu0 %230  }
  0xc1   :  { %v277_v21 = vld [vmem:[#allocation0 + $0x38] sm:$0xf]  ;;  %v331_v22 = vld [vmem:[#allocation0 + $0x80] sm:$0xf] }
  0xc2   :  { %364 = vst [vmem:[%s549_s1 + $0x1c] sm:$0xf] %v277_v21  ;;  %373 = vst [vmem:[%s549_s1 + $0x40] sm:$0xf] %v331_v22 }
  0xc3   :  { %234 = vst.msk [vmem:[#allocation0 + $0x43] ss:$72 sm:$0x3] %vm7_vm0, %v231_v23  }
  0xca   :  { %v283_v24 = vld [vmem:[#allocation0 + $0x40] sm:$0xf]  ;;  %v337_v25 = vld [vmem:[#allocation0 + $0x88] sm:$0xf] }
  0xcb   :  { %365 = vst [vmem:[%s549_s1 + $0x20] sm:$0xf] %v283_v24  ;;  %374 = vst [vmem:[%s549_s1 + $0x44] sm:$0xf] %v337_v25 }

// kernel: lane_cls_forward.1
= control target key start
LH: loop header
LB: loop body
LE: loop exit
PB: predicated region body
PF: predicated region fallthrough
CT: control target
= control target key end

     0   :  { %v20242_v3 = vmov 0.0   ;;  %v20243_v8 = vmov 0   ;;  %vm38_vm0 = vcmask 130048   ;;  %vm195_vm1 = vcmask 1040384   ;;  %s27194_s0 = inlined_call_operand.vmem [shape: f32[2,16,225], index: 0, kind: input, shape index: {}]   ;;  %s27195_s1 = inlined_call_operand.vmem [shape: f32[8,16], index: 1, kind: input, shape index: {}]   ;;  %s27196_s2 = inlined_call_operand.vmem [shape: f32[8,1], index: 2, kind: input, shape index: {}]   ;;  %s27197_s3 = inlined_call_operand.vmem [shape: bf16[8,225,2048], index: 3, kind: input, shape index: {}]   ;;  %s27198_s5 = inlined_call_operand.vmem [shape: bf16[2048,72], index: 5, kind: input, shape index: {}]   ;;  %s27199_s4 = inlined_call_operand.vmem [shape: f32[1,2048], index: 4, kind: input, shape index: {}]   ;;  %s27200_s6 = inlined_call_operand.vmem [shape: f32[1,72], index: 6, kind: input, shape index: {}]   ;;  %s27201_s7 = inlined_call_operand.vmem [shape: f32[1,2,72], index: 7, kind: output, shape index: {}]  }
   0x1   :  { %v29_v0 = vld [vmem:[%s27194_s0 + $0x8] sm:$0xff]  ;;  %v31_v1 = vld [vmem:[%s27194_s0 + $0x18] sm:$0xff]  ;;  %106 = vmatprep.mubr.f32.mxu0 %v20242_v3  ;;  %182 = vmatprep.mubr.f32.mxu1 %v20242_v3  ;;  %v28_v6 = vld [vmem:[%s27194_s0] sm:$0xff]  ;;  %vm1835_vm2 = vcmask 793600   ;;  %vm16044_vm3 = vcmask 582656  }
   0x2   :  { %v16058_v2 = vld [vmem:[%s27194_s0 + $0x28] sm:$0xff]  ;;  %v19975_v4 = vpack.c.bf16 %v31_v1, %v29_v0  ;;  %v16060_v5 = vld [vmem:[%s27194_s0 + $0x38] sm:$0xff]  ;;  %v30_v7 = vld [vmem:[%s27194_s0 + $0x10] sm:$0xff]  ;;  %19985 = vset.pattern.permute.xlu0 %v20243_v8 }
   0x3   :  { %v19979_v9 = vpack.c.bf16 %v16060_v5, %v16058_v2  ;;  %v19977_v10 = vpack.c.bf16 %v30_v7, %v28_v6  ;;  %v16057_v11 = vld [vmem:[%s27194_s0 + $0x20] sm:$0xff]  ;;  %v16059_v12 = vld [vmem:[%s27194_s0 + $0x30] sm:$0xff]  ;;  %v16063_v20 = vld [vmem:[%s27197_s3 + $0x748] sm:$0xff] }
   0x4   :  { %v27_v13 = vld [vmem:[%s27195_s1] sm:$0xff]  ;;  %19976 = vmatprep.subr.bf16.mxu0 %v19975_v4  ;;  %v19981_v14 = vpack.c.bf16 %v16059_v12, %v16057_v11  ;;  %v16071_v21 = vld [vmem:[%s27197_s3 + $0x788] sm:$0xff] }
   0x5   :  { %v32_v15 = vld [vmem:[%s27196_s2] sm:$0xff]  ;;  %19980 = vmatprep.subr.bf16.mxu1 %v19979_v9  ;;  %19978 = vmatpush1.bf16.msra.mxu0 %v19977_v10  ;;  %v16296_v23 = vcombine.low %v16063_v20, %v16071_v21  ;;  %v16297_v24 = vcombine.high %v16063_v20, %v16071_v21  ;;  %v16079_v26 = vld [vmem:[%s27197_s3 + $0x7c8] sm:$0xff] }
   0x6   :  { %v16062_v16 = vld [vmem:[%s27197_s3 + $0x740] sm:$0xff]  ;;  %19982 = vmatpush1.bf16.msra.mxu1 %v19981_v14  ;;  %35 = vperm.xlu0 %19985, %v32_v15   ;;  %v16087_v27 = vld [vmem:[%s27197_s3 + $0x808] sm:$0xff] }
   0x7   :  { %v16070_v17 = vld [vmem:[%s27197_s3 + $0x780] sm:$0xff]  ;;  %v16313_v29 = vcombine.high %v16079_v26, %v16087_v27  ;;  %1930 = vmatprep.subr.bf16.mxu1 %v16297_v24  ;;  %v16095_v32 = vld [vmem:[%s27197_s3 + $0x848] sm:$0xff]  ;;  %v16312_v35 = vcombine.low %v16079_v26, %v16087_v27 }
   0x8   :  { %v16294_v18 = vcombine.low %v16062_v16, %v16070_v17  ;;  %v16295_v19 = vcombine.high %v16062_v16, %v16070_v17  ;;  %v16078_v22 = vld [vmem:[%s27197_s3 + $0x7c0] sm:$0xff]  ;;  %16056 = vmatmul.mubr.msk.f32.vlgmr.msra.gmra.mrb[0].mxu0 %vm38_vm0, %v27_v13  ;;  %v16103_v33 = vld [vmem:[%s27197_s3 + $0x888] sm:$0xff] }
   0x9   :  { %v16086_v25 = vld [vmem:[%s27197_s3 + $0x800] sm:$0xff]  ;;  %16061 = vmatmul.mubr.msk.f32.vlgmr.msra.gmra.mrb[0].mxu1 %vm38_vm0, %v27_v13  ;;  %v16329_v37 = vcombine.high %v16095_v32, %v16103_v33  ;;  %v16111_v40 = vld [vmem:[%s27197_s3 + $0x8c8] sm:$0xff]  ;;  %v16328_v43 = vcombine.low %v16095_v32, %v16103_v33 }
   0xa   :  { %1889 = vmatprep.subr.bf16.mxu0 %v16295_v19  ;;  %v16311_v28 = vcombine.high %v16078_v22, %v16086_v25  ;;  %v16094_v30 = vld [vmem:[%s27197_s3 + $0x840] sm:$0xff]  ;;  %v16310_v34 = vcombine.low %v16078_v22, %v16086_v25  ;;  %1931 = vmatpush1.bf16.msra.mxu1 %v16296_v23  ;;  %v16119_v41 = vld [vmem:[%s27197_s3 + $0x908] sm:$0xff] }
   0xb   :  { %v16102_v31 = vld [vmem:[%s27197_s3 + $0x880] sm:$0xff]  ;;  %1890 = vmatpush1.bf16.msra.mxu0 %v16294_v18  ;;  %1932 = vmatprep.subr.bf16.mxu1 %v16313_v29  ;;  %v16345_v45 = vcombine.high %v16111_v40, %v16119_v41  ;;  %v16127_v48 = vld [vmem:[%s27197_s3 + $0x948] sm:$0xff]  ;;  %v16344_v51 = vcombine.low %v16111_v40, %v16119_v41 }
   0xc   :  { %1891 = vmatprep.subr.bf16.mxu0 %v16311_v28  ;;  %v16327_v36 = vcombine.high %v16094_v30, %v16102_v31  ;;  %v16110_v38 = vld [vmem:[%s27197_s3 + $0x8c0] sm:$0xff]  ;;  %v16326_v42 = vcombine.low %v16094_v30, %v16102_v31  ;;  %v16135_v49 = vld [vmem:[%s27197_s3 + $0x988] sm:$0xff] }
   0xd   :  { %v16118_v39 = vld [vmem:[%s27197_s3 + $0x900] sm:$0xff]  ;;  %v16361_v53 = vcombine.high %v16127_v48, %v16135_v49  ;;  %v16143_v56 = vld [vmem:[%s27197_s3 + $0x9c8] sm:$0xff]  ;;  %v16360_v59 = vcombine.low %v16127_v48, %v16135_v49 }
   0xe   :  { %1933 = vmatpush1.bf16.msra.mxu1 %v16312_v35  ;;  %v16343_v44 = vcombine.high %v16110_v38, %v16118_v39  ;;  %v16126_v46 = vld [vmem:[%s27197_s3 + $0x940] sm:$0xff]  ;;  %v16342_v50 = vcombine.low %v16110_v38, %v16118_v39  ;;  %v16151_v57 = vld [vmem:[%s27197_s3 + $0xa08] sm:$0xff] }
   0xf   :  { %1892 = vmatpush1.bf16.msra.mxu0 %v16310_v34  ;;  %1934 = vmatprep.subr.bf16.mxu1 %v16329_v37  ;;  %v16134_v47 = vld [vmem:[%s27197_s3 + $0x980] sm:$0xff]  ;;  %v16377_v61 = vcombine.high %v16143_v56, %v16151_v57  ;;  %v16159_v0 = vld [vmem:[%s27197_s3 + $0xa48] sm:$0xff]  ;;  %v16376_v3 = vcombine.low %v16143_v56, %v16151_v57 }
  0x10   :  { %1893 = vmatprep.subr.bf16.mxu0 %v16327_v36  ;;  %v16359_v52 = vcombine.high %v16126_v46, %v16134_v47  ;;  %v16142_v54 = vld [vmem:[%s27197_s3 + $0x9c0] sm:$0xff]  ;;  %v16358_v58 = vcombine.low %v16126_v46, %v16134_v47  ;;  %v16167_v1 = vld [vmem:[%s27197_s3 + $0xa88] sm:$0xff] }
  0x11   :  { %v16150_v55 = vld [vmem:[%s27197_s3 + $0xa00] sm:$0xff]  ;;  %v16393_v5 = vcombine.high %v16159_v0, %v16167_v1  ;;  %v16175_v9 = vld [vmem:[%s27197_s3 + $0xac8] sm:$0xff]  ;;  %v16392_v12 = vcombine.low %v16159_v0, %v16167_v1 }
  0x12   :  { %1935 = vmatpush1.bf16.msra.mxu1 %v16328_v43  ;;  %v16375_v60 = vcombine.high %v16142_v54, %v16150_v55  ;;  %v16158_v62 = vld [vmem:[%s27197_s3 + $0xa40] sm:$0xff]  ;;  %v16374_v2 = vcombine.low %v16142_v54, %v16150_v55  ;;  %v16183_v10 = vld [vmem:[%s27197_s3 + $0xb08] sm:$0xff] }
  0x13   :  { %1894 = vmatpush1.bf16.msra.mxu0 %v16326_v42  ;;  %1936 = vmatprep.subr.bf16.mxu1 %v16345_v45  ;;  %v16166_v63 = vld [vmem:[%s27197_s3 + $0xa80] sm:$0xff]  ;;  %v16409_v14 = vcombine.high %v16175_v9, %v16183_v10  ;;  %v16191_v17 = vld [vmem:[%s27197_s3 + $0xb48] sm:$0xff]  ;;  %v16408_v20 = vcombine.low %v16175_v9, %v16183_v10 }
  0x14   :  { %1895 = vmatprep.subr.bf16.mxu0 %v16343_v44  ;;  %v16391_v4 = vcombine.high %v16158_v62, %v16166_v63  ;;  %v16174_v6 = vld [vmem:[%s27197_s3 + $0xac0] sm:$0xff]  ;;  %v16390_v11 = vcombine.low %v16158_v62, %v16166_v63  ;;  %v16199_v18 = vld [vmem:[%s27197_s3 + $0xb88] sm:$0xff]  ;;  %v20487_v62 = vsel %vm195_vm1, 65535, %v20243_v8 }
  0x15   :  { %v16182_v7 = vld [vmem:[%s27197_s3 + $0xb00] sm:$0xff]  ;;  %v16425_v22 = vcombine.high %v16191_v17, %v16199_v18  ;;  %v16207_v25 = vld [vmem:[%s27197_s3 + $0xbc8] sm:$0xff]  ;;  %v16424_v28 = vcombine.low %v16191_v17, %v16199_v18  ;;  %v16073_v17 = vld [vmem:[%s27197_s3 + $0x798] sm:$0xff] }
  0x16   :  { %1937 = vmatpush1.bf16.msra.mxu1 %v16344_v51  ;;  %v16407_v13 = vcombine.high %v16174_v6, %v16182_v7  ;;  %v16190_v15 = vld [vmem:[%s27197_s3 + $0xb40] sm:$0xff]  ;;  %v16406_v19 = vcombine.low %v16174_v6, %v16182_v7  ;;  %v16215_v26 = vld [vmem:[%s27197_s3 + $0xc08] sm:$0xff] }
  0x17   :  { %1896 = vmatpush1.bf16.msra.mxu0 %v16342_v50  ;;  %1938 = vmatprep.subr.bf16.mxu1 %v16361_v53  ;;  %v16198_v16 = vld [vmem:[%s27197_s3 + $0xb80] sm:$0xff]  ;;  %v16441_v30 = vcombine.high %v16207_v25, %v16215_v26  ;;  %v16223_v33 = vld [vmem:[%s27197_s3 + $0xc48] sm:$0xff]  ;;  %v16440_v36 = vcombine.low %v16207_v25, %v16215_v26 }
  0x18   :  { %1897 = vmatprep.subr.bf16.mxu0 %v16359_v52  ;;  %v16423_v21 = vcombine.high %v16190_v15, %v16198_v16  ;;  %v16206_v23 = vld [vmem:[%s27197_s3 + $0xbc0] sm:$0xff]  ;;  %v16422_v27 = vcombine.low %v16190_v15, %v16198_v16  ;;  %v16231_v34 = vld [vmem:[%s27197_s3 + $0xc88] sm:$0xff] }
  0x19   :  { %v16214_v24 = vld [vmem:[%s27197_s3 + $0xc00] sm:$0xff]  ;;  %v16457_v38 = vcombine.high %v16223_v33, %v16231_v34  ;;  %v16239_v41 = vld [vmem:[%s27197_s3 + $0xcc8] sm:$0xff]  ;;  %v16456_v44 = vcombine.low %v16223_v33, %v16231_v34  ;;  %v20549_v33 = vld [vmem:[%s27197_s3 + $0x818] sm:$0xff] }
  0x1a   :  { %1939 = vmatpush1.bf16.msra.mxu1 %v16360_v59  ;;  %v16439_v29 = vcombine.high %v16206_v23, %v16214_v24  ;;  %v16222_v31 = vld [vmem:[%s27197_s3 + $0xc40] sm:$0xff]  ;;  %v16438_v35 = vcombine.low %v16206_v23, %v16214_v24  ;;  %v16247_v42 = vld [vmem:[%s27197_s3 + $0xd08] sm:$0xff] }
  0x1b   :  { %1898 = vmatpush1.bf16.msra.mxu0 %v16358_v58  ;;  %1940 = vmatprep.subr.bf16.mxu1 %v16377_v61  ;;  %v16230_v32 = vld [vmem:[%s27197_s3 + $0xc80] sm:$0xff]  ;;  %v16473_v46 = vcombine.high %v16239_v41, %v16247_v42  ;;  %v16255_v49 = vld [vmem:[%s27197_s3 + $0xd48] sm:$0xff]  ;;  %v16472_v52 = vcombine.low %v16239_v41, %v16247_v42 }
  0x1c   :  { %1899 = vmatprep.subr.bf16.mxu0 %v16375_v60  ;;  %v16455_v37 = vcombine.high %v16222_v31, %v16230_v32  ;;  %v16238_v39 = vld [vmem:[%s27197_s3 + $0xcc0] sm:$0xff]  ;;  %v16454_v43 = vcombine.low %v16222_v31, %v16230_v32  ;;  %v16263_v50 = vld [vmem:[%s27197_s3 + $0xd88] sm:$0xff]  ;;  %v20544_v32 = vld [vmem:[%s27197_s3 + $0x7d8] sm:$0xff] }
  0x1d   :  { %v16246_v40 = vld [vmem:[%s27197_s3 + $0xd00] sm:$0xff]  ;;  %v16489_v54 = vcombine.high %v16255_v49, %v16263_v50  ;;  %v16488_v56 = vcombine.low %v16255_v49, %v16263_v50  ;;  %v16271_v59 = vld [vmem:[%s27197_s3 + $0xdc8] sm:$0xff]  ;;  %v16316_v41 = vcombine.low %v20544_v32, %v20549_v33  ;;  %v16317_v42 = vcombine.high %v20544_v32, %v20549_v33  ;;  %v16136_v33 = vld [vmem:[%s27197_s3 + $0x990] sm:$0xff] }
  0x1e   :  { %1941 = vmatpush1.bf16.msra.mxu1 %v16376_v3  ;;  %v16471_v45 = vcombine.high %v16238_v39, %v16246_v40  ;;  %v16254_v47 = vld [vmem:[%s27197_s3 + $0xd40] sm:$0xff]  ;;  %v16470_v51 = vcombine.low %v16238_v39, %v16246_v40  ;;  %v16279_v61 = vld [vmem:[%s27197_s3 + $0xe08] sm:$0xff] }
  0x1f   :  { %1900 = vmatpush1.bf16.msra.mxu0 %v16374_v2  ;;  %1942 = vmatprep.subr.bf16.mxu1 %v16393_v5  ;;  %v16262_v48 = vld [vmem:[%s27197_s3 + $0xd80] sm:$0xff]  ;;  %v16504_v0 = vcombine.low %v16271_v59, %v16279_v61  ;;  %v16505_v1 = vcombine.high %v16271_v59, %v16279_v61  ;;  %v16287_v3 = vld [vmem:[%s27197_s3 + $0xe48] sm:$0x11] }
  0x20   :  { %1901 = vmatprep.subr.bf16.mxu0 %v16391_v4  ;;  %v16487_v53 = vcombine.high %v16254_v47, %v16262_v48  ;;  %v16486_v55 = vcombine.low %v16254_v47, %v16262_v48  ;;  %v16270_v57 = vld [vmem:[%s27197_s3 + $0xdc0] sm:$0xff]  ;;  %v16521_v5 = vcombine.high %v16287_v3, %v16287_v3  ;;  %v16520_v7 = vcombine.low %v16287_v3, %v16287_v3  ;;  %v20583_v47 = vld [vmem:[%s27197_s3 + $0x858] sm:$0xff] }
  0x21   :  { %v16278_v58 = vld [vmem:[%s27197_s3 + $0xe00] sm:$0xff]  ;;  %v20588_v48 = vld [vmem:[%s27197_s3 + $0x898] sm:$0xff] }
  0x22   :  { %1943 = vmatpush1.bf16.msra.mxu1 %v16392_v12  ;;  %v16503_v60 = vcombine.high %v16270_v57, %v16278_v58  ;;  %v16502_v63 = vcombine.low %v16270_v57, %v16278_v58  ;;  %v16286_v2 = vld [vmem:[%s27197_s3 + $0xe40] sm:$0x11]  ;;  %v1851_v9 = vand.u32 %v16521_v5, %v20487_v62  ;;  %v20502_v12 = vld [vmem:[%s27197_s3 + $0x750] sm:$0xff] }
  0x23   :  { %1902 = vmatpush1.bf16.msra.mxu0 %v16390_v11  ;;  %1944 = vmatprep.subr.bf16.mxu1 %v16409_v14  ;;  %v16519_v4 = vcombine.high %v16286_v2, %v16286_v2  ;;  %v16518_v6 = vcombine.low %v16286_v2, %v16286_v2  ;;  %v1848_v11 = vand.u32 %v16520_v7, %v20487_v62  ;;  %v20512_v14 = vld [vmem:[%s27197_s3 + $0x758] sm:$0xff]  ;;  %v16120_v2 = vld [vmem:[%s27197_s3 + $0x910] sm:$0xff] }
  0x24   :  { %1903 = vmatprep.subr.bf16.mxu0 %v16407_v13  ;;  %v20507_v13 = vld [vmem:[%s27197_s3 + $0x790] sm:$0xff]  ;;  %v16300_v18 = vcombine.low %v20512_v14, %v16073_v17 }
  0x25   :  { %v1845_v8 = vand.u32 %v16519_v4, %v20487_v62  ;;  %v1842_v10 = vand.u32 %v16518_v6, %v20487_v62  ;;  %v16298_v15 = vcombine.low %v20502_v12, %v20507_v13  ;;  %v16299_v16 = vcombine.high %v20502_v12, %v20507_v13  ;;  %v16121_v12 = vld [vmem:[%s27197_s3 + $0x918] sm:$0xff] }
  0x26   :  { %1945 = vmatpush1.bf16.msra.mxu1 %v16408_v20 }
  0x27   :  { %1904 = vmatpush1.bf16.msra.mxu0 %v16406_v19  ;;  %1946 = vmatprep.subr.bf16.mxu1 %v16425_v22  ;;  %v16301_v19 = vcombine.high %v20512_v14, %v16073_v17 }
  0x28   :  { %1905 = vmatprep.subr.bf16.mxu0 %v16423_v21 }
  0x2a   :  { %1947 = vmatpush1.bf16.msra.mxu1 %v16424_v28 }
  0x2b   :  { %1906 = vmatpush1.bf16.msra.mxu0 %v16422_v27  ;;  %1948 = vmatprep.subr.bf16.mxu1 %v16441_v30  ;;  %v20538_v30 = vld [vmem:[%s27197_s3 + $0x810] sm:$0xff] }
  0x2c   :  { %1907 = vmatprep.subr.bf16.mxu0 %v16439_v29  ;;  %v20533_v29 = vld [vmem:[%s27197_s3 + $0x7d0] sm:$0xff] }
  0x2d   :  { %v16315_v40 = vcombine.high %v20533_v29, %v20538_v30 }
  0x2e   :  { %1949 = vmatpush1.bf16.msra.mxu1 %v16440_v36  ;;  %v20558_v36 = vld [vmem:[%s27197_s3 + $0x850] sm:$0xff] }
  0x2f   :  { %1908 = vmatpush1.bf16.msra.mxu0 %v16438_v35  ;;  %1950 = vmatprep.subr.bf16.mxu1 %v16457_v38  ;;  %v16314_v38 = vcombine.low %v20533_v29, %v20538_v30 }
  0x30   :  { %1909 = vmatprep.subr.bf16.mxu0 %v16455_v37  ;;  %v20563_v37 = vld [vmem:[%s27197_s3 + $0x890] sm:$0xff] }
  0x31   :  { %v16331_v59 = vcombine.high %v20558_v36, %v20563_v37 }
  0x32   :  { %1951 = vmatpush1.bf16.msra.mxu1 %v16456_v44 }
  0x33   :  { %1910 = vmatpush1.bf16.msra.mxu0 %v16454_v43  ;;  %1952 = vmatprep.subr.bf16.mxu1 %v16473_v46  ;;  %v16330_v46 = vcombine.low %v20558_v36, %v20563_v37  ;;  %v16152_v36 = vld [vmem:[%s27197_s3 + $0xa10] sm:$0xff]  ;;  %v16145_v37 = vld [vmem:[%s27197_s3 + $0x9d8] sm:$0xff] }
  0x34   :  { %1911 = vmatprep.subr.bf16.mxu0 %v16471_v45 }
  0x36   :  { %1953 = vmatpush1.bf16.msra.mxu1 %v16472_v52 }
  0x37   :  { %1912 = vmatpush1.bf16.msra.mxu0 %v16470_v51  ;;  %1954 = vmatprep.subr.bf16.mxu1 %v16489_v54 }
  0x38   :  { %1913 = vmatprep.subr.bf16.mxu0 %v16487_v53 }
  0x3a   :  { %1955 = vmatpush1.bf16.msra.mxu1 %v16488_v56 }
  0x3b   :  { %1914 = vmatpush1.bf16.msra.mxu0 %v16486_v55  ;;  %1956 = vmatprep.subr.bf16.mxu1 %v16505_v1  ;;  %v16112_v1 = vld [vmem:[%s27197_s3 + $0x8d0] sm:$0xff] }
  0x3c   :  { %1915 = vmatprep.subr.bf16.mxu0 %v16503_v60  ;;  %v16333_v60 = vcombine.high %v20583_v47, %v20588_v48  ;;  %v16347_v17 = vcombine.high %v16112_v1, %v16120_v2 }
  0x3e   :  { %1957 = vmatpush1.bf16.msra.mxu1 %v16504_v0 }
  0x3f   :  { %1916 = vmatpush1.bf16.msra.mxu0 %v16502_v63  ;;  %1958 = vmatprep.subr.bf16.mxu1 %v1851_v9 }
  0x40   :  { %1917 = vmatprep.subr.bf16.mxu0 %v1845_v8 }
  0x42   :  { %1959 = vmatpush1.bf16.msra.mxu1 %v1848_v11  ;;  %v16113_v11 = vld [vmem:[%s27197_s3 + $0x8d8] sm:$0xff] }
  0x43   :  { %1918 = vmatpush1.bf16.msra.mxu0 %v1842_v10  ;;  %2012 = vmatprep.subr.bf16.mxu1 %v16301_v19 }
  0x44   :  { %1971 = vmatprep.subr.bf16.mxu0 %v16299_v16  ;;  %v16332_v16 = vcombine.low %v20583_v47, %v20588_v48 }
  0x85   :  { %v36_v20 = vpop.permute.xlu0 %35 }
  0xdb   :  { %v108_v21 = vpop.f32.mrb[0].mxu0 }
  0xdc   :  { %v20523_v22 = vadd.f32 %v108_v21, %v36_v20  ;;  %v184_v23 = vpop.f32.mrb[0].mxu1  ;;  %v110_v24 = vpop.f32.mrb[1].mxu0 }
  0xdd   :  { %v186_v25 = vpop.f32.mrb[1].mxu1  ;;  %v20525_v26 = vadd.f32 %v110_v24, %v36_v20  ;;  %v20528_v28 = vadd.f32 %v184_v23, %v36_v20 }
  0xde   :  { %v434_v27 = vrot.slane %v20523_v22, 1  ;;  %v20551_v34 = vadd.f32 %v186_v25, %v36_v20  ;;  %v3756_v43 = vrot.slane %v20523_v22, 2  ;;  %v5556_v57 = vrot.slane %v20523_v22, 3 }
  0xdf   :  { %v435_v31 = vrot.slane %v20525_v26, 1  ;;  %v191_v44 = vrot.slane %v20528_v28, 7  ;;  %v3760_v49 = vrot.slane %v20528_v28, 1  ;;  %v3757_v50 = vrot.slane %v20525_v26, 2 }
  0xe0   :  { %v438_v35 = vsel %vm195_vm1, %v434_v27, %v20528_v28  ;;  %v192_v39 = vrot.slane %v20551_v34, 7  ;;  %v3761_v51 = vrot.slane %v20551_v34, 1  ;;  %v5557_v53 = vrot.slane %v20525_v26, 3 }
  0xe1   :  { %v439_v45 = vsel %vm195_vm1, %v435_v31, %v20551_v34  ;;  %v5561_v54 = vrot.slane %v20551_v34, 2  ;;  %v20597_v55 = vpack.c.bf16 %v438_v35, %v438_v35  ;;  %v7356_v58 = vrot.slane %v20523_v22, 4  ;;  %v16128_v31 = vld [vmem:[%s27197_s3 + $0x950] sm:$0xff] }
  0xe2   :  { %v20593_v52 = vpack.c.bf16 %v439_v45, %v439_v45  ;;  %v20601_v56 = vsel %vm195_vm1, %v20525_v26, %v192_v39  ;;  %v5560_v61 = vrot.slane %v20528_v28, 2  ;;  %v7357_v63 = vrot.slane %v20525_v26, 4  ;;  %v16153_v45 = vld [vmem:[%s27197_s3 + $0xa18] sm:$0xff] }
  0xe3   :  { %v7361_v0 = vrot.slane %v20551_v34, 3  ;;  %v20626_v3 = vsel %vm195_vm1, %v20523_v22, %v191_v44  ;;  %v9156_v4 = vrot.slane %v20523_v22, 5  ;;  %v7360_v5 = vrot.slane %v20528_v28, 3 }
  0xe4   :  { %16534 = vmatprep.mubr.msk.bf16.mxu0 %vm1835_vm2, %v20593_v52  ;;  %16535 = vmatprep.mubr.msk.bf16.mxu1 %vm1835_vm2, %v20593_v52  ;;  %v20631_v6 = vsel %vm195_vm1, %v3757_v50, %v3761_v51  ;;  %v20634_v7 = vsel %vm195_vm1, %v3756_v43, %v3760_v49  ;;  %v9160_v8 = vrot.slane %v20528_v28, 4  ;;  %v9157_v9 = vrot.slane %v20525_v26, 5  ;;  %v16144_v43 = vld [vmem:[%s27197_s3 + $0x9d0] sm:$0xff] }
  0xe5   :  { %1922 = vmatmul.mubr.bf16.vlgmr.msra.gmra.mrb[4].mxu0 %v20597_v55  ;;  %1963 = vmatmul.mubr.bf16.vlgmr.msra.gmra.mrb[4].mxu1 %v20597_v55  ;;  %v9161_v10 = vrot.slane %v20551_v34, 4  ;;  %v20650_v13 = vsel %vm195_vm1, %v5557_v53, %v5561_v54  ;;  %v10956_v14 = vrot.slane %v20523_v22, 6  ;;  %v10961_v19 = vrot.slane %v20551_v34, 5  ;;  %v16160_v50 = vld [vmem:[%s27197_s3 + $0xa50] sm:$0xff]  ;;  %v16161_v53 = vld [vmem:[%s27197_s3 + $0xa58] sm:$0xff] }
  0xe6   :  { %1972 = vmatpush1.bf16.msra.mxu0 %v16298_v15  ;;  %2013 = vmatpush1.bf16.msra.mxu1 %v16300_v18  ;;  %v10960_v15 = vrot.slane %v20528_v28, 5  ;;  %v10957_v18 = vrot.slane %v20525_v26, 6  ;;  %v20659_v20 = vsel %vm195_vm1, %v5556_v57, %v5560_v61  ;;  %v20662_v21 = vsel %vm195_vm1, %v7357_v63, %v7361_v0  ;;  %v16168_v51 = vld [vmem:[%s27197_s3 + $0xa90] sm:$0xff]  ;;  %v16169_v54 = vld [vmem:[%s27197_s3 + $0xa98] sm:$0xff] }
  0xe7   :  { %16536 = vmatprep.mubr.msk.bf16.mxu0 %vm1835_vm2, %v20593_v52  ;;  %16537 = vmatprep.mubr.msk.bf16.mxu1 %vm1835_vm2, %v20593_v52  ;;  %v12757_v23 = vrot.slane %v20525_v26, 7  ;;  %v12761_v24 = vrot.slane %v20551_v34, 6  ;;  %v16349_v25 = vcombine.high %v16113_v11, %v16121_v12  ;;  %v20667_v27 = vsel %vm195_vm1, %v7356_v58, %v7360_v5  ;;  %v16176_v61 = vld [vmem:[%s27197_s3 + $0xad0] sm:$0xff]  ;;  %v16177_v0 = vld [vmem:[%s27197_s3 + $0xad8] sm:$0xff] }
  0xe8   :  { %1973 = vmatprep.subr.bf16.mxu0 %v16315_v40  ;;  %2014 = vmatprep.subr.bf16.mxu1 %v16317_v42  ;;  %v12756_v29 = vrot.slane %v20523_v22, 7  ;;  %v12760_v30 = vrot.slane %v20528_v28, 6  ;;  %v20675_v26 = vsel %vm195_vm1, %v9157_v9, %v9161_v10  ;;  %v20678_v32 = vsel %vm195_vm1, %v9156_v4, %v9160_v8  ;;  %v16129_v22 = vld [vmem:[%s27197_s3 + $0x958] sm:$0xff]  ;;  %v16184_v63 = vld [vmem:[%s27197_s3 + $0xb10] sm:$0xff] }
  0xe9   :  { %v16137_v28 = vld [vmem:[%s27197_s3 + $0x998] sm:$0xff]  ;;  %v20690_v34 = vsel %vm195_vm1, %v10957_v18, %v10961_v19  ;;  %v20693_v35 = vsel %vm195_vm1, %v10956_v14, %v10960_v15  ;;  %v16348_v39 = vcombine.low %v16113_v11, %v16121_v12  ;;  %v20699_v40 = vsel %vm195_vm1, %v12757_v23, %v12761_v24  ;;  %v16192_v9 = vld [vmem:[%s27197_s3 + $0xb50] sm:$0xff] }
  0xea   :  { %1974 = vmatpush1.bf16.msra.mxu0 %v16314_v38  ;;  %2015 = vmatpush1.bf16.msra.mxu1 %v16316_v41  ;;  %v16346_v38 = vcombine.low %v16112_v1, %v16120_v2  ;;  %v16363_v41 = vcombine.high %v16128_v31, %v16136_v33  ;;  %v16365_v42 = vcombine.high %v16129_v22, %v16137_v28  ;;  %v16185_v1 = vld [vmem:[%s27197_s3 + $0xb18] sm:$0xff]  ;;  %v16200_v10 = vld [vmem:[%s27197_s3 + $0xb90] sm:$0xff] }
  0xeb   :  { %1975 = vmatprep.subr.bf16.mxu0 %v16331_v59  ;;  %2016 = vmatprep.subr.bf16.mxu1 %v16333_v60  ;;  %v20705_v44 = vsel %vm195_vm1, %v12756_v29, %v12760_v30  ;;  %v16364_v47 = vcombine.low %v16129_v22, %v16137_v28  ;;  %v16379_v48 = vcombine.high %v16144_v43, %v16152_v36  ;;  %v16193_v11 = vld [vmem:[%s27197_s3 + $0xb58] sm:$0xff]  ;;  %v16208_v18 = vld [vmem:[%s27197_s3 + $0xbd0] sm:$0xff] }
  0xec   :  { %v16381_v49 = vcombine.high %v16145_v37, %v16153_v45  ;;  %v16378_v57 = vcombine.low %v16144_v43, %v16152_v36  ;;  %v16380_v58 = vcombine.low %v16145_v37, %v16153_v45  ;;  %v16395_v59 = vcombine.high %v16160_v50, %v16168_v51  ;;  %v16201_v12 = vld [vmem:[%s27197_s3 + $0xb98] sm:$0xff]  ;;  %v16216_v19 = vld [vmem:[%s27197_s3 + $0xc10] sm:$0xff] }
  0xed   :  { %v16397_v60 = vcombine.high %v16161_v53, %v16169_v54  ;;  %v16394_v2 = vcombine.low %v16160_v50, %v16168_v51  ;;  %v16396_v4 = vcombine.low %v16161_v53, %v16169_v54  ;;  %v16411_v5 = vcombine.high %v16176_v61, %v16184_v63  ;;  %v16209_v23 = vld [vmem:[%s27197_s3 + $0xbd8] sm:$0xff]  ;;  %v16232_v22 = vld [vmem:[%s27197_s3 + $0xc90] sm:$0xff] }
  0xee   :  { %1976 = vmatpush1.bf16.msra.mxu0 %v16330_v46  ;;  %2017 = vmatpush1.bf16.msra.mxu1 %v16332_v16  ;;  %v16362_v46 = vcombine.low %v16128_v31, %v16136_v33  ;;  %v16413_v8 = vcombine.high %v16177_v0, %v16185_v1  ;;  %v16410_v14 = vcombine.low %v16176_v61, %v16184_v63  ;;  %v16217_v24 = vld [vmem:[%s27197_s3 + $0xc18] sm:$0xff]  ;;  %v16224_v33 = vld [vmem:[%s27197_s3 + $0xc50] sm:$0xff] }
  0xef   :  { %1977 = vmatprep.subr.bf16.mxu0 %v16347_v17  ;;  %2018 = vmatprep.subr.bf16.mxu1 %v16349_v25  ;;  %v16412_v15 = vcombine.low %v16177_v0, %v16185_v1  ;;  %v16427_v16 = vcombine.high %v16192_v9, %v16200_v10  ;;  %v16429_v17 = vcombine.high %v16193_v11, %v16201_v12  ;;  %v16225_v28 = vld [vmem:[%s27197_s3 + $0xc58] sm:$0xff]  ;;  %v16240_v36 = vld [vmem:[%s27197_s3 + $0xcd0] sm:$0xff] }
  0xf0   :  { %v16426_v25 = vcombine.low %v16192_v9, %v16200_v10  ;;  %v16428_v29 = vcombine.low %v16193_v11, %v16201_v12  ;;  %v16443_v30 = vcombine.high %v16208_v18, %v16216_v19  ;;  %v16445_v31 = vcombine.high %v16209_v23, %v16217_v24  ;;  %v16248_v37 = vld [vmem:[%s27197_s3 + $0xd10] sm:$0xff]  ;;  %v16241_v45 = vld [vmem:[%s27197_s3 + $0xcd8] sm:$0xff] }
  0xf1   :  { %v16256_v51 = vld [vmem:[%s27197_s3 + $0xd50] sm:$0xff]  ;;  %v16257_v54 = vld [vmem:[%s27197_s3 + $0xd58] sm:$0xff] }
  0xf2   :  { %1978 = vmatpush1.bf16.msra.mxu0 %v16346_v38  ;;  %2019 = vmatpush1.bf16.msra.mxu1 %v16348_v39  ;;  %v16233_v38 = vld [vmem:[%s27197_s3 + $0xc98] sm:$0xff]  ;;  %v16442_v39 = vcombine.low %v16208_v18, %v16216_v19  ;;  %v16264_v53 = vld [vmem:[%s27197_s3 + $0xd90] sm:$0xff] }
  0xf3   :  { %1979 = vmatprep.subr.bf16.mxu0 %v16363_v41  ;;  %2020 = vmatprep.subr.bf16.mxu1 %v16365_v42  ;;  %v16444_v41 = vcombine.low %v16209_v23, %v16217_v24  ;;  %v16459_v42 = vcombine.high %v16224_v33, %v16232_v22  ;;  %v16461_v43 = vcombine.high %v16225_v28, %v16233_v38  ;;  %v16272_v63 = vld [vmem:[%s27197_s3 + $0xdd0] sm:$0xff]  ;;  %v16273_v1 = vld [vmem:[%s27197_s3 + $0xdd8] sm:$0xff]  ;;  %v16066_v24 = vld [vmem:[%s27197_s3 + $0x760] sm:$0xff] }
  0xf4   :  { %v16280_v0 = vld [vmem:[%s27197_s3 + $0xe10] sm:$0xff] }
  0xf5   :  { %v16507_v10 = vcombine.high %v16272_v63, %v16280_v0 }
  0xf6   :  { %1980 = vmatpush1.bf16.msra.mxu0 %v16362_v46  ;;  %2021 = vmatpush1.bf16.msra.mxu1 %v16364_v47  ;;  %v16249_v46 = vld [vmem:[%s27197_s3 + $0xd18] sm:$0xff]  ;;  %v16458_v47 = vcombine.low %v16224_v33, %v16232_v22 }
  0xf7   :  { %1981 = vmatprep.subr.bf16.mxu0 %v16379_v48  ;;  %2022 = vmatprep.subr.bf16.mxu1 %v16381_v49  ;;  %v16460_v48 = vcombine.low %v16225_v28, %v16233_v38  ;;  %v16475_v49 = vcombine.high %v16240_v36, %v16248_v37  ;;  %v16477_v50 = vcombine.high %v16241_v45, %v16249_v46  ;;  %v16082_v38 = vld [vmem:[%s27197_s3 + $0x7e0] sm:$0xff] }
  0xfa   :  { %1982 = vmatpush1.bf16.msra.mxu0 %v16378_v57  ;;  %2023 = vmatpush1.bf16.msra.mxu1 %v16380_v58  ;;  %v16265_v57 = vld [vmem:[%s27197_s3 + $0xd98] sm:$0xff]  ;;  %v16474_v58 = vcombine.low %v16240_v36, %v16248_v37 }
  0xfb   :  { %1983 = vmatprep.subr.bf16.mxu0 %v16395_v59  ;;  %2024 = vmatprep.subr.bf16.mxu1 %v16397_v60  ;;  %v16476_v59 = vcombine.low %v16241_v45, %v16249_v46  ;;  %v16491_v60 = vcombine.high %v16256_v51, %v16264_v53  ;;  %v16493_v61 = vcombine.high %v16257_v54, %v16265_v57  ;;  %v16098_v46 = vld [vmem:[%s27197_s3 + $0x860] sm:$0xff] }
  0xfc   :  { %v16492_v9 = vcombine.low %v16257_v54, %v16265_v57  ;;  %v16114_v57 = vld [vmem:[%s27197_s3 + $0x8e0] sm:$0xff] }
  0xfe   :  { %1984 = vmatpush1.bf16.msra.mxu0 %v16394_v2  ;;  %2025 = vmatpush1.bf16.msra.mxu1 %v16396_v4  ;;  %v16281_v2 = vld [vmem:[%s27197_s3 + $0xe18] sm:$0xff]  ;;  %v16288_v4 = vld [vmem:[%s27197_s3 + $0xe50] sm:$0x11] }
  0xff   :  { %1985 = vmatprep.subr.bf16.mxu0 %v16411_v5  ;;  %2026 = vmatprep.subr.bf16.mxu1 %v16413_v8  ;;  %v16289_v5 = vld [vmem:[%s27197_s3 + $0xe58] sm:$0x11]  ;;  %v16490_v8 = vcombine.low %v16256_v51, %v16264_v53  ;;  %v16509_v11 = vcombine.high %v16273_v1, %v16281_v2  ;;  %v16523_v12 = vcombine.high %v16288_v4, %v16288_v4 }
 0x100   :  { %v16524_v18 = vcombine.low %v16289_v5, %v16289_v5 }
 0x101   :  { %v1857_v19 = vand.u32 %v16523_v12, %v20487_v62 }
 0x102   :  { %1986 = vmatpush1.bf16.msra.mxu0 %v16410_v14  ;;  %2027 = vmatpush1.bf16.msra.mxu1 %v16412_v15  ;;  %v16525_v14 = vcombine.high %v16289_v5, %v16289_v5  ;;  %v16506_v15 = vcombine.low %v16272_v63, %v16280_v0  ;;  %v1860_v33 = vand.u32 %v16524_v18, %v20487_v62  ;;  %v16131_v5 = vld [vmem:[%s27197_s3 + $0x968] sm:$0xff] }
 0x103   :  { %1987 = vmatprep.subr.bf16.mxu0 %v16427_v16  ;;  %2028 = vmatprep.subr.bf16.mxu1 %v16429_v17  ;;  %v16508_v16 = vcombine.low %v16273_v1, %v16281_v2  ;;  %v16522_v17 = vcombine.low %v16288_v4, %v16288_v4  ;;  %v16130_v2 = vld [vmem:[%s27197_s3 + $0x960] sm:$0xff] }
 0x104   :  { %v1863_v23 = vand.u32 %v16525_v14, %v20487_v62  ;;  %v16138_v4 = vld [vmem:[%s27197_s3 + $0x9a0] sm:$0xff] }
 0x105   :  { %v16146_v14 = vld [vmem:[%s27197_s3 + $0x9e0] sm:$0xff]  ;;  %v16366_v18 = vcombine.low %v16130_v2, %v16138_v4 }
 0x106   :  { %1988 = vmatpush1.bf16.msra.mxu0 %v16426_v25  ;;  %2029 = vmatpush1.bf16.msra.mxu1 %v16428_v29  ;;  %v16074_v25 = vld [vmem:[%s27197_s3 + $0x7a0] sm:$0xff]  ;;  %v16067_v29 = vld [vmem:[%s27197_s3 + $0x768] sm:$0xff] }
 0x107   :  { %1989 = vmatprep.subr.bf16.mxu0 %v16443_v30  ;;  %2030 = vmatprep.subr.bf16.mxu1 %v16445_v31  ;;  %v16075_v30 = vld [vmem:[%s27197_s3 + $0x7a8] sm:$0xff]  ;;  %v1854_v31 = vand.u32 %v16522_v17, %v20487_v62  ;;  %v16303_v22 = vcombine.high %v16066_v24, %v16074_v25 }
 0x108   :  { %v16305_v28 = vcombine.high %v16067_v29, %v16075_v30  ;;  %v16304_v36 = vcombine.low %v16067_v29, %v16075_v30  ;;  %v16155_v17 = vld [vmem:[%s27197_s3 + $0xa28] sm:$0xff]  ;;  %v16170_v29 = vld [vmem:[%s27197_s3 + $0xaa0] sm:$0xff] }
 0x109   :  { %v16163_v30 = vld [vmem:[%s27197_s3 + $0xa68] sm:$0xff] }
 0x10a   :  { %1990 = vmatpush1.bf16.msra.mxu0 %v16442_v39  ;;  %2031 = vmatpush1.bf16.msra.mxu1 %v16444_v41  ;;  %v16090_v39 = vld [vmem:[%s27197_s3 + $0x820] sm:$0xff]  ;;  %v16083_v41 = vld [vmem:[%s27197_s3 + $0x7e8] sm:$0xff] }
 0x10b   :  { %1991 = vmatprep.subr.bf16.mxu0 %v16459_v42  ;;  %2032 = vmatprep.subr.bf16.mxu1 %v16461_v43  ;;  %v16091_v42 = vld [vmem:[%s27197_s3 + $0x828] sm:$0xff]  ;;  %v16302_v43 = vcombine.low %v16066_v24, %v16074_v25  ;;  %v16319_v37 = vcombine.high %v16082_v38, %v16090_v39  ;;  %v16162_v25 = vld [vmem:[%s27197_s3 + $0xa60] sm:$0xff] }
 0x10c   :  { %v16321_v45 = vcombine.high %v16083_v41, %v16091_v42  ;;  %v16320_v51 = vcombine.low %v16083_v41, %v16091_v42  ;;  %v16186_v41 = vld [vmem:[%s27197_s3 + $0xb20] sm:$0xff]  ;;  %v16179_v42 = vld [vmem:[%s27197_s3 + $0xae8] sm:$0xff] }
 0x10e   :  { %1992 = vmatpush1.bf16.msra.mxu0 %v16458_v47  ;;  %2033 = vmatpush1.bf16.msra.mxu1 %v16460_v48  ;;  %v16106_v47 = vld [vmem:[%s27197_s3 + $0x8a0] sm:$0xff]  ;;  %v16099_v48 = vld [vmem:[%s27197_s3 + $0x868] sm:$0xff] }
 0x10f   :  { %1993 = vmatprep.subr.bf16.mxu0 %v16475_v49  ;;  %2034 = vmatprep.subr.bf16.mxu1 %v16477_v50  ;;  %v16107_v49 = vld [vmem:[%s27197_s3 + $0x8a8] sm:$0xff]  ;;  %v16318_v50 = vcombine.low %v16082_v38, %v16090_v39  ;;  %v16335_v53 = vcombine.high %v16098_v46, %v16106_v47  ;;  %v16178_v39 = vld [vmem:[%s27197_s3 + $0xae0] sm:$0xff] }
 0x110   :  { %v16337_v54 = vcombine.high %v16099_v48, %v16107_v49  ;;  %v16336_v63 = vcombine.low %v16099_v48, %v16107_v49  ;;  %v16202_v48 = vld [vmem:[%s27197_s3 + $0xba0] sm:$0xff]  ;;  %v16195_v49 = vld [vmem:[%s27197_s3 + $0xb68] sm:$0xff] }
 0x112   :  { %1994 = vmatpush1.bf16.msra.mxu0 %v16474_v58  ;;  %2035 = vmatpush1.bf16.msra.mxu1 %v16476_v59  ;;  %v16122_v58 = vld [vmem:[%s27197_s3 + $0x920] sm:$0xff]  ;;  %v16115_v59 = vld [vmem:[%s27197_s3 + $0x8e8] sm:$0xff] }
 0x113   :  { %1995 = vmatprep.subr.bf16.mxu0 %v16491_v60  ;;  %2036 = vmatprep.subr.bf16.mxu1 %v16493_v61  ;;  %v16123_v60 = vld [vmem:[%s27197_s3 + $0x928] sm:$0xff]  ;;  %v16334_v61 = vcombine.low %v16098_v46, %v16106_v47  ;;  %v16351_v0 = vcombine.high %v16114_v57, %v16122_v58  ;;  %v16194_v47 = vld [vmem:[%s27197_s3 + $0xb60] sm:$0xff] }
 0x114   :  { %v16353_v1 = vcombine.high %v16115_v59, %v16123_v60 }
 0x116   :  { %1996 = vmatpush1.bf16.msra.mxu0 %v16490_v8  ;;  %2037 = vmatpush1.bf16.msra.mxu1 %v16492_v9  ;;  %v16139_v8 = vld [vmem:[%s27197_s3 + $0x9a8] sm:$0xff]  ;;  %v16350_v9 = vcombine.low %v16114_v57, %v16122_v58  ;;  %v16210_v58 = vld [vmem:[%s27197_s3 + $0xbe0] sm:$0xff] }
 0x117   :  { %1997 = vmatprep.subr.bf16.mxu0 %v16507_v10  ;;  %2038 = vmatprep.subr.bf16.mxu1 %v16509_v11  ;;  %v16352_v10 = vcombine.low %v16115_v59, %v16123_v60  ;;  %v16367_v11 = vcombine.high %v16130_v2, %v16138_v4  ;;  %v16369_v12 = vcombine.high %v16131_v5, %v16139_v8  ;;  %v16218_v59 = vld [vmem:[%s27197_s3 + $0xc20] sm:$0xff]  ;;  %v16211_v60 = vld [vmem:[%s27197_s3 + $0xbe8] sm:$0xff] }
 0x118   :  { %v16226_v4 = vld [vmem:[%s27197_s3 + $0xc60] sm:$0xff] }
 0x11a   :  { %1998 = vmatpush1.bf16.msra.mxu0 %v16506_v15  ;;  %2039 = vmatpush1.bf16.msra.mxu1 %v16508_v16  ;;  %v16154_v15 = vld [vmem:[%s27197_s3 + $0xa20] sm:$0xff]  ;;  %v16147_v16 = vld [vmem:[%s27197_s3 + $0x9e8] sm:$0xff] }
 0x11b   :  { %1999 = vmatprep.subr.bf16.mxu0 %v1857_v19  ;;  %2040 = vmatprep.subr.bf16.mxu1 %v1863_v23  ;;  %v16368_v19 = vcombine.low %v16131_v5, %v16139_v8  ;;  %v16383_v23 = vcombine.high %v16146_v14, %v16154_v15  ;;  %v16385_v24 = vcombine.high %v16147_v16, %v16155_v17  ;;  %v16234_v5 = vld [vmem:[%s27197_s3 + $0xca0] sm:$0xff]  ;;  %v16227_v8 = vld [vmem:[%s27197_s3 + $0xc68] sm:$0xff] }
 0x11e   :  { %2000 = vmatpush1.bf16.msra.mxu0 %v1854_v31  ;;  %2041 = vmatpush1.bf16.msra.mxu1 %v1860_v33  ;;  %v16171_v31 = vld [vmem:[%s27197_s3 + $0xaa8] sm:$0xff]  ;;  %v16382_v33 = vcombine.low %v16146_v14, %v16154_v15  ;;  %v16242_v15 = vld [vmem:[%s27197_s3 + $0xce0] sm:$0xff] }
 0x11f   :  { %2053 = vmatprep.subr.bf16.mxu0 %v16303_v22  ;;  %2094 = vmatprep.subr.bf16.mxu1 %v16305_v28  ;;  %v16384_v22 = vcombine.low %v16147_v16, %v16155_v17  ;;  %v16399_v28 = vcombine.high %v16162_v25, %v16170_v29  ;;  %v16401_v38 = vcombine.high %v16163_v30, %v16171_v31  ;;  %v16250_v16 = vld [vmem:[%s27197_s3 + $0xd20] sm:$0xff]  ;;  %v16243_v17 = vld [vmem:[%s27197_s3 + $0xce8] sm:$0xff] }
 0x121   :  { %2004 = vmatmul.mubr.bf16.vlgmr.msra.gmra.mrb[8].mxu0 %v20597_v55  ;;  %2045 = vmatmul.mubr.bf16.vlgmr.msra.gmra.mrb[8].mxu1 %v20597_v55 }
 0x122   :  { %2054 = vmatpush1.bf16.msra.mxu0 %v16302_v43  ;;  %16538 = vmatprep.mubr.msk.bf16.mxu0 %vm1835_vm2, %v20593_v52  ;;  %v16187_v43 = vld [vmem:[%s27197_s3 + $0xb28] sm:$0xff] }
 0x123   :  { %2095 = vmatpush1.bf16.msra.mxu1 %v16304_v36  ;;  %16539 = vmatprep.mubr.msk.bf16.mxu1 %vm1835_vm2, %v20593_v52  ;;  %v16398_v36 = vcombine.low %v16162_v25, %v16170_v29  ;;  %v16417_v46 = vcombine.high %v16179_v42, %v16187_v43  ;;  %v16258_v29 = vld [vmem:[%s27197_s3 + $0xd60] sm:$0xff] }
 0x124   :  { %2055 = vmatprep.subr.bf16.mxu0 %v16319_v37  ;;  %2096 = vmatprep.subr.bf16.mxu1 %v16321_v45  ;;  %v16400_v37 = vcombine.low %v16163_v30, %v16171_v31  ;;  %v16415_v45 = vcombine.high %v16178_v39, %v16186_v41  ;;  %v16266_v30 = vld [vmem:[%s27197_s3 + $0xda0] sm:$0xff]  ;;  %v16259_v31 = vld [vmem:[%s27197_s3 + $0xd68] sm:$0xff] }
 0x126   :  { %2056 = vmatpush1.bf16.msra.mxu0 %v16318_v50  ;;  %v16203_v50 = vld [vmem:[%s27197_s3 + $0xba8] sm:$0xff] }
 0x127   :  { %2097 = vmatpush1.bf16.msra.mxu1 %v16320_v51  ;;  %2057 = vmatprep.subr.bf16.mxu0 %v16335_v53  ;;  %v16414_v51 = vcombine.low %v16178_v39, %v16186_v41  ;;  %v16416_v53 = vcombine.low %v16179_v42, %v16187_v43  ;;  %v16433_v57 = vcombine.high %v16195_v49, %v16203_v50  ;;  %v16274_v41 = vld [vmem:[%s27197_s3 + $0xde0] sm:$0xff] }
 0x128   :  { %2098 = vmatprep.subr.bf16.mxu1 %v16337_v54  ;;  %v16431_v54 = vcombine.high %v16194_v47, %v16202_v48  ;;  %v16282_v42 = vld [vmem:[%s27197_s3 + $0xe20] sm:$0xff] }
 0x129   :  { %v16290_v43 = vld [vmem:[%s27197_s3 + $0xe60] sm:$0x11] }
 0x12a   :  { %2058 = vmatpush1.bf16.msra.mxu0 %v16334_v61  ;;  %v16219_v61 = vld [vmem:[%s27197_s3 + $0xc28] sm:$0xff] }
 0x12b   :  { %2099 = vmatpush1.bf16.msra.mxu1 %v16336_v63  ;;  %2059 = vmatprep.subr.bf16.mxu0 %v16351_v0  ;;  %v16430_v63 = vcombine.low %v16194_v47, %v16202_v48  ;;  %v16432_v0 = vcombine.low %v16195_v49, %v16203_v50  ;;  %v16449_v2 = vcombine.high %v16211_v60, %v16219_v61 }
 0x12c   :  { %2100 = vmatprep.subr.bf16.mxu1 %v16353_v1  ;;  %v16447_v1 = vcombine.high %v16210_v58, %v16218_v59  ;;  %v16511_v48 = vcombine.high %v16274_v41, %v16282_v42  ;;  %v16527_v49 = vcombine.high %v16290_v43, %v16290_v43 }
 0x12e   :  { %2060 = vmatpush1.bf16.msra.mxu0 %v16350_v9  ;;  %v16235_v9 = vld [vmem:[%s27197_s3 + $0xca8] sm:$0xff] }
 0x12f   :  { %2101 = vmatpush1.bf16.msra.mxu1 %v16352_v10  ;;  %2061 = vmatprep.subr.bf16.mxu0 %v16367_v11  ;;  %v16446_v10 = vcombine.low %v16210_v58, %v16218_v59  ;;  %v16448_v11 = vcombine.low %v16211_v60, %v16219_v61  ;;  %v16465_v14 = vcombine.high %v16227_v8, %v16235_v9  ;;  %v16068_v61 = vld [vmem:[%s27197_s3 + $0x770] sm:$0xff] }
 0x130   :  { %2102 = vmatprep.subr.bf16.mxu1 %v16369_v12  ;;  %v16463_v12 = vcombine.high %v16226_v4, %v16234_v5  ;;  %v1869_v58 = vand.u32 %v16527_v49, %v20487_v62 }
 0x132   :  { %2062 = vmatpush1.bf16.msra.mxu0 %v16366_v18  ;;  %v16251_v18 = vld [vmem:[%s27197_s3 + $0xd28] sm:$0xff] }
 0x133   :  { %2103 = vmatpush1.bf16.msra.mxu1 %v16368_v19  ;;  %2063 = vmatprep.subr.bf16.mxu0 %v16383_v23  ;;  %v16462_v19 = vcombine.low %v16226_v4, %v16234_v5  ;;  %v16464_v23 = vcombine.low %v16227_v8, %v16235_v9  ;;  %v16481_v25 = vcombine.high %v16243_v17, %v16251_v18  ;;  %v16084_v9 = vld [vmem:[%s27197_s3 + $0x7f0] sm:$0xff] }
 0x134   :  { %2104 = vmatprep.subr.bf16.mxu1 %v16385_v24  ;;  %v16479_v24 = vcombine.high %v16242_v15, %v16250_v16 }
 0x136   :  { %2064 = vmatpush1.bf16.msra.mxu0 %v16382_v33  ;;  %v16267_v33 = vld [vmem:[%s27197_s3 + $0xda8] sm:$0xff] }
 0x137   :  { %2105 = vmatpush1.bf16.msra.mxu1 %v16384_v22  ;;  %2065 = vmatprep.subr.bf16.mxu0 %v16399_v28  ;;  %v16478_v22 = vcombine.low %v16242_v15, %v16250_v16  ;;  %v16480_v28 = vcombine.low %v16243_v17, %v16251_v18  ;;  %v16497_v39 = vcombine.high %v16259_v31, %v16267_v33  ;;  %v16100_v17 = vld [vmem:[%s27197_s3 + $0x870] sm:$0xff] }
 0x138   :  { %2106 = vmatprep.subr.bf16.mxu1 %v16401_v38  ;;  %v16495_v38 = vcombine.high %v16258_v29, %v16266_v30  ;;  %v16496_v47 = vcombine.low %v16259_v31, %v16267_v33  ;;  %v16108_v18 = vld [vmem:[%s27197_s3 + $0x8b0] sm:$0xff] }
 0x139   :  { %v16116_v33 = vld [vmem:[%s27197_s3 + $0x8f0] sm:$0xff] }
 0x13a   :  { %2066 = vmatpush1.bf16.msra.mxu0 %v16398_v36  ;;  %v16275_v36 = vld [vmem:[%s27197_s3 + $0xde8] sm:$0xff] }
 0x13b   :  { %2107 = vmatpush1.bf16.msra.mxu1 %v16400_v37  ;;  %2067 = vmatprep.subr.bf16.mxu0 %v16415_v45  ;;  %v16283_v37 = vld [vmem:[%s27197_s3 + $0xe28] sm:$0xff] }
 0x13c   :  { %2108 = vmatprep.subr.bf16.mxu1 %v16417_v46  ;;  %v16291_v45 = vld [vmem:[%s27197_s3 + $0xe68] sm:$0x11]  ;;  %v16494_v46 = vcombine.low %v16258_v29, %v16266_v30  ;;  %v16513_v50 = vcombine.high %v16275_v36, %v16283_v37  ;;  %v16339_v30 = vcombine.high %v16100_v17, %v16108_v18 }
 0x13d   :  { %v16528_v59 = vcombine.low %v16291_v45, %v16291_v45 }
 0x13e   :  { %2068 = vmatpush1.bf16.msra.mxu0 %v16414_v51  ;;  %v16529_v51 = vcombine.high %v16291_v45, %v16291_v45  ;;  %v16141_v45 = vld [vmem:[%s27197_s3 + $0x9b8] sm:$0xff] }
 0x13f   :  { %2109 = vmatpush1.bf16.msra.mxu1 %v16416_v53  ;;  %2069 = vmatprep.subr.bf16.mxu0 %v16431_v54  ;;  %v16510_v53 = vcombine.low %v16274_v41, %v16282_v42  ;;  %v16526_v54 = vcombine.low %v16290_v43, %v16290_v43  ;;  %v1872_v4 = vand.u32 %v16528_v59, %v20487_v62  ;;  %v16132_v43 = vld [vmem:[%s27197_s3 + $0x970] sm:$0xff] }
 0x140   :  { %2110 = vmatprep.subr.bf16.mxu1 %v16433_v57  ;;  %v16512_v57 = vcombine.low %v16275_v36, %v16283_v37  ;;  %v1875_v60 = vand.u32 %v16529_v51, %v20487_v62  ;;  %v16140_v36 = vld [vmem:[%s27197_s3 + $0x9b0] sm:$0xff]  ;;  %v16133_v37 = vld [vmem:[%s27197_s3 + $0x978] sm:$0xff] }
 0x141   :  { %v16373_v49 = vcombine.high %v16133_v37, %v16141_v45  ;;  %v16156_v51 = vld [vmem:[%s27197_s3 + $0xa30] sm:$0xff] }
 0x142   :  { %2070 = vmatpush1.bf16.msra.mxu0 %v16430_v63  ;;  %v16076_v63 = vld [vmem:[%s27197_s3 + $0x7b0] sm:$0xff] }
 0x143   :  { %2111 = vmatpush1.bf16.msra.mxu1 %v16432_v0  ;;  %2071 = vmatprep.subr.bf16.mxu0 %v16447_v1  ;;  %v16069_v0 = vld [vmem:[%s27197_s3 + $0x778] sm:$0xff]  ;;  %v16307_v5 = vcombine.high %v16068_v61, %v16076_v63 }
 0x144   :  { %2112 = vmatprep.subr.bf16.mxu1 %v16449_v2  ;;  %v16077_v1 = vld [vmem:[%s27197_s3 + $0x7b8] sm:$0xff]  ;;  %v1866_v2 = vand.u32 %v16526_v54, %v20487_v62 }
 0x145   :  { %v16309_v8 = vcombine.high %v16069_v0, %v16077_v1  ;;  %v16308_v15 = vcombine.low %v16069_v0, %v16077_v1  ;;  %v16157_v54 = vld [vmem:[%s27197_s3 + $0xa38] sm:$0xff] }
 0x146   :  { %2072 = vmatpush1.bf16.msra.mxu0 %v16446_v10  ;;  %v16092_v10 = vld [vmem:[%s27197_s3 + $0x830] sm:$0xff]  ;;  %v16165_v0 = vld [vmem:[%s27197_s3 + $0xa78] sm:$0xff] }
 0x147   :  { %2113 = vmatpush1.bf16.msra.mxu1 %v16448_v11  ;;  %2073 = vmatprep.subr.bf16.mxu0 %v16463_v12  ;;  %v16306_v11 = vcombine.low %v16068_v61, %v16076_v63  ;;  %v16085_v12 = vld [vmem:[%s27197_s3 + $0x7f8] sm:$0xff]  ;;  %v16323_v16 = vcombine.high %v16084_v9, %v16092_v10  ;;  %v16164_v61 = vld [vmem:[%s27197_s3 + $0xa70] sm:$0xff] }
 0x148   :  { %2114 = vmatprep.subr.bf16.mxu1 %v16465_v14  ;;  %v16093_v14 = vld [vmem:[%s27197_s3 + $0x838] sm:$0xff]  ;;  %v16172_v63 = vld [vmem:[%s27197_s3 + $0xab0] sm:$0xff] }
 0x149   :  { %v16324_v29 = vcombine.low %v16085_v12, %v16093_v14  ;;  %v16173_v1 = vld [vmem:[%s27197_s3 + $0xab8] sm:$0xff] }
 0x14a   :  { %2074 = vmatpush1.bf16.msra.mxu0 %v16462_v19  ;;  %v16325_v19 = vcombine.high %v16085_v12, %v16093_v14  ;;  %v16189_v12 = vld [vmem:[%s27197_s3 + $0xb38] sm:$0xff]  ;;  %v16402_v14 = vcombine.low %v16164_v61, %v16172_v63 }
 0x14b   :  { %2115 = vmatpush1.bf16.msra.mxu1 %v16464_v23  ;;  %2075 = vmatprep.subr.bf16.mxu0 %v16479_v24  ;;  %v16101_v23 = vld [vmem:[%s27197_s3 + $0x878] sm:$0xff] }
 0x14c   :  { %2116 = vmatprep.subr.bf16.mxu1 %v16481_v25  ;;  %v16109_v24 = vld [vmem:[%s27197_s3 + $0x8b8] sm:$0xff]  ;;  %v16322_v25 = vcombine.low %v16084_v9, %v16092_v10  ;;  %v16180_v9 = vld [vmem:[%s27197_s3 + $0xaf0] sm:$0xff] }
 0x14d   :  { %v16341_v31 = vcombine.high %v16101_v23, %v16109_v24  ;;  %v16188_v10 = vld [vmem:[%s27197_s3 + $0xb30] sm:$0xff] }
 0x14e   :  { %2076 = vmatpush1.bf16.msra.mxu0 %v16478_v22  ;;  %v16124_v22 = vld [vmem:[%s27197_s3 + $0x930] sm:$0xff] }
 0x14f   :  { %2117 = vmatpush1.bf16.msra.mxu1 %v16480_v28  ;;  %2077 = vmatprep.subr.bf16.mxu0 %v16495_v38  ;;  %v16117_v28 = vld [vmem:[%s27197_s3 + $0x8f8] sm:$0xff]  ;;  %v16355_v41 = vcombine.high %v16116_v33, %v16124_v22 }
 0x150   :  { %2118 = vmatprep.subr.bf16.mxu1 %v16497_v39  ;;  %v16125_v38 = vld [vmem:[%s27197_s3 + $0x938] sm:$0xff]  ;;  %v16340_v39 = vcombine.low %v16101_v23, %v16109_v24 }
 0x151   :  { %v16357_v42 = vcombine.high %v16117_v28, %v16125_v38  ;;  %v16197_v23 = vld [vmem:[%s27197_s3 + $0xb78] sm:$0xff] }
 0x152   :  { %2078 = vmatpush1.bf16.msra.mxu0 %v16494_v46  ;;  %v16354_v46 = vcombine.low %v16116_v33, %v16124_v22  ;;  %v16205_v24 = vld [vmem:[%s27197_s3 + $0xbb8] sm:$0xff]  ;;  %v16212_v33 = vld [vmem:[%s27197_s3 + $0xbf0] sm:$0xff] }
 0x153   :  { %2119 = vmatpush1.bf16.msra.mxu1 %v16496_v47  ;;  %2079 = vmatprep.subr.bf16.mxu0 %v16511_v48  ;;  %v16356_v47 = vcombine.low %v16117_v28, %v16125_v38  ;;  %v16371_v48 = vcombine.high %v16132_v43, %v16140_v36  ;;  %v16220_v22 = vld [vmem:[%s27197_s3 + $0xc30] sm:$0xff]  ;;  %v16213_v28 = vld [vmem:[%s27197_s3 + $0xbf8] sm:$0xff] }
 0x154   :  { %2120 = vmatprep.subr.bf16.mxu1 %v16513_v50  ;;  %v16148_v50 = vld [vmem:[%s27197_s3 + $0x9f0] sm:$0xff]  ;;  %v16221_v38 = vld [vmem:[%s27197_s3 + $0xc38] sm:$0xff] }
 0x155   :  { %v16387_v59 = vcombine.high %v16148_v50, %v16156_v51 }
 0x156   :  { %2080 = vmatpush1.bf16.msra.mxu0 %v16510_v53  ;;  %v16149_v53 = vld [vmem:[%s27197_s3 + $0x9f8] sm:$0xff] }
 0x157   :  { %2121 = vmatpush1.bf16.msra.mxu1 %v16512_v57  ;;  %2081 = vmatprep.subr.bf16.mxu0 %v1869_v58  ;;  %v16370_v57 = vcombine.low %v16132_v43, %v16140_v36  ;;  %v16372_v58 = vcombine.low %v16133_v37, %v16141_v45  ;;  %v16228_v43 = vld [vmem:[%s27197_s3 + $0xc70] sm:$0xff]  ;;  %v16229_v37 = vld [vmem:[%s27197_s3 + $0xc78] sm:$0xff] }
 0x158   :  { %2122 = vmatprep.subr.bf16.mxu1 %v1875_v60  ;;  %v16389_v60 = vcombine.high %v16149_v53, %v16157_v54  ;;  %v16236_v36 = vld [vmem:[%s27197_s3 + $0xcb0] sm:$0xff]  ;;  %v16237_v45 = vld [vmem:[%s27197_s3 + $0xcb8] sm:$0xff] }
 0x15a   :  { %2082 = vmatpush1.bf16.msra.mxu0 %v1866_v2  ;;  %v16386_v2 = vcombine.low %v16148_v50, %v16156_v51  ;;  %v16244_v50 = vld [vmem:[%s27197_s3 + $0xcf0] sm:$0xff] }
 0x15b   :  { %2123 = vmatpush1.bf16.msra.mxu1 %v1872_v4  ;;  %2135 = vmatprep.subr.bf16.mxu0 %v16307_v5  ;;  %v16388_v4 = vcombine.low %v16149_v53, %v16157_v54  ;;  %v16403_v5 = vcombine.high %v16164_v61, %v16172_v63  ;;  %v16252_v51 = vld [vmem:[%s27197_s3 + $0xd30] sm:$0xff]  ;;  %v16245_v53 = vld [vmem:[%s27197_s3 + $0xcf8] sm:$0xff] }
 0x15c   :  { %2176 = vmatprep.subr.bf16.mxu1 %v16309_v8  ;;  %v16405_v8 = vcombine.high %v16165_v0, %v16173_v1  ;;  %v16253_v54 = vld [vmem:[%s27197_s3 + $0xd38] sm:$0xff]  ;;  %v16260_v61 = vld [vmem:[%s27197_s3 + $0xd70] sm:$0xff] }
 0x15d   :  { %2086 = vmatmul.mubr.bf16.vlgmr.msra.gmra.mrb[12].mxu0 %v20597_v55  ;;  %v16268_v63 = vld [vmem:[%s27197_s3 + $0xdb0] sm:$0xff] }
 0x15e   :  { %2127 = vmatmul.mubr.bf16.vlgmr.msra.gmra.mrb[12].mxu1 %v20597_v55  ;;  %2136 = vmatpush1.bf16.msra.mxu0 %v16306_v11  ;;  %v16181_v11 = vld [vmem:[%s27197_s3 + $0xaf8] sm:$0xff] }
 0x15f   :  { %16540 = vmatprep.mubr.msk.bf16.mxu0 %vm1835_vm2, %v20593_v52  ;;  %2177 = vmatpush1.bf16.msra.mxu1 %v16308_v15  ;;  %v16404_v15 = vcombine.low %v16165_v0, %v16173_v1  ;;  %v16261_v0 = vld [vmem:[%s27197_s3 + $0xd78] sm:$0xff] }
 0x160   :  { %16541 = vmatprep.mubr.msk.bf16.mxu1 %vm1835_vm2, %v20593_v52  ;;  %2137 = vmatprep.subr.bf16.mxu0 %v16323_v16  ;;  %v16338_v52 = vcombine.low %v16100_v17, %v16108_v18  ;;  %v16419_v16 = vcombine.high %v16180_v9, %v16188_v10  ;;  %v16421_v17 = vcombine.high %v16181_v11, %v16189_v12  ;;  %v16196_v18 = vld [vmem:[%s27197_s3 + $0xb70] sm:$0xff]  ;;  %v16269_v1 = vld [vmem:[%s27197_s3 + $0xdb8] sm:$0xff] }
 0x161   :  { %2178 = vmatprep.subr.bf16.mxu1 %v16325_v19  ;;  %v16204_v19 = vld [vmem:[%s27197_s3 + $0xbb0] sm:$0xff] }
 0x162   :  { %2138 = vmatpush1.bf16.msra.mxu0 %v16322_v25  ;;  %v16418_v25 = vcombine.low %v16180_v9, %v16188_v10  ;;  %v16276_v9 = vld [vmem:[%s27197_s3 + $0xdf0] sm:$0xff] }
 0x163   :  { %2179 = vmatpush1.bf16.msra.mxu1 %v16324_v29  ;;  %2139 = vmatprep.subr.bf16.mxu0 %v16339_v30  ;;  %v16420_v29 = vcombine.low %v16181_v11, %v16189_v12  ;;  %v16435_v30 = vcombine.high %v16196_v18, %v16204_v19  ;;  %v16284_v10 = vld [vmem:[%s27197_s3 + $0xe30] sm:$0xff]  ;;  %v16277_v12 = vld [vmem:[%s27197_s3 + $0xdf8] sm:$0xff] }
 0x164   :  { %2180 = vmatprep.subr.bf16.mxu1 %v16341_v31  ;;  %v16437_v31 = vcombine.high %v16197_v23, %v16205_v24  ;;  %v16292_v11 = vld [vmem:[%s27197_s3 + $0xe70] sm:$0x11] }
 0x166   :  { %2140 = vmatpush1.bf16.msra.mxu0 %v16338_v52  ;;  %v16434_v52 = vcombine.low %v16196_v18, %v16204_v19  ;;  %v16515_v18 = vcombine.high %v16276_v9, %v16284_v10  ;;  %v16531_v19 = vcombine.high %v16292_v11, %v16292_v11 }
 0x167   :  { %2181 = vmatpush1.bf16.msra.mxu1 %v16340_v39  ;;  %2141 = vmatprep.subr.bf16.mxu0 %v16355_v41  ;;  %v16436_v39 = vcombine.low %v16197_v23, %v16205_v24  ;;  %v16451_v41 = vcombine.high %v16212_v33, %v16220_v22 }
 0x168   :  { %2182 = vmatprep.subr.bf16.mxu1 %v16357_v42  ;;  %v16453_v42 = vcombine.high %v16213_v28, %v16221_v38 }
 0x16a   :  { %2142 = vmatpush1.bf16.msra.mxu0 %v16354_v46  ;;  %v16450_v46 = vcombine.low %v16212_v33, %v16220_v22 }
 0x16b   :  { %2183 = vmatpush1.bf16.msra.mxu1 %v16356_v47  ;;  %2143 = vmatprep.subr.bf16.mxu0 %v16371_v48  ;;  %v16452_v47 = vcombine.low %v16213_v28, %v16221_v38  ;;  %v16467_v48 = vcombine.high %v16228_v43, %v16236_v36  ;;  %v200_v28 = vld [vmem:[%s27197_s3] sm:$0xff] }
 0x16c   :  { %2184 = vmatprep.subr.bf16.mxu1 %v16373_v49  ;;  %v16469_v49 = vcombine.high %v16229_v37, %v16237_v45  ;;  %v208_v38 = vld [vmem:[%s27197_s3 + $0x40] sm:$0xff] }
 0x16e   :  { %2144 = vmatpush1.bf16.msra.mxu0 %v16370_v57  ;;  %v16466_v57 = vcombine.low %v16228_v43, %v16236_v36  ;;  %v16543_v43 = vcombine.high %v200_v28, %v208_v38 }
 0x16f   :  { %2185 = vmatpush1.bf16.msra.mxu1 %v16372_v58  ;;  %2145 = vmatprep.subr.bf16.mxu0 %v16387_v59  ;;  %v16468_v58 = vcombine.low %v16229_v37, %v16237_v45  ;;  %v16483_v59 = vcombine.high %v16244_v50, %v16252_v51  ;;  %v216_v37 = vld [vmem:[%s27197_s3 + $0x80] sm:$0xff] }
 0x170   :  { %2186 = vmatprep.subr.bf16.mxu1 %v16389_v60  ;;  %v16485_v60 = vcombine.high %v16245_v53, %v16253_v54  ;;  %v224_v45 = vld [vmem:[%s27197_s3 + $0xc0] sm:$0xff] }
 0x172   :  { %2146 = vmatpush1.bf16.msra.mxu0 %v16386_v2  ;;  %v16482_v2 = vcombine.low %v16244_v50, %v16252_v51  ;;  %v16559_v50 = vcombine.high %v216_v37, %v224_v45  ;;  %v232_v51 = vld [vmem:[%s27197_s3 + $0x100] sm:$0xff] }
 0x173   :  { %2187 = vmatpush1.bf16.msra.mxu1 %v16388_v4  ;;  %2147 = vmatprep.subr.bf16.mxu0 %v16403_v5  ;;  %v16484_v4 = vcombine.low %v16245_v53, %v16253_v54  ;;  %v16499_v5 = vcombine.high %v16260_v61, %v16268_v63  ;;  %v240_v53 = vld [vmem:[%s27197_s3 + $0x140] sm:$0xff]  ;;  %v21223_v54 = vpack.c.bf16 %v20601_v56, %v20601_v56 }
 0x174   :  { %2188 = vmatprep.subr.bf16.mxu1 %v16405_v8  ;;  %v16501_v8 = vcombine.high %v16261_v0, %v16269_v1  ;;  %v16575_v56 = vcombine.high %v232_v51, %v240_v53 }
 0x176   :  { %2148 = vmatpush1.bf16.msra.mxu0 %v16402_v14  ;;  %v16285_v14 = vld [vmem:[%s27197_s3 + $0xe38] sm:$0xff] }
 0x177   :  { %2189 = vmatpush1.bf16.msra.mxu1 %v16404_v15  ;;  %2149 = vmatprep.subr.bf16.mxu0 %v16419_v16  ;;  %v16293_v15 = vld [vmem:[%s27197_s3 + $0xe78] sm:$0x11]  ;;  %v16498_v16 = vcombine.low %v16260_v61, %v16268_v63  ;;  %v16517_v23 = vcombine.high %v16277_v12, %v16285_v14 }
 0x178   :  { %2190 = vmatprep.subr.bf16.mxu1 %v16421_v17  ;;  %v16500_v17 = vcombine.low %v16261_v0, %v16269_v1  ;;  %v16533_v24 = vcombine.high %v16293_v15, %v16293_v15  ;;  %v16532_v33 = vcombine.low %v16293_v15, %v16293_v15  ;;  %v248_v0 = vld [vmem:[%s27197_s3 + $0x180] sm:$0xff]  ;;  %v249_v1 = vld [vmem:[%s27197_s3 + $0x188] sm:$0xff] }
 0x17a   :  { %2150 = vmatpush1.bf16.msra.mxu0 %v16418_v25  ;;  %v16514_v25 = vcombine.low %v16276_v9, %v16284_v10  ;;  %v1887_v22 = vand.u32 %v16533_v24, %v20487_v62  ;;  %v264_v10 = vld [vmem:[%s27197_s3 + $0x200] sm:$0xff]  ;;  %v281_v24 = vld [vmem:[%s27197_s3 + $0x288] sm:$0xff] }
 0x17b   :  { %2191 = vmatpush1.bf16.msra.mxu1 %v16420_v29  ;;  %2151 = vmatprep.subr.bf16.mxu0 %v16435_v30  ;;  %v16530_v29 = vcombine.low %v16292_v11, %v16292_v11  ;;  %v16516_v30 = vcombine.low %v16277_v12, %v16285_v14  ;;  %v272_v11 = vld [vmem:[%s27197_s3 + $0x240] sm:$0xff]  ;;  %v265_v12 = vld [vmem:[%s27197_s3 + $0x208] sm:$0xff] }
 0x17c   :  { %2192 = vmatprep.subr.bf16.mxu1 %v16437_v31  ;;  %v1881_v31 = vand.u32 %v16531_v19, %v20487_v62  ;;  %v273_v14 = vld [vmem:[%s27197_s3 + $0x248] sm:$0xff]  ;;  %v280_v19 = vld [vmem:[%s27197_s3 + $0x280] sm:$0xff] }
 0x17e   :  { %2152 = vmatpush1.bf16.msra.mxu0 %v16434_v52  ;;  %v201_v52 = vld [vmem:[%s27197_s3 + $0x8] sm:$0xff] }
 0x17f   :  { %2193 = vmatpush1.bf16.msra.mxu1 %v16436_v39  ;;  %2153 = vmatprep.subr.bf16.mxu0 %v16451_v41  ;;  %v209_v39 = vld [vmem:[%s27197_s3 + $0x48] sm:$0xff]  ;;  %v1878_v41 = vand.u32 %v16530_v29, %v20487_v62  ;;  %v16606_v29 = vcombine.low %v264_v10, %v272_v11 }
 0x180   :  { %2194 = vmatprep.subr.bf16.mxu1 %v16453_v42  ;;  %v1884_v42 = vand.u32 %v16532_v33, %v20487_v62  ;;  %v16545_v36 = vcombine.high %v201_v52, %v209_v39 }
 0x182   :  { %2154 = vmatpush1.bf16.msra.mxu0 %v16450_v46  ;;  %v16542_v46 = vcombine.low %v200_v28, %v208_v38  ;;  %v304_v28 = vld [vmem:[%s27197_s3 + $0x340] sm:$0xff]  ;;  %v297_v38 = vld [vmem:[%s27197_s3 + $0x308] sm:$0xff] }
 0x183   :  { %2195 = vmatpush1.bf16.msra.mxu1 %v16452_v47  ;;  %2155 = vmatprep.subr.bf16.mxu0 %v16467_v48  ;;  %v217_v47 = vld [vmem:[%s27197_s3 + $0x88] sm:$0xff] }
 0x184   :  { %2196 = vmatprep.subr.bf16.mxu1 %v16469_v49  ;;  %v225_v48 = vld [vmem:[%s27197_s3 + $0xc8] sm:$0xff]  ;;  %v16544_v49 = vcombine.low %v201_v52, %v209_v39 }
 0x185   :  { %v16560_v61 = vcombine.low %v217_v47, %v225_v48  ;;  %v305_v52 = vld [vmem:[%s27197_s3 + $0x348] sm:$0xff] }
 0x186   :  { %2156 = vmatpush1.bf16.msra.mxu0 %v16466_v57  ;;  %v16561_v57 = vcombine.high %v217_v47, %v225_v48  ;;  %v16640_v48 = vcombine.low %v297_v38, %v305_v52 }
 0x187   :  { %2197 = vmatpush1.bf16.msra.mxu1 %v16468_v58  ;;  %2157 = vmatprep.subr.bf16.mxu0 %v16483_v59  ;;  %v233_v58 = vld [vmem:[%s27197_s3 + $0x108] sm:$0xff] }
 0x188   :  { %2198 = vmatprep.subr.bf16.mxu1 %v16485_v60  ;;  %v241_v59 = vld [vmem:[%s27197_s3 + $0x148] sm:$0xff]  ;;  %v16558_v60 = vcombine.low %v216_v37, %v224_v45  ;;  %v320_v37 = vld [vmem:[%s27197_s3 + $0x3c0] sm:$0xff] }
 0x189   :  { %v16577_v63 = vcombine.high %v233_v58, %v241_v59  ;;  %v313_v45 = vld [vmem:[%s27197_s3 + $0x388] sm:$0xff] }
 0x18a   :  { %2158 = vmatpush1.bf16.msra.mxu0 %v16482_v2  ;;  %v257_v2 = vld [vmem:[%s27197_s3 + $0x1c8] sm:$0xff] }
 0x18b   :  { %2199 = vmatpush1.bf16.msra.mxu1 %v16484_v4  ;;  %2159 = vmatprep.subr.bf16.mxu0 %v16499_v5  ;;  %v16574_v4 = vcombine.low %v232_v51, %v240_v53  ;;  %v16576_v5 = vcombine.low %v233_v58, %v241_v59  ;;  %v16593_v9 = vcombine.high %v249_v1, %v257_v2  ;;  %v328_v51 = vld [vmem:[%s27197_s3 + $0x400] sm:$0xff]  ;;  %v337_v58 = vld [vmem:[%s27197_s3 + $0x448] sm:$0xff] }
 0x18c   :  { %2200 = vmatprep.subr.bf16.mxu1 %v16501_v8  ;;  %v336_v53 = vld [vmem:[%s27197_s3 + $0x440] sm:$0xff] }
 0x18e   :  { %2160 = vmatpush1.bf16.msra.mxu0 %v16498_v16  ;;  %v16592_v16 = vcombine.low %v249_v1, %v257_v2  ;;  %v353_v1 = vld [vmem:[%s27197_s3 + $0x4c8] sm:$0xff]  ;;  %v16670_v2 = vcombine.low %v328_v51, %v336_v53 }
 0x18f   :  { %2201 = vmatpush1.bf16.msra.mxu1 %v16500_v17  ;;  %2161 = vmatprep.subr.bf16.mxu0 %v16515_v18  ;;  %v16607_v17 = vcombine.high %v264_v10, %v272_v11  ;;  %v16609_v18 = vcombine.high %v265_v12, %v273_v14  ;;  %v360_v11 = vld [vmem:[%s27197_s3 + $0x500] sm:$0xff] }
 0x190   :  { %2202 = vmatprep.subr.bf16.mxu1 %v16517_v23  ;;  %v288_v23 = vld [vmem:[%s27197_s3 + $0x2c0] sm:$0xff] }
 0x191   :  { %v16622_v39 = vcombine.low %v280_v19, %v288_v23 }
 0x192   :  { %2162 = vmatpush1.bf16.msra.mxu0 %v16514_v25  ;;  %v289_v25 = vld [vmem:[%s27197_s3 + $0x2c8] sm:$0xff] }
 0x193   :  { %2203 = vmatpush1.bf16.msra.mxu1 %v16516_v30  ;;  %2163 = vmatprep.subr.bf16.mxu0 %v1881_v31  ;;  %v16608_v30 = vcombine.low %v265_v12, %v273_v14  ;;  %v16623_v31 = vcombine.high %v280_v19, %v288_v23  ;;  %v16625_v33 = vcombine.high %v281_v24, %v289_v25  ;;  %v368_v12 = vld [vmem:[%s27197_s3 + $0x540] sm:$0xff] }
 0x194   :  { %2204 = vmatprep.subr.bf16.mxu1 %v1887_v22  ;;  %v296_v22 = vld [vmem:[%s27197_s3 + $0x300] sm:$0xff] }
 0x195   :  { %v16638_v47 = vcombine.low %v296_v22, %v304_v28 }
 0x196   :  { %2164 = vmatpush1.bf16.msra.mxu0 %v1878_v41  ;;  %v16624_v41 = vcombine.low %v281_v24, %v289_v25 }
 0x197   :  { %2205 = vmatpush1.bf16.msra.mxu1 %v1884_v42  ;;  %3428 = vmatprep.subr.bf16.mxu0 %v16543_v43  ;;  %v16639_v42 = vcombine.high %v296_v22, %v304_v28  ;;  %v16641_v43 = vcombine.high %v297_v38, %v305_v52  ;;  %v384_v22 = vld [vmem:[%s27197_s3 + $0x5c0] sm:$0xff]  ;;  %v377_v28 = vld [vmem:[%s27197_s3 + $0x588] sm:$0xff]  ;;  %v16702_v52 = vcombine.low %v360_v11, %v368_v12 }
 0x198   :  { %3469 = vmatprep.subr.bf16.mxu1 %v16545_v36  ;;  %v312_v36 = vld [vmem:[%s27197_s3 + $0x380] sm:$0xff]  ;;  %v385_v38 = vld [vmem:[%s27197_s3 + $0x5c8] sm:$0xff] }
 0x199   :  { %2168 = vmatmul.mubr.bf16.vlgmr.msra.gmra.mrb[16].mxu0 %v20597_v55  ;;  %v16654_v59 = vcombine.low %v312_v36, %v320_v37 }
 0x19a   :  { %2209 = vmatmul.mubr.bf16.vlgmr.msra.gmra.mrb[16].mxu1 %v20597_v55  ;;  %3429 = vmatpush1.bf16.msra.mxu0 %v16542_v46  ;;  %v256_v55 = vld [vmem:[%s27197_s3 + $0x1c0] sm:$0xff]  ;;  %v321_v46 = vld [vmem:[%s27197_s3 + $0x3c8] sm:$0xff] }
 0x19b   :  { %16782 = vmatprep.mubr.msk.bf16.mxu0 %vm1835_vm2, %v21223_v54  ;;  %3470 = vmatpush1.bf16.msra.mxu1 %v16544_v49  ;;  %v16591_v8 = vcombine.high %v248_v0, %v256_v55  ;;  %v16590_v15 = vcombine.low %v248_v0, %v256_v55  ;;  %v16655_v49 = vcombine.high %v312_v36, %v320_v37  ;;  %v352_v0 = vld [vmem:[%s27197_s3 + $0x4c0] sm:$0xff]  ;;  %v345_v55 = vld [vmem:[%s27197_s3 + $0x488] sm:$0xff] }
 0x19c   :  { %16783 = vmatprep.mubr.msk.bf16.mxu1 %vm1835_vm2, %v21223_v54  ;;  %3430 = vmatprep.subr.bf16.mxu0 %v16559_v50  ;;  %v16657_v50 = vcombine.high %v313_v45, %v321_v46  ;;  %v16689_v10 = vcombine.high %v345_v55, %v353_v1  ;;  %v400_v36 = vld [vmem:[%s27197_s3 + $0x640] sm:$0xff]  ;;  %v393_v37 = vld [vmem:[%s27197_s3 + $0x608] sm:$0xff] }
 0x19d   :  { %3471 = vmatprep.subr.bf16.mxu1 %v16561_v57  ;;  %v329_v57 = vld [vmem:[%s27197_s3 + $0x408] sm:$0xff] }
 0x19e   :  { %3431 = vmatpush1.bf16.msra.mxu0 %v16558_v60  ;;  %v16656_v60 = vcombine.low %v313_v45, %v321_v46  ;;  %v401_v45 = vld [vmem:[%s27197_s3 + $0x648] sm:$0xff] }
 0x19f   :  { %3472 = vmatpush1.bf16.msra.mxu1 %v16560_v61  ;;  %3432 = vmatprep.subr.bf16.mxu0 %v16575_v56  ;;  %v16671_v61 = vcombine.high %v328_v51, %v336_v53  ;;  %v16673_v56 = vcombine.high %v329_v57, %v337_v58  ;;  %v416_v51 = vld [vmem:[%s27197_s3 + $0x6c0] sm:$0xff] }
 0x1a0   :  { %3473 = vmatprep.subr.bf16.mxu1 %v16577_v63  ;;  %v344_v63 = vld [vmem:[%s27197_s3 + $0x480] sm:$0xff] }
 0x1a1   :  { %v16686_v23 = vcombine.low %v344_v63, %v352_v0  ;;  %v424_v53 = vld [vmem:[%s27197_s3 + $0x700] sm:$0x11] }
 0x1a2   :  { %3433 = vmatpush1.bf16.msra.mxu0 %v16574_v4  ;;  %v16672_v4 = vcombine.low %v329_v57, %v337_v58  ;;  %v409_v57 = vld [vmem:[%s27197_s3 + $0x688] sm:$0xff] }
 0x1a3   :  { %3474 = vmatpush1.bf16.msra.mxu1 %v16576_v5  ;;  %3434 = vmatprep.subr.bf16.mxu0 %v16591_v8  ;;  %v16687_v5 = vcombine.high %v344_v63, %v352_v0  ;;  %v417_v58 = vld [vmem:[%s27197_s3 + $0x6c8] sm:$0xff]  ;;  %v16767_v63 = vcombine.high %v424_v53, %v424_v53 }
 0x1a4   :  { %3475 = vmatprep.subr.bf16.mxu1 %v16593_v9  ;;  %v16753_v0 = vcombine.high %v409_v57, %v417_v58 }
 0x1a6   :  { %3435 = vmatpush1.bf16.msra.mxu0 %v16590_v15 }
 0x1a7   :  { %3476 = vmatpush1.bf16.msra.mxu1 %v16592_v16  ;;  %3436 = vmatprep.subr.bf16.mxu0 %v16607_v17  ;;  %v361_v16 = vld [vmem:[%s27197_s3 + $0x508] sm:$0xff] }
 0x1a8   :  { %3477 = vmatprep.subr.bf16.mxu1 %v16609_v18  ;;  %v369_v17 = vld [vmem:[%s27197_s3 + $0x548] sm:$0xff] }
 0x1aa   :  { %3437 = vmatpush1.bf16.msra.mxu0 %v16606_v29  ;;  %v16688_v29 = vcombine.low %v345_v55, %v353_v1 }
 0x1ab   :  { %3478 = vmatpush1.bf16.msra.mxu1 %v16608_v30  ;;  %3438 = vmatprep.subr.bf16.mxu0 %v16623_v31  ;;  %v16703_v30 = vcombine.high %v360_v11, %v368_v12  ;;  %v16705_v31 = vcombine.high %v361_v16, %v369_v17  ;;  %v202_v12 = vld [vmem:[%s27197_s3 + $0x10] sm:$0xff] }
 0x1ac   :  { %3479 = vmatprep.subr.bf16.mxu1 %v16625_v33  ;;  %v376_v33 = vld [vmem:[%s27197_s3 + $0x580] sm:$0xff] }
 0x1ad   :  { %v16718_v46 = vcombine.low %v376_v33, %v384_v22 }
 0x1ae   :  { %3439 = vmatpush1.bf16.msra.mxu0 %v16622_v39  ;;  %v16704_v39 = vcombine.low %v361_v16, %v369_v17  ;;  %v210_v16 = vld [vmem:[%s27197_s3 + $0x50] sm:$0xff]  ;;  %v203_v17 = vld [vmem:[%s27197_s3 + $0x18] sm:$0xff] }
 0x1af   :  { %3480 = vmatpush1.bf16.msra.mxu1 %v16624_v41  ;;  %3440 = vmatprep.subr.bf16.mxu0 %v16639_v42  ;;  %v16719_v41 = vcombine.high %v376_v33, %v384_v22  ;;  %v16721_v42 = vcombine.high %v377_v28, %v385_v38  ;;  %v219_v33 = vld [vmem:[%s27197_s3 + $0x98] sm:$0xff] }
 0x1b0   :  { %3481 = vmatprep.subr.bf16.mxu1 %v16641_v43  ;;  %v392_v43 = vld [vmem:[%s27197_s3 + $0x600] sm:$0xff]  ;;  %v227_v22 = vld [vmem:[%s27197_s3 + $0xd8] sm:$0xff] }
 0x1b2   :  { %3441 = vmatpush1.bf16.msra.mxu0 %v16638_v47  ;;  %v16720_v47 = vcombine.low %v377_v28, %v385_v38  ;;  %v21412_v28 = vpack.c.bf16 %v20626_v3, %v20626_v3  ;;  %v235_v3 = vld [vmem:[%s27197_s3 + $0x118] sm:$0xff] }
 0x1b3   :  { %3482 = vmatpush1.bf16.msra.mxu1 %v16640_v48  ;;  %3442 = vmatprep.subr.bf16.mxu0 %v16655_v49  ;;  %v16735_v48 = vcombine.high %v392_v43, %v400_v36  ;;  %v16737_v49 = vcombine.high %v393_v37, %v401_v45 }
 0x1b4   :  { %3483 = vmatprep.subr.bf16.mxu1 %v16657_v50  ;;  %v408_v50 = vld [vmem:[%s27197_s3 + $0x680] sm:$0xff] }
 0x1b5   :  { %v16750_v1 = vcombine.low %v408_v50, %v416_v51 }
 0x1b6   :  { %3443 = vmatpush1.bf16.msra.mxu0 %v16654_v59  ;;  %v425_v59 = vld [vmem:[%s27197_s3 + $0x708] sm:$0x11] }
 0x1b7   :  { %3484 = vmatpush1.bf16.msra.mxu1 %v16656_v60  ;;  %3444 = vmatprep.subr.bf16.mxu0 %v16671_v61  ;;  %v16734_v60 = vcombine.low %v392_v43, %v400_v36  ;;  %v16736_v61 = vcombine.low %v393_v37, %v401_v45  ;;  %v16769_v55 = vcombine.high %v425_v59, %v425_v59  ;;  %v243_v43 = vld [vmem:[%s27197_s3 + $0x158] sm:$0xff] }
 0x1b8   :  { %v21320_v8 = vpop.f32.mrb[4].mxu0  ;;  %v21322_v9 = vpop.f32.mrb[4].mxu1  ;;  %3485 = vmatprep.subr.bf16.mxu1 %v16673_v56  ;;  %v16751_v56 = vcombine.high %v408_v50, %v416_v51  ;;  %v16564_v37 = vcombine.low %v219_v33, %v227_v22  ;;  %v259_v50 = vld [vmem:[%s27197_s3 + $0x1d8] sm:$0xff] }
 0x1b9   :  { %v21330_v14 = vpop.f32.mrb[5].mxu0  ;;  %v21332_v15 = vpop.f32.mrb[5].mxu1  ;;  %v3390_v11 = vand.u32 %v16769_v55, %v20487_v62 }
 0x1ba   :  { %3445 = vmatpush1.bf16.msra.mxu0 %v16670_v2  ;;  %v1927_v18 = vpop.f32.mrb[6].mxu0  ;;  %v1968_v19 = vpop.f32.mrb[6].mxu1  ;;  %v16766_v2 = vcombine.low %v424_v53, %v424_v53  ;;  %v16580_v53 = vcombine.low %v235_v3, %v243_v43 }
 0x1bb   :  { %3486 = vmatpush1.bf16.msra.mxu1 %v16672_v4  ;;  %v1928_v24 = vpop.f32.mrb[7].mxu0  ;;  %v1969_v25 = vpop.f32.mrb[7].mxu1  ;;  %3446 = vmatprep.subr.bf16.mxu0 %v16687_v5  ;;  %v16752_v4 = vcombine.low %v409_v57, %v417_v58  ;;  %v3384_v5 = vand.u32 %v16767_v63, %v20487_v62  ;;  %v211_v18 = vld [vmem:[%s27197_s3 + $0x58] sm:$0xff] }
 0x1bc   :  { %3487 = vmatprep.subr.bf16.mxu1 %v16689_v10  ;;  %v16768_v10 = vcombine.low %v425_v59, %v425_v59  ;;  %v3381_v19 = vand.u32 %v16766_v2, %v20487_v62  ;;  %v16547_v24 = vcombine.high %v202_v12, %v210_v16  ;;  %v16549_v25 = vcombine.high %v203_v17, %v211_v18  ;;  %v266_v59 = vld [vmem:[%s27197_s3 + $0x210] sm:$0xff] }
 0x1bd   :  { %v16548_v38 = vcombine.low %v203_v17, %v211_v18  ;;  %v282_v2 = vld [vmem:[%s27197_s3 + $0x290] sm:$0xff] }
 0x1be   :  { %3447 = vmatpush1.bf16.msra.mxu0 %v16686_v23  ;;  %v3387_v23 = vand.u32 %v16768_v10, %v20487_v62  ;;  %v291_v10 = vld [vmem:[%s27197_s3 + $0x2d8] sm:$0xff]  ;;  %v298_v18 = vld [vmem:[%s27197_s3 + $0x310] sm:$0xff] }
 0x1bf   :  { %3488 = vmatpush1.bf16.msra.mxu1 %v16688_v29  ;;  %3448 = vmatprep.subr.bf16.mxu0 %v16703_v30  ;;  %v218_v29 = vld [vmem:[%s27197_s3 + $0x90] sm:$0xff] }
 0x1c0   :  { %3489 = vmatprep.subr.bf16.mxu1 %v16705_v31  ;;  %v226_v30 = vld [vmem:[%s27197_s3 + $0xd0] sm:$0xff]  ;;  %v16546_v31 = vcombine.low %v202_v12, %v210_v16 }
 0x1c1   :  { %v16562_v36 = vcombine.low %v218_v29, %v226_v30 }
 0x1c2   :  { %3449 = vmatpush1.bf16.msra.mxu0 %v16702_v52  ;;  %v16563_v52 = vcombine.high %v218_v29, %v226_v30 }
 0x1c3   :  { %3490 = vmatpush1.bf16.msra.mxu1 %v16704_v39  ;;  %3450 = vmatprep.subr.bf16.mxu0 %v16719_v41  ;;  %v234_v39 = vld [vmem:[%s27197_s3 + $0x110] sm:$0xff] }
 0x1c4   :  { %3491 = vmatprep.subr.bf16.mxu1 %v16721_v42  ;;  %v242_v41 = vld [vmem:[%s27197_s3 + $0x150] sm:$0xff]  ;;  %v16565_v42 = vcombine.high %v219_v33, %v227_v22 }
 0x1c5   :  { %v16579_v45 = vcombine.high %v234_v39, %v242_v41  ;;  %v16578_v51 = vcombine.low %v234_v39, %v242_v41  ;;  %v314_v33 = vld [vmem:[%s27197_s3 + $0x390] sm:$0xff] }
 0x1c6   :  { %3451 = vmatpush1.bf16.msra.mxu0 %v16718_v46  ;;  %v16581_v46 = vcombine.high %v235_v3, %v243_v43  ;;  %v322_v22 = vld [vmem:[%s27197_s3 + $0x3d0] sm:$0xff] }
 0x1c7   :  { %3492 = vmatpush1.bf16.msra.mxu1 %v16720_v47  ;;  %3452 = vmatprep.subr.bf16.mxu0 %v16735_v48  ;;  %v250_v47 = vld [vmem:[%s27197_s3 + $0x190] sm:$0xff] }
 0x1c8   :  { %3493 = vmatprep.subr.bf16.mxu1 %v16737_v49  ;;  %v258_v48 = vld [vmem:[%s27197_s3 + $0x1d0] sm:$0xff]  ;;  %v251_v49 = vld [vmem:[%s27197_s3 + $0x198] sm:$0xff] }
 0x1c9   :  { %v16595_v57 = vcombine.high %v250_v47, %v258_v48  ;;  %v16597_v58 = vcombine.high %v251_v49, %v259_v50  ;;  %v16594_v63 = vcombine.low %v250_v47, %v258_v48  ;;  %v330_v43 = vld [vmem:[%s27197_s3 + $0x410] sm:$0xff] }
 0x1ca   :  { %3453 = vmatpush1.bf16.msra.mxu0 %v16734_v60  ;;  %v274_v60 = vld [vmem:[%s27197_s3 + $0x250] sm:$0xff] }
 0x1cb   :  { %3494 = vmatpush1.bf16.msra.mxu1 %v16736_v61  ;;  %3454 = vmatprep.subr.bf16.mxu0 %v16751_v56  ;;  %v267_v61 = vld [vmem:[%s27197_s3 + $0x218] sm:$0xff]  ;;  %v16611_v55 = vcombine.high %v266_v59, %v274_v60 }
 0x1cc   :  { %3495 = vmatprep.subr.bf16.mxu1 %v16753_v0  ;;  %v275_v56 = vld [vmem:[%s27197_s3 + $0x258] sm:$0xff]  ;;  %v16596_v0 = vcombine.low %v251_v49, %v259_v50  ;;  %v346_v50 = vld [vmem:[%s27197_s3 + $0x490] sm:$0xff] }
 0x1cd   :  { %v16612_v12 = vcombine.low %v267_v61, %v275_v56 }
 0x1ce   :  { %3455 = vmatpush1.bf16.msra.mxu0 %v16750_v1  ;;  %v16613_v1 = vcombine.high %v267_v61, %v275_v56 }
 0x1cf   :  { %3496 = vmatpush1.bf16.msra.mxu1 %v16752_v4  ;;  %3456 = vmatprep.subr.bf16.mxu0 %v3384_v5  ;;  %v290_v4 = vld [vmem:[%s27197_s3 + $0x2d0] sm:$0xff]  ;;  %v283_v5 = vld [vmem:[%s27197_s3 + $0x298] sm:$0xff] }
 0x1d0   :  { %3497 = vmatprep.subr.bf16.mxu1 %v3390_v11  ;;  %v16610_v11 = vcombine.low %v266_v59, %v274_v60  ;;  %v16627_v16 = vcombine.high %v282_v2, %v290_v4  ;;  %v16629_v17 = vcombine.high %v283_v5, %v291_v10  ;;  %v16628_v29 = vcombine.low %v283_v5, %v291_v10  ;;  %v371_v5 = vld [vmem:[%s27197_s3 + $0x558] sm:$0xff] }
 0x1d2   :  { %3457 = vmatpush1.bf16.msra.mxu0 %v3381_v19  ;;  %v306_v19 = vld [vmem:[%s27197_s3 + $0x350] sm:$0xff] }
 0x1d3   :  { %3498 = vmatpush1.bf16.msra.mxu1 %v3387_v23  ;;  %3510 = vmatprep.subr.bf16.mxu0 %v16547_v24  ;;  %v299_v23 = vld [vmem:[%s27197_s3 + $0x318] sm:$0xff]  ;;  %v16643_v30 = vcombine.high %v298_v18, %v306_v19  ;;  %v16642_v39 = vcombine.low %v298_v18, %v306_v19 }
 0x1d4   :  { %3551 = vmatprep.subr.bf16.mxu1 %v16549_v25  ;;  %v307_v24 = vld [vmem:[%s27197_s3 + $0x358] sm:$0xff]  ;;  %v16626_v25 = vcombine.low %v282_v2, %v290_v4 }
 0x1d5   :  { %3461 = vmatmul.mubr.bf16.vlgmr.msra.gmra.mrb[20].mxu0 %v21412_v28  ;;  %v16644_v41 = vcombine.low %v299_v23, %v307_v24  ;;  %v363_v4 = vld [vmem:[%s27197_s3 + $0x518] sm:$0xff] }
 0x1d6   :  { %3502 = vmatmul.mubr.bf16.vlgmr.msra.gmra.mrb[20].mxu1 %v21412_v28  ;;  %3511 = vmatpush1.bf16.msra.mxu0 %v16546_v31  ;;  %v16645_v31 = vcombine.high %v299_v23, %v307_v24  ;;  %v16709_v23 = vcombine.high %v363_v4, %v371_v5  ;;  %v378_v24 = vld [vmem:[%s27197_s3 + $0x590] sm:$0xff] }
 0x1d7   :  { %16784 = vmatprep.mubr.msk.bf16.mxu0 %vm1835_vm2, %v21223_v54  ;;  %3552 = vmatpush1.bf16.msra.mxu1 %v16548_v38  ;;  %v315_v38 = vld [vmem:[%s27197_s3 + $0x398] sm:$0xff] }
 0x1d8   :  { %16785 = vmatprep.mubr.msk.bf16.mxu1 %vm1835_vm2, %v21223_v54  ;;  %3512 = vmatprep.subr.bf16.mxu0 %v16563_v52  ;;  %v323_v52 = vld [vmem:[%s27197_s3 + $0x3d8] sm:$0xff] }
 0x1d9   :  { %3553 = vmatprep.subr.bf16.mxu1 %v16565_v42  ;;  %v16659_v42 = vcombine.high %v314_v33, %v322_v22  ;;  %v16661_v3 = vcombine.high %v315_v38, %v323_v52  ;;  %v16660_v47 = vcombine.low %v315_v38, %v323_v52  ;;  %v394_v52 = vld [vmem:[%s27197_s3 + $0x610] sm:$0xff] }
 0x1da   :  { %3513 = vmatpush1.bf16.msra.mxu0 %v16562_v36  ;;  %v338_v36 = vld [vmem:[%s27197_s3 + $0x450] sm:$0xff] }
 0x1db   :  { %3554 = vmatpush1.bf16.msra.mxu1 %v16564_v37  ;;  %3514 = vmatprep.subr.bf16.mxu0 %v16579_v45  ;;  %v331_v37 = vld [vmem:[%s27197_s3 + $0x418] sm:$0xff]  ;;  %v16675_v48 = vcombine.high %v330_v43, %v338_v36 }
 0x1dc   :  { %3555 = vmatprep.subr.bf16.mxu1 %v16581_v46  ;;  %v339_v45 = vld [vmem:[%s27197_s3 + $0x458] sm:$0xff]  ;;  %v16658_v46 = vcombine.low %v314_v33, %v322_v22  ;;  %v16708_v33 = vcombine.low %v363_v4, %v371_v5 }
 0x1dd   :  { %v16677_v49 = vcombine.high %v331_v37, %v339_v45  ;;  %v16676_v59 = vcombine.low %v331_v37, %v339_v45  ;;  %v410_v45 = vld [vmem:[%s27197_s3 + $0x690] sm:$0xff] }
 0x1de   :  { %3515 = vmatpush1.bf16.msra.mxu0 %v16578_v51  ;;  %v354_v51 = vld [vmem:[%s27197_s3 + $0x4d0] sm:$0xff] }
 0x1df   :  { %3556 = vmatpush1.bf16.msra.mxu1 %v16580_v53  ;;  %3516 = vmatprep.subr.bf16.mxu0 %v16595_v57  ;;  %v347_v53 = vld [vmem:[%s27197_s3 + $0x498] sm:$0xff]  ;;  %v16691_v60 = vcombine.high %v346_v50, %v354_v51 }
 0x1e0   :  { %3557 = vmatprep.subr.bf16.mxu1 %v16597_v58  ;;  %v355_v57 = vld [vmem:[%s27197_s3 + $0x4d8] sm:$0xff]  ;;  %v16674_v58 = vcombine.low %v330_v43, %v338_v36 }
 0x1e1   :  { %v16692_v18 = vcombine.low %v347_v53, %v355_v57 }
 0x1e2   :  { %3517 = vmatpush1.bf16.msra.mxu0 %v16594_v63  ;;  %v16693_v63 = vcombine.high %v347_v53, %v355_v57 }
 0x1e3   :  { %3558 = vmatpush1.bf16.msra.mxu1 %v16596_v0  ;;  %3518 = vmatprep.subr.bf16.mxu0 %v16611_v55  ;;  %v362_v0 = vld [vmem:[%s27197_s3 + $0x510] sm:$0xff] }
 0x1e4   :  { %3559 = vmatprep.subr.bf16.mxu1 %v16613_v1  ;;  %v370_v55 = vld [vmem:[%s27197_s3 + $0x550] sm:$0xff] }
 0x1e5   :  { %v16707_v19 = vcombine.high %v362_v0, %v370_v55 }
 0x1e6   :  { %3519 = vmatpush1.bf16.msra.mxu0 %v16610_v11 }
 0x1e7   :  { %3560 = vmatpush1.bf16.msra.mxu1 %v16612_v12  ;;  %3520 = vmatprep.subr.bf16.mxu0 %v16627_v16  ;;  %v16690_v12 = vcombine.low %v346_v50, %v354_v51  ;;  %v427_v50 = vld [vmem:[%s27197_s3 + $0x718] sm:$0x11] }
 0x1e8   :  { %3561 = vmatprep.subr.bf16.mxu1 %v16629_v17  ;;  %v16772_v5 = vcombine.low %v427_v50, %v427_v50 }
 0x1ea   :  { %3521 = vmatpush1.bf16.msra.mxu0 %v16626_v25  ;;  %v386_v25 = vld [vmem:[%s27197_s3 + $0x5d0] sm:$0xff] }
 0x1eb   :  { %3562 = vmatpush1.bf16.msra.mxu1 %v16628_v29  ;;  %3522 = vmatprep.subr.bf16.mxu0 %v16643_v30  ;;  %v379_v29 = vld [vmem:[%s27197_s3 + $0x598] sm:$0xff]  ;;  %v16723_v22 = vcombine.high %v378_v24, %v386_v25 }
 0x1ec   :  { %3563 = vmatprep.subr.bf16.mxu1 %v16645_v31  ;;  %v387_v30 = vld [vmem:[%s27197_s3 + $0x5d8] sm:$0xff]  ;;  %v16706_v31 = vcombine.low %v362_v0, %v370_v55 }
 0x1ed   :  { %v16725_v38 = vcombine.high %v379_v29, %v387_v30  ;;  %v16724_v43 = vcombine.low %v379_v29, %v387_v30  ;;  %v228_v29 = vld [vmem:[%s27197_s3 + $0xe0] sm:$0xff] }
 0x1ee   :  { %3523 = vmatpush1.bf16.msra.mxu0 %v16642_v39  ;;  %v402_v39 = vld [vmem:[%s27197_s3 + $0x650] sm:$0xff] }
 0x1ef   :  { %3564 = vmatpush1.bf16.msra.mxu1 %v16644_v41  ;;  %3524 = vmatprep.subr.bf16.mxu0 %v16659_v42  ;;  %v395_v41 = vld [vmem:[%s27197_s3 + $0x618] sm:$0xff]  ;;  %v16739_v36 = vcombine.high %v394_v52, %v402_v39  ;;  %v16738_v51 = vcombine.low %v394_v52, %v402_v39  ;;  %v236_v52 = vld [vmem:[%s27197_s3 + $0x120] sm:$0xff] }
 0x1f0   :  { %3565 = vmatprep.subr.bf16.mxu1 %v16661_v3  ;;  %v403_v42 = vld [vmem:[%s27197_s3 + $0x658] sm:$0xff]  ;;  %v16722_v3 = vcombine.low %v378_v24, %v386_v25  ;;  %v220_v25 = vld [vmem:[%s27197_s3 + $0xa0] sm:$0xff] }
 0x1f1   :  { %v16741_v37 = vcombine.high %v395_v41, %v403_v42  ;;  %v16740_v53 = vcombine.low %v395_v41, %v403_v42  ;;  %v244_v39 = vld [vmem:[%s27197_s3 + $0x160] sm:$0xff]  ;;  %v237_v42 = vld [vmem:[%s27197_s3 + $0x128] sm:$0xff] }
 0x1f2   :  { %3525 = vmatpush1.bf16.msra.mxu0 %v16658_v46  ;;  %v418_v46 = vld [vmem:[%s27197_s3 + $0x6d0] sm:$0xff] }
 0x1f3   :  { %3566 = vmatpush1.bf16.msra.mxu1 %v16660_v47  ;;  %3526 = vmatprep.subr.bf16.mxu0 %v16675_v48  ;;  %v426_v47 = vld [vmem:[%s27197_s3 + $0x710] sm:$0x11]  ;;  %v411_v48 = vld [vmem:[%s27197_s3 + $0x698] sm:$0xff]  ;;  %v16755_v57 = vcombine.high %v410_v45, %v418_v46 }
 0x1f4   :  { %v21516_v61 = vpop.f32.mrb[8].mxu0  ;;  %v21518_v56 = vpop.f32.mrb[8].mxu1  ;;  %3567 = vmatprep.subr.bf16.mxu1 %v16677_v49  ;;  %v419_v49 = vld [vmem:[%s27197_s3 + $0x6d8] sm:$0xff]  ;;  %v16770_v0 = vcombine.low %v426_v47, %v426_v47 }
 0x1f5   :  { %v21526_v1 = vpop.f32.mrb[9].mxu0  ;;  %v21528_v2 = vpop.f32.mrb[9].mxu1  ;;  %v16756_v55 = vcombine.low %v411_v48, %v419_v49 }
 0x1f6   :  { %v2009_v10 = vpop.f32.mrb[10].mxu0  ;;  %v2050_v11 = vpop.f32.mrb[10].mxu1  ;;  %3527 = vmatpush1.bf16.msra.mxu0 %v16674_v58  ;;  %v16771_v58 = vcombine.high %v426_v47, %v426_v47  ;;  %v260_v47 = vld [vmem:[%s27197_s3 + $0x1e0] sm:$0xff] }
 0x1f7   :  { %3568 = vmatpush1.bf16.msra.mxu1 %v16676_v59  ;;  %v2010_v16 = vpop.f32.mrb[11].mxu0  ;;  %v2051_v17 = vpop.f32.mrb[11].mxu1  ;;  %3528 = vmatprep.subr.bf16.mxu0 %v16691_v60  ;;  %v16757_v59 = vcombine.high %v411_v48, %v419_v49  ;;  %v16773_v60 = vcombine.high %v427_v50, %v427_v50  ;;  %v204_v11 = vld [vmem:[%s27197_s3 + $0x20] sm:$0xff]  ;;  %v253_v48 = vld [vmem:[%s27197_s3 + $0x1a8] sm:$0xff]  ;;  %v16582_v50 = vcombine.low %v236_v52, %v244_v39 }
 0x1f8   :  { %3569 = vmatprep.subr.bf16.mxu1 %v16693_v63  ;;  %v16754_v63 = vcombine.low %v410_v45, %v418_v46  ;;  %v3396_v4 = vand.u32 %v16771_v58, %v20487_v62  ;;  %v205_v16 = vld [vmem:[%s27197_s3 + $0x28] sm:$0xff]  ;;  %v252_v46 = vld [vmem:[%s27197_s3 + $0x1a0] sm:$0xff] }
 0x1f9   :  { %v3402_v10 = vand.u32 %v16773_v60, %v20487_v62  ;;  %v213_v17 = vld [vmem:[%s27197_s3 + $0x68] sm:$0xff]  ;;  %v268_v58 = vld [vmem:[%s27197_s3 + $0x220] sm:$0xff] }
 0x1fa   :  { %3529 = vmatpush1.bf16.msra.mxu0 %v16690_v12  ;;  %v212_v12 = vld [vmem:[%s27197_s3 + $0x60] sm:$0xff]  ;;  %v16553_v24 = vcombine.high %v205_v16, %v213_v17  ;;  %v261_v49 = vld [vmem:[%s27197_s3 + $0x1e8] sm:$0xff] }
 0x1fb   :  { %3570 = vmatpush1.bf16.msra.mxu1 %v16692_v18  ;;  %3530 = vmatprep.subr.bf16.mxu0 %v16707_v19  ;;  %v3393_v18 = vand.u32 %v16770_v0, %v20487_v62  ;;  %v3399_v19 = vand.u32 %v16772_v5, %v20487_v62  ;;  %v16550_v30 = vcombine.low %v204_v11, %v212_v12  ;;  %v269_v60 = vld [vmem:[%s27197_s3 + $0x228] sm:$0xff] }
 0x1fc   :  { %3571 = vmatprep.subr.bf16.mxu1 %v16709_v23  ;;  %v16551_v23 = vcombine.high %v204_v11, %v212_v12  ;;  %v16598_v0 = vcombine.low %v252_v46, %v260_v47  ;;  %v292_v11 = vld [vmem:[%s27197_s3 + $0x2e0] sm:$0xff]  ;;  %v285_v12 = vld [vmem:[%s27197_s3 + $0x2a8] sm:$0xff] }
 0x1fe   :  { %3531 = vmatpush1.bf16.msra.mxu0 %v16706_v31  ;;  %v221_v31 = vld [vmem:[%s27197_s3 + $0xa8] sm:$0xff] }
 0x1ff   :  { %3572 = vmatpush1.bf16.msra.mxu1 %v16708_v33  ;;  %3532 = vmatprep.subr.bf16.mxu0 %v16723_v22  ;;  %v229_v33 = vld [vmem:[%s27197_s3 + $0xe8] sm:$0xff]  ;;  %v16552_v22 = vcombine.low %v205_v16, %v213_v17 }
 0x200   :  { %3573 = vmatprep.subr.bf16.mxu1 %v16725_v38  ;;  %v16567_v38 = vcombine.high %v220_v25, %v228_v29  ;;  %v16569_v41 = vcombine.high %v221_v31, %v229_v33  ;;  %v293_v16 = vld [vmem:[%s27197_s3 + $0x2e8] sm:$0xff] }
 0x202   :  { %3533 = vmatpush1.bf16.msra.mxu0 %v16722_v3  ;;  %v245_v3 = vld [vmem:[%s27197_s3 + $0x168] sm:$0xff] }
 0x203   :  { %3574 = vmatpush1.bf16.msra.mxu1 %v16724_v43  ;;  %3534 = vmatprep.subr.bf16.mxu0 %v16739_v36  ;;  %v16566_v43 = vcombine.low %v220_v25, %v228_v29  ;;  %v16568_v36 = vcombine.low %v221_v31, %v229_v33  ;;  %v16585_v45 = vcombine.high %v237_v42, %v245_v3  ;;  %v308_v25 = vld [vmem:[%s27197_s3 + $0x360] sm:$0xff]  ;;  %v301_v29 = vld [vmem:[%s27197_s3 + $0x328] sm:$0xff] }
 0x204   :  { %3575 = vmatprep.subr.bf16.mxu1 %v16741_v37  ;;  %v16583_v37 = vcombine.high %v236_v52, %v244_v39  ;;  %v16632_v33 = vcombine.low %v285_v12, %v293_v16  ;;  %v316_v52 = vld [vmem:[%s27197_s3 + $0x3a0] sm:$0xff] }
 0x205   :  { %v324_v39 = vld [vmem:[%s27197_s3 + $0x3e0] sm:$0xff] }
 0x206   :  { %3535 = vmatpush1.bf16.msra.mxu0 %v16738_v51  ;;  %v16584_v51 = vcombine.low %v237_v42, %v245_v3  ;;  %v325_v42 = vld [vmem:[%s27197_s3 + $0x3e8] sm:$0xff] }
 0x207   :  { %3576 = vmatpush1.bf16.msra.mxu1 %v16740_v53  ;;  %3536 = vmatprep.subr.bf16.mxu0 %v16755_v57  ;;  %v16599_v53 = vcombine.high %v252_v46, %v260_v47  ;;  %v16601_v57 = vcombine.high %v253_v48, %v261_v49  ;;  %v340_v46 = vld [vmem:[%s27197_s3 + $0x460] sm:$0xff]  ;;  %v333_v47 = vld [vmem:[%s27197_s3 + $0x428] sm:$0xff] }
 0x208   :  { %3577 = vmatprep.subr.bf16.mxu1 %v16757_v59  ;;  %v276_v59 = vld [vmem:[%s27197_s3 + $0x260] sm:$0xff] }
 0x209   :  { %v16614_v17 = vcombine.low %v268_v58, %v276_v59 }
 0x20a   :  { %3537 = vmatpush1.bf16.msra.mxu0 %v16754_v63  ;;  %v277_v63 = vld [vmem:[%s27197_s3 + $0x268] sm:$0xff] }
 0x20b   :  { %3578 = vmatpush1.bf16.msra.mxu1 %v16756_v55  ;;  %3538 = vmatprep.subr.bf16.mxu0 %v3396_v4  ;;  %v16600_v55 = vcombine.low %v253_v48, %v261_v49  ;;  %v16615_v4 = vcombine.high %v268_v58, %v276_v59  ;;  %v16617_v5 = vcombine.high %v269_v60, %v277_v63  ;;  %v341_v48 = vld [vmem:[%s27197_s3 + $0x468] sm:$0xff]  ;;  %v356_v58 = vld [vmem:[%s27197_s3 + $0x4e0] sm:$0xff] }
 0x20c   :  { %3579 = vmatprep.subr.bf16.mxu1 %v3402_v10  ;;  %v284_v10 = vld [vmem:[%s27197_s3 + $0x2a0] sm:$0xff]  ;;  %v16662_v49 = vcombine.low %v316_v52, %v324_v39  ;;  %v349_v59 = vld [vmem:[%s27197_s3 + $0x4a8] sm:$0xff] }
 0x20d   :  { %v16630_v31 = vcombine.low %v284_v10, %v292_v11 }
 0x20e   :  { %3539 = vmatpush1.bf16.msra.mxu0 %v3393_v18  ;;  %v16616_v18 = vcombine.low %v269_v60, %v277_v63  ;;  %v357_v60 = vld [vmem:[%s27197_s3 + $0x4e8] sm:$0xff] }
 0x20f   :  { %3580 = vmatpush1.bf16.msra.mxu1 %v3399_v19  ;;  %3592 = vmatprep.subr.bf16.mxu0 %v16551_v23  ;;  %v16631_v19 = vcombine.high %v284_v10, %v292_v11  ;;  %v16633_v23 = vcombine.high %v285_v12, %v293_v16  ;;  %v364_v10 = vld [vmem:[%s27197_s3 + $0x520] sm:$0xff] }
 0x210   :  { %3633 = vmatprep.subr.bf16.mxu1 %v16553_v24  ;;  %v300_v24 = vld [vmem:[%s27197_s3 + $0x320] sm:$0xff] }
 0x211   :  { %3543 = vmatmul.mubr.bf16.vlgmr.msra.gmra.mrb[24].mxu0 %v21412_v28  ;;  %v16646_v3 = vcombine.low %v300_v24, %v308_v25  ;;  %v372_v11 = vld [vmem:[%s27197_s3 + $0x560] sm:$0xff] }
 0x212   :  { %3584 = vmatmul.mubr.bf16.vlgmr.msra.gmra.mrb[24].mxu1 %v21412_v28  ;;  %3593 = vmatpush1.bf16.msra.mxu0 %v16550_v30  ;;  %v309_v30 = vld [vmem:[%s27197_s3 + $0x368] sm:$0xff] }
 0x213   :  { %16786 = vmatprep.mubr.msk.bf16.mxu0 %vm1835_vm2, %v21223_v54  ;;  %3634 = vmatpush1.bf16.msra.mxu1 %v16552_v22  ;;  %v16647_v22 = vcombine.high %v300_v24, %v308_v25 }
 0x214   :  { %16787 = vmatprep.mubr.msk.bf16.mxu1 %vm1835_vm2, %v21223_v54  ;;  %3594 = vmatprep.subr.bf16.mxu0 %v16567_v38  ;;  %v16649_v38 = vcombine.high %v301_v29, %v309_v30 }
 0x215   :  { %3635 = vmatprep.subr.bf16.mxu1 %v16569_v41  ;;  %v317_v41 = vld [vmem:[%s27197_s3 + $0x3a8] sm:$0xff] }
 0x216   :  { %3595 = vmatpush1.bf16.msra.mxu0 %v16566_v43  ;;  %v16648_v43 = vcombine.low %v301_v29, %v309_v30  ;;  %v16696_v30 = vcombine.low %v349_v59, %v357_v60 }
 0x217   :  { %3636 = vmatpush1.bf16.msra.mxu1 %v16568_v36  ;;  %3596 = vmatprep.subr.bf16.mxu0 %v16583_v37  ;;  %v16663_v36 = vcombine.high %v316_v52, %v324_v39  ;;  %v16665_v37 = vcombine.high %v317_v41, %v325_v42  ;;  %v388_v52 = vld [vmem:[%s27197_s3 + $0x5e0] sm:$0xff]  ;;  %v381_v39 = vld [vmem:[%s27197_s3 + $0x5a8] sm:$0xff] }
 0x218   :  { %3637 = vmatprep.subr.bf16.mxu1 %v16585_v45  ;;  %v332_v45 = vld [vmem:[%s27197_s3 + $0x420] sm:$0xff] }
 0x219   :  { %v16678_v63 = vcombine.low %v332_v45, %v340_v46 }
 0x21a   :  { %3597 = vmatpush1.bf16.msra.mxu0 %v16582_v50  ;;  %v16664_v50 = vcombine.low %v317_v41, %v325_v42  ;;  %v389_v41 = vld [vmem:[%s27197_s3 + $0x5e8] sm:$0xff]  ;;  %v16710_v42 = vcombine.low %v364_v10, %v372_v11 }
 0x21b   :  { %3638 = vmatpush1.bf16.msra.mxu1 %v16584_v51  ;;  %3598 = vmatprep.subr.bf16.mxu0 %v16599_v53  ;;  %v16679_v51 = vcombine.high %v332_v45, %v340_v46  ;;  %v16681_v53 = vcombine.high %v333_v47, %v341_v48  ;;  %v404_v45 = vld [vmem:[%s27197_s3 + $0x660] sm:$0xff]  ;;  %v397_v46 = vld [vmem:[%s27197_s3 + $0x628] sm:$0xff] }
 0x21c   :  { %3639 = vmatprep.subr.bf16.mxu1 %v16601_v57  ;;  %v348_v57 = vld [vmem:[%s27197_s3 + $0x4a0] sm:$0xff] }
 0x21d   :  { %v16694_v24 = vcombine.low %v348_v57, %v356_v58 }
 0x21e   :  { %3599 = vmatpush1.bf16.msra.mxu0 %v16598_v0  ;;  %v16680_v0 = vcombine.low %v333_v47, %v341_v48  ;;  %v405_v47 = vld [vmem:[%s27197_s3 + $0x668] sm:$0xff] }
 0x21f   :  { %3640 = vmatpush1.bf16.msra.mxu1 %v16600_v55  ;;  %3600 = vmatprep.subr.bf16.mxu0 %v16615_v4  ;;  %v16695_v55 = vcombine.high %v348_v57, %v356_v58  ;;  %v420_v57 = vld [vmem:[%s27197_s3 + $0x6e0] sm:$0xff] }
 0x220   :  { %3641 = vmatprep.subr.bf16.mxu1 %v16617_v5  ;;  %v16697_v5 = vcombine.high %v349_v59, %v357_v60  ;;  %v428_v58 = vld [vmem:[%s27197_s3 + $0x720] sm:$0x11]  ;;  %v413_v59 = vld [vmem:[%s27197_s3 + $0x6a8] sm:$0xff] }
 0x221   :  { %v421_v60 = vld [vmem:[%s27197_s3 + $0x6e8] sm:$0xff] }
 0x222   :  { %3601 = vmatpush1.bf16.msra.mxu0 %v16614_v17  ;;  %v365_v17 = vld [vmem:[%s27197_s3 + $0x528] sm:$0xff] }
 0x223   :  { %3642 = vmatpush1.bf16.msra.mxu1 %v16616_v18  ;;  %3602 = vmatprep.subr.bf16.mxu0 %v16631_v19  ;;  %v373_v18 = vld [vmem:[%s27197_s3 + $0x568] sm:$0xff] }
 0x224   :  { %3643 = vmatprep.subr.bf16.mxu1 %v16633_v23 }
 0x226   :  { %3603 = vmatpush1.bf16.msra.mxu0 %v16630_v31  ;;  %v16711_v31 = vcombine.high %v364_v10, %v372_v11  ;;  %v16775_v10 = vcombine.high %v428_v58, %v428_v58  ;;  %v16761_v11 = vcombine.high %v413_v59, %v421_v60 }
 0x227   :  { %3644 = vmatpush1.bf16.msra.mxu1 %v16632_v33  ;;  %3604 = vmatprep.subr.bf16.mxu0 %v16647_v22  ;;  %v16713_v22 = vcombine.high %v365_v17, %v373_v18 }
 0x228   :  { %3645 = vmatprep.subr.bf16.mxu1 %v16649_v38  ;;  %v380_v38 = vld [vmem:[%s27197_s3 + $0x5a0] sm:$0xff] }
 0x229   :  { %v16726_v48 = vcombine.low %v380_v38, %v388_v52 }
 0x22a   :  { %3605 = vmatpush1.bf16.msra.mxu0 %v16646_v3  ;;  %v16712_v3 = vcombine.low %v365_v17, %v373_v18 }
 0x22b   :  { %3646 = vmatpush1.bf16.msra.mxu1 %v16648_v43  ;;  %3606 = vmatprep.subr.bf16.mxu0 %v16663_v36  ;;  %v16727_v43 = vcombine.high %v380_v38, %v388_v52  ;;  %v16729_v36 = vcombine.high %v381_v39, %v389_v41  ;;  %v215_v38 = vld [vmem:[%s27197_s3 + $0x78] sm:$0xff] }
 0x22c   :  { %3647 = vmatprep.subr.bf16.mxu1 %v16665_v37  ;;  %v396_v37 = vld [vmem:[%s27197_s3 + $0x620] sm:$0xff] }
 0x22e   :  { %3607 = vmatpush1.bf16.msra.mxu0 %v16662_v49  ;;  %v16728_v49 = vcombine.low %v381_v39, %v389_v41 }
 0x22f   :  { %3648 = vmatpush1.bf16.msra.mxu1 %v16664_v50  ;;  %3608 = vmatprep.subr.bf16.mxu0 %v16679_v51  ;;  %v16743_v50 = vcombine.high %v396_v37, %v404_v45  ;;  %v16745_v51 = vcombine.high %v397_v46, %v405_v47 }
 0x230   :  { %v21708_v4 = vpop.f32.mrb[12].mxu0  ;;  %3649 = vmatprep.subr.bf16.mxu1 %v16681_v53  ;;  %v412_v53 = vld [vmem:[%s27197_s3 + $0x6a0] sm:$0xff] }
 0x231   :  { %v21716_v12 = vpop.f32.mrb[12].mxu1  ;;  %v21718_v16 = vpop.f32.mrb[13].mxu0  ;;  %v16758_v18 = vcombine.low %v412_v53, %v420_v57 }
 0x232   :  { %v21726_v19 = vpop.f32.mrb[13].mxu1  ;;  %v2091_v23 = vpop.f32.mrb[14].mxu0  ;;  %3609 = vmatpush1.bf16.msra.mxu0 %v16678_v63  ;;  %v429_v63 = vld [vmem:[%s27197_s3 + $0x728] sm:$0x11] }
 0x233   :  { %v2132_v25 = vpop.f32.mrb[14].mxu1  ;;  %3650 = vmatpush1.bf16.msra.mxu1 %v16680_v0  ;;  %v2092_v29 = vpop.f32.mrb[15].mxu0  ;;  %3610 = vmatprep.subr.bf16.mxu0 %v16695_v55  ;;  %v16742_v0 = vcombine.low %v396_v37, %v404_v45  ;;  %v16744_v55 = vcombine.low %v397_v46, %v405_v47  ;;  %v16777_v17 = vcombine.high %v429_v63, %v429_v63  ;;  %v223_v37 = vld [vmem:[%s27197_s3 + $0xb8] sm:$0xff] }
 0x234   :  { %v2133_v33 = vpop.f32.mrb[15].mxu1  ;;  %3651 = vmatprep.subr.bf16.mxu1 %v16697_v5  ;;  %v16759_v5 = vcombine.high %v412_v53, %v420_v57  ;;  %v16774_v23 = vcombine.low %v428_v58, %v428_v58  ;;  %v3408_v25 = vand.u32 %v16775_v10, %v20487_v62  ;;  %v16776_v29 = vcombine.low %v429_v63, %v429_v63  ;;  %v231_v45 = vld [vmem:[%s27197_s3 + $0xf8] sm:$0xff]  ;;  %v254_v63 = vld [vmem:[%s27197_s3 + $0x1b0] sm:$0xff] }
 0x235   :  { %v214_v33 = vld [vmem:[%s27197_s3 + $0x70] sm:$0xff]  ;;  %v247_v53 = vld [vmem:[%s27197_s3 + $0x178] sm:$0xff]  ;;  %v16572_v58 = vcombine.low %v223_v37, %v231_v45 }
 0x236   :  { %3611 = vmatpush1.bf16.msra.mxu0 %v16694_v24  ;;  %v16760_v24 = vcombine.low %v413_v59, %v421_v60  ;;  %v3405_v52 = vand.u32 %v16774_v23, %v20487_v62  ;;  %v3411_v39 = vand.u32 %v16776_v29, %v20487_v62  ;;  %v278_v23 = vld [vmem:[%s27197_s3 + $0x270] sm:$0xff] }
 0x237   :  { %3652 = vmatpush1.bf16.msra.mxu1 %v16696_v30  ;;  %3612 = vmatprep.subr.bf16.mxu0 %v16711_v31  ;;  %v3414_v30 = vand.u32 %v16777_v17, %v20487_v62  ;;  %v206_v31 = vld [vmem:[%s27197_s3 + $0x30] sm:$0xff] }
 0x238   :  { %3653 = vmatprep.subr.bf16.mxu1 %v16713_v22  ;;  %v207_v22 = vld [vmem:[%s27197_s3 + $0x38] sm:$0xff]  ;;  %v16555_v41 = vcombine.high %v206_v31, %v214_v33 }
 0x239   :  { %v16556_v46 = vcombine.low %v207_v22, %v215_v38 }
 0x23a   :  { %3613 = vmatpush1.bf16.msra.mxu0 %v16710_v42  ;;  %v16557_v42 = vcombine.high %v207_v22, %v215_v38  ;;  %v286_v22 = vld [vmem:[%s27197_s3 + $0x2b0] sm:$0xff] }
 0x23b   :  { %3654 = vmatpush1.bf16.msra.mxu1 %v16712_v3  ;;  %3614 = vmatprep.subr.bf16.mxu0 %v16727_v43  ;;  %v222_v3 = vld [vmem:[%s27197_s3 + $0xb0] sm:$0xff] }
 0x23c   :  { %3655 = vmatprep.subr.bf16.mxu1 %v16729_v36  ;;  %v230_v43 = vld [vmem:[%s27197_s3 + $0xf0] sm:$0xff]  ;;  %v16554_v36 = vcombine.low %v206_v31, %v214_v33 }
 0x23d   :  { %v16571_v47 = vcombine.high %v222_v3, %v230_v43  ;;  %v16570_v57 = vcombine.low %v222_v3, %v230_v43  ;;  %v294_v38 = vld [vmem:[%s27197_s3 + $0x2f0] sm:$0xff] }
 0x23e   :  { %3615 = vmatpush1.bf16.msra.mxu0 %v16726_v48  ;;  %v238_v48 = vld [vmem:[%s27197_s3 + $0x130] sm:$0xff]  ;;  %v16635_v3 = vcombine.high %v286_v22, %v294_v38 }
 0x23f   :  { %3656 = vmatpush1.bf16.msra.mxu1 %v16728_v49  ;;  %3616 = vmatprep.subr.bf16.mxu0 %v16743_v50  ;;  %v246_v49 = vld [vmem:[%s27197_s3 + $0x170] sm:$0xff]  ;;  %v16573_v50 = vcombine.high %v223_v37, %v231_v45  ;;  %v303_v45 = vld [vmem:[%s27197_s3 + $0x338] sm:$0xff] }
 0x240   :  { %3657 = vmatprep.subr.bf16.mxu1 %v16745_v51  ;;  %v239_v51 = vld [vmem:[%s27197_s3 + $0x138] sm:$0xff]  ;;  %v16587_v59 = vcombine.high %v238_v48, %v246_v49  ;;  %v310_v37 = vld [vmem:[%s27197_s3 + $0x370] sm:$0xff] }
 0x241   :  { %v16589_v60 = vcombine.high %v239_v51, %v247_v53  ;;  %v16588_v10 = vcombine.low %v239_v51, %v247_v53  ;;  %v318_v51 = vld [vmem:[%s27197_s3 + $0x3b0] sm:$0xff] }
 0x242   :  { %3617 = vmatpush1.bf16.msra.mxu0 %v16742_v0  ;;  %v262_v0 = vld [vmem:[%s27197_s3 + $0x1f0] sm:$0xff] }
 0x243   :  { %3658 = vmatpush1.bf16.msra.mxu1 %v16744_v55  ;;  %3618 = vmatprep.subr.bf16.mxu0 %v16759_v5  ;;  %v255_v55 = vld [vmem:[%s27197_s3 + $0x1b8] sm:$0xff]  ;;  %v16602_v29 = vcombine.low %v254_v63, %v262_v0  ;;  %v326_v53 = vld [vmem:[%s27197_s3 + $0x3f0] sm:$0xff] }
 0x244   :  { %3659 = vmatprep.subr.bf16.mxu1 %v16761_v11  ;;  %v263_v5 = vld [vmem:[%s27197_s3 + $0x1f8] sm:$0xff]  ;;  %v16603_v11 = vcombine.high %v254_v63, %v262_v0  ;;  %v16667_v63 = vcombine.high %v318_v51, %v326_v53 }
 0x245   :  { %v16605_v17 = vcombine.high %v255_v55, %v263_v5 }
 0x246   :  { %3619 = vmatpush1.bf16.msra.mxu0 %v16758_v18  ;;  %v270_v18 = vld [vmem:[%s27197_s3 + $0x230] sm:$0xff] }
 0x247   :  { %3660 = vmatpush1.bf16.msra.mxu1 %v16760_v24  ;;  %3620 = vmatprep.subr.bf16.mxu0 %v3408_v25  ;;  %v271_v24 = vld [vmem:[%s27197_s3 + $0x238] sm:$0xff]  ;;  %v16619_v31 = vcombine.high %v270_v18, %v278_v23 }
 0x248   :  { %3661 = vmatprep.subr.bf16.mxu1 %v3414_v30  ;;  %v279_v25 = vld [vmem:[%s27197_s3 + $0x278] sm:$0xff]  ;;  %v16604_v30 = vcombine.low %v255_v55, %v263_v5  ;;  %v334_v55 = vld [vmem:[%s27197_s3 + $0x430] sm:$0xff] }
 0x249   :  { %v16621_v33 = vcombine.high %v271_v24, %v279_v25  ;;  %v342_v5 = vld [vmem:[%s27197_s3 + $0x470] sm:$0xff] }
 0x24a   :  { %3621 = vmatpush1.bf16.msra.mxu0 %v3405_v52  ;;  %v287_v52 = vld [vmem:[%s27197_s3 + $0x2b8] sm:$0xff] }
 0x24b   :  { %3662 = vmatpush1.bf16.msra.mxu1 %v3411_v39  ;;  %3674 = vmatprep.subr.bf16.mxu0 %v16555_v41  ;;  %v295_v39 = vld [vmem:[%s27197_s3 + $0x2f8] sm:$0xff]  ;;  %v16618_v41 = vcombine.low %v270_v18, %v278_v23  ;;  %v16683_v18 = vcombine.high %v334_v55, %v342_v5 }
 0x24c   :  { %3715 = vmatprep.subr.bf16.mxu1 %v16557_v42  ;;  %v16620_v42 = vcombine.low %v271_v24, %v279_v25  ;;  %v16637_v43 = vcombine.high %v287_v52, %v295_v39  ;;  %v350_v24 = vld [vmem:[%s27197_s3 + $0x4b0] sm:$0xff] }
 0x24d   :  { %3625 = vmatmul.mubr.bf16.vlgmr.msra.gmra.mrb[28].mxu0 %v21412_v28  ;;  %v358_v25 = vld [vmem:[%s27197_s3 + $0x4f0] sm:$0xff] }
 0x24e   :  { %3666 = vmatmul.mubr.bf16.vlgmr.msra.gmra.mrb[28].mxu1 %v21412_v28  ;;  %3675 = vmatpush1.bf16.msra.mxu0 %v16554_v36  ;;  %v302_v36 = vld [vmem:[%s27197_s3 + $0x330] sm:$0xff] }
 0x24f   :  { %16788 = vmatprep.mubr.msk.bf16.mxu0 %vm1835_vm2, %v21223_v54  ;;  %3716 = vmatpush1.bf16.msra.mxu1 %v16556_v46  ;;  %v311_v46 = vld [vmem:[%s27197_s3 + $0x378] sm:$0xff] }
 0x250   :  { %16789 = vmatprep.mubr.msk.bf16.mxu1 %vm1835_vm2, %v21223_v54  ;;  %3676 = vmatprep.subr.bf16.mxu0 %v16571_v47  ;;  %v16586_v54 = vcombine.low %v238_v48, %v246_v49  ;;  %v16634_v47 = vcombine.low %v286_v22, %v294_v38  ;;  %v16636_v48 = vcombine.low %v287_v52, %v295_v39  ;;  %v366_v39 = vld [vmem:[%s27197_s3 + $0x530] sm:$0xff] }
 0x251   :  { %3717 = vmatprep.subr.bf16.mxu1 %v16573_v50  ;;  %v16651_v49 = vcombine.high %v302_v36, %v310_v37  ;;  %v16653_v50 = vcombine.high %v303_v45, %v311_v46  ;;  %v16699_v22 = vcombine.high %v350_v24, %v358_v25 }
 0x252   :  { %3677 = vmatpush1.bf16.msra.mxu0 %v16570_v57  ;;  %v319_v57 = vld [vmem:[%s27197_s3 + $0x3b8] sm:$0xff] }
 0x253   :  { %3718 = vmatpush1.bf16.msra.mxu1 %v16572_v58  ;;  %3678 = vmatprep.subr.bf16.mxu0 %v16587_v59  ;;  %v327_v58 = vld [vmem:[%s27197_s3 + $0x3f8] sm:$0xff]  ;;  %v16650_v59 = vcombine.low %v302_v36, %v310_v37 }
 0x254   :  { %3719 = vmatprep.subr.bf16.mxu1 %v16589_v60  ;;  %v16652_v60 = vcombine.low %v303_v45, %v311_v46  ;;  %v16669_v0 = vcombine.high %v319_v57, %v327_v58  ;;  %v375_v36 = vld [vmem:[%s27197_s3 + $0x578] sm:$0xff]  ;;  %v16698_v46 = vcombine.low %v350_v24, %v358_v25 }
 0x256   :  { %3679 = vmatpush1.bf16.msra.mxu0 %v16586_v54  ;;  %v335_v54 = vld [vmem:[%s27197_s3 + $0x438] sm:$0xff] }
 0x257   :  { %3720 = vmatpush1.bf16.msra.mxu1 %v16588_v10  ;;  %3680 = vmatprep.subr.bf16.mxu0 %v16603_v11  ;;  %v343_v10 = vld [vmem:[%s27197_s3 + $0x478] sm:$0xff]  ;;  %v16666_v11 = vcombine.low %v318_v51, %v326_v53 }
 0x258   :  { %3721 = vmatprep.subr.bf16.mxu1 %v16605_v17  ;;  %v16668_v17 = vcombine.low %v319_v57, %v327_v58  ;;  %v16685_v23 = vcombine.high %v335_v54, %v343_v10  ;;  %v382_v57 = vld [vmem:[%s27197_s3 + $0x5b0] sm:$0xff] }
 0x259   :  { %v390_v58 = vld [vmem:[%s27197_s3 + $0x5f0] sm:$0xff] }
 0x25a   :  { %3681 = vmatpush1.bf16.msra.mxu0 %v16602_v29  ;;  %v351_v29 = vld [vmem:[%s27197_s3 + $0x4b8] sm:$0xff] }
 0x25b   :  { %3722 = vmatpush1.bf16.msra.mxu1 %v16604_v30  ;;  %3682 = vmatprep.subr.bf16.mxu0 %v16619_v31  ;;  %v359_v30 = vld [vmem:[%s27197_s3 + $0x4f8] sm:$0xff]  ;;  %v16682_v31 = vcombine.low %v334_v55, %v342_v5  ;;  %v16731_v55 = vcombine.high %v382_v57, %v390_v58 }
 0x25c   :  { %3723 = vmatprep.subr.bf16.mxu1 %v16621_v33  ;;  %v16684_v33 = vcombine.low %v335_v54, %v343_v10  ;;  %v16701_v52 = vcombine.high %v351_v29, %v359_v30  ;;  %v398_v54 = vld [vmem:[%s27197_s3 + $0x630] sm:$0xff] }
 0x25d   :  { %v406_v10 = vld [vmem:[%s27197_s3 + $0x670] sm:$0xff] }
 0x25e   :  { %3683 = vmatpush1.bf16.msra.mxu0 %v16618_v41  ;;  %v374_v41 = vld [vmem:[%s27197_s3 + $0x570] sm:$0xff]  ;;  %v16747_v24 = vcombine.high %v398_v54, %v406_v10 }
 0x25f   :  { %3724 = vmatpush1.bf16.msra.mxu1 %v16620_v42  ;;  %3684 = vmatprep.subr.bf16.mxu0 %v16635_v3 }
 0x260   :  { %3725 = vmatprep.subr.bf16.mxu1 %v16637_v43  ;;  %v367_v43 = vld [vmem:[%s27197_s3 + $0x538] sm:$0xff] }
 0x261   :  { %v16717_v53 = vcombine.high %v367_v43, %v375_v36 }
 0x262   :  { %3685 = vmatpush1.bf16.msra.mxu0 %v16634_v47 }
 0x263   :  { %3726 = vmatpush1.bf16.msra.mxu1 %v16636_v48  ;;  %3686 = vmatprep.subr.bf16.mxu0 %v16651_v49  ;;  %v16700_v49 = vcombine.low %v351_v29, %v359_v30  ;;  %v414_v29 = vld [vmem:[%s27197_s3 + $0x6b0] sm:$0xff] }
 0x264   :  { %3727 = vmatprep.subr.bf16.mxu1 %v16653_v50  ;;  %v16715_v50 = vcombine.high %v366_v39, %v374_v41  ;;  %v422_v30 = vld [vmem:[%s27197_s3 + $0x6f0] sm:$0xff] }
 0x266   :  { %3687 = vmatpush1.bf16.msra.mxu0 %v16650_v59  ;;  %v383_v59 = vld [vmem:[%s27197_s3 + $0x5b8] sm:$0xff] }
 0x267   :  { %3728 = vmatpush1.bf16.msra.mxu1 %v16652_v60  ;;  %3688 = vmatprep.subr.bf16.mxu0 %v16667_v63  ;;  %v391_v60 = vld [vmem:[%s27197_s3 + $0x5f8] sm:$0xff]  ;;  %v16714_v63 = vcombine.low %v366_v39, %v374_v41  ;;  %v16746_v39 = vcombine.low %v398_v54, %v406_v10  ;;  %v16806_v54 = vld [vmem:[%s27197_s3 + $0xf00] sm:$0xff] }
 0x268   :  { %3729 = vmatprep.subr.bf16.mxu1 %v16669_v0  ;;  %v16716_v0 = vcombine.low %v367_v43, %v375_v36  ;;  %v16733_v5 = vcombine.high %v383_v59, %v391_v60  ;;  %v16763_v43 = vcombine.high %v414_v29, %v422_v30  ;;  %v16814_v10 = vld [vmem:[%s27197_s3 + $0xf40] sm:$0xff] }
 0x26a   :  { %3689 = vmatpush1.bf16.msra.mxu0 %v16666_v11  ;;  %v399_v11 = vld [vmem:[%s27197_s3 + $0x638] sm:$0xff] }
 0x26b   :  { %3730 = vmatpush1.bf16.msra.mxu1 %v16668_v17  ;;  %3690 = vmatprep.subr.bf16.mxu0 %v16683_v18  ;;  %v407_v17 = vld [vmem:[%s27197_s3 + $0x678] sm:$0xff]  ;;  %v16730_v18 = vcombine.low %v382_v57, %v390_v58  ;;  %v16790_v57 = vld [vmem:[%s27197_s3 + $0xe80] sm:$0xff] }
 0x26c   :  { %v21900_v38 = vpop.f32.mrb[16].mxu0  ;;  %3731 = vmatprep.subr.bf16.mxu1 %v16685_v23  ;;  %v16732_v23 = vcombine.low %v383_v59, %v391_v60  ;;  %v16749_v25 = vcombine.high %v399_v11, %v407_v17  ;;  %v16748_v41 = vcombine.low %v399_v11, %v407_v17  ;;  %v16798_v58 = vld [vmem:[%s27197_s3 + $0xec0] sm:$0xff]  ;;  %v16791_v59 = vld [vmem:[%s27197_s3 + $0xe88] sm:$0xff] }
 0x26d   :  { %v21908_v42 = vpop.f32.mrb[16].mxu1  ;;  %v21910_v3 = vpop.f32.mrb[17].mxu0  ;;  %v16799_v60 = vld [vmem:[%s27197_s3 + $0xec8] sm:$0xff]  ;;  %v17022_v11 = vcombine.low %v16790_v57, %v16798_v58 }
 0x26e   :  { %v21918_v37 = vpop.f32.mrb[17].mxu1  ;;  %v2173_v45 = vpop.f32.mrb[18].mxu0  ;;  %3691 = vmatpush1.bf16.msra.mxu0 %v16682_v31  ;;  %v430_v31 = vld [vmem:[%s27197_s3 + $0x730] sm:$0x11]  ;;  %v16807_v17 = vld [vmem:[%s27197_s3 + $0xf08] sm:$0xff] }
 0x26f   :  { %v2214_v47 = vpop.f32.mrb[18].mxu1  ;;  %3732 = vmatpush1.bf16.msra.mxu1 %v16684_v33  ;;  %v2174_v48 = vpop.f32.mrb[19].mxu0  ;;  %3692 = vmatprep.subr.bf16.mxu0 %v16699_v22  ;;  %v415_v33 = vld [vmem:[%s27197_s3 + $0x6b8] sm:$0xff]  ;;  %v16779_v36 = vcombine.high %v430_v31, %v430_v31 }
 0x270   :  { %v2215_v51 = vpop.f32.mrb[19].mxu1  ;;  %3733 = vmatprep.subr.bf16.mxu1 %v16701_v52  ;;  %v423_v22 = vld [vmem:[%s27197_s3 + $0x6f8] sm:$0xff]  ;;  %v16762_v47 = vcombine.low %v414_v29, %v422_v30  ;;  %v16778_v48 = vcombine.low %v430_v31, %v430_v31  ;;  %v16830_v29 = vld [vmem:[%s27197_s3 + $0xfc0] sm:$0xff]  ;;  %v21999_v30 = vpack.c.bf16 %v20631_v6, %v20631_v6 }
 0x271   :  { %v431_v52 = vld [vmem:[%s27197_s3 + $0x738] sm:$0x11]  ;;  %v16765_v45 = vcombine.high %v415_v33, %v423_v22 }
 0x272   :  { %3693 = vmatpush1.bf16.msra.mxu0 %v16698_v46  ;;  %v16781_v46 = vcombine.high %v431_v52, %v431_v52  ;;  %v16780_v51 = vcombine.low %v431_v52, %v431_v52  ;;  %v17038_v52 = vcombine.low %v16806_v54, %v16814_v10 }
 0x273   :  { %3734 = vmatpush1.bf16.msra.mxu1 %v16700_v49  ;;  %3694 = vmatprep.subr.bf16.mxu0 %v16715_v50  ;;  %v16764_v49 = vcombine.low %v415_v33, %v423_v22  ;;  %v3420_v50 = vand.u32 %v16779_v36, %v20487_v62  ;;  %v16823_v33 = vld [vmem:[%s27197_s3 + $0xf88] sm:$0xff] }
 0x274   :  { %3735 = vmatprep.subr.bf16.mxu1 %v16717_v53  ;;  %v3426_v53 = vand.u32 %v16781_v46, %v20487_v62  ;;  %v16831_v22 = vld [vmem:[%s27197_s3 + $0xfc8] sm:$0xff] }
 0x275   :  { %v16839_v36 = vld [vmem:[%s27197_s3 + $0x1008] sm:$0xff] }
 0x276   :  { %3695 = vmatpush1.bf16.msra.mxu0 %v16714_v63  ;;  %v3417_v63 = vand.u32 %v16778_v48, %v20487_v62 }
 0x277   :  { %3736 = vmatpush1.bf16.msra.mxu1 %v16716_v0  ;;  %3696 = vmatprep.subr.bf16.mxu0 %v16731_v55  ;;  %v3423_v0 = vand.u32 %v16780_v51, %v20487_v62  ;;  %v17023_v55 = vcombine.high %v16790_v57, %v16798_v58  ;;  %v16862_v51 = vld [vmem:[%s27197_s3 + $0x10c0] sm:$0xff]  ;;  %v16863_v57 = vld [vmem:[%s27197_s3 + $0x10c8] sm:$0xff] }
 0x278   :  { %3737 = vmatprep.subr.bf16.mxu1 %v16733_v5  ;;  %v17025_v5 = vcombine.high %v16791_v59, %v16799_v60 }
 0x27a   :  { %3697 = vmatpush1.bf16.msra.mxu0 %v16730_v18  ;;  %v16815_v18 = vld [vmem:[%s27197_s3 + $0xf48] sm:$0xff] }
 0x27b   :  { %3738 = vmatpush1.bf16.msra.mxu1 %v16732_v23  ;;  %3698 = vmatprep.subr.bf16.mxu0 %v16747_v24  ;;  %v17024_v23 = vcombine.low %v16791_v59, %v16799_v60  ;;  %v17039_v24 = vcombine.high %v16806_v54, %v16814_v10  ;;  %v17041_v31 = vcombine.high %v16807_v17, %v16815_v18  ;;  %v16879_v54 = vld [vmem:[%s27197_s3 + $0x1148] sm:$0xff] }
 0x27c   :  { %3739 = vmatprep.subr.bf16.mxu1 %v16749_v25  ;;  %v16822_v25 = vld [vmem:[%s27197_s3 + $0xf80] sm:$0xff] }
 0x27d   :  { %v17055_v6 = vcombine.high %v16822_v25, %v16830_v29  ;;  %v17054_v46 = vcombine.low %v16822_v25, %v16830_v29  ;;  %v16887_v25 = vld [vmem:[%s27197_s3 + $0x1188] sm:$0xff] }
 0x27e   :  { %3699 = vmatpush1.bf16.msra.mxu0 %v16746_v39  ;;  %v17040_v39 = vcombine.low %v16807_v17, %v16815_v18  ;;  %v16895_v29 = vld [vmem:[%s27197_s3 + $0x11c8] sm:$0xff] }
 0x27f   :  { %3740 = vmatpush1.bf16.msra.mxu1 %v16748_v41  ;;  %3700 = vmatprep.subr.bf16.mxu0 %v16763_v43  ;;  %v17057_v41 = vcombine.high %v16823_v33, %v16831_v22  ;;  %v16838_v43 = vld [vmem:[%s27197_s3 + $0x1000] sm:$0xff] }
 0x280   :  { %3741 = vmatprep.subr.bf16.mxu1 %v16765_v45  ;;  %v16847_v45 = vld [vmem:[%s27197_s3 + $0x1048] sm:$0xff] }
 0x281   :  { %v17072_v59 = vcombine.low %v16839_v36, %v16847_v45 }
 0x282   :  { %3701 = vmatpush1.bf16.msra.mxu0 %v16762_v47  ;;  %v17056_v47 = vcombine.low %v16823_v33, %v16831_v22 }
 0x283   :  { %3742 = vmatpush1.bf16.msra.mxu1 %v16764_v49  ;;  %3702 = vmatprep.subr.bf16.mxu0 %v3420_v50  ;;  %v17073_v49 = vcombine.high %v16839_v36, %v16847_v45  ;;  %v16854_v50 = vld [vmem:[%s27197_s3 + $0x1080] sm:$0xff]  ;;  %v17120_v36 = vcombine.low %v16887_v25, %v16895_v29 }
 0x284   :  { %3743 = vmatprep.subr.bf16.mxu1 %v3426_v53  ;;  %v16855_v53 = vld [vmem:[%s27197_s3 + $0x1088] sm:$0xff]  ;;  %v17087_v60 = vcombine.high %v16854_v50, %v16862_v51  ;;  %v17086_v10 = vcombine.low %v16854_v50, %v16862_v51 }
 0x285   :  { %v16927_v50 = vld [vmem:[%s27197_s3 + $0x12c8] sm:$0xff] }
 0x286   :  { %3703 = vmatpush1.bf16.msra.mxu0 %v3417_v63  ;;  %v17089_v63 = vcombine.high %v16855_v53, %v16863_v57 }
 0x287   :  { %3744 = vmatpush1.bf16.msra.mxu1 %v3423_v0  ;;  %5212 = vmatprep.subr.bf16.mxu0 %v17023_v55  ;;  %v16870_v0 = vld [vmem:[%s27197_s3 + $0x1100] sm:$0xff] }
 0x288   :  { %5253 = vmatprep.subr.bf16.mxu1 %v17025_v5  ;;  %v16878_v55 = vld [vmem:[%s27197_s3 + $0x1140] sm:$0xff]  ;;  %v16871_v5 = vld [vmem:[%s27197_s3 + $0x1108] sm:$0xff] }
 0x289   :  { %3707 = vmatmul.mubr.bf16.vlgmr.msra.gmra.mrb[32].mxu0 %v21412_v28  ;;  %v17103_v17 = vcombine.high %v16870_v0, %v16878_v55  ;;  %v17105_v18 = vcombine.high %v16871_v5, %v16879_v54  ;;  %v17104_v33 = vcombine.low %v16871_v5, %v16879_v54 }
 0x28a   :  { %3748 = vmatmul.mubr.bf16.vlgmr.msra.gmra.mrb[32].mxu1 %v21412_v28  ;;  %5213 = vmatpush1.bf16.msra.mxu0 %v17022_v11  ;;  %v16846_v28 = vld [vmem:[%s27197_s3 + $0x1040] sm:$0xff]  ;;  %v17088_v11 = vcombine.low %v16855_v53, %v16863_v57 }
 0x28b   :  { %17262 = vmatprep.mubr.msk.bf16.mxu0 %vm1835_vm2, %v21999_v30  ;;  %5254 = vmatpush1.bf16.msra.mxu1 %v17024_v23  ;;  %v17071_v48 = vcombine.high %v16838_v43, %v16846_v28  ;;  %v17070_v58 = vcombine.low %v16838_v43, %v16846_v28  ;;  %v16886_v23 = vld [vmem:[%s27197_s3 + $0x1180] sm:$0xff]  ;;  %v16911_v43 = vld [vmem:[%s27197_s3 + $0x1248] sm:$0xff] }
 0x28c   :  { %17263 = vmatprep.mubr.msk.bf16.mxu1 %vm1835_vm2, %v21999_v30  ;;  %5214 = vmatprep.subr.bf16.mxu0 %v17039_v24  ;;  %v16894_v24 = vld [vmem:[%s27197_s3 + $0x11c0] sm:$0xff] }
 0x28d   :  { %5255 = vmatprep.subr.bf16.mxu1 %v17041_v31  ;;  %v17102_v31 = vcombine.low %v16870_v0, %v16878_v55  ;;  %v17119_v22 = vcombine.high %v16886_v23, %v16894_v24  ;;  %v17118_v28 = vcombine.low %v16886_v23, %v16894_v24  ;;  %v16943_v0 = vld [vmem:[%s27197_s3 + $0x1348] sm:$0xff] }
 0x28e   :  { %5215 = vmatpush1.bf16.msra.mxu0 %v17038_v52  ;;  %v17121_v52 = vcombine.high %v16887_v25, %v16895_v29  ;;  %v16951_v29 = vld [vmem:[%s27197_s3 + $0x1388] sm:$0xff] }
 0x28f   :  { %5256 = vmatpush1.bf16.msra.mxu1 %v17040_v39  ;;  %5216 = vmatprep.subr.bf16.mxu0 %v17055_v6  ;;  %v16902_v39 = vld [vmem:[%s27197_s3 + $0x1200] sm:$0xff] }
 0x290   :  { %5257 = vmatprep.subr.bf16.mxu1 %v17057_v41  ;;  %v16910_v6 = vld [vmem:[%s27197_s3 + $0x1240] sm:$0xff]  ;;  %v16903_v41 = vld [vmem:[%s27197_s3 + $0x1208] sm:$0xff] }
 0x291   :  { %v17135_v45 = vcombine.high %v16902_v39, %v16910_v6  ;;  %v17134_v51 = vcombine.low %v16902_v39, %v16910_v6  ;;  %v17136_v53 = vcombine.low %v16903_v41, %v16911_v43 }
 0x292   :  { %5217 = vmatpush1.bf16.msra.mxu0 %v17054_v46  ;;  %v17137_v46 = vcombine.high %v16903_v41, %v16911_v43 }
 0x293   :  { %5258 = vmatpush1.bf16.msra.mxu1 %v17056_v47  ;;  %5218 = vmatprep.subr.bf16.mxu0 %v17071_v48  ;;  %v16918_v47 = vld [vmem:[%s27197_s3 + $0x1280] sm:$0xff] }
 0x294   :  { %5259 = vmatprep.subr.bf16.mxu1 %v17073_v49  ;;  %v16926_v48 = vld [vmem:[%s27197_s3 + $0x12c0] sm:$0xff]  ;;  %v16919_v49 = vld [vmem:[%s27197_s3 + $0x1288] sm:$0xff] }
 0x295   :  { %v17151_v57 = vcombine.high %v16918_v47, %v16926_v48  ;;  %v17150_v55 = vcombine.low %v16918_v47, %v16926_v48  ;;  %v17152_v5 = vcombine.low %v16919_v49, %v16927_v50  ;;  %v16975_v47 = vld [vmem:[%s27197_s3 + $0x1448] sm:$0xff] }
 0x296   :  { %5219 = vmatpush1.bf16.msra.mxu0 %v17070_v58  ;;  %v17153_v58 = vcombine.high %v16919_v49, %v16927_v50 }
 0x297   :  { %5260 = vmatpush1.bf16.msra.mxu1 %v17072_v59  ;;  %5220 = vmatprep.subr.bf16.mxu0 %v17087_v60  ;;  %v16934_v59 = vld [vmem:[%s27197_s3 + $0x1300] sm:$0xff] }
 0x298   :  { %5261 = vmatprep.subr.bf16.mxu1 %v17089_v63  ;;  %v16942_v60 = vld [vmem:[%s27197_s3 + $0x1340] sm:$0xff]  ;;  %v16935_v63 = vld [vmem:[%s27197_s3 + $0x1308] sm:$0xff] }
 0x299   :  { %v17167_v54 = vcombine.high %v16934_v59, %v16942_v60 }
 0x29a   :  { %5221 = vmatpush1.bf16.msra.mxu0 %v17086_v10 }
 0x29b   :  { %5262 = vmatpush1.bf16.msra.mxu1 %v17088_v11  ;;  %5222 = vmatprep.subr.bf16.mxu0 %v17103_v17  ;;  %v17169_v11 = vcombine.high %v16935_v63, %v16943_v0  ;;  %v16950_v17 = vld [vmem:[%s27197_s3 + $0x1380] sm:$0xff] }
 0x29c   :  { %5263 = vmatprep.subr.bf16.mxu1 %v17105_v18  ;;  %v16958_v18 = vld [vmem:[%s27197_s3 + $0x13c0] sm:$0xff] }
 0x29d   :  { %v17182_v48 = vcombine.low %v16950_v17, %v16958_v18 }
 0x29e   :  { %5223 = vmatpush1.bf16.msra.mxu0 %v17102_v31  ;;  %v16959_v31 = vld [vmem:[%s27197_s3 + $0x13c8] sm:$0xff] }
 0x29f   :  { %5264 = vmatpush1.bf16.msra.mxu1 %v17104_v33  ;;  %5224 = vmatprep.subr.bf16.mxu0 %v17119_v22  ;;  %v17184_v49 = vcombine.low %v16951_v29, %v16959_v31 }
 0x2a0   :  { %5265 = vmatprep.subr.bf16.mxu1 %v17121_v52 }
 0x2a2   :  { %5225 = vmatpush1.bf16.msra.mxu0 %v17118_v28  ;;  %v17168_v28 = vcombine.low %v16935_v63, %v16943_v0 }
 0x2a3   :  { %5266 = vmatpush1.bf16.msra.mxu1 %v17120_v36  ;;  %5226 = vmatprep.subr.bf16.mxu0 %v17135_v45  ;;  %v17183_v36 = vcombine.high %v16950_v17, %v16958_v18  ;;  %v17007_v17 = vld [vmem:[%s27197_s3 + $0x1548] sm:$0xff] }
 0x2a4   :  { %5267 = vmatprep.subr.bf16.mxu1 %v17137_v46  ;;  %v16974_v46 = vld [vmem:[%s27197_s3 + $0x1440] sm:$0xff]  ;;  %v17015_v18 = vld [vmem:[%s27197_s3 + $0x1588] sm:$0x11] }
 0x2a6   :  { %5227 = vmatpush1.bf16.msra.mxu0 %v17134_v51 }
 0x2a7   :  { %5268 = vmatpush1.bf16.msra.mxu1 %v17136_v53  ;;  %5228 = vmatprep.subr.bf16.mxu0 %v17151_v57  ;;  %v16982_v53 = vld [vmem:[%s27197_s3 + $0x1480] sm:$0xff] }
 0x2a8   :  { %v3462_v10 = vpop.f32.mrb[20].mxu0  ;;  %5269 = vmatprep.subr.bf16.mxu1 %v17153_v58  ;;  %v16990_v57 = vld [vmem:[%s27197_s3 + $0x14c0] sm:$0xff]  ;;  %v16983_v58 = vld [vmem:[%s27197_s3 + $0x1488] sm:$0xff] }
 0x2a9   :  { %v22103_v23 = vadd.f32 %v3462_v10, %v21320_v8  ;;  %v3503_v24 = vpop.f32.mrb[20].mxu1  ;;  %v3464_v25 = vpop.f32.mrb[21].mxu0  ;;  %v17166_v8 = vcombine.low %v16934_v59, %v16942_v60  ;;  %v16991_v59 = vld [vmem:[%s27197_s3 + $0x14c8] sm:$0xff]  ;;  %v17215_v0 = vcombine.high %v16982_v53, %v16990_v57  ;;  %v17014_v10 = vld [vmem:[%s27197_s3 + $0x1580] sm:$0x11] }
 0x2aa   :  { %v22112_v33 = vadd.f32 %v3503_v24, %v21322_v9  ;;  %v22115_v22 = vadd.f32 %v3464_v25, %v21330_v14  ;;  %v3505_v52 = vpop.f32.mrb[21].mxu1  ;;  %v3466_v39 = vpop.f32.mrb[22].mxu0  ;;  %5229 = vmatpush1.bf16.msra.mxu0 %v17150_v55  ;;  %v17185_v9 = vcombine.high %v16951_v29, %v16959_v31  ;;  %v16966_v14 = vld [vmem:[%s27197_s3 + $0x1400] sm:$0xff]  ;;  %v17217_v55 = vcombine.high %v16983_v58, %v16991_v59 }
 0x2ab   :  { %v22118_v6 = vadd.f32 %v3505_v52, %v21332_v15  ;;  %v3507_v41 = vpop.f32.mrb[22].mxu1  ;;  %5270 = vmatpush1.bf16.msra.mxu1 %v17152_v5  ;;  %v3467_v43 = vpop.f32.mrb[23].mxu0  ;;  %5230 = vmatprep.subr.bf16.mxu0 %v17167_v54  ;;  %v16967_v15 = vld [vmem:[%s27197_s3 + $0x1408] sm:$0xff]  ;;  %v17199_v50 = vcombine.high %v16966_v14, %v16974_v46  ;;  %v17198_v60 = vcombine.low %v16966_v14, %v16974_v46  ;;  %v16998_v5 = vld [vmem:[%s27197_s3 + $0x1500] sm:$0xff]  ;;  %v16800_v14 = vld [vmem:[%s27197_s3 + $0xed0] sm:$0xff] }
 0x2ac   :  { %v3508_v45 = vpop.f32.mrb[23].mxu1  ;;  %5271 = vmatprep.subr.bf16.mxu1 %v17169_v11  ;;  %v17201_v51 = vcombine.high %v16967_v15, %v16975_v47  ;;  %v17200_v63 = vcombine.low %v16967_v15, %v16975_v47  ;;  %v17006_v54 = vld [vmem:[%s27197_s3 + $0x1540] sm:$0xff]  ;;  %v16999_v11 = vld [vmem:[%s27197_s3 + $0x1508] sm:$0xff]  ;;  %v17214_v24 = vcombine.low %v16982_v53, %v16990_v57  ;;  %v17216_v25 = vcombine.low %v16983_v58, %v16991_v59  ;;  %v16793_v46 = vld [vmem:[%s27197_s3 + $0xe98] sm:$0xff] }
 0x2ad   :  { %v17231_v29 = vcombine.high %v16998_v5, %v17006_v54  ;;  %v17247_v31 = vcombine.high %v17014_v10, %v17014_v10  ;;  %v17233_v52 = vcombine.high %v16999_v11, %v17007_v17  ;;  %v17249_v39 = vcombine.high %v17015_v18, %v17015_v18  ;;  %v16801_v15 = vld [vmem:[%s27197_s3 + $0xed8] sm:$0xff]  ;;  %v16816_v53 = vld [vmem:[%s27197_s3 + $0xf50] sm:$0xff] }
 0x2ae   :  { %5231 = vmatpush1.bf16.msra.mxu0 %v17166_v8  ;;  %v17230_v8 = vcombine.low %v16998_v5, %v17006_v54  ;;  %v17246_v41 = vcombine.low %v17014_v10, %v17014_v10  ;;  %v17232_v43 = vcombine.low %v16999_v11, %v17007_v17  ;;  %v16809_v58 = vld [vmem:[%s27197_s3 + $0xf18] sm:$0xff]  ;;  %v16832_v5 = vld [vmem:[%s27197_s3 + $0xfd0] sm:$0xff] }
 0x2af   :  { %5272 = vmatpush1.bf16.msra.mxu1 %v17168_v28  ;;  %5232 = vmatprep.subr.bf16.mxu0 %v17183_v36  ;;  %v5168_v28 = vand.u32 %v17247_v31, %v20487_v62  ;;  %v17248_v36 = vcombine.low %v17015_v18, %v17015_v18  ;;  %v5174_v45 = vand.u32 %v17249_v39, %v20487_v62  ;;  %v16817_v59 = vld [vmem:[%s27197_s3 + $0xf58] sm:$0xff] }
 0x2b0   :  { %5273 = vmatprep.subr.bf16.mxu1 %v17185_v9  ;;  %v16792_v9 = vld [vmem:[%s27197_s3 + $0xe90] sm:$0xff]  ;;  %v5165_v47 = vand.u32 %v17246_v41, %v20487_v62  ;;  %v17045_v54 = vcombine.high %v16809_v58, %v16817_v59  ;;  %v16833_v10 = vld [vmem:[%s27197_s3 + $0xfd8] sm:$0xff]  ;;  %v17044_v17 = vcombine.low %v16809_v58, %v16817_v59 }
 0x2b1   :  { %v17026_v57 = vcombine.low %v16792_v9, %v16800_v14  ;;  %v16841_v31 = vld [vmem:[%s27197_s3 + $0x1018] sm:$0xff] }
 0x2b2   :  { %5233 = vmatpush1.bf16.msra.mxu0 %v17182_v48  ;;  %v5171_v48 = vand.u32 %v17248_v36, %v20487_v62  ;;  %v16864_v36 = vld [vmem:[%s27197_s3 + $0x10d0] sm:$0xff] }
 0x2b3   :  { %5274 = vmatpush1.bf16.msra.mxu1 %v17184_v49  ;;  %5234 = vmatprep.subr.bf16.mxu0 %v17199_v50  ;;  %v17027_v49 = vcombine.high %v16792_v9, %v16800_v14  ;;  %v17029_v50 = vcombine.high %v16793_v46, %v16801_v15  ;;  %v16865_v9 = vld [vmem:[%s27197_s3 + $0x10d8] sm:$0xff] }
 0x2b4   :  { %5275 = vmatprep.subr.bf16.mxu1 %v17201_v51  ;;  %v16808_v51 = vld [vmem:[%s27197_s3 + $0xf10] sm:$0xff] }
 0x2b5   :  { %v17042_v11 = vcombine.low %v16808_v51, %v16816_v53 }
 0x2b6   :  { %5235 = vmatpush1.bf16.msra.mxu0 %v17198_v60  ;;  %v22192_v60 = vpack.c.bf16 %v20634_v7, %v20634_v7  ;;  %v16825_v7 = vld [vmem:[%s27197_s3 + $0xf98] sm:$0xff] }
 0x2b7   :  { %5276 = vmatpush1.bf16.msra.mxu1 %v17200_v63  ;;  %5236 = vmatprep.subr.bf16.mxu0 %v17215_v0  ;;  %v17028_v63 = vcombine.low %v16793_v46, %v16801_v15  ;;  %v17043_v0 = vcombine.high %v16808_v51, %v16816_v53  ;;  %v16881_v51 = vld [vmem:[%s27197_s3 + $0x1158] sm:$0xff] }
 0x2b8   :  { %5277 = vmatprep.subr.bf16.mxu1 %v17217_v55  ;;  %v16824_v55 = vld [vmem:[%s27197_s3 + $0xf90] sm:$0xff] }
 0x2b9   :  { %v17059_v18 = vcombine.high %v16824_v55, %v16832_v5  ;;  %v17058_v39 = vcombine.low %v16824_v55, %v16832_v5  ;;  %v16889_v55 = vld [vmem:[%s27197_s3 + $0x1198] sm:$0xff] }
 0x2ba   :  { %5237 = vmatpush1.bf16.msra.mxu0 %v17214_v24  ;;  %v17061_v24 = vcombine.high %v16825_v7, %v16833_v10  ;;  %v16897_v5 = vld [vmem:[%s27197_s3 + $0x11d8] sm:$0xff] }
 0x2bb   :  { %5278 = vmatpush1.bf16.msra.mxu1 %v17216_v25  ;;  %5238 = vmatprep.subr.bf16.mxu0 %v17231_v29  ;;  %v16840_v25 = vld [vmem:[%s27197_s3 + $0x1010] sm:$0xff] }
 0x2bc   :  { %5279 = vmatprep.subr.bf16.mxu1 %v17233_v52  ;;  %v16848_v29 = vld [vmem:[%s27197_s3 + $0x1050] sm:$0xff]  ;;  %v16849_v52 = vld [vmem:[%s27197_s3 + $0x1058] sm:$0xff] }
 0x2bd   :  { %v17075_v41 = vcombine.high %v16840_v25, %v16848_v29  ;;  %v17074_v14 = vcombine.low %v16840_v25, %v16848_v29  ;;  %v17076_v46 = vcombine.low %v16841_v31, %v16849_v52  ;;  %v16913_v25 = vld [vmem:[%s27197_s3 + $0x1258] sm:$0xff] }
 0x2be   :  { %5239 = vmatpush1.bf16.msra.mxu0 %v17230_v8  ;;  %v17060_v8 = vcombine.low %v16825_v7, %v16833_v10 }
 0x2bf   :  { %5280 = vmatpush1.bf16.msra.mxu1 %v17232_v43  ;;  %5240 = vmatprep.subr.bf16.mxu0 %v5168_v28  ;;  %v17077_v43 = vcombine.high %v16841_v31, %v16849_v52  ;;  %v16856_v28 = vld [vmem:[%s27197_s3 + $0x1090] sm:$0xff]  ;;  %v17124_v31 = vcombine.low %v16889_v55, %v16897_v5 }
 0x2c0   :  { %5281 = vmatprep.subr.bf16.mxu1 %v5174_v45  ;;  %v16857_v45 = vld [vmem:[%s27197_s3 + $0x1098] sm:$0xff]  ;;  %v17091_v15 = vcombine.high %v16856_v28, %v16864_v36  ;;  %v17090_v53 = vcombine.low %v16856_v28, %v16864_v36 }
 0x2c1   :  { %v16929_v28 = vld [vmem:[%s27197_s3 + $0x12d8] sm:$0xff] }
 0x2c2   :  { %5241 = vmatpush1.bf16.msra.mxu0 %v5165_v47  ;;  %v17093_v47 = vcombine.high %v16857_v45, %v16865_v9 }
 0x2c3   :  { %5282 = vmatpush1.bf16.msra.mxu1 %v5171_v48  ;;  %5294 = vmatprep.subr.bf16.mxu0 %v17027_v49  ;;  %v16872_v48 = vld [vmem:[%s27197_s3 + $0x1110] sm:$0xff] }
 0x2c4   :  { %5335 = vmatprep.subr.bf16.mxu1 %v17029_v50  ;;  %v16880_v49 = vld [vmem:[%s27197_s3 + $0x1150] sm:$0xff]  ;;  %v16873_v50 = vld [vmem:[%s27197_s3 + $0x1118] sm:$0xff] }
 0x2c5   :  { %5245 = vmatmul.mubr.bf16.vlgmr.msra.gmra.mrb[36].mxu0 %v22192_v60  ;;  %v17107_v58 = vcombine.high %v16872_v48, %v16880_v49  ;;  %v17109_v59 = vcombine.high %v16873_v50, %v16881_v51  ;;  %v17108_v7 = vcombine.low %v16873_v50, %v16881_v51 }
 0x2c6   :  { %5286 = vmatmul.mubr.bf16.vlgmr.msra.gmra.mrb[36].mxu1 %v22192_v60  ;;  %5295 = vmatpush1.bf16.msra.mxu0 %v17026_v57  ;;  %v17092_v57 = vcombine.low %v16857_v45, %v16865_v9 }
 0x2c7   :  { %17264 = vmatprep.mubr.msk.bf16.mxu0 %vm1835_vm2, %v21999_v30  ;;  %5336 = vmatpush1.bf16.msra.mxu1 %v17028_v63  ;;  %v16888_v63 = vld [vmem:[%s27197_s3 + $0x1190] sm:$0xff] }
 0x2c8   :  { %17265 = vmatprep.mubr.msk.bf16.mxu1 %vm1835_vm2, %v21999_v30  ;;  %5296 = vmatprep.subr.bf16.mxu0 %v17043_v0  ;;  %v16896_v0 = vld [vmem:[%s27197_s3 + $0x11d0] sm:$0xff] }
 0x2c9   :  { %5337 = vmatprep.subr.bf16.mxu1 %v17045_v54  ;;  %v17106_v54 = vcombine.low %v16872_v48, %v16880_v49  ;;  %v17123_v10 = vcombine.high %v16888_v63, %v16896_v0  ;;  %v17122_v29 = vcombine.low %v16888_v63, %v16896_v0  ;;  %v16945_v48 = vld [vmem:[%s27197_s3 + $0x1358] sm:$0xff] }
 0x2ca   :  { %5297 = vmatpush1.bf16.msra.mxu0 %v17042_v11  ;;  %v17125_v11 = vcombine.high %v16889_v55, %v16897_v5  ;;  %v16953_v5 = vld [vmem:[%s27197_s3 + $0x1398] sm:$0xff] }
 0x2cb   :  { %5338 = vmatpush1.bf16.msra.mxu1 %v17044_v17  ;;  %5298 = vmatprep.subr.bf16.mxu0 %v17059_v18  ;;  %v16904_v17 = vld [vmem:[%s27197_s3 + $0x1210] sm:$0xff] }
 0x2cc   :  { %5339 = vmatprep.subr.bf16.mxu1 %v17061_v24  ;;  %v16912_v18 = vld [vmem:[%s27197_s3 + $0x1250] sm:$0xff]  ;;  %v16905_v24 = vld [vmem:[%s27197_s3 + $0x1218] sm:$0xff] }
 0x2cd   :  { %v17139_v52 = vcombine.high %v16904_v17, %v16912_v18  ;;  %v17138_v36 = vcombine.low %v16904_v17, %v16912_v18  ;;  %v17140_v45 = vcombine.low %v16905_v24, %v16913_v25 }
 0x2ce   :  { %5299 = vmatpush1.bf16.msra.mxu0 %v17058_v39  ;;  %v17141_v39 = vcombine.high %v16905_v24, %v16913_v25 }
 0x2cf   :  { %5340 = vmatpush1.bf16.msra.mxu1 %v17060_v8  ;;  %5300 = vmatprep.subr.bf16.mxu0 %v17075_v41  ;;  %v16920_v8 = vld [vmem:[%s27197_s3 + $0x1290] sm:$0xff] }
 0x2d0   :  { %5341 = vmatprep.subr.bf16.mxu1 %v17077_v43  ;;  %v16928_v41 = vld [vmem:[%s27197_s3 + $0x12d0] sm:$0xff]  ;;  %v16921_v43 = vld [vmem:[%s27197_s3 + $0x1298] sm:$0xff] }
 0x2d1   :  { %v17155_v9 = vcombine.high %v16920_v8, %v16928_v41  ;;  %v17154_v49 = vcombine.low %v16920_v8, %v16928_v41  ;;  %v17156_v50 = vcombine.low %v16921_v43, %v16929_v28  ;;  %v16977_v8 = vld [vmem:[%s27197_s3 + $0x1458] sm:$0xff] }
 0x2d2   :  { %5301 = vmatpush1.bf16.msra.mxu0 %v17074_v14  ;;  %v17157_v14 = vcombine.high %v16921_v43, %v16929_v28 }
 0x2d3   :  { %5342 = vmatpush1.bf16.msra.mxu1 %v17076_v46  ;;  %5302 = vmatprep.subr.bf16.mxu0 %v17091_v15  ;;  %v16936_v46 = vld [vmem:[%s27197_s3 + $0x1310] sm:$0xff] }
 0x2d4   :  { %5343 = vmatprep.subr.bf16.mxu1 %v17093_v47  ;;  %v16944_v15 = vld [vmem:[%s27197_s3 + $0x1350] sm:$0xff]  ;;  %v16937_v47 = vld [vmem:[%s27197_s3 + $0x1318] sm:$0xff] }
 0x2d5   :  { %v17171_v51 = vcombine.high %v16936_v46, %v16944_v15 }
 0x2d6   :  { %5303 = vmatpush1.bf16.msra.mxu0 %v17090_v53 }
 0x2d7   :  { %5344 = vmatpush1.bf16.msra.mxu1 %v17092_v57  ;;  %5304 = vmatprep.subr.bf16.mxu0 %v17107_v58  ;;  %v17173_v57 = vcombine.high %v16937_v47, %v16945_v48  ;;  %v16952_v58 = vld [vmem:[%s27197_s3 + $0x1390] sm:$0xff] }
 0x2d8   :  { %5345 = vmatprep.subr.bf16.mxu1 %v17109_v59  ;;  %v16960_v59 = vld [vmem:[%s27197_s3 + $0x13d0] sm:$0xff] }
 0x2d9   :  { %v17186_v41 = vcombine.low %v16952_v58, %v16960_v59 }
 0x2da   :  { %5305 = vmatpush1.bf16.msra.mxu0 %v17106_v54  ;;  %v16961_v54 = vld [vmem:[%s27197_s3 + $0x13d8] sm:$0xff] }
 0x2db   :  { %5346 = vmatpush1.bf16.msra.mxu1 %v17108_v7  ;;  %5306 = vmatprep.subr.bf16.mxu0 %v17123_v10  ;;  %v17188_v43 = vcombine.low %v16953_v5, %v16961_v54 }
 0x2dc   :  { %5347 = vmatprep.subr.bf16.mxu1 %v17125_v11 }
 0x2de   :  { %5307 = vmatpush1.bf16.msra.mxu0 %v17122_v29  ;;  %v17172_v29 = vcombine.low %v16937_v47, %v16945_v48 }
 0x2df   :  { %5348 = vmatpush1.bf16.msra.mxu1 %v17124_v31  ;;  %5308 = vmatprep.subr.bf16.mxu0 %v17139_v52  ;;  %v17187_v31 = vcombine.high %v16952_v58, %v16960_v59  ;;  %v17009_v58 = vld [vmem:[%s27197_s3 + $0x1558] sm:$0xff] }
 0x2e0   :  { %5349 = vmatprep.subr.bf16.mxu1 %v17141_v39  ;;  %v16976_v39 = vld [vmem:[%s27197_s3 + $0x1450] sm:$0xff]  ;;  %v17017_v59 = vld [vmem:[%s27197_s3 + $0x1598] sm:$0x11] }
 0x2e2   :  { %5309 = vmatpush1.bf16.msra.mxu0 %v17138_v36 }
 0x2e3   :  { %5350 = vmatpush1.bf16.msra.mxu1 %v17140_v45  ;;  %5310 = vmatprep.subr.bf16.mxu0 %v17155_v9  ;;  %v16984_v45 = vld [vmem:[%s27197_s3 + $0x1490] sm:$0xff] }
 0x2e4   :  { %v3544_v53 = vpop.f32.mrb[24].mxu0  ;;  %5351 = vmatprep.subr.bf16.mxu1 %v17157_v14  ;;  %v16992_v9 = vld [vmem:[%s27197_s3 + $0x14d0] sm:$0xff]  ;;  %v16985_v14 = vld [vmem:[%s27197_s3 + $0x1498] sm:$0xff] }
 0x2e5   :  { %v22303_v63 = vadd.f32 %v3544_v53, %v21516_v61  ;;  %v3585_v0 = vpop.f32.mrb[24].mxu1  ;;  %v3546_v55 = vpop.f32.mrb[25].mxu0  ;;  %v17170_v61 = vcombine.low %v16936_v46, %v16944_v15  ;;  %v16993_v46 = vld [vmem:[%s27197_s3 + $0x14d8] sm:$0xff]  ;;  %v17219_v48 = vcombine.high %v16984_v45, %v16992_v9  ;;  %v17016_v53 = vld [vmem:[%s27197_s3 + $0x1590] sm:$0x11] }
 0x2e6   :  { %v22312_v7 = vadd.f32 %v3585_v0, %v21518_v56  ;;  %v22315_v10 = vadd.f32 %v3546_v55, %v21526_v1  ;;  %v3587_v11 = vpop.f32.mrb[25].mxu1  ;;  %v3548_v17 = vpop.f32.mrb[26].mxu0  ;;  %5311 = vmatpush1.bf16.msra.mxu0 %v17154_v49  ;;  %v17189_v56 = vcombine.high %v16953_v5, %v16961_v54  ;;  %v16968_v1 = vld [vmem:[%s27197_s3 + $0x1410] sm:$0xff]  ;;  %v17221_v49 = vcombine.high %v16985_v14, %v16993_v46 }
 0x2e7   :  { %v22318_v18 = vadd.f32 %v3587_v11, %v21528_v2  ;;  %v3589_v24 = vpop.f32.mrb[26].mxu1  ;;  %5352 = vmatpush1.bf16.msra.mxu1 %v17156_v50  ;;  %v3549_v25 = vpop.f32.mrb[27].mxu0  ;;  %5312 = vmatprep.subr.bf16.mxu0 %v17171_v51  ;;  %v16969_v2 = vld [vmem:[%s27197_s3 + $0x1418] sm:$0xff]  ;;  %v17203_v28 = vcombine.high %v16968_v1, %v16976_v39  ;;  %v17202_v15 = vcombine.low %v16968_v1, %v16976_v39  ;;  %v17000_v50 = vld [vmem:[%s27197_s3 + $0x1510] sm:$0xff]  ;;  %v16802_v1 = vld [vmem:[%s27197_s3 + $0xee0] sm:$0xff] }
 0x2e8   :  { %v3590_v52 = vpop.f32.mrb[27].mxu1  ;;  %5353 = vmatprep.subr.bf16.mxu1 %v17173_v57  ;;  %v17205_v36 = vcombine.high %v16969_v2, %v16977_v8  ;;  %v17204_v47 = vcombine.low %v16969_v2, %v16977_v8  ;;  %v17008_v51 = vld [vmem:[%s27197_s3 + $0x1550] sm:$0xff]  ;;  %v17001_v57 = vld [vmem:[%s27197_s3 + $0x1518] sm:$0xff]  ;;  %v17218_v0 = vcombine.low %v16984_v45, %v16992_v9  ;;  %v17220_v55 = vcombine.low %v16985_v14, %v16993_v46  ;;  %v16795_v39 = vld [vmem:[%s27197_s3 + $0xea8] sm:$0xff] }
 0x2e9   :  { %v17235_v5 = vcombine.high %v17000_v50, %v17008_v51  ;;  %v17251_v54 = vcombine.high %v17016_v53, %v17016_v53  ;;  %v17237_v11 = vcombine.high %v17001_v57, %v17009_v58  ;;  %v17253_v17 = vcombine.high %v17017_v59, %v17017_v59  ;;  %v16803_v2 = vld [vmem:[%s27197_s3 + $0xee8] sm:$0xff]  ;;  %v16818_v45 = vld [vmem:[%s27197_s3 + $0xf60] sm:$0xff] }
 0x2ea   :  { %5313 = vmatpush1.bf16.msra.mxu0 %v17170_v61  ;;  %v17234_v61 = vcombine.low %v17000_v50, %v17008_v51  ;;  %v17250_v24 = vcombine.low %v17016_v53, %v17016_v53  ;;  %v17236_v25 = vcombine.low %v17001_v57, %v17009_v58  ;;  %v16811_v14 = vld [vmem:[%s27197_s3 + $0xf28] sm:$0xff] }
 0x2eb   :  { %5354 = vmatpush1.bf16.msra.mxu1 %v17172_v29  ;;  %5314 = vmatprep.subr.bf16.mxu0 %v17187_v31  ;;  %v5180_v29 = vand.u32 %v17251_v54, %v20487_v62  ;;  %v17252_v31 = vcombine.low %v17017_v59, %v17017_v59  ;;  %v5186_v52 = vand.u32 %v17253_v17, %v20487_v62  ;;  %v16819_v46 = vld [vmem:[%s27197_s3 + $0xf68] sm:$0xff] }
 0x2ec   :  { %5355 = vmatprep.subr.bf16.mxu1 %v17189_v56  ;;  %v16794_v56 = vld [vmem:[%s27197_s3 + $0xea0] sm:$0xff]  ;;  %v5177_v8 = vand.u32 %v17250_v24, %v20487_v62  ;;  %v17049_v50 = vcombine.high %v16811_v14, %v16819_v46  ;;  %v16827_v51 = vld [vmem:[%s27197_s3 + $0xfa8] sm:$0xff]  ;;  %v17048_v58 = vcombine.low %v16811_v14, %v16819_v46 }
 0x2ed   :  { %v17030_v9 = vcombine.low %v16794_v56, %v16802_v1  ;;  %v16835_v53 = vld [vmem:[%s27197_s3 + $0xfe8] sm:$0xff] }
 0x2ee   :  { %5315 = vmatpush1.bf16.msra.mxu0 %v17186_v41  ;;  %v5183_v41 = vand.u32 %v17252_v31, %v20487_v62  ;;  %v16843_v54 = vld [vmem:[%s27197_s3 + $0x1028] sm:$0xff]  ;;  %v16866_v31 = vld [vmem:[%s27197_s3 + $0x10e0] sm:$0xff] }
 0x2ef   :  { %5356 = vmatpush1.bf16.msra.mxu1 %v17188_v43  ;;  %5316 = vmatprep.subr.bf16.mxu0 %v17203_v28  ;;  %v17031_v43 = vcombine.high %v16794_v56, %v16802_v1  ;;  %v17033_v28 = vcombine.high %v16795_v39, %v16803_v2  ;;  %v16867_v56 = vld [vmem:[%s27197_s3 + $0x10e8] sm:$0xff] }
 0x2f0   :  { %5357 = vmatprep.subr.bf16.mxu1 %v17205_v36  ;;  %v16810_v36 = vld [vmem:[%s27197_s3 + $0xf20] sm:$0xff] }
 0x2f1   :  { %v17046_v57 = vcombine.low %v16810_v36, %v16818_v45 }
 0x2f2   :  { %5317 = vmatpush1.bf16.msra.mxu0 %v17202_v15  ;;  %v17032_v15 = vcombine.low %v16795_v39, %v16803_v2 }
 0x2f3   :  { %5358 = vmatpush1.bf16.msra.mxu1 %v17204_v47  ;;  %5318 = vmatprep.subr.bf16.mxu0 %v17219_v48  ;;  %v17047_v47 = vcombine.high %v16810_v36, %v16818_v45  ;;  %v16826_v48 = vld [vmem:[%s27197_s3 + $0xfa0] sm:$0xff]  ;;  %v16883_v36 = vld [vmem:[%s27197_s3 + $0x1168] sm:$0xff] }
 0x2f4   :  { %5359 = vmatprep.subr.bf16.mxu1 %v17221_v49  ;;  %v16834_v49 = vld [vmem:[%s27197_s3 + $0xfe0] sm:$0xff] }
 0x2f5   :  { %v17063_v59 = vcombine.high %v16826_v48, %v16834_v49  ;;  %v17062_v17 = vcombine.low %v16826_v48, %v16834_v49  ;;  %v16891_v48 = vld [vmem:[%s27197_s3 + $0x11a8] sm:$0xff] }
 0x2f6   :  { %5319 = vmatpush1.bf16.msra.mxu0 %v17218_v0  ;;  %v17065_v0 = vcombine.high %v16827_v51, %v16835_v53  ;;  %v16899_v49 = vld [vmem:[%s27197_s3 + $0x11e8] sm:$0xff] }
 0x2f7   :  { %5360 = vmatpush1.bf16.msra.mxu1 %v17220_v55  ;;  %5320 = vmatprep.subr.bf16.mxu0 %v17235_v5  ;;  %v16842_v55 = vld [vmem:[%s27197_s3 + $0x1020] sm:$0xff] }
 0x2f8   :  { %5361 = vmatprep.subr.bf16.mxu1 %v17237_v11  ;;  %v16850_v5 = vld [vmem:[%s27197_s3 + $0x1060] sm:$0xff]  ;;  %v16851_v11 = vld [vmem:[%s27197_s3 + $0x1068] sm:$0xff] }
 0x2f9   :  { %v17079_v24 = vcombine.high %v16842_v55, %v16850_v5  ;;  %v17078_v1 = vcombine.low %v16842_v55, %v16850_v5  ;;  %v17080_v39 = vcombine.low %v16843_v54, %v16851_v11  ;;  %v16915_v55 = vld [vmem:[%s27197_s3 + $0x1268] sm:$0xff] }
 0x2fa   :  { %5321 = vmatpush1.bf16.msra.mxu0 %v17234_v61  ;;  %v17064_v61 = vcombine.low %v16827_v51, %v16835_v53 }
 0x2fb   :  { %5362 = vmatpush1.bf16.msra.mxu1 %v17236_v25  ;;  %5322 = vmatprep.subr.bf16.mxu0 %v5180_v29  ;;  %v17081_v25 = vcombine.high %v16843_v54, %v16851_v11  ;;  %v16858_v29 = vld [vmem:[%s27197_s3 + $0x10a0] sm:$0xff]  ;;  %v17128_v54 = vcombine.low %v16891_v48, %v16899_v49 }
 0x2fc   :  { %5363 = vmatprep.subr.bf16.mxu1 %v5186_v52  ;;  %v16859_v52 = vld [vmem:[%s27197_s3 + $0x10a8] sm:$0xff]  ;;  %v17095_v2 = vcombine.high %v16858_v29, %v16866_v31  ;;  %v17094_v45 = vcombine.low %v16858_v29, %v16866_v31 }
 0x2fd   :  { %v16931_v29 = vld [vmem:[%s27197_s3 + $0x12e8] sm:$0xff] }
 0x2fe   :  { %5323 = vmatpush1.bf16.msra.mxu0 %v5177_v8  ;;  %v17097_v8 = vcombine.high %v16859_v52, %v16867_v56 }
 0x2ff   :  { %5364 = vmatpush1.bf16.msra.mxu1 %v5183_v41  ;;  %5376 = vmatprep.subr.bf16.mxu0 %v17031_v43  ;;  %v16874_v41 = vld [vmem:[%s27197_s3 + $0x1120] sm:$0xff] }
 0x300   :  { %5417 = vmatprep.subr.bf16.mxu1 %v17033_v28  ;;  %v16882_v43 = vld [vmem:[%s27197_s3 + $0x1160] sm:$0xff]  ;;  %v16875_v28 = vld [vmem:[%s27197_s3 + $0x1128] sm:$0xff] }
 0x301   :  { %5327 = vmatmul.mubr.bf16.vlgmr.msra.gmra.mrb[40].mxu0 %v22192_v60  ;;  %v17111_v14 = vcombine.high %v16874_v41, %v16882_v43  ;;  %v17113_v46 = vcombine.high %v16875_v28, %v16883_v36  ;;  %v17112_v51 = vcombine.low %v16875_v28, %v16883_v36 }
 0x302   :  { %5368 = vmatmul.mubr.bf16.vlgmr.msra.gmra.mrb[40].mxu1 %v22192_v60  ;;  %5377 = vmatpush1.bf16.msra.mxu0 %v17030_v9  ;;  %v17096_v9 = vcombine.low %v16859_v52, %v16867_v56 }
 0x303   :  { %17266 = vmatprep.mubr.msk.bf16.mxu0 %vm1835_vm2, %v21999_v30  ;;  %5418 = vmatpush1.bf16.msra.mxu1 %v17032_v15  ;;  %v16890_v15 = vld [vmem:[%s27197_s3 + $0x11a0] sm:$0xff] }
 0x304   :  { %17267 = vmatprep.mubr.msk.bf16.mxu1 %vm1835_vm2, %v21999_v30  ;;  %5378 = vmatprep.subr.bf16.mxu0 %v17047_v47  ;;  %v16898_v47 = vld [vmem:[%s27197_s3 + $0x11e0] sm:$0xff] }
 0x305   :  { %5419 = vmatprep.subr.bf16.mxu1 %v17049_v50  ;;  %v17110_v50 = vcombine.low %v16874_v41, %v16882_v43  ;;  %v17127_v53 = vcombine.high %v16890_v15, %v16898_v47  ;;  %v17126_v5 = vcombine.low %v16890_v15, %v16898_v47  ;;  %v16947_v41 = vld [vmem:[%s27197_s3 + $0x1368] sm:$0xff] }
 0x306   :  { %5379 = vmatpush1.bf16.msra.mxu0 %v17046_v57  ;;  %v17129_v57 = vcombine.high %v16891_v48, %v16899_v49  ;;  %v16955_v49 = vld [vmem:[%s27197_s3 + $0x13a8] sm:$0xff] }
 0x307   :  { %5420 = vmatpush1.bf16.msra.mxu1 %v17048_v58  ;;  %5380 = vmatprep.subr.bf16.mxu0 %v17063_v59  ;;  %v16906_v58 = vld [vmem:[%s27197_s3 + $0x1220] sm:$0xff] }
 0x308   :  { %5421 = vmatprep.subr.bf16.mxu1 %v17065_v0  ;;  %v16914_v59 = vld [vmem:[%s27197_s3 + $0x1260] sm:$0xff]  ;;  %v16907_v0 = vld [vmem:[%s27197_s3 + $0x1228] sm:$0xff] }
 0x309   :  { %v17143_v11 = vcombine.high %v16906_v58, %v16914_v59  ;;  %v17142_v31 = vcombine.low %v16906_v58, %v16914_v59  ;;  %v17144_v52 = vcombine.low %v16907_v0, %v16915_v55 }
 0x30a   :  { %5381 = vmatpush1.bf16.msra.mxu0 %v17062_v17  ;;  %v17145_v17 = vcombine.high %v16907_v0, %v16915_v55 }
 0x30b   :  { %5422 = vmatpush1.bf16.msra.mxu1 %v17064_v61  ;;  %5382 = vmatprep.subr.bf16.mxu0 %v17079_v24  ;;  %v16922_v61 = vld [vmem:[%s27197_s3 + $0x12a0] sm:$0xff] }
 0x30c   :  { %5423 = vmatprep.subr.bf16.mxu1 %v17081_v25  ;;  %v16930_v24 = vld [vmem:[%s27197_s3 + $0x12e0] sm:$0xff]  ;;  %v16923_v25 = vld [vmem:[%s27197_s3 + $0x12a8] sm:$0xff] }
 0x30d   :  { %v17159_v56 = vcombine.high %v16922_v61, %v16930_v24  ;;  %v17158_v43 = vcombine.low %v16922_v61, %v16930_v24  ;;  %v17160_v28 = vcombine.low %v16923_v25, %v16931_v29  ;;  %v16979_v61 = vld [vmem:[%s27197_s3 + $0x1468] sm:$0xff] }
 0x30e   :  { %5383 = vmatpush1.bf16.msra.mxu0 %v17078_v1  ;;  %v17161_v1 = vcombine.high %v16923_v25, %v16931_v29 }
 0x30f   :  { %5424 = vmatpush1.bf16.msra.mxu1 %v17080_v39  ;;  %5384 = vmatprep.subr.bf16.mxu0 %v17095_v2  ;;  %v16938_v39 = vld [vmem:[%s27197_s3 + $0x1320] sm:$0xff] }
 0x310   :  { %5425 = vmatprep.subr.bf16.mxu1 %v17097_v8  ;;  %v16946_v2 = vld [vmem:[%s27197_s3 + $0x1360] sm:$0xff]  ;;  %v16939_v8 = vld [vmem:[%s27197_s3 + $0x1328] sm:$0xff] }
 0x311   :  { %v17175_v36 = vcombine.high %v16938_v39, %v16946_v2 }
 0x312   :  { %5385 = vmatpush1.bf16.msra.mxu0 %v17094_v45 }
 0x313   :  { %5426 = vmatpush1.bf16.msra.mxu1 %v17096_v9  ;;  %5386 = vmatprep.subr.bf16.mxu0 %v17111_v14  ;;  %v17177_v9 = vcombine.high %v16939_v8, %v16947_v41  ;;  %v16954_v14 = vld [vmem:[%s27197_s3 + $0x13a0] sm:$0xff] }
 0x314   :  { %5427 = vmatprep.subr.bf16.mxu1 %v17113_v46  ;;  %v16962_v46 = vld [vmem:[%s27197_s3 + $0x13e0] sm:$0xff] }
 0x315   :  { %v17190_v24 = vcombine.low %v16954_v14, %v16962_v46 }
 0x316   :  { %5387 = vmatpush1.bf16.msra.mxu0 %v17110_v50  ;;  %v16963_v50 = vld [vmem:[%s27197_s3 + $0x13e8] sm:$0xff] }
 0x317   :  { %5428 = vmatpush1.bf16.msra.mxu1 %v17112_v51  ;;  %5388 = vmatprep.subr.bf16.mxu0 %v17127_v53  ;;  %v17192_v25 = vcombine.low %v16955_v49, %v16963_v50 }
 0x318   :  { %5429 = vmatprep.subr.bf16.mxu1 %v17129_v57 }
 0x31a   :  { %5389 = vmatpush1.bf16.msra.mxu0 %v17126_v5  ;;  %v17176_v5 = vcombine.low %v16939_v8, %v16947_v41 }
 0x31b   :  { %5430 = vmatpush1.bf16.msra.mxu1 %v17128_v54  ;;  %5390 = vmatprep.subr.bf16.mxu0 %v17143_v11  ;;  %v17191_v54 = vcombine.high %v16954_v14, %v16962_v46  ;;  %v17011_v14 = vld [vmem:[%s27197_s3 + $0x1568] sm:$0xff] }
 0x31c   :  { %5431 = vmatprep.subr.bf16.mxu1 %v17145_v17  ;;  %v16978_v17 = vld [vmem:[%s27197_s3 + $0x1460] sm:$0xff]  ;;  %v17019_v46 = vld [vmem:[%s27197_s3 + $0x15a8] sm:$0x11] }
 0x31e   :  { %5391 = vmatpush1.bf16.msra.mxu0 %v17142_v31 }
 0x31f   :  { %5432 = vmatpush1.bf16.msra.mxu1 %v17144_v52  ;;  %5392 = vmatprep.subr.bf16.mxu0 %v17159_v56  ;;  %v16986_v52 = vld [vmem:[%s27197_s3 + $0x14a0] sm:$0xff] }
 0x320   :  { %v3626_v45 = vpop.f32.mrb[28].mxu0  ;;  %5433 = vmatprep.subr.bf16.mxu1 %v17161_v1  ;;  %v16994_v56 = vld [vmem:[%s27197_s3 + $0x14e0] sm:$0xff]  ;;  %v16987_v1 = vld [vmem:[%s27197_s3 + $0x14a8] sm:$0xff] }
 0x321   :  { %v22499_v15 = vadd.f32 %v3626_v45, %v21708_v4  ;;  %v3667_v47 = vpop.f32.mrb[28].mxu1  ;;  %v3628_v48 = vpop.f32.mrb[29].mxu0  ;;  %v17174_v4 = vcombine.low %v16938_v39, %v16946_v2  ;;  %v16995_v39 = vld [vmem:[%s27197_s3 + $0x14e8] sm:$0xff]  ;;  %v17223_v41 = vcombine.high %v16986_v52, %v16994_v56  ;;  %v17018_v45 = vld [vmem:[%s27197_s3 + $0x15a0] sm:$0x11] }
 0x322   :  { %v22508_v51 = vadd.f32 %v3667_v47, %v21716_v12  ;;  %v22511_v53 = vadd.f32 %v3628_v48, %v21718_v16  ;;  %v3669_v57 = vpop.f32.mrb[29].mxu1  ;;  %v3630_v58 = vpop.f32.mrb[30].mxu0  ;;  %5393 = vmatpush1.bf16.msra.mxu0 %v17158_v43  ;;  %v17193_v12 = vcombine.high %v16955_v49, %v16963_v50  ;;  %v16970_v16 = vld [vmem:[%s27197_s3 + $0x1420] sm:$0xff]  ;;  %v17225_v43 = vcombine.high %v16987_v1, %v16995_v39 }
 0x323   :  { %v22514_v59 = vadd.f32 %v3669_v57, %v21726_v19  ;;  %v3671_v0 = vpop.f32.mrb[30].mxu1  ;;  %5434 = vmatpush1.bf16.msra.mxu1 %v17160_v28  ;;  %v3631_v55 = vpop.f32.mrb[31].mxu0  ;;  %5394 = vmatprep.subr.bf16.mxu0 %v17175_v36  ;;  %v16971_v19 = vld [vmem:[%s27197_s3 + $0x1428] sm:$0xff]  ;;  %v17207_v29 = vcombine.high %v16970_v16, %v16978_v17  ;;  %v17206_v2 = vcombine.low %v16970_v16, %v16978_v17  ;;  %v17002_v28 = vld [vmem:[%s27197_s3 + $0x1520] sm:$0xff]  ;;  %v16804_v16 = vld [vmem:[%s27197_s3 + $0xef0] sm:$0xff] }
 0x324   :  { %v3672_v11 = vpop.f32.mrb[31].mxu1  ;;  %5435 = vmatprep.subr.bf16.mxu1 %v17177_v9  ;;  %v17209_v31 = vcombine.high %v16971_v19, %v16979_v61  ;;  %v17208_v8 = vcombine.low %v16971_v19, %v16979_v61  ;;  %v17010_v36 = vld [vmem:[%s27197_s3 + $0x1560] sm:$0xff]  ;;  %v17003_v9 = vld [vmem:[%s27197_s3 + $0x1528] sm:$0xff]  ;;  %v17222_v47 = vcombine.low %v16986_v52, %v16994_v56  ;;  %v17224_v48 = vcombine.low %v16987_v1, %v16995_v39  ;;  %v16797_v17 = vld [vmem:[%s27197_s3 + $0xeb8] sm:$0xff] }
 0x325   :  { %v17239_v49 = vcombine.high %v17002_v28, %v17010_v36  ;;  %v17255_v50 = vcombine.high %v17018_v45, %v17018_v45  ;;  %v17241_v57 = vcombine.high %v17003_v9, %v17011_v14  ;;  %v17257_v58 = vcombine.high %v17019_v46, %v17019_v46  ;;  %v16805_v19 = vld [vmem:[%s27197_s3 + $0xef8] sm:$0xff]  ;;  %v16820_v52 = vld [vmem:[%s27197_s3 + $0xf70] sm:$0xff] }
 0x326   :  { %5395 = vmatpush1.bf16.msra.mxu0 %v17174_v4  ;;  %v17238_v4 = vcombine.low %v17002_v28, %v17010_v36  ;;  %v17254_v0 = vcombine.low %v17018_v45, %v17018_v45  ;;  %v17240_v55 = vcombine.low %v17003_v9, %v17011_v14  ;;  %v16813_v1 = vld [vmem:[%s27197_s3 + $0xf38] sm:$0xff] }
 0x327   :  { %5436 = vmatpush1.bf16.msra.mxu1 %v17176_v5  ;;  %5396 = vmatprep.subr.bf16.mxu0 %v17191_v54  ;;  %v5192_v5 = vand.u32 %v17255_v50, %v20487_v62  ;;  %v17256_v54 = vcombine.low %v17019_v46, %v17019_v46  ;;  %v5198_v11 = vand.u32 %v17257_v58, %v20487_v62  ;;  %v16821_v39 = vld [vmem:[%s27197_s3 + $0xf78] sm:$0xff] }
 0x328   :  { %5437 = vmatprep.subr.bf16.mxu1 %v17193_v12  ;;  %v16796_v12 = vld [vmem:[%s27197_s3 + $0xeb0] sm:$0xff]  ;;  %v5189_v61 = vand.u32 %v17254_v0, %v20487_v62  ;;  %v17053_v28 = vcombine.high %v16813_v1, %v16821_v39  ;;  %v16829_v36 = vld [vmem:[%s27197_s3 + $0xfb8] sm:$0xff]  ;;  %v17052_v14 = vcombine.low %v16813_v1, %v16821_v39 }
 0x329   :  { %v17034_v56 = vcombine.low %v16796_v12, %v16804_v16  ;;  %v16837_v45 = vld [vmem:[%s27197_s3 + $0xff8] sm:$0xff]  ;;  %v16892_v39 = vld [vmem:[%s27197_s3 + $0x11b0] sm:$0xff] }
 0x32a   :  { %5397 = vmatpush1.bf16.msra.mxu0 %v17190_v24  ;;  %v5195_v24 = vand.u32 %v17256_v54, %v20487_v62  ;;  %v16845_v50 = vld [vmem:[%s27197_s3 + $0x1038] sm:$0xff]  ;;  %v17068_v58 = vcombine.low %v16829_v36, %v16837_v45 }
 0x32b   :  { %5438 = vmatpush1.bf16.msra.mxu1 %v17192_v25  ;;  %5398 = vmatprep.subr.bf16.mxu0 %v17207_v29  ;;  %v17035_v25 = vcombine.high %v16796_v12, %v16804_v16  ;;  %v17037_v29 = vcombine.high %v16797_v17, %v16805_v19  ;;  %v16861_v54 = vld [vmem:[%s27197_s3 + $0x10b8] sm:$0xff] }
 0x32c   :  { %5439 = vmatprep.subr.bf16.mxu1 %v17209_v31  ;;  %v16812_v31 = vld [vmem:[%s27197_s3 + $0xf30] sm:$0xff] }
 0x32d   :  { %v17050_v9 = vcombine.low %v16812_v31, %v16820_v52 }
 0x32e   :  { %5399 = vmatpush1.bf16.msra.mxu0 %v17206_v2  ;;  %v17036_v2 = vcombine.low %v16797_v17, %v16805_v19 }
 0x32f   :  { %5440 = vmatpush1.bf16.msra.mxu1 %v17208_v8  ;;  %5400 = vmatprep.subr.bf16.mxu0 %v17223_v41  ;;  %v17051_v8 = vcombine.high %v16812_v31, %v16820_v52  ;;  %v16828_v41 = vld [vmem:[%s27197_s3 + $0xfb0] sm:$0xff] }
 0x330   :  { %5441 = vmatprep.subr.bf16.mxu1 %v17225_v43  ;;  %v16836_v43 = vld [vmem:[%s27197_s3 + $0xff0] sm:$0xff] }
 0x331   :  { %v17067_v46 = vcombine.high %v16828_v41, %v16836_v43 }
 0x332   :  { %5401 = vmatpush1.bf16.msra.mxu0 %v17222_v47  ;;  %v17069_v47 = vcombine.high %v16829_v36, %v16837_v45 }
 0x333   :  { %5442 = vmatpush1.bf16.msra.mxu1 %v17224_v48  ;;  %5402 = vmatprep.subr.bf16.mxu0 %v17239_v49  ;;  %v16844_v48 = vld [vmem:[%s27197_s3 + $0x1030] sm:$0xff] }
 0x334   :  { %5443 = vmatprep.subr.bf16.mxu1 %v17241_v57  ;;  %v16852_v49 = vld [vmem:[%s27197_s3 + $0x1070] sm:$0xff]  ;;  %v16853_v57 = vld [vmem:[%s27197_s3 + $0x1078] sm:$0xff] }
 0x335   :  { %v17085_v0 = vcombine.high %v16845_v50, %v16853_v57  ;;  %v17082_v12 = vcombine.low %v16844_v48, %v16852_v49  ;;  %v17084_v16 = vcombine.low %v16845_v50, %v16853_v57 }
 0x336   :  { %5403 = vmatpush1.bf16.msra.mxu0 %v17238_v4  ;;  %v17083_v4 = vcombine.high %v16844_v48, %v16852_v49 }
 0x337   :  { %5444 = vmatpush1.bf16.msra.mxu1 %v17240_v55  ;;  %5404 = vmatprep.subr.bf16.mxu0 %v5192_v5  ;;  %v16860_v55 = vld [vmem:[%s27197_s3 + $0x10b0] sm:$0xff] }
 0x338   :  { %5445 = vmatprep.subr.bf16.mxu1 %v5198_v11  ;;  %v16868_v5 = vld [vmem:[%s27197_s3 + $0x10f0] sm:$0xff]  ;;  %v16869_v11 = vld [vmem:[%s27197_s3 + $0x10f8] sm:$0xff] }
 0x339   :  { %v17099_v17 = vcombine.high %v16860_v55, %v16868_v5  ;;  %v17101_v19 = vcombine.high %v16861_v54, %v16869_v11  ;;  %v17098_v31 = vcombine.low %v16860_v55, %v16868_v5  ;;  %v17100_v52 = vcombine.low %v16861_v54, %v16869_v11 }
 0x33a   :  { %5405 = vmatpush1.bf16.msra.mxu0 %v5189_v61  ;;  %v16876_v61 = vld [vmem:[%s27197_s3 + $0x1130] sm:$0xff] }
 0x33b   :  { %5446 = vmatpush1.bf16.msra.mxu1 %v5195_v24  ;;  %5458 = vmatprep.subr.bf16.mxu0 %v17035_v25  ;;  %v16884_v24 = vld [vmem:[%s27197_s3 + $0x1170] sm:$0xff]  ;;  %v16877_v25 = vld [vmem:[%s27197_s3 + $0x1138] sm:$0xff] }
 0x33c   :  { %5499 = vmatprep.subr.bf16.mxu1 %v17037_v29  ;;  %v16885_v29 = vld [vmem:[%s27197_s3 + $0x1178] sm:$0xff] }
 0x33d   :  { %5409 = vmatmul.mubr.bf16.vlgmr.msra.gmra.mrb[44].mxu0 %v22192_v60  ;;  %v17117_v1 = vcombine.high %v16877_v25, %v16885_v29 }
 0x33e   :  { %5450 = vmatmul.mubr.bf16.vlgmr.msra.gmra.mrb[44].mxu1 %v22192_v60  ;;  %5459 = vmatpush1.bf16.msra.mxu0 %v17034_v56  ;;  %v17115_v56 = vcombine.high %v16876_v61, %v16884_v24 }
 0x33f   :  { %17268 = vmatprep.mubr.msk.bf16.mxu0 %vm1835_vm2, %v21999_v30  ;;  %5500 = vmatpush1.bf16.msra.mxu1 %v17036_v2  ;;  %v16900_v2 = vld [vmem:[%s27197_s3 + $0x11f0] sm:$0xff] }
 0x340   :  { %17269 = vmatprep.mubr.msk.bf16.mxu1 %vm1835_vm2, %v21999_v30  ;;  %5460 = vmatprep.subr.bf16.mxu0 %v17051_v8  ;;  %v17066_v30 = vcombine.low %v16828_v41, %v16836_v43  ;;  %v16893_v8 = vld [vmem:[%s27197_s3 + $0x11b8] sm:$0xff]  ;;  %v17114_v43 = vcombine.low %v16876_v61, %v16884_v24  ;;  %v17131_v36 = vcombine.high %v16892_v39, %v16900_v2 }
 0x341   :  { %5501 = vmatprep.subr.bf16.mxu1 %v17053_v28  ;;  %v16901_v41 = vld [vmem:[%s27197_s3 + $0x11f8] sm:$0xff]  ;;  %v17116_v28 = vcombine.low %v16877_v25, %v16885_v29  ;;  %v17130_v48 = vcombine.low %v16892_v39, %v16900_v2 }
 0x342   :  { %5461 = vmatpush1.bf16.msra.mxu0 %v17050_v9  ;;  %v17133_v45 = vcombine.high %v16893_v8, %v16901_v41  ;;  %v16908_v9 = vld [vmem:[%s27197_s3 + $0x1230] sm:$0xff]  ;;  %v17132_v49 = vcombine.low %v16893_v8, %v16901_v41  ;;  %v16957_v8 = vld [vmem:[%s27197_s3 + $0x13b8] sm:$0xff] }
 0x343   :  { %5502 = vmatpush1.bf16.msra.mxu1 %v17052_v14  ;;  %5462 = vmatprep.subr.bf16.mxu0 %v17067_v46  ;;  %v16916_v14 = vld [vmem:[%s27197_s3 + $0x1270] sm:$0xff]  ;;  %v16909_v46 = vld [vmem:[%s27197_s3 + $0x1238] sm:$0xff] }
 0x344   :  { %5503 = vmatprep.subr.bf16.mxu1 %v17069_v47  ;;  %v16917_v47 = vld [vmem:[%s27197_s3 + $0x1278] sm:$0xff]  ;;  %v17147_v50 = vcombine.high %v16908_v9, %v16916_v14  ;;  %v17146_v55 = vcombine.low %v16908_v9, %v16916_v14 }
 0x345   :  { %v17149_v57 = vcombine.high %v16909_v46, %v16917_v47  ;;  %v17148_v5 = vcombine.low %v16909_v46, %v16917_v47  ;;  %v16965_v41 = vld [vmem:[%s27197_s3 + $0x13f8] sm:$0xff] }
 0x346   :  { %5463 = vmatpush1.bf16.msra.mxu0 %v17066_v30  ;;  %v16924_v30 = vld [vmem:[%s27197_s3 + $0x12b0] sm:$0xff] }
 0x347   :  { %5504 = vmatpush1.bf16.msra.mxu1 %v17068_v58  ;;  %5464 = vmatprep.subr.bf16.mxu0 %v17083_v4  ;;  %v16932_v58 = vld [vmem:[%s27197_s3 + $0x12f0] sm:$0xff]  ;;  %v16925_v4 = vld [vmem:[%s27197_s3 + $0x12b8] sm:$0xff] }
 0x348   :  { %5505 = vmatprep.subr.bf16.mxu1 %v17085_v0  ;;  %v16933_v0 = vld [vmem:[%s27197_s3 + $0x12f8] sm:$0xff]  ;;  %v17163_v54 = vcombine.high %v16924_v30, %v16932_v58  ;;  %v17162_v61 = vcombine.low %v16924_v30, %v16932_v58  ;;  %v17196_v58 = vcombine.low %v16957_v8, %v16965_v41 }
 0x349   :  { %v17165_v11 = vcombine.high %v16925_v4, %v16933_v0  ;;  %v17164_v24 = vcombine.low %v16925_v4, %v16933_v0 }
 0x34a   :  { %5465 = vmatpush1.bf16.msra.mxu0 %v17082_v12  ;;  %v16940_v12 = vld [vmem:[%s27197_s3 + $0x1330] sm:$0xff] }
 0x34b   :  { %5506 = vmatpush1.bf16.msra.mxu1 %v17084_v16  ;;  %5466 = vmatprep.subr.bf16.mxu0 %v17099_v17  ;;  %v16948_v16 = vld [vmem:[%s27197_s3 + $0x1370] sm:$0xff]  ;;  %v16941_v17 = vld [vmem:[%s27197_s3 + $0x1338] sm:$0xff] }
 0x34c   :  { %5507 = vmatprep.subr.bf16.mxu1 %v17101_v19  ;;  %v16949_v19 = vld [vmem:[%s27197_s3 + $0x1378] sm:$0xff]  ;;  %v17179_v25 = vcombine.high %v16940_v12, %v16948_v16 }
 0x34d   :  { %v17180_v47 = vcombine.low %v16941_v17, %v16949_v19 }
 0x34e   :  { %5467 = vmatpush1.bf16.msra.mxu0 %v17098_v31  ;;  %v17181_v31 = vcombine.high %v16941_v17, %v16949_v19 }
 0x34f   :  { %5508 = vmatpush1.bf16.msra.mxu1 %v17100_v52  ;;  %5468 = vmatprep.subr.bf16.mxu0 %v17115_v56  ;;  %v16956_v52 = vld [vmem:[%s27197_s3 + $0x13b0] sm:$0xff] }
 0x350   :  { %5509 = vmatprep.subr.bf16.mxu1 %v17117_v1  ;;  %v16964_v56 = vld [vmem:[%s27197_s3 + $0x13f0] sm:$0xff] }
 0x351   :  { %v17194_v30 = vcombine.low %v16956_v52, %v16964_v56 }
 0x352   :  { %5469 = vmatpush1.bf16.msra.mxu0 %v17114_v43 }
 0x353   :  { %5510 = vmatpush1.bf16.msra.mxu1 %v17116_v28  ;;  %5470 = vmatprep.subr.bf16.mxu0 %v17131_v36 }
 0x354   :  { %5511 = vmatprep.subr.bf16.mxu1 %v17133_v45 }
 0x356   :  { %5471 = vmatpush1.bf16.msra.mxu0 %v17130_v48  ;;  %v17195_v48 = vcombine.high %v16956_v52, %v16964_v56  ;;  %v17021_v52 = vld [vmem:[%s27197_s3 + $0x15b8] sm:$0x11] }
 0x357   :  { %5512 = vmatpush1.bf16.msra.mxu1 %v17132_v49  ;;  %5472 = vmatprep.subr.bf16.mxu0 %v17147_v50  ;;  %v16980_v50 = vld [vmem:[%s27197_s3 + $0x1470] sm:$0xff] }
 0x358   :  { %5513 = vmatprep.subr.bf16.mxu1 %v17149_v57  ;;  %v16981_v57 = vld [vmem:[%s27197_s3 + $0x1478] sm:$0xff] }
 0x35a   :  { %5473 = vmatpush1.bf16.msra.mxu0 %v17146_v55  ;;  %v16988_v55 = vld [vmem:[%s27197_s3 + $0x14b0] sm:$0xff] }
 0x35b   :  { %5514 = vmatpush1.bf16.msra.mxu1 %v17148_v5  ;;  %5474 = vmatprep.subr.bf16.mxu0 %v17163_v54  ;;  %v16996_v5 = vld [vmem:[%s27197_s3 + $0x14f0] sm:$0xff]  ;;  %v16989_v54 = vld [vmem:[%s27197_s3 + $0x14b8] sm:$0xff] }
 0x35c   :  { %v3708_v29 = vpop.f32.mrb[32].mxu0  ;;  %5515 = vmatprep.subr.bf16.mxu1 %v17165_v11  ;;  %v16997_v11 = vld [vmem:[%s27197_s3 + $0x14f8] sm:$0xff]  ;;  %v17227_v17 = vcombine.high %v16988_v55, %v16996_v5  ;;  %v17226_v56 = vcombine.low %v16988_v55, %v16996_v5  ;;  %v17287_v5 = vld [vmem:[%s27197_s3 + $0x1648] sm:$0xff] }
 0x35d   :  { %v22695_v1 = vadd.f32 %v3708_v29, %v21900_v38  ;;  %v3749_v39 = vpop.f32.mrb[32].mxu1  ;;  %v3710_v2 = vpop.f32.mrb[33].mxu0  ;;  %v17178_v38 = vcombine.low %v16940_v12, %v16948_v16  ;;  %v17229_v19 = vcombine.high %v16989_v54, %v16997_v11  ;;  %v17005_v29 = vld [vmem:[%s27197_s3 + $0x1538] sm:$0xff] }
 0x35e   :  { %v22704_v43 = vadd.f32 %v3749_v39, %v21908_v42  ;;  %v22707_v28 = vadd.f32 %v3710_v2, %v21910_v3  ;;  %v3751_v36 = vpop.f32.mrb[33].mxu1  ;;  %v3712_v45 = vpop.f32.mrb[34].mxu0  ;;  %5475 = vmatpush1.bf16.msra.mxu0 %v17162_v61  ;;  %v17197_v42 = vcombine.high %v16957_v8, %v16965_v41  ;;  %v16972_v3 = vld [vmem:[%s27197_s3 + $0x1430] sm:$0xff]  ;;  %v17228_v39 = vcombine.low %v16989_v54, %v16997_v11  ;;  %v17295_v54 = vld [vmem:[%s27197_s3 + $0x1688] sm:$0xff] }
 0x35f   :  { %v22710_v9 = vadd.f32 %v3751_v36, %v21918_v37  ;;  %v3753_v14 = vpop.f32.mrb[34].mxu1  ;;  %5516 = vmatpush1.bf16.msra.mxu1 %v17164_v24  ;;  %v3713_v46 = vpop.f32.mrb[35].mxu0  ;;  %5476 = vmatprep.subr.bf16.mxu0 %v17179_v25  ;;  %v16973_v37 = vld [vmem:[%s27197_s3 + $0x1438] sm:$0xff]  ;;  %v17211_v4 = vcombine.high %v16972_v3, %v16980_v50  ;;  %v17210_v12 = vcombine.low %v16972_v3, %v16980_v50  ;;  %v17004_v61 = vld [vmem:[%s27197_s3 + $0x1530] sm:$0xff]  ;;  %v17271_v3 = vld [vmem:[%s27197_s3 + $0x15c8] sm:$0xff] }
 0x360   :  { %v3754_v49 = vpop.f32.mrb[35].mxu1  ;;  %5517 = vmatprep.subr.bf16.mxu1 %v17181_v31  ;;  %v17213_v0 = vcombine.high %v16973_v37, %v16981_v57  ;;  %v17212_v16 = vcombine.low %v16973_v37, %v16981_v57  ;;  %v17012_v24 = vld [vmem:[%s27197_s3 + $0x1570] sm:$0xff]  ;;  %v17013_v31 = vld [vmem:[%s27197_s3 + $0x1578] sm:$0xff]  ;;  %v17261_v36 = vcombine.high %v17021_v52, %v17021_v52  ;;  %v17279_v50 = vld [vmem:[%s27197_s3 + $0x1608] sm:$0xff] }
 0x361   :  { %v17020_v25 = vld [vmem:[%s27197_s3 + $0x15b0] sm:$0x11]  ;;  %v17243_v2 = vcombine.high %v17004_v61, %v17012_v24  ;;  %v17245_v41 = vcombine.high %v17005_v29, %v17013_v31  ;;  %v17242_v45 = vcombine.low %v17004_v61, %v17012_v24  ;;  %v17244_v14 = vcombine.low %v17005_v29, %v17013_v31  ;;  %v17270_v49 = vld [vmem:[%s27197_s3 + $0x15c0] sm:$0xff]  ;;  %v17303_v24 = vld [vmem:[%s27197_s3 + $0x16c8] sm:$0xff] }
 0x362   :  { %5477 = vmatpush1.bf16.msra.mxu0 %v17178_v38  ;;  %v17259_v8 = vcombine.high %v17020_v25, %v17020_v25  ;;  %v17258_v38 = vcombine.low %v17020_v25, %v17020_v25  ;;  %v17504_v11 = vcombine.low %v17271_v3, %v17279_v50  ;;  %v17521_v61 = vcombine.high %v17287_v5, %v17295_v54  ;;  %v17311_v25 = vld [vmem:[%s27197_s3 + $0x1708] sm:$0xff] }
 0x363   :  { %5518 = vmatpush1.bf16.msra.mxu1 %v17180_v47  ;;  %5478 = vmatprep.subr.bf16.mxu0 %v17195_v48  ;;  %v17260_v47 = vcombine.low %v17021_v52, %v17021_v52  ;;  %v5210_v48 = vand.u32 %v17261_v36, %v20487_v62  ;;  %v17520_v31 = vcombine.low %v17287_v5, %v17295_v54  ;;  %v17366_v5 = vld [vmem:[%s27197_s3 + $0x18c0] sm:$0xff] }
 0x364   :  { %5519 = vmatprep.subr.bf16.mxu1 %v17197_v42  ;;  %v5204_v46 = vand.u32 %v17259_v8, %v20487_v62  ;;  %v17278_v42 = vld [vmem:[%s27197_s3 + $0x1600] sm:$0xff]  ;;  %v5201_v37 = vand.u32 %v17258_v38, %v20487_v62  ;;  %v17537_v52 = vcombine.high %v17303_v24, %v17311_v25 }
 0x365   :  { %v5207_v57 = vand.u32 %v17260_v47, %v20487_v62  ;;  %v17502_v55 = vcombine.low %v17270_v49, %v17278_v42  ;;  %v17334_v38 = vld [vmem:[%s27197_s3 + $0x17c0] sm:$0xff]  ;;  %v17343_v47 = vld [vmem:[%s27197_s3 + $0x1808] sm:$0xff] }
 0x366   :  { %5479 = vmatpush1.bf16.msra.mxu0 %v17194_v30  ;;  %v17503_v30 = vcombine.high %v17270_v49, %v17278_v42  ;;  %v17374_v54 = vld [vmem:[%s27197_s3 + $0x1900] sm:$0xff] }
 0x367   :  { %5520 = vmatpush1.bf16.msra.mxu1 %v17196_v58  ;;  %5480 = vmatprep.subr.bf16.mxu0 %v17211_v4  ;;  %v17505_v58 = vcombine.high %v17271_v3, %v17279_v50  ;;  %v17286_v4 = vld [vmem:[%s27197_s3 + $0x1640] sm:$0xff] }
 0x368   :  { %5521 = vmatprep.subr.bf16.mxu1 %v17213_v0  ;;  %v17294_v0 = vld [vmem:[%s27197_s3 + $0x1680] sm:$0xff] }
 0x369   :  { %v17518_v29 = vcombine.low %v17286_v4, %v17294_v0  ;;  %v17350_v50 = vld [vmem:[%s27197_s3 + $0x1840] sm:$0xff] }
 0x36a   :  { %5481 = vmatpush1.bf16.msra.mxu0 %v17210_v12  ;;  %v17519_v12 = vcombine.high %v17286_v4, %v17294_v0 }
 0x36b   :  { %5522 = vmatpush1.bf16.msra.mxu1 %v17212_v16  ;;  %5482 = vmatprep.subr.bf16.mxu0 %v17227_v17  ;;  %v17302_v16 = vld [vmem:[%s27197_s3 + $0x16c0] sm:$0xff] }
 0x36c   :  { %5523 = vmatprep.subr.bf16.mxu1 %v17229_v19  ;;  %v17310_v17 = vld [vmem:[%s27197_s3 + $0x1700] sm:$0xff]  ;;  %v22791_v19 = vpack.c.bf16 %v20650_v13, %v20650_v13 }
 0x36d   :  { %v17535_v13 = vcombine.high %v17302_v16, %v17310_v17  ;;  %v17534_v8 = vcombine.low %v17302_v16, %v17310_v17 }
 0x36e   :  { %5483 = vmatpush1.bf16.msra.mxu0 %v17226_v56  ;;  %v17318_v56 = vld [vmem:[%s27197_s3 + $0x1740] sm:$0xff] }
 0x36f   :  { %5524 = vmatpush1.bf16.msra.mxu1 %v17228_v39  ;;  %5484 = vmatprep.subr.bf16.mxu0 %v17243_v2  ;;  %v17319_v39 = vld [vmem:[%s27197_s3 + $0x1748] sm:$0xff] }
 0x370   :  { %5525 = vmatprep.subr.bf16.mxu1 %v17245_v41  ;;  %v17327_v2 = vld [vmem:[%s27197_s3 + $0x1788] sm:$0xff]  ;;  %v17536_v41 = vcombine.low %v17303_v24, %v17311_v25  ;;  %v17382_v25 = vld [vmem:[%s27197_s3 + $0x1940] sm:$0xff] }
 0x371   :  { %v17552_v49 = vcombine.low %v17319_v39, %v17327_v2 }
 0x372   :  { %5485 = vmatpush1.bf16.msra.mxu0 %v17242_v45  ;;  %v17553_v45 = vcombine.high %v17319_v39, %v17327_v2  ;;  %v17398_v2 = vld [vmem:[%s27197_s3 + $0x19c0] sm:$0xff] }
 0x373   :  { %5526 = vmatpush1.bf16.msra.mxu1 %v17244_v14  ;;  %5486 = vmatprep.subr.bf16.mxu0 %v5204_v46  ;;  %v17342_v14 = vld [vmem:[%s27197_s3 + $0x1800] sm:$0xff]  ;;  %v17335_v46 = vld [vmem:[%s27197_s3 + $0x17c8] sm:$0xff] }
 0x374   :  { %5527 = vmatprep.subr.bf16.mxu1 %v5210_v48  ;;  %v17567_v42 = vcombine.high %v17334_v38, %v17342_v14  ;;  %v17569_v3 = vcombine.high %v17335_v46, %v17343_v47  ;;  %v17568_v4 = vcombine.low %v17335_v46, %v17343_v47  ;;  %v17414_v47 = vld [vmem:[%s27197_s3 + $0x1a40] sm:$0xff] }
 0x376   :  { %5487 = vmatpush1.bf16.msra.mxu0 %v5201_v37  ;;  %v17358_v37 = vld [vmem:[%s27197_s3 + $0x1880] sm:$0xff] }
 0x377   :  { %5528 = vmatpush1.bf16.msra.mxu1 %v5207_v57  ;;  %7012 = vmatprep.subr.bf16.mxu0 %v17503_v30  ;;  %v17351_v57 = vld [vmem:[%s27197_s3 + $0x1848] sm:$0xff]  ;;  %v17583_v0 = vcombine.high %v17350_v50, %v17358_v37  ;;  %v17582_v16 = vcombine.low %v17350_v50, %v17358_v37 }
 0x378   :  { %7053 = vmatprep.subr.bf16.mxu1 %v17505_v58  ;;  %v17359_v30 = vld [vmem:[%s27197_s3 + $0x1888] sm:$0xff]  ;;  %v17566_v58 = vcombine.low %v17334_v38, %v17342_v14 }
 0x379   :  { %5491 = vmatmul.mubr.bf16.vlgmr.msra.gmra.mrb[48].mxu0 %v22192_v60  ;;  %v17584_v17 = vcombine.low %v17351_v57, %v17359_v30 }
 0x37a   :  { %5532 = vmatmul.mubr.bf16.vlgmr.msra.gmra.mrb[48].mxu1 %v22192_v60  ;;  %7013 = vmatpush1.bf16.msra.mxu0 %v17502_v55  ;;  %v17326_v60 = vld [vmem:[%s27197_s3 + $0x1780] sm:$0xff]  ;;  %v17585_v55 = vcombine.high %v17351_v57, %v17359_v30 }
 0x37b   :  { %17742 = vmatprep.mubr.msk.bf16.mxu0 %vm1835_vm2, %v22791_v19  ;;  %7054 = vmatpush1.bf16.msra.mxu1 %v17504_v11  ;;  %v17551_v36 = vcombine.high %v17318_v56, %v17326_v60  ;;  %v17550_v48 = vcombine.low %v17318_v56, %v17326_v60  ;;  %v17367_v11 = vld [vmem:[%s27197_s3 + $0x18c8] sm:$0xff] }
 0x37c   :  { %17743 = vmatprep.mubr.msk.bf16.mxu1 %vm1835_vm2, %v22791_v19  ;;  %7014 = vmatprep.subr.bf16.mxu0 %v17519_v12  ;;  %v17375_v12 = vld [vmem:[%s27197_s3 + $0x1908] sm:$0xff] }
 0x37d   :  { %7055 = vmatprep.subr.bf16.mxu1 %v17521_v61  ;;  %v17599_v61 = vcombine.high %v17366_v5, %v17374_v54  ;;  %v17601_v24 = vcombine.high %v17367_v11, %v17375_v12  ;;  %v17600_v56 = vcombine.low %v17367_v11, %v17375_v12  ;;  %v17439_v11 = vld [vmem:[%s27197_s3 + $0x1b08] sm:$0xff] }
 0x37e   :  { %7015 = vmatpush1.bf16.msra.mxu0 %v17518_v29  ;;  %v17390_v29 = vld [vmem:[%s27197_s3 + $0x1980] sm:$0xff] }
 0x37f   :  { %7056 = vmatpush1.bf16.msra.mxu1 %v17520_v31  ;;  %7016 = vmatprep.subr.bf16.mxu0 %v17535_v13  ;;  %v17383_v31 = vld [vmem:[%s27197_s3 + $0x1948] sm:$0xff]  ;;  %v17615_v60 = vcombine.high %v17382_v25, %v17390_v29 }
 0x380   :  { %7057 = vmatprep.subr.bf16.mxu1 %v17537_v52  ;;  %v17391_v13 = vld [vmem:[%s27197_s3 + $0x1988] sm:$0xff]  ;;  %v17598_v52 = vcombine.low %v17366_v5, %v17374_v54 }
 0x381   :  { %v17617_v39 = vcombine.high %v17383_v31, %v17391_v13  ;;  %v17616_v38 = vcombine.low %v17383_v31, %v17391_v13  ;;  %v17431_v54 = vld [vmem:[%s27197_s3 + $0x1ac8] sm:$0xff] }
 0x382   :  { %7017 = vmatpush1.bf16.msra.mxu0 %v17534_v8  ;;  %v17406_v8 = vld [vmem:[%s27197_s3 + $0x1a00] sm:$0xff] }
 0x383   :  { %7058 = vmatpush1.bf16.msra.mxu1 %v17536_v41  ;;  %7018 = vmatprep.subr.bf16.mxu0 %v17551_v36  ;;  %v17399_v41 = vld [vmem:[%s27197_s3 + $0x19c8] sm:$0xff]  ;;  %v17631_v14 = vcombine.high %v17398_v2, %v17406_v8 }
 0x384   :  { %7059 = vmatprep.subr.bf16.mxu1 %v17553_v45  ;;  %v17407_v36 = vld [vmem:[%s27197_s3 + $0x1a08] sm:$0xff]  ;;  %v17614_v45 = vcombine.low %v17382_v25, %v17390_v29 }
 0x385   :  { %v17633_v46 = vcombine.high %v17399_v41, %v17407_v36  ;;  %v17632_v50 = vcombine.low %v17399_v41, %v17407_v36  ;;  %v17462_v36 = vld [vmem:[%s27197_s3 + $0x1bc0] sm:$0xff] }
 0x386   :  { %7019 = vmatpush1.bf16.msra.mxu0 %v17550_v48  ;;  %v17422_v48 = vld [vmem:[%s27197_s3 + $0x1a80] sm:$0xff] }
 0x387   :  { %7060 = vmatpush1.bf16.msra.mxu1 %v17552_v49  ;;  %7020 = vmatprep.subr.bf16.mxu0 %v17567_v42  ;;  %v17415_v49 = vld [vmem:[%s27197_s3 + $0x1a48] sm:$0xff]  ;;  %v17647_v37 = vcombine.high %v17414_v47, %v17422_v48 }
 0x388   :  { %7061 = vmatprep.subr.bf16.mxu1 %v17569_v3  ;;  %v17423_v42 = vld [vmem:[%s27197_s3 + $0x1a88] sm:$0xff]  ;;  %v17630_v3 = vcombine.low %v17398_v2, %v17406_v8  ;;  %v17664_v2 = vcombine.low %v17431_v54, %v17439_v11 }
 0x389   :  { %v17649_v30 = vcombine.high %v17415_v49, %v17423_v42  ;;  %v17648_v31 = vcombine.low %v17415_v49, %v17423_v42  ;;  %v17478_v42 = vld [vmem:[%s27197_s3 + $0x1c40] sm:$0xff] }
 0x38a   :  { %7021 = vmatpush1.bf16.msra.mxu0 %v17566_v58  ;;  %v17430_v58 = vld [vmem:[%s27197_s3 + $0x1ac0] sm:$0xff] }
 0x38b   :  { %7062 = vmatpush1.bf16.msra.mxu1 %v17568_v4  ;;  %7022 = vmatprep.subr.bf16.mxu0 %v17583_v0  ;;  %v17438_v4 = vld [vmem:[%s27197_s3 + $0x1b00] sm:$0xff] }
 0x38c   :  { %7063 = vmatprep.subr.bf16.mxu1 %v17585_v55  ;;  %v17663_v13 = vcombine.high %v17430_v58, %v17438_v4 }
 0x38e   :  { %7023 = vmatpush1.bf16.msra.mxu0 %v17582_v16 }
 0x38f   :  { %7064 = vmatpush1.bf16.msra.mxu1 %v17584_v17  ;;  %7024 = vmatprep.subr.bf16.mxu0 %v17599_v61 }
 0x390   :  { %7065 = vmatprep.subr.bf16.mxu1 %v17601_v24 }
 0x392   :  { %7025 = vmatpush1.bf16.msra.mxu0 %v17598_v52 }
 0x393   :  { %7066 = vmatpush1.bf16.msra.mxu1 %v17600_v56  ;;  %7026 = vmatprep.subr.bf16.mxu0 %v17615_v60  ;;  %v17454_v56 = vld [vmem:[%s27197_s3 + $0x1b80] sm:$0xff]  ;;  %v17455_v60 = vld [vmem:[%s27197_s3 + $0x1b88] sm:$0xff] }
 0x394   :  { %7067 = vmatprep.subr.bf16.mxu1 %v17617_v39  ;;  %v17662_v39 = vcombine.low %v17430_v58, %v17438_v4 }
 0x396   :  { %7027 = vmatpush1.bf16.msra.mxu0 %v17614_v45  ;;  %v17470_v45 = vld [vmem:[%s27197_s3 + $0x1c00] sm:$0xff] }
 0x397   :  { %7068 = vmatpush1.bf16.msra.mxu1 %v17616_v38  ;;  %7028 = vmatprep.subr.bf16.mxu0 %v17631_v14  ;;  %v17463_v38 = vld [vmem:[%s27197_s3 + $0x1bc8] sm:$0xff]  ;;  %v17694_v58 = vcombine.low %v17462_v36, %v17470_v45 }
 0x398   :  { %v5246_v57 = vpop.f32.mrb[36].mxu0  ;;  %7069 = vmatprep.subr.bf16.mxu1 %v17633_v46  ;;  %v17471_v14 = vld [vmem:[%s27197_s3 + $0x1c08] sm:$0xff] }
 0x399   :  { %v22895_v0 = vadd.f32 %v5246_v57, %v22103_v23  ;;  %v5287_v55 = vpop.f32.mrb[36].mxu1  ;;  %v5248_v5 = vpop.f32.mrb[37].mxu0  ;;  %v17646_v23 = vcombine.low %v17414_v47, %v17422_v48  ;;  %v17695_v48 = vcombine.high %v17462_v36, %v17470_v45  ;;  %v17697_v49 = vcombine.high %v17463_v38, %v17471_v14  ;;  %v17487_v57 = vld [vmem:[%s27197_s3 + $0x1c88] sm:$0xff]  ;;  %v17289_v36 = vld [vmem:[%s27197_s3 + $0x1658] sm:$0xff] }
 0x39a   :  { %v22904_v12 = vadd.f32 %v5287_v55, %v22112_v33  ;;  %v22907_v16 = vadd.f32 %v5248_v5, %v22115_v22  ;;  %v5289_v17 = vpop.f32.mrb[37].mxu1  ;;  %v5250_v61 = vpop.f32.mrb[38].mxu0  ;;  %7029 = vmatpush1.bf16.msra.mxu0 %v17630_v3  ;;  %v17665_v33 = vcombine.high %v17431_v54, %v17439_v11  ;;  %v17446_v22 = vld [vmem:[%s27197_s3 + $0x1b40] sm:$0xff]  ;;  %v17696_v4 = vcombine.low %v17463_v38, %v17471_v14  ;;  %v17297_v45 = vld [vmem:[%s27197_s3 + $0x1698] sm:$0xff] }
 0x39b   :  { %v22910_v24 = vadd.f32 %v5289_v17, %v22118_v6  ;;  %v5291_v25 = vpop.f32.mrb[38].mxu1  ;;  %7070 = vmatpush1.bf16.msra.mxu1 %v17632_v50  ;;  %v5251_v29 = vpop.f32.mrb[39].mxu0  ;;  %7030 = vmatprep.subr.bf16.mxu0 %v17647_v37  ;;  %v17447_v6 = vld [vmem:[%s27197_s3 + $0x1b48] sm:$0xff]  ;;  %v17679_v8 = vcombine.high %v17446_v22, %v17454_v56  ;;  %v17678_v46 = vcombine.low %v17446_v22, %v17454_v56  ;;  %v17486_v3 = vld [vmem:[%s27197_s3 + $0x1c80] sm:$0xff]  ;;  %v17281_v22 = vld [vmem:[%s27197_s3 + $0x1618] sm:$0xff] }
 0x39c   :  { %v5292_v52 = vpop.f32.mrb[39].mxu1  ;;  %7071 = vmatprep.subr.bf16.mxu1 %v17649_v30  ;;  %v17681_v41 = vcombine.high %v17447_v6, %v17455_v60  ;;  %v17680_v47 = vcombine.low %v17447_v6, %v17455_v60  ;;  %v17494_v50 = vld [vmem:[%s27197_s3 + $0x1cc0] sm:$0x11]  ;;  %v17479_v37 = vld [vmem:[%s27197_s3 + $0x1c48] sm:$0xff]  ;;  %v17711_v55 = vcombine.high %v17478_v42, %v17486_v3  ;;  %v17710_v17 = vcombine.low %v17478_v42, %v17486_v3  ;;  %v17313_v42 = vld [vmem:[%s27197_s3 + $0x1718] sm:$0xff] }
 0x39d   :  { %v17495_v30 = vld [vmem:[%s27197_s3 + $0x1cc8] sm:$0x11]  ;;  %v17727_v5 = vcombine.high %v17494_v50, %v17494_v50  ;;  %v17713_v54 = vcombine.high %v17479_v37, %v17487_v57  ;;  %v17726_v61 = vcombine.low %v17494_v50, %v17494_v50  ;;  %v17280_v52 = vld [vmem:[%s27197_s3 + $0x1610] sm:$0xff]  ;;  %v22984_v38 = vpack.c.bf16 %v20659_v20, %v20659_v20  ;;  %v17305_v20 = vld [vmem:[%s27197_s3 + $0x16d8] sm:$0xff] }
 0x39e   :  { %7031 = vmatpush1.bf16.msra.mxu0 %v17646_v23  ;;  %v17729_v11 = vcombine.high %v17495_v30, %v17495_v30  ;;  %v17712_v23 = vcombine.low %v17479_v37, %v17487_v57  ;;  %v17728_v29 = vcombine.low %v17495_v30, %v17495_v30  ;;  %v17524_v50 = vcombine.low %v17289_v36, %v17297_v45  ;;  %v17320_v30 = vld [vmem:[%s27197_s3 + $0x1750] sm:$0xff] }
 0x39f   :  { %7072 = vmatpush1.bf16.msra.mxu1 %v17648_v31  ;;  %7032 = vmatprep.subr.bf16.mxu0 %v17663_v13  ;;  %v6968_v25 = vand.u32 %v17727_v5, %v20487_v62  ;;  %v17272_v13 = vld [vmem:[%s27197_s3 + $0x15d0] sm:$0xff]  ;;  %v6965_v56 = vand.u32 %v17726_v61, %v20487_v62  ;;  %v17541_v57 = vcombine.high %v17305_v20, %v17313_v42 }
 0x3a0   :  { %7073 = vmatprep.subr.bf16.mxu1 %v17665_v33  ;;  %v6974_v31 = vand.u32 %v17729_v11, %v20487_v62  ;;  %v17273_v33 = vld [vmem:[%s27197_s3 + $0x15d8] sm:$0xff]  ;;  %v6971_v6 = vand.u32 %v17728_v29, %v20487_v62  ;;  %v17507_v60 = vcombine.high %v17272_v13, %v17280_v52  ;;  %v17336_v61 = vld [vmem:[%s27197_s3 + $0x17d0] sm:$0xff] }
 0x3a1   :  { %v17508_v14 = vcombine.low %v17273_v33, %v17281_v22  ;;  %v17345_v29 = vld [vmem:[%s27197_s3 + $0x1818] sm:$0xff] }
 0x3a2   :  { %7033 = vmatpush1.bf16.msra.mxu0 %v17662_v39  ;;  %v17509_v39 = vcombine.high %v17273_v33, %v17281_v22  ;;  %v17352_v22 = vld [vmem:[%s27197_s3 + $0x1850] sm:$0xff] }
 0x3a3   :  { %7074 = vmatpush1.bf16.msra.mxu1 %v17664_v2  ;;  %7034 = vmatprep.subr.bf16.mxu0 %v17679_v8  ;;  %v17288_v2 = vld [vmem:[%s27197_s3 + $0x1650] sm:$0xff] }
 0x3a4   :  { %7075 = vmatprep.subr.bf16.mxu1 %v17681_v41  ;;  %v17296_v8 = vld [vmem:[%s27197_s3 + $0x1690] sm:$0xff]  ;;  %v17506_v41 = vcombine.low %v17272_v13, %v17280_v52 }
 0x3a5   :  { %v17522_v3 = vcombine.low %v17288_v2, %v17296_v8 }
 0x3a6   :  { %7035 = vmatpush1.bf16.msra.mxu0 %v17678_v46  ;;  %v17523_v46 = vcombine.high %v17288_v2, %v17296_v8 }
 0x3a7   :  { %7076 = vmatpush1.bf16.msra.mxu1 %v17680_v47  ;;  %7036 = vmatprep.subr.bf16.mxu0 %v17695_v48  ;;  %v17304_v47 = vld [vmem:[%s27197_s3 + $0x16d0] sm:$0xff] }
 0x3a8   :  { %7077 = vmatprep.subr.bf16.mxu1 %v17697_v49  ;;  %v17312_v48 = vld [vmem:[%s27197_s3 + $0x1710] sm:$0xff]  ;;  %v17525_v49 = vcombine.high %v17289_v36, %v17297_v45 }
 0x3a9   :  { %v17539_v37 = vcombine.high %v17304_v47, %v17312_v48  ;;  %v17538_v5 = vcombine.low %v17304_v47, %v17312_v48  ;;  %v17368_v36 = vld [vmem:[%s27197_s3 + $0x18d0] sm:$0xff] }
 0x3aa   :  { %7037 = vmatpush1.bf16.msra.mxu0 %v17694_v58  ;;  %v17328_v58 = vld [vmem:[%s27197_s3 + $0x1790] sm:$0xff] }
 0x3ab   :  { %7078 = vmatpush1.bf16.msra.mxu1 %v17696_v4  ;;  %7038 = vmatprep.subr.bf16.mxu0 %v17711_v55  ;;  %v17321_v4 = vld [vmem:[%s27197_s3 + $0x1758] sm:$0xff]  ;;  %v17555_v11 = vcombine.high %v17320_v30, %v17328_v58  ;;  %v17376_v45 = vld [vmem:[%s27197_s3 + $0x1910] sm:$0xff] }
 0x3ac   :  { %7079 = vmatprep.subr.bf16.mxu1 %v17713_v54  ;;  %v17329_v55 = vld [vmem:[%s27197_s3 + $0x1798] sm:$0xff]  ;;  %v17540_v54 = vcombine.low %v17305_v20, %v17313_v42  ;;  %v17384_v42 = vld [vmem:[%s27197_s3 + $0x1950] sm:$0xff] }
 0x3ad   :  { %v17556_v13 = vcombine.low %v17321_v4, %v17329_v55 }
 0x3ae   :  { %7039 = vmatpush1.bf16.msra.mxu0 %v17710_v17  ;;  %v17557_v17 = vcombine.high %v17321_v4, %v17329_v55  ;;  %v17400_v55 = vld [vmem:[%s27197_s3 + $0x19d0] sm:$0xff] }
 0x3af   :  { %7080 = vmatpush1.bf16.msra.mxu1 %v17712_v23  ;;  %7040 = vmatprep.subr.bf16.mxu0 %v6968_v25  ;;  %v17344_v23 = vld [vmem:[%s27197_s3 + $0x1810] sm:$0xff]  ;;  %v17337_v25 = vld [vmem:[%s27197_s3 + $0x17d8] sm:$0xff] }
 0x3b0   :  { %7081 = vmatprep.subr.bf16.mxu1 %v6974_v31  ;;  %v17554_v31 = vcombine.low %v17320_v30, %v17328_v58  ;;  %v17571_v52 = vcombine.high %v17336_v61, %v17344_v23  ;;  %v17573_v33 = vcombine.high %v17337_v25, %v17345_v29  ;;  %v17572_v2 = vcombine.low %v17337_v25, %v17345_v29  ;;  %v17416_v29 = vld [vmem:[%s27197_s3 + $0x1a50] sm:$0xff] }
 0x3b2   :  { %7041 = vmatpush1.bf16.msra.mxu0 %v6965_v56  ;;  %v17360_v56 = vld [vmem:[%s27197_s3 + $0x1890] sm:$0xff] }
 0x3b3   :  { %7082 = vmatpush1.bf16.msra.mxu1 %v6971_v6  ;;  %7094 = vmatprep.subr.bf16.mxu0 %v17507_v60  ;;  %v17353_v6 = vld [vmem:[%s27197_s3 + $0x1858] sm:$0xff]  ;;  %v17587_v8 = vcombine.high %v17352_v22, %v17360_v56  ;;  %v17586_v47 = vcombine.low %v17352_v22, %v17360_v56 }
 0x3b4   :  { %7135 = vmatprep.subr.bf16.mxu1 %v17509_v39  ;;  %v17361_v60 = vld [vmem:[%s27197_s3 + $0x1898] sm:$0xff]  ;;  %v17570_v39 = vcombine.low %v17336_v61, %v17344_v23 }
 0x3b5   :  { %7045 = vmatmul.mubr.bf16.vlgmr.msra.gmra.mrb[52].mxu0 %v22984_v38  ;;  %v17588_v48 = vcombine.low %v17353_v6, %v17361_v60 }
 0x3b6   :  { %7086 = vmatmul.mubr.bf16.vlgmr.msra.gmra.mrb[52].mxu1 %v22984_v38  ;;  %7095 = vmatpush1.bf16.msra.mxu0 %v17506_v41  ;;  %v17589_v41 = vcombine.high %v17353_v6, %v17361_v60 }
 0x3b7   :  { %17744 = vmatprep.mubr.msk.bf16.mxu0 %vm1835_vm2, %v22791_v19  ;;  %7136 = vmatpush1.bf16.msra.mxu1 %v17508_v14  ;;  %v17369_v14 = vld [vmem:[%s27197_s3 + $0x18d8] sm:$0xff] }
 0x3b8   :  { %17745 = vmatprep.mubr.msk.bf16.mxu1 %vm1835_vm2, %v22791_v19  ;;  %7096 = vmatprep.subr.bf16.mxu0 %v17523_v46  ;;  %v17377_v46 = vld [vmem:[%s27197_s3 + $0x1918] sm:$0xff] }
 0x3b9   :  { %7137 = vmatprep.subr.bf16.mxu1 %v17525_v49  ;;  %v17603_v49 = vcombine.high %v17368_v36, %v17376_v45  ;;  %v17605_v20 = vcombine.high %v17369_v14, %v17377_v46  ;;  %v17604_v30 = vcombine.low %v17369_v14, %v17377_v46  ;;  %v17441_v14 = vld [vmem:[%s27197_s3 + $0x1b18] sm:$0xff] }
 0x3ba   :  { %7097 = vmatpush1.bf16.msra.mxu0 %v17522_v3  ;;  %v17392_v3 = vld [vmem:[%s27197_s3 + $0x1990] sm:$0xff] }
 0x3bb   :  { %7138 = vmatpush1.bf16.msra.mxu1 %v17524_v50  ;;  %7098 = vmatprep.subr.bf16.mxu0 %v17539_v37  ;;  %v17385_v50 = vld [vmem:[%s27197_s3 + $0x1958] sm:$0xff]  ;;  %v17619_v58 = vcombine.high %v17384_v42, %v17392_v3 }
 0x3bc   :  { %7139 = vmatprep.subr.bf16.mxu1 %v17541_v57  ;;  %v17393_v37 = vld [vmem:[%s27197_s3 + $0x1998] sm:$0xff]  ;;  %v17602_v57 = vcombine.low %v17368_v36, %v17376_v45 }
 0x3bd   :  { %v17621_v4 = vcombine.high %v17385_v50, %v17393_v37  ;;  %v17620_v61 = vcombine.low %v17385_v50, %v17393_v37  ;;  %v17433_v45 = vld [vmem:[%s27197_s3 + $0x1ad8] sm:$0xff] }
 0x3be   :  { %7099 = vmatpush1.bf16.msra.mxu0 %v17538_v5  ;;  %v17408_v5 = vld [vmem:[%s27197_s3 + $0x1a10] sm:$0xff] }
 0x3bf   :  { %7140 = vmatpush1.bf16.msra.mxu1 %v17540_v54  ;;  %7100 = vmatprep.subr.bf16.mxu0 %v17555_v11  ;;  %v17401_v54 = vld [vmem:[%s27197_s3 + $0x19d8] sm:$0xff]  ;;  %v17635_v23 = vcombine.high %v17400_v55, %v17408_v5 }
 0x3c0   :  { %7141 = vmatprep.subr.bf16.mxu1 %v17557_v17  ;;  %v17409_v11 = vld [vmem:[%s27197_s3 + $0x1a18] sm:$0xff]  ;;  %v17618_v17 = vcombine.low %v17384_v42, %v17392_v3 }
 0x3c1   :  { %v17637_v25 = vcombine.high %v17401_v54, %v17409_v11  ;;  %v17636_v22 = vcombine.low %v17401_v54, %v17409_v11  ;;  %v17464_v11 = vld [vmem:[%s27197_s3 + $0x1bd0] sm:$0xff] }
 0x3c2   :  { %7101 = vmatpush1.bf16.msra.mxu0 %v17554_v31  ;;  %v17424_v31 = vld [vmem:[%s27197_s3 + $0x1a90] sm:$0xff] }
 0x3c3   :  { %7142 = vmatpush1.bf16.msra.mxu1 %v17556_v13  ;;  %7102 = vmatprep.subr.bf16.mxu0 %v17571_v52  ;;  %v17417_v13 = vld [vmem:[%s27197_s3 + $0x1a58] sm:$0xff]  ;;  %v17651_v56 = vcombine.high %v17416_v29, %v17424_v31 }
 0x3c4   :  { %7143 = vmatprep.subr.bf16.mxu1 %v17573_v33  ;;  %v17425_v52 = vld [vmem:[%s27197_s3 + $0x1a98] sm:$0xff]  ;;  %v17634_v33 = vcombine.low %v17400_v55, %v17408_v5  ;;  %v17668_v55 = vcombine.low %v17433_v45, %v17441_v14 }
 0x3c5   :  { %v17653_v60 = vcombine.high %v17417_v13, %v17425_v52  ;;  %v17652_v50 = vcombine.low %v17417_v13, %v17425_v52  ;;  %v17480_v52 = vld [vmem:[%s27197_s3 + $0x1c50] sm:$0xff] }
 0x3c6   :  { %7103 = vmatpush1.bf16.msra.mxu0 %v17570_v39  ;;  %v17432_v39 = vld [vmem:[%s27197_s3 + $0x1ad0] sm:$0xff] }
 0x3c7   :  { %7144 = vmatpush1.bf16.msra.mxu1 %v17572_v2  ;;  %7104 = vmatprep.subr.bf16.mxu0 %v17587_v8  ;;  %v17440_v2 = vld [vmem:[%s27197_s3 + $0x1b10] sm:$0xff] }
 0x3c8   :  { %7145 = vmatprep.subr.bf16.mxu1 %v17589_v41  ;;  %v17667_v37 = vcombine.high %v17432_v39, %v17440_v2 }
 0x3ca   :  { %7105 = vmatpush1.bf16.msra.mxu0 %v17586_v47 }
 0x3cb   :  { %7146 = vmatpush1.bf16.msra.mxu1 %v17588_v48  ;;  %7106 = vmatprep.subr.bf16.mxu0 %v17603_v49 }
 0x3cc   :  { %7147 = vmatprep.subr.bf16.mxu1 %v17605_v20 }
 0x3ce   :  { %7107 = vmatpush1.bf16.msra.mxu0 %v17602_v57 }
 0x3cf   :  { %7148 = vmatpush1.bf16.msra.mxu1 %v17604_v30  ;;  %7108 = vmatprep.subr.bf16.mxu0 %v17619_v58  ;;  %v17456_v30 = vld [vmem:[%s27197_s3 + $0x1b90] sm:$0xff]  ;;  %v17457_v58 = vld [vmem:[%s27197_s3 + $0x1b98] sm:$0xff] }
 0x3d0   :  { %7149 = vmatprep.subr.bf16.mxu1 %v17621_v4  ;;  %v17666_v4 = vcombine.low %v17432_v39, %v17440_v2 }
 0x3d2   :  { %7109 = vmatpush1.bf16.msra.mxu0 %v17618_v17  ;;  %v17472_v17 = vld [vmem:[%s27197_s3 + $0x1c10] sm:$0xff] }
 0x3d3   :  { %7150 = vmatpush1.bf16.msra.mxu1 %v17620_v61  ;;  %7110 = vmatprep.subr.bf16.mxu0 %v17635_v23  ;;  %v17465_v61 = vld [vmem:[%s27197_s3 + $0x1bd8] sm:$0xff]  ;;  %v17698_v39 = vcombine.low %v17464_v11, %v17472_v17 }
 0x3d4   :  { %v5328_v6 = vpop.f32.mrb[40].mxu0  ;;  %7151 = vmatprep.subr.bf16.mxu1 %v17637_v25  ;;  %v17473_v23 = vld [vmem:[%s27197_s3 + $0x1c18] sm:$0xff] }
 0x3d5   :  { %v23095_v8 = vadd.f32 %v5328_v6, %v22303_v63  ;;  %v5369_v41 = vpop.f32.mrb[40].mxu1  ;;  %v5330_v36 = vpop.f32.mrb[41].mxu0  ;;  %v17650_v63 = vcombine.low %v17416_v29, %v17424_v31  ;;  %v17699_v31 = vcombine.high %v17464_v11, %v17472_v17  ;;  %v17701_v13 = vcombine.high %v17465_v61, %v17473_v23  ;;  %v17489_v6 = vld [vmem:[%s27197_s3 + $0x1c98] sm:$0xff]  ;;  %v17291_v11 = vld [vmem:[%s27197_s3 + $0x1668] sm:$0xff] }
 0x3d6   :  { %v23104_v46 = vadd.f32 %v5369_v41, %v22312_v7  ;;  %v23107_v47 = vadd.f32 %v5330_v36, %v22315_v10  ;;  %v5371_v48 = vpop.f32.mrb[41].mxu1  ;;  %v5332_v49 = vpop.f32.mrb[42].mxu0  ;;  %7111 = vmatpush1.bf16.msra.mxu0 %v17634_v33  ;;  %v17669_v7 = vcombine.high %v17433_v45, %v17441_v14  ;;  %v17448_v10 = vld [vmem:[%s27197_s3 + $0x1b50] sm:$0xff]  ;;  %v17700_v2 = vcombine.low %v17465_v61, %v17473_v23  ;;  %v17299_v17 = vld [vmem:[%s27197_s3 + $0x16a8] sm:$0xff] }
 0x3d7   :  { %v23110_v20 = vadd.f32 %v5371_v48, %v22318_v18  ;;  %v5373_v42 = vpop.f32.mrb[42].mxu1  ;;  %7152 = vmatpush1.bf16.msra.mxu1 %v17636_v22  ;;  %v5333_v3 = vpop.f32.mrb[43].mxu0  ;;  %7112 = vmatprep.subr.bf16.mxu0 %v17651_v56  ;;  %v17449_v18 = vld [vmem:[%s27197_s3 + $0x1b58] sm:$0xff]  ;;  %v17683_v5 = vcombine.high %v17448_v10, %v17456_v30  ;;  %v17682_v25 = vcombine.low %v17448_v10, %v17456_v30  ;;  %v17488_v33 = vld [vmem:[%s27197_s3 + $0x1c90] sm:$0xff]  ;;  %v17283_v10 = vld [vmem:[%s27197_s3 + $0x1628] sm:$0xff] }
 0x3d8   :  { %v5374_v57 = vpop.f32.mrb[43].mxu1  ;;  %7153 = vmatprep.subr.bf16.mxu1 %v17653_v60  ;;  %v17685_v54 = vcombine.high %v17449_v18, %v17457_v58  ;;  %v17684_v29 = vcombine.low %v17449_v18, %v17457_v58  ;;  %v17496_v22 = vld [vmem:[%s27197_s3 + $0x1cd0] sm:$0x11]  ;;  %v17481_v56 = vld [vmem:[%s27197_s3 + $0x1c58] sm:$0xff]  ;;  %v17715_v41 = vcombine.high %v17480_v52, %v17488_v33  ;;  %v17714_v48 = vcombine.low %v17480_v52, %v17488_v33  ;;  %v17315_v52 = vld [vmem:[%s27197_s3 + $0x1728] sm:$0xff] }
 0x3d9   :  { %v17497_v60 = vld [vmem:[%s27197_s3 + $0x1cd8] sm:$0x11]  ;;  %v17731_v36 = vcombine.high %v17496_v22, %v17496_v22  ;;  %v17717_v45 = vcombine.high %v17481_v56, %v17489_v6  ;;  %v17730_v49 = vcombine.low %v17496_v22, %v17496_v22  ;;  %v17282_v57 = vld [vmem:[%s27197_s3 + $0x1620] sm:$0xff]  ;;  %v17528_v22 = vcombine.low %v17291_v11, %v17299_v17 }
 0x3da   :  { %7113 = vmatpush1.bf16.msra.mxu0 %v17650_v63  ;;  %v17733_v14 = vcombine.high %v17497_v60, %v17497_v60  ;;  %v17716_v63 = vcombine.low %v17481_v56, %v17489_v6  ;;  %v17732_v3 = vcombine.low %v17497_v60, %v17497_v60  ;;  %v17322_v60 = vld [vmem:[%s27197_s3 + $0x1760] sm:$0xff] }
 0x3db   :  { %7154 = vmatpush1.bf16.msra.mxu1 %v17652_v50  ;;  %7114 = vmatprep.subr.bf16.mxu0 %v17667_v37  ;;  %v6980_v42 = vand.u32 %v17731_v36, %v20487_v62  ;;  %v17274_v37 = vld [vmem:[%s27197_s3 + $0x15e0] sm:$0xff]  ;;  %v6977_v30 = vand.u32 %v17730_v49, %v20487_v62 }
 0x3dc   :  { %7155 = vmatprep.subr.bf16.mxu1 %v17669_v7  ;;  %v6986_v50 = vand.u32 %v17733_v14, %v20487_v62  ;;  %v17275_v7 = vld [vmem:[%s27197_s3 + $0x15e8] sm:$0xff]  ;;  %v6983_v18 = vand.u32 %v17732_v3, %v20487_v62  ;;  %v17511_v58 = vcombine.high %v17274_v37, %v17282_v57  ;;  %v17338_v49 = vld [vmem:[%s27197_s3 + $0x17e0] sm:$0xff] }
 0x3dd   :  { %v17512_v61 = vcombine.low %v17275_v7, %v17283_v10  ;;  %v17347_v3 = vld [vmem:[%s27197_s3 + $0x1828] sm:$0xff] }
 0x3de   :  { %7115 = vmatpush1.bf16.msra.mxu0 %v17666_v4  ;;  %v17513_v4 = vcombine.high %v17275_v7, %v17283_v10  ;;  %v17354_v10 = vld [vmem:[%s27197_s3 + $0x1860] sm:$0xff] }
 0x3df   :  { %7156 = vmatpush1.bf16.msra.mxu1 %v17668_v55  ;;  %7116 = vmatprep.subr.bf16.mxu0 %v17683_v5  ;;  %v17290_v55 = vld [vmem:[%s27197_s3 + $0x1660] sm:$0xff] }
 0x3e0   :  { %7157 = vmatprep.subr.bf16.mxu1 %v17685_v54  ;;  %v17298_v5 = vld [vmem:[%s27197_s3 + $0x16a0] sm:$0xff]  ;;  %v17510_v54 = vcombine.low %v17274_v37, %v17282_v57 }
 0x3e1   :  { %v17527_v23 = vcombine.high %v17290_v55, %v17298_v5  ;;  %v17526_v33 = vcombine.low %v17290_v55, %v17298_v5 }
 0x3e2   :  { %7117 = vmatpush1.bf16.msra.mxu0 %v17682_v25  ;;  %v17306_v25 = vld [vmem:[%s27197_s3 + $0x16e0] sm:$0xff] }
 0x3e3   :  { %7158 = vmatpush1.bf16.msra.mxu1 %v17684_v29  ;;  %7118 = vmatprep.subr.bf16.mxu0 %v17699_v31  ;;  %v17314_v29 = vld [vmem:[%s27197_s3 + $0x1720] sm:$0xff]  ;;  %v17529_v31 = vcombine.high %v17291_v11, %v17299_v17 }
 0x3e4   :  { %7159 = vmatprep.subr.bf16.mxu1 %v17701_v13  ;;  %v17307_v13 = vld [vmem:[%s27197_s3 + $0x16e8] sm:$0xff]  ;;  %v17543_v56 = vcombine.high %v17306_v25, %v17314_v29  ;;  %v17542_v36 = vcombine.low %v17306_v25, %v17314_v29  ;;  %v17370_v11 = vld [vmem:[%s27197_s3 + $0x18e0] sm:$0xff] }
 0x3e5   :  { %v17545_v6 = vcombine.high %v17307_v13, %v17315_v52  ;;  %v17378_v17 = vld [vmem:[%s27197_s3 + $0x1920] sm:$0xff] }
 0x3e6   :  { %7119 = vmatpush1.bf16.msra.mxu0 %v17698_v39  ;;  %v17330_v39 = vld [vmem:[%s27197_s3 + $0x17a0] sm:$0xff] }
 0x3e7   :  { %7160 = vmatpush1.bf16.msra.mxu1 %v17700_v2  ;;  %7120 = vmatprep.subr.bf16.mxu0 %v17715_v41  ;;  %v17323_v2 = vld [vmem:[%s27197_s3 + $0x1768] sm:$0xff]  ;;  %v17559_v14 = vcombine.high %v17322_v60, %v17330_v39 }
 0x3e8   :  { %7161 = vmatprep.subr.bf16.mxu1 %v17717_v45  ;;  %v17331_v41 = vld [vmem:[%s27197_s3 + $0x17a8] sm:$0xff]  ;;  %v17544_v45 = vcombine.low %v17307_v13, %v17315_v52  ;;  %v17386_v52 = vld [vmem:[%s27197_s3 + $0x1960] sm:$0xff] }
 0x3e9   :  { %v17560_v37 = vcombine.low %v17323_v2, %v17331_v41 }
 0x3ea   :  { %7121 = vmatpush1.bf16.msra.mxu0 %v17714_v48  ;;  %v17561_v48 = vcombine.high %v17323_v2, %v17331_v41  ;;  %v17402_v41 = vld [vmem:[%s27197_s3 + $0x19e0] sm:$0xff] }
 0x3eb   :  { %7162 = vmatpush1.bf16.msra.mxu1 %v17716_v63  ;;  %7122 = vmatprep.subr.bf16.mxu0 %v6980_v42  ;;  %v17346_v63 = vld [vmem:[%s27197_s3 + $0x1820] sm:$0xff]  ;;  %v17339_v42 = vld [vmem:[%s27197_s3 + $0x17e8] sm:$0xff] }
 0x3ec   :  { %7163 = vmatprep.subr.bf16.mxu1 %v6986_v50  ;;  %v17558_v50 = vcombine.low %v17322_v60, %v17330_v39  ;;  %v17575_v57 = vcombine.high %v17338_v49, %v17346_v63  ;;  %v17577_v7 = vcombine.high %v17339_v42, %v17347_v3  ;;  %v17576_v55 = vcombine.low %v17339_v42, %v17347_v3  ;;  %v17418_v3 = vld [vmem:[%s27197_s3 + $0x1a60] sm:$0xff] }
 0x3ee   :  { %7123 = vmatpush1.bf16.msra.mxu0 %v6977_v30  ;;  %v17362_v30 = vld [vmem:[%s27197_s3 + $0x18a0] sm:$0xff] }
 0x3ef   :  { %7164 = vmatpush1.bf16.msra.mxu1 %v6983_v18  ;;  %7176 = vmatprep.subr.bf16.mxu0 %v17511_v58  ;;  %v17355_v18 = vld [vmem:[%s27197_s3 + $0x1868] sm:$0xff]  ;;  %v17591_v5 = vcombine.high %v17354_v10, %v17362_v30  ;;  %v17590_v25 = vcombine.low %v17354_v10, %v17362_v30 }
 0x3f0   :  { %7217 = vmatprep.subr.bf16.mxu1 %v17513_v4  ;;  %v17363_v58 = vld [vmem:[%s27197_s3 + $0x18a8] sm:$0xff]  ;;  %v17574_v4 = vcombine.low %v17338_v49, %v17346_v63 }
 0x3f1   :  { %7127 = vmatmul.mubr.bf16.vlgmr.msra.gmra.mrb[56].mxu0 %v22984_v38  ;;  %v17592_v29 = vcombine.low %v17355_v18, %v17363_v58 }
 0x3f2   :  { %7168 = vmatmul.mubr.bf16.vlgmr.msra.gmra.mrb[56].mxu1 %v22984_v38  ;;  %7177 = vmatpush1.bf16.msra.mxu0 %v17510_v54  ;;  %v17593_v54 = vcombine.high %v17355_v18, %v17363_v58 }
 0x3f3   :  { %17746 = vmatprep.mubr.msk.bf16.mxu0 %vm1835_vm2, %v22791_v19  ;;  %7218 = vmatpush1.bf16.msra.mxu1 %v17512_v61  ;;  %v17371_v61 = vld [vmem:[%s27197_s3 + $0x18e8] sm:$0xff] }
 0x3f4   :  { %17747 = vmatprep.mubr.msk.bf16.mxu1 %vm1835_vm2, %v22791_v19  ;;  %7178 = vmatprep.subr.bf16.mxu0 %v17527_v23  ;;  %v17379_v23 = vld [vmem:[%s27197_s3 + $0x1928] sm:$0xff] }
 0x3f5   :  { %7219 = vmatprep.subr.bf16.mxu1 %v17529_v31  ;;  %v17607_v31 = vcombine.high %v17370_v11, %v17378_v17  ;;  %v17609_v13 = vcombine.high %v17371_v61, %v17379_v23  ;;  %v17608_v60 = vcombine.low %v17371_v61, %v17379_v23  ;;  %v17443_v61 = vld [vmem:[%s27197_s3 + $0x1b28] sm:$0xff] }
 0x3f6   :  { %7179 = vmatpush1.bf16.msra.mxu0 %v17526_v33  ;;  %v17394_v33 = vld [vmem:[%s27197_s3 + $0x19a0] sm:$0xff] }
 0x3f7   :  { %7220 = vmatpush1.bf16.msra.mxu1 %v17528_v22  ;;  %7180 = vmatprep.subr.bf16.mxu0 %v17543_v56  ;;  %v17387_v22 = vld [vmem:[%s27197_s3 + $0x1968] sm:$0xff]  ;;  %v17623_v39 = vcombine.high %v17386_v52, %v17394_v33 }
 0x3f8   :  { %7221 = vmatprep.subr.bf16.mxu1 %v17545_v6  ;;  %v17395_v56 = vld [vmem:[%s27197_s3 + $0x19a8] sm:$0xff]  ;;  %v17606_v6 = vcombine.low %v17370_v11, %v17378_v17 }
 0x3f9   :  { %v17625_v2 = vcombine.high %v17387_v22, %v17395_v56  ;;  %v17624_v49 = vcombine.low %v17387_v22, %v17395_v56  ;;  %v17435_v17 = vld [vmem:[%s27197_s3 + $0x1ae8] sm:$0xff] }
 0x3fa   :  { %7181 = vmatpush1.bf16.msra.mxu0 %v17542_v36  ;;  %v17410_v36 = vld [vmem:[%s27197_s3 + $0x1a20] sm:$0xff] }
 0x3fb   :  { %7222 = vmatpush1.bf16.msra.mxu1 %v17544_v45  ;;  %7182 = vmatprep.subr.bf16.mxu0 %v17559_v14  ;;  %v17403_v45 = vld [vmem:[%s27197_s3 + $0x19e8] sm:$0xff]  ;;  %v17639_v63 = vcombine.high %v17402_v41, %v17410_v36 }
 0x3fc   :  { %7223 = vmatprep.subr.bf16.mxu1 %v17561_v48  ;;  %v17411_v14 = vld [vmem:[%s27197_s3 + $0x1a28] sm:$0xff]  ;;  %v17622_v48 = vcombine.low %v17386_v52, %v17394_v33 }
 0x3fd   :  { %v17641_v42 = vcombine.high %v17403_v45, %v17411_v14  ;;  %v17640_v10 = vcombine.low %v17403_v45, %v17411_v14  ;;  %v17466_v14 = vld [vmem:[%s27197_s3 + $0x1be0] sm:$0xff] }
 0x3fe   :  { %7183 = vmatpush1.bf16.msra.mxu0 %v17558_v50  ;;  %v17426_v50 = vld [vmem:[%s27197_s3 + $0x1aa0] sm:$0xff] }
 0x3ff   :  { %7224 = vmatpush1.bf16.msra.mxu1 %v17560_v37  ;;  %7184 = vmatprep.subr.bf16.mxu0 %v17575_v57  ;;  %v17419_v37 = vld [vmem:[%s27197_s3 + $0x1a68] sm:$0xff]  ;;  %v17655_v30 = vcombine.high %v17418_v3, %v17426_v50 }
 0x400   :  { %7225 = vmatprep.subr.bf16.mxu1 %v17577_v7  ;;  %v17427_v57 = vld [vmem:[%s27197_s3 + $0x1aa8] sm:$0xff]  ;;  %v17638_v7 = vcombine.low %v17402_v41, %v17410_v36  ;;  %v17672_v41 = vcombine.low %v17435_v17, %v17443_v61 }
 0x401   :  { %v17657_v58 = vcombine.high %v17419_v37, %v17427_v57  ;;  %v17656_v22 = vcombine.low %v17419_v37, %v17427_v57  ;;  %v17482_v57 = vld [vmem:[%s27197_s3 + $0x1c60] sm:$0xff] }
 0x402   :  { %7185 = vmatpush1.bf16.msra.mxu0 %v17574_v4  ;;  %v17434_v4 = vld [vmem:[%s27197_s3 + $0x1ae0] sm:$0xff] }
 0x403   :  { %7226 = vmatpush1.bf16.msra.mxu1 %v17576_v55  ;;  %7186 = vmatprep.subr.bf16.mxu0 %v17591_v5  ;;  %v17442_v55 = vld [vmem:[%s27197_s3 + $0x1b20] sm:$0xff] }
 0x404   :  { %7227 = vmatprep.subr.bf16.mxu1 %v17593_v54  ;;  %v17671_v56 = vcombine.high %v17434_v4, %v17442_v55 }
 0x406   :  { %7187 = vmatpush1.bf16.msra.mxu0 %v17590_v25 }
 0x407   :  { %7228 = vmatpush1.bf16.msra.mxu1 %v17592_v29  ;;  %7188 = vmatprep.subr.bf16.mxu0 %v17607_v31 }
 0x408   :  { %7229 = vmatprep.subr.bf16.mxu1 %v17609_v13 }
 0x40a   :  { %7189 = vmatpush1.bf16.msra.mxu0 %v17606_v6 }
 0x40b   :  { %7230 = vmatpush1.bf16.msra.mxu1 %v17608_v60  ;;  %7190 = vmatprep.subr.bf16.mxu0 %v17623_v39  ;;  %v17458_v60 = vld [vmem:[%s27197_s3 + $0x1ba0] sm:$0xff]  ;;  %v17459_v39 = vld [vmem:[%s27197_s3 + $0x1ba8] sm:$0xff] }
 0x40c   :  { %7231 = vmatprep.subr.bf16.mxu1 %v17625_v2  ;;  %v17670_v2 = vcombine.low %v17434_v4, %v17442_v55 }
 0x40e   :  { %7191 = vmatpush1.bf16.msra.mxu0 %v17622_v48  ;;  %v17474_v48 = vld [vmem:[%s27197_s3 + $0x1c20] sm:$0xff] }
 0x40f   :  { %7232 = vmatpush1.bf16.msra.mxu1 %v17624_v49  ;;  %7192 = vmatprep.subr.bf16.mxu0 %v17639_v63  ;;  %v17467_v49 = vld [vmem:[%s27197_s3 + $0x1be8] sm:$0xff]  ;;  %v17702_v4 = vcombine.low %v17466_v14, %v17474_v48 }
 0x410   :  { %v5410_v18 = vpop.f32.mrb[44].mxu0  ;;  %7233 = vmatprep.subr.bf16.mxu1 %v17641_v42  ;;  %v17475_v63 = vld [vmem:[%s27197_s3 + $0x1c28] sm:$0xff] }
 0x411   :  { %v23291_v5 = vadd.f32 %v5410_v18, %v22499_v15  ;;  %v5451_v54 = vpop.f32.mrb[44].mxu1  ;;  %v5412_v11 = vpop.f32.mrb[45].mxu0  ;;  %v17654_v15 = vcombine.low %v17418_v3, %v17426_v50  ;;  %v17703_v50 = vcombine.high %v17466_v14, %v17474_v48  ;;  %v17705_v37 = vcombine.high %v17467_v49, %v17475_v63  ;;  %v17491_v18 = vld [vmem:[%s27197_s3 + $0x1ca8] sm:$0xff]  ;;  %v17293_v14 = vld [vmem:[%s27197_s3 + $0x1678] sm:$0xff] }
 0x412   :  { %v23300_v23 = vadd.f32 %v5451_v54, %v22508_v51  ;;  %v23303_v25 = vadd.f32 %v5412_v11, %v22511_v53  ;;  %v5453_v29 = vpop.f32.mrb[45].mxu1  ;;  %v5414_v31 = vpop.f32.mrb[46].mxu0  ;;  %7193 = vmatpush1.bf16.msra.mxu0 %v17638_v7  ;;  %v17673_v51 = vcombine.high %v17435_v17, %v17443_v61  ;;  %v17450_v53 = vld [vmem:[%s27197_s3 + $0x1b60] sm:$0xff]  ;;  %v17704_v55 = vcombine.low %v17467_v49, %v17475_v63  ;;  %v17301_v48 = vld [vmem:[%s27197_s3 + $0x16b8] sm:$0xff] }
 0x413   :  { %v23306_v13 = vadd.f32 %v5453_v29, %v22514_v59  ;;  %v5455_v52 = vpop.f32.mrb[46].mxu1  ;;  %7234 = vmatpush1.bf16.msra.mxu1 %v17640_v10  ;;  %v5415_v33 = vpop.f32.mrb[47].mxu0  ;;  %7194 = vmatprep.subr.bf16.mxu0 %v17655_v30  ;;  %v17451_v59 = vld [vmem:[%s27197_s3 + $0x1b68] sm:$0xff]  ;;  %v17687_v36 = vcombine.high %v17450_v53, %v17458_v60  ;;  %v17686_v42 = vcombine.low %v17450_v53, %v17458_v60  ;;  %v17490_v7 = vld [vmem:[%s27197_s3 + $0x1ca0] sm:$0xff]  ;;  %v17285_v53 = vld [vmem:[%s27197_s3 + $0x1638] sm:$0xff] }
 0x414   :  { %v5456_v6 = vpop.f32.mrb[47].mxu1  ;;  %7235 = vmatprep.subr.bf16.mxu1 %v17657_v58  ;;  %v17689_v45 = vcombine.high %v17451_v59, %v17459_v39  ;;  %v17688_v3 = vcombine.low %v17451_v59, %v17459_v39  ;;  %v17498_v10 = vld [vmem:[%s27197_s3 + $0x1ce0] sm:$0x11]  ;;  %v17483_v30 = vld [vmem:[%s27197_s3 + $0x1c68] sm:$0xff]  ;;  %v17719_v54 = vcombine.high %v17482_v57, %v17490_v7  ;;  %v17718_v29 = vcombine.low %v17482_v57, %v17490_v7  ;;  %v17317_v57 = vld [vmem:[%s27197_s3 + $0x1738] sm:$0xff] }
 0x415   :  { %v17499_v58 = vld [vmem:[%s27197_s3 + $0x1ce8] sm:$0x11]  ;;  %v17735_v11 = vcombine.high %v17498_v10, %v17498_v10  ;;  %v17721_v17 = vcombine.high %v17483_v30, %v17491_v18  ;;  %v17734_v31 = vcombine.low %v17498_v10, %v17498_v10  ;;  %v17284_v6 = vld [vmem:[%s27197_s3 + $0x1630] sm:$0xff]  ;;  %v17532_v10 = vcombine.low %v17293_v14, %v17301_v48 }
 0x416   :  { %7195 = vmatpush1.bf16.msra.mxu0 %v17654_v15  ;;  %v17737_v61 = vcombine.high %v17499_v58, %v17499_v58  ;;  %v17720_v15 = vcombine.low %v17483_v30, %v17491_v18  ;;  %v17736_v33 = vcombine.low %v17499_v58, %v17499_v58  ;;  %v17324_v58 = vld [vmem:[%s27197_s3 + $0x1770] sm:$0xff] }
 0x417   :  { %7236 = vmatpush1.bf16.msra.mxu1 %v17656_v22  ;;  %7196 = vmatprep.subr.bf16.mxu0 %v17671_v56  ;;  %v6992_v52 = vand.u32 %v17735_v11, %v20487_v62  ;;  %v17276_v56 = vld [vmem:[%s27197_s3 + $0x15f0] sm:$0xff]  ;;  %v6989_v60 = vand.u32 %v17734_v31, %v20487_v62 }
 0x418   :  { %7237 = vmatprep.subr.bf16.mxu1 %v17673_v51  ;;  %v6998_v22 = vand.u32 %v17737_v61, %v20487_v62  ;;  %v17277_v51 = vld [vmem:[%s27197_s3 + $0x15f8] sm:$0xff]  ;;  %v6995_v59 = vand.u32 %v17736_v33, %v20487_v62  ;;  %v17515_v39 = vcombine.high %v17276_v56, %v17284_v6  ;;  %v17348_v31 = vld [vmem:[%s27197_s3 + $0x1830] sm:$0xff] }
 0x419   :  { %v17516_v49 = vcombine.low %v17277_v51, %v17285_v53 }
 0x41a   :  { %7197 = vmatpush1.bf16.msra.mxu0 %v17670_v2  ;;  %v17517_v2 = vcombine.high %v17277_v51, %v17285_v53  ;;  %v17356_v51 = vld [vmem:[%s27197_s3 + $0x1870] sm:$0xff] }
 0x41b   :  { %7238 = vmatpush1.bf16.msra.mxu1 %v17672_v41  ;;  %7198 = vmatprep.subr.bf16.mxu0 %v17687_v36  ;;  %v17292_v41 = vld [vmem:[%s27197_s3 + $0x1670] sm:$0xff] }
 0x41c   :  { %7239 = vmatprep.subr.bf16.mxu1 %v17689_v45  ;;  %v17300_v36 = vld [vmem:[%s27197_s3 + $0x16b0] sm:$0xff]  ;;  %v17514_v45 = vcombine.low %v17276_v56, %v17284_v6 }
 0x41d   :  { %v17531_v63 = vcombine.high %v17292_v41, %v17300_v36  ;;  %v17530_v7 = vcombine.low %v17292_v41, %v17300_v36  ;;  %v17364_v53 = vld [vmem:[%s27197_s3 + $0x18b0] sm:$0xff] }
 0x41e   :  { %7199 = vmatpush1.bf16.msra.mxu0 %v17686_v42  ;;  %v17308_v42 = vld [vmem:[%s27197_s3 + $0x16f0] sm:$0xff]  ;;  %v17595_v41 = vcombine.high %v17356_v51, %v17364_v53 }
 0x41f   :  { %7240 = vmatpush1.bf16.msra.mxu1 %v17688_v3  ;;  %7200 = vmatprep.subr.bf16.mxu0 %v17703_v50  ;;  %v17316_v3 = vld [vmem:[%s27197_s3 + $0x1730] sm:$0xff]  ;;  %v17533_v50 = vcombine.high %v17293_v14, %v17301_v48  ;;  %v17373_v48 = vld [vmem:[%s27197_s3 + $0x18f8] sm:$0xff] }
 0x420   :  { %7241 = vmatprep.subr.bf16.mxu1 %v17705_v37  ;;  %v17309_v37 = vld [vmem:[%s27197_s3 + $0x16f8] sm:$0xff]  ;;  %v17547_v30 = vcombine.high %v17308_v42, %v17316_v3  ;;  %v17380_v14 = vld [vmem:[%s27197_s3 + $0x1930] sm:$0xff] }
 0x421   :  { %v17549_v18 = vcombine.high %v17309_v37, %v17317_v57  ;;  %v17548_v11 = vcombine.low %v17309_v37, %v17317_v57  ;;  %v17388_v37 = vld [vmem:[%s27197_s3 + $0x1970] sm:$0xff] }
 0x422   :  { %7201 = vmatpush1.bf16.msra.mxu0 %v17702_v4  ;;  %v17332_v4 = vld [vmem:[%s27197_s3 + $0x17b0] sm:$0xff] }
 0x423   :  { %7242 = vmatpush1.bf16.msra.mxu1 %v17704_v55  ;;  %7202 = vmatprep.subr.bf16.mxu0 %v17719_v54  ;;  %v17325_v55 = vld [vmem:[%s27197_s3 + $0x1778] sm:$0xff]  ;;  %v17562_v33 = vcombine.low %v17324_v58, %v17332_v4  ;;  %v17396_v57 = vld [vmem:[%s27197_s3 + $0x19b0] sm:$0xff] }
 0x424   :  { %7243 = vmatprep.subr.bf16.mxu1 %v17721_v17  ;;  %v17333_v54 = vld [vmem:[%s27197_s3 + $0x17b8] sm:$0xff]  ;;  %v17563_v17 = vcombine.high %v17324_v58, %v17332_v4  ;;  %v17627_v58 = vcombine.high %v17388_v37, %v17396_v57 }
 0x425   :  { %v17565_v61 = vcombine.high %v17325_v55, %v17333_v54 }
 0x426   :  { %7203 = vmatpush1.bf16.msra.mxu0 %v17718_v29  ;;  %v17340_v29 = vld [vmem:[%s27197_s3 + $0x17f0] sm:$0xff] }
 0x427   :  { %7244 = vmatpush1.bf16.msra.mxu1 %v17720_v15  ;;  %7204 = vmatprep.subr.bf16.mxu0 %v6992_v52  ;;  %v17341_v15 = vld [vmem:[%s27197_s3 + $0x17f8] sm:$0xff]  ;;  %v17579_v56 = vcombine.high %v17340_v29, %v17348_v31 }
 0x428   :  { %7245 = vmatprep.subr.bf16.mxu1 %v6998_v22  ;;  %v17349_v52 = vld [vmem:[%s27197_s3 + $0x1838] sm:$0xff]  ;;  %v17564_v22 = vcombine.low %v17325_v55, %v17333_v54  ;;  %v17404_v55 = vld [vmem:[%s27197_s3 + $0x19f0] sm:$0xff] }
 0x429   :  { %v17581_v6 = vcombine.high %v17341_v15, %v17349_v52  ;;  %v17412_v54 = vld [vmem:[%s27197_s3 + $0x1a30] sm:$0xff] }
 0x42a   :  { %7205 = vmatpush1.bf16.msra.mxu0 %v6989_v60  ;;  %v17357_v60 = vld [vmem:[%s27197_s3 + $0x1878] sm:$0xff] }
 0x42b   :  { %7246 = vmatpush1.bf16.msra.mxu1 %v6995_v59  ;;  %7258 = vmatprep.subr.bf16.mxu0 %v17515_v39  ;;  %v17365_v59 = vld [vmem:[%s27197_s3 + $0x18b8] sm:$0xff]  ;;  %v17578_v39 = vcombine.low %v17340_v29, %v17348_v31  ;;  %v17643_v29 = vcombine.high %v17404_v55, %v17412_v54 }
 0x42c   :  { %7299 = vmatprep.subr.bf16.mxu1 %v17517_v2  ;;  %v17580_v2 = vcombine.low %v17341_v15, %v17349_v52  ;;  %v17597_v36 = vcombine.high %v17357_v60, %v17365_v59  ;;  %v17420_v15 = vld [vmem:[%s27197_s3 + $0x1a70] sm:$0xff] }
 0x42d   :  { %7209 = vmatmul.mubr.bf16.vlgmr.msra.gmra.mrb[60].mxu0 %v22984_v38  ;;  %v17428_v52 = vld [vmem:[%s27197_s3 + $0x1ab0] sm:$0xff] }
 0x42e   :  { %7250 = vmatmul.mubr.bf16.vlgmr.msra.gmra.mrb[60].mxu1 %v22984_v38  ;;  %7259 = vmatpush1.bf16.msra.mxu0 %v17514_v45  ;;  %v17372_v45 = vld [vmem:[%s27197_s3 + $0x18f0] sm:$0xff] }
 0x42f   :  { %17748 = vmatprep.mubr.msk.bf16.mxu0 %vm1835_vm2, %v22791_v19  ;;  %7300 = vmatpush1.bf16.msra.mxu1 %v17516_v49  ;;  %v17381_v49 = vld [vmem:[%s27197_s3 + $0x1938] sm:$0xff] }
 0x430   :  { %17749 = vmatprep.mubr.msk.bf16.mxu1 %vm1835_vm2, %v22791_v19  ;;  %7260 = vmatprep.subr.bf16.mxu0 %v17531_v63  ;;  %v17546_v19 = vcombine.low %v17308_v42, %v17316_v3  ;;  %v17594_v63 = vcombine.low %v17356_v51, %v17364_v53  ;;  %v17596_v42 = vcombine.low %v17357_v60, %v17365_v59  ;;  %v17436_v59 = vld [vmem:[%s27197_s3 + $0x1af0] sm:$0xff] }
 0x431   :  { %7301 = vmatprep.subr.bf16.mxu1 %v17533_v50  ;;  %v17611_v3 = vcombine.high %v17372_v45, %v17380_v14  ;;  %v17613_v50 = vcombine.high %v17373_v48, %v17381_v49  ;;  %v17659_v51 = vcombine.high %v17420_v15, %v17428_v52 }
 0x432   :  { %7261 = vmatpush1.bf16.msra.mxu0 %v17530_v7  ;;  %v17389_v7 = vld [vmem:[%s27197_s3 + $0x1978] sm:$0xff] }
 0x433   :  { %7302 = vmatpush1.bf16.msra.mxu1 %v17532_v10  ;;  %7262 = vmatprep.subr.bf16.mxu0 %v17547_v30  ;;  %v17397_v10 = vld [vmem:[%s27197_s3 + $0x19b8] sm:$0xff]  ;;  %v17610_v30 = vcombine.low %v17372_v45, %v17380_v14 }
 0x434   :  { %7303 = vmatprep.subr.bf16.mxu1 %v17549_v18  ;;  %v17612_v18 = vcombine.low %v17373_v48, %v17381_v49  ;;  %v17629_v4 = vcombine.high %v17389_v7, %v17397_v10  ;;  %v17437_v45 = vld [vmem:[%s27197_s3 + $0x1af8] sm:$0xff] }
 0x435   :  { %v17445_v14 = vld [vmem:[%s27197_s3 + $0x1b38] sm:$0xff] }
 0x436   :  { %7263 = vmatpush1.bf16.msra.mxu0 %v17546_v19  ;;  %v17405_v19 = vld [vmem:[%s27197_s3 + $0x19f8] sm:$0xff] }
 0x437   :  { %7304 = vmatpush1.bf16.msra.mxu1 %v17548_v11  ;;  %7264 = vmatprep.subr.bf16.mxu0 %v17563_v17  ;;  %v17413_v11 = vld [vmem:[%s27197_s3 + $0x1a38] sm:$0xff]  ;;  %v17626_v17 = vcombine.low %v17388_v37, %v17396_v57 }
 0x438   :  { %7305 = vmatprep.subr.bf16.mxu1 %v17565_v61  ;;  %v17628_v61 = vcombine.low %v17389_v7, %v17397_v10  ;;  %v17645_v31 = vcombine.high %v17405_v19, %v17413_v11 }
 0x43a   :  { %7265 = vmatpush1.bf16.msra.mxu0 %v17562_v33  ;;  %v17421_v33 = vld [vmem:[%s27197_s3 + $0x1a78] sm:$0xff] }
 0x43b   :  { %7306 = vmatpush1.bf16.msra.mxu1 %v17564_v22  ;;  %7266 = vmatprep.subr.bf16.mxu0 %v17579_v56  ;;  %v17429_v22 = vld [vmem:[%s27197_s3 + $0x1ab8] sm:$0xff]  ;;  %v17642_v56 = vcombine.low %v17404_v55, %v17412_v54 }
 0x43c   :  { %7307 = vmatprep.subr.bf16.mxu1 %v17581_v6  ;;  %v17644_v6 = vcombine.low %v17405_v19, %v17413_v11  ;;  %v17661_v60 = vcombine.high %v17421_v33, %v17429_v22  ;;  %v17660_v57 = vcombine.low %v17421_v33, %v17429_v22  ;;  %v17468_v19 = vld [vmem:[%s27197_s3 + $0x1bf0] sm:$0xff] }
 0x43d   :  { %v17476_v11 = vld [vmem:[%s27197_s3 + $0x1c30] sm:$0xff] }
 0x43e   :  { %7267 = vmatpush1.bf16.msra.mxu0 %v17578_v39  ;;  %v17444_v39 = vld [vmem:[%s27197_s3 + $0x1b30] sm:$0xff] }
 0x43f   :  { %7308 = vmatpush1.bf16.msra.mxu1 %v17580_v2  ;;  %7268 = vmatprep.subr.bf16.mxu0 %v17595_v41  ;;  %v17675_v7 = vcombine.high %v17436_v59, %v17444_v39  ;;  %v17484_v33 = vld [vmem:[%s27197_s3 + $0x1c70] sm:$0xff] }
 0x440   :  { %7309 = vmatprep.subr.bf16.mxu1 %v17597_v36  ;;  %v17492_v22 = vld [vmem:[%s27197_s3 + $0x1cb0] sm:$0xff] }
 0x442   :  { %7269 = vmatpush1.bf16.msra.mxu0 %v17594_v63 }
 0x443   :  { %7310 = vmatpush1.bf16.msra.mxu1 %v17596_v42  ;;  %7270 = vmatprep.subr.bf16.mxu0 %v17611_v3 }
 0x444   :  { %7311 = vmatprep.subr.bf16.mxu1 %v17613_v50 }
 0x446   :  { %7271 = vmatpush1.bf16.msra.mxu0 %v17610_v30  ;;  %v17460_v30 = vld [vmem:[%s27197_s3 + $0x1bb0] sm:$0xff] }
 0x447   :  { %7312 = vmatpush1.bf16.msra.mxu1 %v17612_v18  ;;  %7272 = vmatprep.subr.bf16.mxu0 %v17627_v58  ;;  %v17461_v18 = vld [vmem:[%s27197_s3 + $0x1bb8] sm:$0xff]  ;;  %v17674_v58 = vcombine.low %v17436_v59, %v17444_v39  ;;  %v17723_v39 = vcombine.high %v17484_v33, %v17492_v22 }
 0x448   :  { %7313 = vmatprep.subr.bf16.mxu1 %v17629_v4  ;;  %v17676_v4 = vcombine.low %v17437_v45, %v17445_v14 }
 0x44a   :  { %7273 = vmatpush1.bf16.msra.mxu0 %v17626_v17  ;;  %v17469_v17 = vld [vmem:[%s27197_s3 + $0x1bf8] sm:$0xff] }
 0x44b   :  { %7314 = vmatpush1.bf16.msra.mxu1 %v17628_v61  ;;  %7274 = vmatprep.subr.bf16.mxu0 %v17643_v29  ;;  %v17477_v61 = vld [vmem:[%s27197_s3 + $0x1c38] sm:$0xff] }
 0x44c   :  { %v5492_v53 = vpop.f32.mrb[48].mxu0  ;;  %7315 = vmatprep.subr.bf16.mxu1 %v17645_v31  ;;  %v17708_v59 = vcombine.low %v17469_v17, %v17477_v61 }
 0x44d   :  { %v23487_v2 = vadd.f32 %v5492_v53, %v22695_v1  ;;  %v5533_v41 = vpop.f32.mrb[48].mxu1  ;;  %v5494_v36 = vpop.f32.mrb[49].mxu0  ;;  %v17658_v1 = vcombine.low %v17420_v15, %v17428_v52  ;;  %v17707_v15 = vcombine.high %v17468_v19, %v17476_v11  ;;  %v17709_v52 = vcombine.high %v17469_v17, %v17477_v61  ;;  %v17501_v53 = vld [vmem:[%s27197_s3 + $0x1cf8] sm:$0x11]  ;;  %v17782_v61 = vld [vmem:[%s27197_s3 + $0x1e00] sm:$0xff] }
 0x44e   :  { %v23496_v48 = vadd.f32 %v5533_v41, %v22704_v43  ;;  %v23499_v49 = vadd.f32 %v5494_v36, %v22707_v28  ;;  %v5535_v63 = vpop.f32.mrb[49].mxu1  ;;  %v5496_v42 = vpop.f32.mrb[50].mxu0  ;;  %7275 = vmatpush1.bf16.msra.mxu0 %v17642_v56  ;;  %v17677_v43 = vcombine.high %v17437_v45, %v17445_v14  ;;  %v17452_v28 = vld [vmem:[%s27197_s3 + $0x1b70] sm:$0xff]  ;;  %v17741_v45 = vcombine.high %v17501_v53, %v17501_v53 }
 0x44f   :  { %v23502_v3 = vadd.f32 %v5535_v63, %v22710_v9  ;;  %v5537_v50 = vpop.f32.mrb[50].mxu1  ;;  %7316 = vmatpush1.bf16.msra.mxu1 %v17644_v6  ;;  %v5497_v37 = vpop.f32.mrb[51].mxu0  ;;  %7276 = vmatprep.subr.bf16.mxu0 %v17659_v51  ;;  %v17453_v9 = vld [vmem:[%s27197_s3 + $0x1b78] sm:$0xff]  ;;  %v17691_v55 = vcombine.high %v17452_v28, %v17460_v30  ;;  %v17690_v29 = vcombine.low %v17452_v28, %v17460_v30  ;;  %v17500_v56 = vld [vmem:[%s27197_s3 + $0x1cf0] sm:$0x11] }
 0x450   :  { %v5538_v10 = vpop.f32.mrb[51].mxu1  ;;  %7317 = vmatprep.subr.bf16.mxu1 %v17661_v60  ;;  %v17693_v54 = vcombine.high %v17453_v9, %v17461_v18  ;;  %v17692_v31 = vcombine.low %v17453_v9, %v17461_v18  ;;  %v17485_v6 = vld [vmem:[%s27197_s3 + $0x1c78] sm:$0xff]  ;;  %v17706_v60 = vcombine.low %v17468_v19, %v17476_v11  ;;  %v17739_v41 = vcombine.high %v17500_v56, %v17500_v56  ;;  %v17775_v19 = vld [vmem:[%s27197_s3 + $0x1dc8] sm:$0xff] }
 0x451   :  { %v17493_v51 = vld [vmem:[%s27197_s3 + $0x1cb8] sm:$0xff]  ;;  %v17722_v14 = vcombine.low %v17484_v33, %v17492_v22  ;;  %v17738_v63 = vcombine.low %v17500_v56, %v17500_v56  ;;  %v17740_v50 = vcombine.low %v17501_v53, %v17501_v53  ;;  %v7010_v37 = vand.u32 %v17741_v45, %v20487_v62  ;;  %v17751_v10 = vld [vmem:[%s27197_s3 + $0x1d08] sm:$0xff]  ;;  %v17814_v45 = vld [vmem:[%s27197_s3 + $0x1f00] sm:$0xff] }
 0x452   :  { %7277 = vmatpush1.bf16.msra.mxu0 %v17658_v1  ;;  %v17725_v36 = vcombine.high %v17485_v6, %v17493_v51  ;;  %v17724_v42 = vcombine.low %v17485_v6, %v17493_v51  ;;  %v7004_v1 = vand.u32 %v17739_v41, %v20487_v62  ;;  %v17791_v33 = vld [vmem:[%s27197_s3 + $0x1e48] sm:$0xff]  ;;  %v17798_v51 = vld [vmem:[%s27197_s3 + $0x1e80] sm:$0xff] }
 0x453   :  { %7318 = vmatpush1.bf16.msra.mxu1 %v17660_v57  ;;  %7278 = vmatprep.subr.bf16.mxu0 %v17675_v7  ;;  %v17750_v57 = vld [vmem:[%s27197_s3 + $0x1d00] sm:$0xff]  ;;  %v7001_v28 = vand.u32 %v17738_v63, %v20487_v62  ;;  %v7007_v30 = vand.u32 %v17740_v50, %v20487_v62  ;;  %v17799_v53 = vld [vmem:[%s27197_s3 + $0x1e88] sm:$0xff] }
 0x454   :  { %7319 = vmatprep.subr.bf16.mxu1 %v17677_v43  ;;  %v17758_v7 = vld [vmem:[%s27197_s3 + $0x1d40] sm:$0xff]  ;;  %v17759_v43 = vld [vmem:[%s27197_s3 + $0x1d48] sm:$0xff] }
 0x455   :  { %v17983_v9 = vcombine.high %v17750_v57, %v17758_v7  ;;  %v17985_v18 = vcombine.high %v17751_v10, %v17759_v43  ;;  %v17984_v11 = vcombine.low %v17751_v10, %v17759_v43  ;;  %v17815_v63 = vld [vmem:[%s27197_s3 + $0x1f08] sm:$0xff]  ;;  %v17838_v10 = vld [vmem:[%s27197_s3 + $0x1fc0] sm:$0xff] }
 0x456   :  { %7279 = vmatpush1.bf16.msra.mxu0 %v17674_v58  ;;  %v17766_v58 = vld [vmem:[%s27197_s3 + $0x1d80] sm:$0xff]  ;;  %v17831_v43 = vld [vmem:[%s27197_s3 + $0x1f88] sm:$0xff] }
 0x457   :  { %7320 = vmatpush1.bf16.msra.mxu1 %v17676_v4  ;;  %7280 = vmatprep.subr.bf16.mxu0 %v17691_v55  ;;  %v17774_v4 = vld [vmem:[%s27197_s3 + $0x1dc0] sm:$0xff]  ;;  %v17982_v55 = vcombine.low %v17750_v57, %v17758_v7 }
 0x458   :  { %7321 = vmatprep.subr.bf16.mxu1 %v17693_v54  ;;  %v17767_v54 = vld [vmem:[%s27197_s3 + $0x1d88] sm:$0xff]  ;;  %v17999_v17 = vcombine.high %v17766_v58, %v17774_v4  ;;  %v17998_v22 = vcombine.low %v17766_v58, %v17774_v4  ;;  %v17830_v7 = vld [vmem:[%s27197_s3 + $0x1f80] sm:$0xff] }
 0x459   :  { %v18000_v56 = vcombine.low %v17767_v54, %v17775_v19  ;;  %v17846_v4 = vld [vmem:[%s27197_s3 + $0x2000] sm:$0xff] }
 0x45a   :  { %7281 = vmatpush1.bf16.msra.mxu0 %v17690_v29  ;;  %v17790_v29 = vld [vmem:[%s27197_s3 + $0x1e40] sm:$0xff] }
 0x45b   :  { %7322 = vmatpush1.bf16.msra.mxu1 %v17692_v31  ;;  %7282 = vmatprep.subr.bf16.mxu0 %v17707_v15  ;;  %v23583_v31 = vpack.c.bf16 %v20662_v21, %v20662_v21  ;;  %v18001_v15 = vcombine.high %v17767_v54, %v17775_v19  ;;  %v18015_v21 = vcombine.high %v17782_v61, %v17790_v29  ;;  %v17847_v54 = vld [vmem:[%s27197_s3 + $0x2008] sm:$0xff] }
 0x45c   :  { %7323 = vmatprep.subr.bf16.mxu1 %v17709_v52  ;;  %v17783_v52 = vld [vmem:[%s27197_s3 + $0x1e08] sm:$0xff] }
 0x45d   :  { %v18017_v6 = vcombine.high %v17783_v52, %v17791_v33  ;;  %v17855_v19 = vld [vmem:[%s27197_s3 + $0x2048] sm:$0xff] }
 0x45e   :  { %7283 = vmatpush1.bf16.msra.mxu0 %v17706_v60  ;;  %v17807_v60 = vld [vmem:[%s27197_s3 + $0x1ec8] sm:$0xff] }
 0x45f   :  { %7324 = vmatpush1.bf16.msra.mxu1 %v17708_v59  ;;  %7284 = vmatprep.subr.bf16.mxu0 %v17723_v39  ;;  %v18014_v59 = vcombine.low %v17782_v61, %v17790_v29  ;;  %v18016_v39 = vcombine.low %v17783_v52, %v17791_v33  ;;  %v18032_v50 = vcombine.low %v17799_v53, %v17807_v60  ;;  %v17870_v52 = vld [vmem:[%s27197_s3 + $0x20c0] sm:$0xff]  ;;  %v17863_v33 = vld [vmem:[%s27197_s3 + $0x2088] sm:$0xff] }
 0x460   :  { %7325 = vmatprep.subr.bf16.mxu1 %v17725_v36  ;;  %v18033_v36 = vcombine.high %v17799_v53, %v17807_v60  ;;  %v18081_v29 = vcombine.high %v17847_v54, %v17855_v19  ;;  %v17886_v53 = vld [vmem:[%s27197_s3 + $0x2140] sm:$0xff]  ;;  %v17879_v60 = vld [vmem:[%s27197_s3 + $0x2108] sm:$0xff] }
 0x462   :  { %7285 = vmatpush1.bf16.msra.mxu0 %v17722_v14  ;;  %v17822_v14 = vld [vmem:[%s27197_s3 + $0x1f40] sm:$0xff] }
 0x463   :  { %7326 = vmatpush1.bf16.msra.mxu1 %v17724_v42  ;;  %7286 = vmatprep.subr.bf16.mxu0 %v7004_v1  ;;  %v17823_v42 = vld [vmem:[%s27197_s3 + $0x1f48] sm:$0xff] }
 0x464   :  { %7327 = vmatprep.subr.bf16.mxu1 %v7010_v37  ;;  %v18047_v37 = vcombine.high %v17814_v45, %v17822_v14  ;;  %v18049_v57 = vcombine.high %v17815_v63, %v17823_v42 }
 0x466   :  { %7287 = vmatpush1.bf16.msra.mxu0 %v7001_v28  ;;  %v17839_v28 = vld [vmem:[%s27197_s3 + $0x1fc8] sm:$0xff] }
 0x467   :  { %7328 = vmatpush1.bf16.msra.mxu1 %v7007_v30  ;;  %8812 = vmatprep.subr.bf16.mxu0 %v17983_v9  ;;  %v18046_v30 = vcombine.low %v17814_v45, %v17822_v14  ;;  %v18048_v9 = vcombine.low %v17815_v63, %v17823_v42  ;;  %v18065_v58 = vcombine.high %v17831_v43, %v17839_v28  ;;  %v17894_v14 = vld [vmem:[%s27197_s3 + $0x2180] sm:$0xff]  ;;  %v17895_v42 = vld [vmem:[%s27197_s3 + $0x2188] sm:$0xff] }
 0x468   :  { %8853 = vmatprep.subr.bf16.mxu1 %v17985_v18  ;;  %v18063_v18 = vcombine.high %v17830_v7, %v17838_v10  ;;  %v17902_v63 = vld [vmem:[%s27197_s3 + $0x21c0] sm:$0xff] }
 0x469   :  { %7291 = vmatmul.mubr.bf16.vlgmr.msra.gmra.mrb[64].mxu0 %v22984_v38 }
 0x46a   :  { %7332 = vmatmul.mubr.bf16.vlgmr.msra.gmra.mrb[64].mxu1 %v22984_v38  ;;  %8813 = vmatpush1.bf16.msra.mxu0 %v17982_v55  ;;  %v17806_v38 = vld [vmem:[%s27197_s3 + $0x1ec0] sm:$0xff] }
 0x46b   :  { %18222 = vmatprep.mubr.msk.bf16.mxu0 %vm1835_vm2, %v23583_v31  ;;  %8854 = vmatpush1.bf16.msra.mxu1 %v17984_v11  ;;  %v18031_v41 = vcombine.high %v17798_v51, %v17806_v38  ;;  %v18030_v1 = vcombine.low %v17798_v51, %v17806_v38  ;;  %v17854_v55 = vld [vmem:[%s27197_s3 + $0x2040] sm:$0xff]  ;;  %v18062_v11 = vcombine.low %v17830_v7, %v17838_v10 }
 0x46c   :  { %18223 = vmatprep.mubr.msk.bf16.mxu1 %vm1835_vm2, %v23583_v31  ;;  %8814 = vmatprep.subr.bf16.mxu0 %v17999_v17  ;;  %v18064_v17 = vcombine.low %v17831_v43, %v17839_v28  ;;  %v18079_v61 = vcombine.high %v17846_v4, %v17854_v55  ;;  %v17878_v38 = vld [vmem:[%s27197_s3 + $0x2100] sm:$0xff] }
 0x46d   :  { %8855 = vmatprep.subr.bf16.mxu1 %v18001_v15  ;;  %v17862_v15 = vld [vmem:[%s27197_s3 + $0x2080] sm:$0xff] }
 0x46e   :  { %8815 = vmatpush1.bf16.msra.mxu0 %v17998_v22  ;;  %v17871_v22 = vld [vmem:[%s27197_s3 + $0x20c8] sm:$0xff]  ;;  %v17910_v43 = vld [vmem:[%s27197_s3 + $0x2200] sm:$0xff] }
 0x46f   :  { %8856 = vmatpush1.bf16.msra.mxu1 %v18000_v56  ;;  %8816 = vmatprep.subr.bf16.mxu0 %v18015_v21  ;;  %v18078_v56 = vcombine.low %v17846_v4, %v17854_v55  ;;  %v18080_v21 = vcombine.low %v17847_v54, %v17855_v19  ;;  %v18097_v51 = vcombine.high %v17863_v33, %v17871_v22  ;;  %v17918_v28 = vld [vmem:[%s27197_s3 + $0x2240] sm:$0xff]  ;;  %v17919_v4 = vld [vmem:[%s27197_s3 + $0x2248] sm:$0xff] }
 0x470   :  { %8857 = vmatprep.subr.bf16.mxu1 %v18017_v6  ;;  %v18095_v6 = vcombine.high %v17862_v15, %v17870_v52 }
 0x472   :  { %8817 = vmatpush1.bf16.msra.mxu0 %v18014_v59  ;;  %v17887_v59 = vld [vmem:[%s27197_s3 + $0x2148] sm:$0xff] }
 0x473   :  { %8858 = vmatpush1.bf16.msra.mxu1 %v18016_v39  ;;  %8818 = vmatprep.subr.bf16.mxu0 %v18031_v41  ;;  %v18094_v39 = vcombine.low %v17862_v15, %v17870_v52  ;;  %v18096_v41 = vcombine.low %v17863_v33, %v17871_v22  ;;  %v18113_v45 = vcombine.high %v17879_v60, %v17887_v59  ;;  %v17934_v22 = vld [vmem:[%s27197_s3 + $0x22c0] sm:$0xff] }
 0x474   :  { %8859 = vmatprep.subr.bf16.mxu1 %v18033_v36  ;;  %v18111_v36 = vcombine.high %v17878_v38, %v17886_v53  ;;  %v18143_v52 = vcombine.high %v17910_v43, %v17918_v28 }
 0x476   :  { %8819 = vmatpush1.bf16.msra.mxu0 %v18030_v1  ;;  %v17903_v1 = vld [vmem:[%s27197_s3 + $0x21c8] sm:$0xff] }
 0x477   :  { %8860 = vmatpush1.bf16.msra.mxu1 %v18032_v50  ;;  %8820 = vmatprep.subr.bf16.mxu0 %v18047_v37  ;;  %v18110_v50 = vcombine.low %v17878_v38, %v17886_v53  ;;  %v18112_v37 = vcombine.low %v17879_v60, %v17887_v59  ;;  %v18129_v10 = vcombine.high %v17895_v42, %v17903_v1  ;;  %v17942_v53 = vld [vmem:[%s27197_s3 + $0x2300] sm:$0xff]  ;;  %v17943_v59 = vld [vmem:[%s27197_s3 + $0x2308] sm:$0xff] }
 0x478   :  { %8861 = vmatprep.subr.bf16.mxu1 %v18049_v57  ;;  %v18127_v57 = vcombine.high %v17894_v14, %v17902_v63  ;;  %v18128_v15 = vcombine.low %v17895_v42, %v17903_v1  ;;  %v17950_v60 = vld [vmem:[%s27197_s3 + $0x2340] sm:$0xff] }
 0x479   :  { %v17966_v42 = vld [vmem:[%s27197_s3 + $0x23c0] sm:$0xff] }
 0x47a   :  { %8821 = vmatpush1.bf16.msra.mxu0 %v18046_v30  ;;  %v17974_v1 = vld [vmem:[%s27197_s3 + $0x2400] sm:$0x11] }
 0x47b   :  { %8862 = vmatpush1.bf16.msra.mxu1 %v18048_v9  ;;  %8822 = vmatprep.subr.bf16.mxu0 %v18063_v18 }
 0x47c   :  { %8863 = vmatprep.subr.bf16.mxu1 %v18065_v58  ;;  %v17911_v58 = vld [vmem:[%s27197_s3 + $0x2208] sm:$0xff] }
 0x47e   :  { %8823 = vmatpush1.bf16.msra.mxu0 %v18062_v11 }
 0x47f   :  { %8864 = vmatpush1.bf16.msra.mxu1 %v18064_v17  ;;  %8824 = vmatprep.subr.bf16.mxu0 %v18079_v61 }
 0x480   :  { %8865 = vmatprep.subr.bf16.mxu1 %v18081_v29 }
 0x482   :  { %8825 = vmatpush1.bf16.msra.mxu0 %v18078_v56  ;;  %v17935_v56 = vld [vmem:[%s27197_s3 + $0x22c8] sm:$0xff] }
 0x483   :  { %8866 = vmatpush1.bf16.msra.mxu1 %v18080_v21  ;;  %8826 = vmatprep.subr.bf16.mxu0 %v18095_v6  ;;  %v18142_v21 = vcombine.low %v17910_v43, %v17918_v28  ;;  %v18144_v6 = vcombine.low %v17911_v58, %v17919_v4  ;;  %v18207_v28 = vcombine.high %v17974_v1, %v17974_v1 }
 0x484   :  { %8867 = vmatprep.subr.bf16.mxu1 %v18097_v51 }
 0x486   :  { %8827 = vmatpush1.bf16.msra.mxu0 %v18094_v39  ;;  %v17951_v39 = vld [vmem:[%s27197_s3 + $0x2348] sm:$0xff] }
 0x487   :  { %8868 = vmatpush1.bf16.msra.mxu1 %v18096_v41  ;;  %8828 = vmatprep.subr.bf16.mxu0 %v18111_v36 }
 0x488   :  { %v7046_v7 = vpop.f32.mrb[52].mxu0  ;;  %8869 = vmatprep.subr.bf16.mxu1 %v18113_v45  ;;  %v18175_v45 = vcombine.high %v17942_v53, %v17950_v60 }
 0x489   :  { %v23687_v30 = vadd.f32 %v7046_v7, %v22895_v0  ;;  %v7087_v9 = vpop.f32.mrb[52].mxu1  ;;  %v7048_v18 = vpop.f32.mrb[53].mxu0  ;;  %v18126_v0 = vcombine.low %v17894_v14, %v17902_v63  ;;  %v18177_v14 = vcombine.high %v17943_v59, %v17951_v39  ;;  %v17958_v63 = vld [vmem:[%s27197_s3 + $0x2380] sm:$0xff]  ;;  %v18174_v7 = vcombine.low %v17942_v53, %v17950_v60 }
 0x48a   :  { %v23696_v55 = vadd.f32 %v7087_v9, %v22904_v12  ;;  %v23699_v54 = vadd.f32 %v7048_v18, %v22907_v16  ;;  %v7089_v19 = vpop.f32.mrb[53].mxu1  ;;  %v7050_v11 = vpop.f32.mrb[54].mxu0  ;;  %8829 = vmatpush1.bf16.msra.mxu0 %v18110_v50  ;;  %v18145_v12 = vcombine.high %v17911_v58, %v17919_v4  ;;  %v17926_v16 = vld [vmem:[%s27197_s3 + $0x2280] sm:$0xff]  ;;  %v17959_v50 = vld [vmem:[%s27197_s3 + $0x2388] sm:$0xff]  ;;  %v18191_v43 = vcombine.high %v17958_v63, %v17966_v42 }
 0x48b   :  { %v23702_v17 = vadd.f32 %v7089_v19, %v22910_v24  ;;  %v7091_v61 = vpop.f32.mrb[54].mxu1  ;;  %8870 = vmatpush1.bf16.msra.mxu1 %v18112_v37  ;;  %v7051_v29 = vpop.f32.mrb[55].mxu0  ;;  %8830 = vmatprep.subr.bf16.mxu0 %v18127_v57  ;;  %v17927_v24 = vld [vmem:[%s27197_s3 + $0x2288] sm:$0xff]  ;;  %v18159_v51 = vcombine.high %v17926_v16, %v17934_v22  ;;  %v18158_v41 = vcombine.low %v17926_v16, %v17934_v22 }
 0x48c   :  { %v7092_v33 = vpop.f32.mrb[55].mxu1  ;;  %8871 = vmatprep.subr.bf16.mxu1 %v18129_v10  ;;  %v18161_v38 = vcombine.high %v17927_v24, %v17935_v56  ;;  %v18160_v36 = vcombine.low %v17927_v24, %v17935_v56  ;;  %v17967_v37 = vld [vmem:[%s27197_s3 + $0x23c8] sm:$0xff]  ;;  %v18176_v10 = vcombine.low %v17943_v59, %v17951_v39  ;;  %v18190_v58 = vcombine.low %v17958_v63, %v17966_v42  ;;  %v17752_v29 = vld [vmem:[%s27197_s3 + $0x1d10] sm:$0xff] }
 0x48d   :  { %v17975_v57 = vld [vmem:[%s27197_s3 + $0x2408] sm:$0x11]  ;;  %v18193_v9 = vcombine.high %v17959_v50, %v17967_v37  ;;  %v18206_v4 = vcombine.low %v17974_v1, %v17974_v1  ;;  %v18192_v19 = vcombine.low %v17959_v50, %v17967_v37  ;;  %v8768_v11 = vand.u32 %v18207_v28, %v20487_v62  ;;  %v17761_v33 = vld [vmem:[%s27197_s3 + $0x1d58] sm:$0xff]  ;;  %v17768_v56 = vld [vmem:[%s27197_s3 + $0x1d90] sm:$0xff] }
 0x48e   :  { %8831 = vmatpush1.bf16.msra.mxu0 %v18126_v0  ;;  %v18209_v18 = vcombine.high %v17975_v57, %v17975_v57  ;;  %v18208_v0 = vcombine.low %v17975_v57, %v17975_v57  ;;  %v23776_v53 = vpack.c.bf16 %v20667_v27, %v20667_v27  ;;  %v17784_v39 = vld [vmem:[%s27197_s3 + $0x1e10] sm:$0xff]  ;;  %v17785_v27 = vld [vmem:[%s27197_s3 + $0x1e18] sm:$0xff] }
 0x48f   :  { %8872 = vmatpush1.bf16.msra.mxu1 %v18128_v15  ;;  %8832 = vmatprep.subr.bf16.mxu0 %v18143_v52  ;;  %v17760_v15 = vld [vmem:[%s27197_s3 + $0x1d50] sm:$0xff]  ;;  %v17753_v52 = vld [vmem:[%s27197_s3 + $0x1d18] sm:$0xff] }
 0x490   :  { %8873 = vmatprep.subr.bf16.mxu1 %v18145_v12  ;;  %v8774_v61 = vand.u32 %v18209_v18, %v20487_v62  ;;  %v8765_v12 = vand.u32 %v18206_v4, %v20487_v62  ;;  %v8771_v16 = vand.u32 %v18208_v0, %v20487_v62  ;;  %v17987_v22 = vcombine.high %v17752_v29, %v17760_v15  ;;  %v17800_v50 = vld [vmem:[%s27197_s3 + $0x1e90] sm:$0xff]  ;;  %v17801_v57 = vld [vmem:[%s27197_s3 + $0x1e98] sm:$0xff] }
 0x491   :  { %v17989_v24 = vcombine.high %v17753_v52, %v17761_v33  ;;  %v17988_v60 = vcombine.low %v17753_v52, %v17761_v33  ;;  %v17808_v37 = vld [vmem:[%s27197_s3 + $0x1ed0] sm:$0xff]  ;;  %v17817_v4 = vld [vmem:[%s27197_s3 + $0x1f18] sm:$0xff] }
 0x492   :  { %8833 = vmatpush1.bf16.msra.mxu0 %v18142_v21  ;;  %v17776_v21 = vld [vmem:[%s27197_s3 + $0x1dd0] sm:$0xff]  ;;  %v18035_v28 = vcombine.high %v17800_v50, %v17808_v37  ;;  %v17833_v33 = vld [vmem:[%s27197_s3 + $0x1f98] sm:$0xff] }
 0x493   :  { %8874 = vmatpush1.bf16.msra.mxu1 %v18144_v6  ;;  %8834 = vmatprep.subr.bf16.mxu0 %v18159_v51  ;;  %v17986_v6 = vcombine.low %v17752_v29, %v17760_v15  ;;  %v17769_v51 = vld [vmem:[%s27197_s3 + $0x1d98] sm:$0xff]  ;;  %v18003_v59 = vcombine.high %v17768_v56, %v17776_v21  ;;  %v17816_v18 = vld [vmem:[%s27197_s3 + $0x1f10] sm:$0xff] }
 0x494   :  { %8875 = vmatprep.subr.bf16.mxu1 %v18161_v38  ;;  %v17777_v38 = vld [vmem:[%s27197_s3 + $0x1dd8] sm:$0xff]  ;;  %v17832_v15 = vld [vmem:[%s27197_s3 + $0x1f90] sm:$0xff] }
 0x495   :  { %v18004_v63 = vcombine.low %v17769_v51, %v17777_v38  ;;  %v17840_v52 = vld [vmem:[%s27197_s3 + $0x1fd0] sm:$0xff] }
 0x496   :  { %8835 = vmatpush1.bf16.msra.mxu0 %v18158_v41  ;;  %v17792_v41 = vld [vmem:[%s27197_s3 + $0x1e50] sm:$0xff] }
 0x497   :  { %8876 = vmatpush1.bf16.msra.mxu1 %v18160_v36  ;;  %8836 = vmatprep.subr.bf16.mxu0 %v18175_v45  ;;  %v18005_v36 = vcombine.high %v17769_v51, %v17777_v38  ;;  %v17793_v45 = vld [vmem:[%s27197_s3 + $0x1e58] sm:$0xff]  ;;  %v18019_v42 = vcombine.high %v17784_v39, %v17792_v41 }
 0x498   :  { %8877 = vmatprep.subr.bf16.mxu1 %v18177_v14  ;;  %v18002_v14 = vcombine.low %v17768_v56, %v17776_v21  ;;  %v18021_v1 = vcombine.high %v17785_v27, %v17793_v45  ;;  %v17848_v21 = vld [vmem:[%s27197_s3 + $0x2010] sm:$0xff]  ;;  %v17849_v51 = vld [vmem:[%s27197_s3 + $0x2018] sm:$0xff] }
 0x499   :  { %v17857_v38 = vld [vmem:[%s27197_s3 + $0x2058] sm:$0xff] }
 0x49a   :  { %8837 = vmatpush1.bf16.msra.mxu0 %v18174_v7  ;;  %v17809_v7 = vld [vmem:[%s27197_s3 + $0x1ed8] sm:$0xff] }
 0x49b   :  { %8878 = vmatpush1.bf16.msra.mxu1 %v18176_v10  ;;  %8838 = vmatprep.subr.bf16.mxu0 %v18191_v43  ;;  %v18018_v10 = vcombine.low %v17784_v39, %v17792_v41  ;;  %v18020_v43 = vcombine.low %v17785_v27, %v17793_v45  ;;  %v18036_v0 = vcombine.low %v17801_v57, %v17809_v7  ;;  %v17872_v27 = vld [vmem:[%s27197_s3 + $0x20d0] sm:$0xff]  ;;  %v17865_v45 = vld [vmem:[%s27197_s3 + $0x2098] sm:$0xff] }
 0x49c   :  { %8879 = vmatprep.subr.bf16.mxu1 %v18193_v9  ;;  %v18037_v9 = vcombine.high %v17801_v57, %v17809_v7  ;;  %v18085_v41 = vcombine.high %v17849_v51, %v17857_v38  ;;  %v17888_v57 = vld [vmem:[%s27197_s3 + $0x2150] sm:$0xff]  ;;  %v17881_v7 = vld [vmem:[%s27197_s3 + $0x2118] sm:$0xff] }
 0x49e   :  { %8839 = vmatpush1.bf16.msra.mxu0 %v18190_v58  ;;  %v17824_v58 = vld [vmem:[%s27197_s3 + $0x1f50] sm:$0xff] }
 0x49f   :  { %8880 = vmatpush1.bf16.msra.mxu1 %v18192_v19  ;;  %8840 = vmatprep.subr.bf16.mxu0 %v8768_v11  ;;  %v17825_v19 = vld [vmem:[%s27197_s3 + $0x1f58] sm:$0xff]  ;;  %v18034_v11 = vcombine.low %v17800_v50, %v17808_v37  ;;  %v17880_v37 = vld [vmem:[%s27197_s3 + $0x2110] sm:$0xff] }
 0x4a0   :  { %8881 = vmatprep.subr.bf16.mxu1 %v8774_v61  ;;  %v18051_v61 = vcombine.high %v17816_v18, %v17824_v58  ;;  %v18053_v29 = vcombine.high %v17817_v4, %v17825_v19 }
 0x4a2   :  { %8841 = vmatpush1.bf16.msra.mxu0 %v8765_v12  ;;  %v17841_v12 = vld [vmem:[%s27197_s3 + $0x1fd8] sm:$0xff] }
 0x4a3   :  { %8882 = vmatpush1.bf16.msra.mxu1 %v8771_v16  ;;  %8894 = vmatprep.subr.bf16.mxu0 %v17987_v22  ;;  %v18050_v16 = vcombine.low %v17816_v18, %v17824_v58  ;;  %v18052_v22 = vcombine.low %v17817_v4, %v17825_v19  ;;  %v18069_v56 = vcombine.high %v17833_v33, %v17841_v12  ;;  %v17896_v58 = vld [vmem:[%s27197_s3 + $0x2190] sm:$0xff]  ;;  %v17897_v19 = vld [vmem:[%s27197_s3 + $0x2198] sm:$0xff] }
 0x4a4   :  { %8935 = vmatprep.subr.bf16.mxu1 %v17989_v24  ;;  %v18067_v24 = vcombine.high %v17832_v15, %v17840_v52  ;;  %v17904_v4 = vld [vmem:[%s27197_s3 + $0x21d0] sm:$0xff] }
 0x4a5   :  { %8845 = vmatmul.mubr.bf16.vlgmr.msra.gmra.mrb[68].mxu0 %v23776_v53 }
 0x4a6   :  { %8886 = vmatmul.mubr.bf16.vlgmr.msra.gmra.mrb[68].mxu1 %v23776_v53  ;;  %8895 = vmatpush1.bf16.msra.mxu0 %v17986_v6  ;;  %v17856_v6 = vld [vmem:[%s27197_s3 + $0x2050] sm:$0xff] }
 0x4a7   :  { %18224 = vmatprep.mubr.msk.bf16.mxu0 %vm1835_vm2, %v23583_v31  ;;  %8936 = vmatpush1.bf16.msra.mxu1 %v17988_v60  ;;  %v18066_v60 = vcombine.low %v17832_v15, %v17840_v52  ;;  %v18083_v39 = vcombine.high %v17848_v21, %v17856_v6 }
 0x4a8   :  { %18225 = vmatprep.mubr.msk.bf16.mxu1 %vm1835_vm2, %v23583_v31  ;;  %8896 = vmatprep.subr.bf16.mxu0 %v18003_v59  ;;  %v18068_v59 = vcombine.low %v17833_v33, %v17841_v12  ;;  %v17912_v33 = vld [vmem:[%s27197_s3 + $0x2210] sm:$0xff] }
 0x4a9   :  { %8937 = vmatprep.subr.bf16.mxu1 %v18005_v36  ;;  %v17864_v36 = vld [vmem:[%s27197_s3 + $0x2090] sm:$0xff] }
 0x4aa   :  { %8897 = vmatpush1.bf16.msra.mxu0 %v18002_v14  ;;  %v17873_v14 = vld [vmem:[%s27197_s3 + $0x20d8] sm:$0xff]  ;;  %v17920_v12 = vld [vmem:[%s27197_s3 + $0x2250] sm:$0xff] }
 0x4ab   :  { %8938 = vmatpush1.bf16.msra.mxu1 %v18004_v63  ;;  %8898 = vmatprep.subr.bf16.mxu0 %v18019_v42  ;;  %v18082_v63 = vcombine.low %v17848_v21, %v17856_v6  ;;  %v18084_v42 = vcombine.low %v17849_v51, %v17857_v38  ;;  %v18101_v50 = vcombine.high %v17865_v45, %v17873_v14  ;;  %v17921_v21 = vld [vmem:[%s27197_s3 + $0x2258] sm:$0xff] }
 0x4ac   :  { %8939 = vmatprep.subr.bf16.mxu1 %v18021_v1  ;;  %v18099_v1 = vcombine.high %v17864_v36, %v17872_v27 }
 0x4ae   :  { %8899 = vmatpush1.bf16.msra.mxu0 %v18018_v10  ;;  %v17889_v10 = vld [vmem:[%s27197_s3 + $0x2158] sm:$0xff] }
 0x4af   :  { %8940 = vmatpush1.bf16.msra.mxu1 %v18020_v43  ;;  %8900 = vmatprep.subr.bf16.mxu0 %v18035_v28  ;;  %v18098_v43 = vcombine.low %v17864_v36, %v17872_v27  ;;  %v18100_v28 = vcombine.low %v17865_v45, %v17873_v14  ;;  %v18117_v18 = vcombine.high %v17881_v7, %v17889_v10  ;;  %v17936_v14 = vld [vmem:[%s27197_s3 + $0x22d0] sm:$0xff] }
 0x4b0   :  { %8941 = vmatprep.subr.bf16.mxu1 %v18037_v9  ;;  %v18115_v9 = vcombine.high %v17880_v37, %v17888_v57  ;;  %v18147_v27 = vcombine.high %v17912_v33, %v17920_v12 }
 0x4b2   :  { %8901 = vmatpush1.bf16.msra.mxu0 %v18034_v11  ;;  %v17905_v11 = vld [vmem:[%s27197_s3 + $0x21d8] sm:$0xff] }
 0x4b3   :  { %8942 = vmatpush1.bf16.msra.mxu1 %v18036_v0  ;;  %8902 = vmatprep.subr.bf16.mxu0 %v18051_v61  ;;  %v18114_v0 = vcombine.low %v17880_v37, %v17888_v57  ;;  %v18116_v61 = vcombine.low %v17881_v7, %v17889_v10  ;;  %v18133_v52 = vcombine.high %v17897_v19, %v17905_v11  ;;  %v17944_v57 = vld [vmem:[%s27197_s3 + $0x2310] sm:$0xff]  ;;  %v17945_v10 = vld [vmem:[%s27197_s3 + $0x2318] sm:$0xff] }
 0x4b4   :  { %8943 = vmatprep.subr.bf16.mxu1 %v18053_v29  ;;  %v18131_v29 = vcombine.high %v17896_v58, %v17904_v4  ;;  %v18132_v36 = vcombine.low %v17897_v19, %v17905_v11  ;;  %v17952_v7 = vld [vmem:[%s27197_s3 + $0x2350] sm:$0xff] }
 0x4b5   :  { %v17968_v19 = vld [vmem:[%s27197_s3 + $0x23d0] sm:$0xff] }
 0x4b6   :  { %8903 = vmatpush1.bf16.msra.mxu0 %v18050_v16  ;;  %v17976_v11 = vld [vmem:[%s27197_s3 + $0x2410] sm:$0x11] }
 0x4b7   :  { %8944 = vmatpush1.bf16.msra.mxu1 %v18052_v22  ;;  %8904 = vmatprep.subr.bf16.mxu0 %v18067_v24 }
 0x4b8   :  { %8945 = vmatprep.subr.bf16.mxu1 %v18069_v56  ;;  %v17913_v56 = vld [vmem:[%s27197_s3 + $0x2218] sm:$0xff] }
 0x4ba   :  { %8905 = vmatpush1.bf16.msra.mxu0 %v18066_v60 }
 0x4bb   :  { %8946 = vmatpush1.bf16.msra.mxu1 %v18068_v59  ;;  %8906 = vmatprep.subr.bf16.mxu0 %v18083_v39 }
 0x4bc   :  { %8947 = vmatprep.subr.bf16.mxu1 %v18085_v41 }
 0x4be   :  { %8907 = vmatpush1.bf16.msra.mxu0 %v18082_v63  ;;  %v17937_v63 = vld [vmem:[%s27197_s3 + $0x22d8] sm:$0xff] }
 0x4bf   :  { %8948 = vmatpush1.bf16.msra.mxu1 %v18084_v42  ;;  %8908 = vmatprep.subr.bf16.mxu0 %v18099_v1  ;;  %v18146_v42 = vcombine.low %v17912_v33, %v17920_v12  ;;  %v18148_v1 = vcombine.low %v17913_v56, %v17921_v21  ;;  %v18211_v12 = vcombine.high %v17976_v11, %v17976_v11 }
 0x4c0   :  { %8949 = vmatprep.subr.bf16.mxu1 %v18101_v50 }
 0x4c2   :  { %8909 = vmatpush1.bf16.msra.mxu0 %v18098_v43  ;;  %v17953_v43 = vld [vmem:[%s27197_s3 + $0x2358] sm:$0xff] }
 0x4c3   :  { %8950 = vmatpush1.bf16.msra.mxu1 %v18100_v28  ;;  %8910 = vmatprep.subr.bf16.mxu0 %v18115_v9 }
 0x4c4   :  { %v7128_v15 = vpop.f32.mrb[56].mxu0  ;;  %8951 = vmatprep.subr.bf16.mxu1 %v18117_v18  ;;  %v18179_v18 = vcombine.high %v17944_v57, %v17952_v7 }
 0x4c5   :  { %v23887_v16 = vadd.f32 %v7128_v15, %v23095_v8  ;;  %v7169_v22 = vpop.f32.mrb[56].mxu1  ;;  %v7130_v24 = vpop.f32.mrb[57].mxu0  ;;  %v18130_v8 = vcombine.low %v17896_v58, %v17904_v4  ;;  %v18181_v58 = vcombine.high %v17945_v10, %v17953_v43  ;;  %v17960_v4 = vld [vmem:[%s27197_s3 + $0x2390] sm:$0xff]  ;;  %v18178_v15 = vcombine.low %v17944_v57, %v17952_v7 }
 0x4c6   :  { %v23896_v6 = vadd.f32 %v7169_v22, %v23104_v46  ;;  %v23899_v51 = vadd.f32 %v7130_v24, %v23107_v47  ;;  %v7171_v38 = vpop.f32.mrb[57].mxu1  ;;  %v7132_v60 = vpop.f32.mrb[58].mxu0  ;;  %8911 = vmatpush1.bf16.msra.mxu0 %v18114_v0  ;;  %v18149_v46 = vcombine.high %v17913_v56, %v17921_v21  ;;  %v17928_v47 = vld [vmem:[%s27197_s3 + $0x2290] sm:$0xff]  ;;  %v17961_v0 = vld [vmem:[%s27197_s3 + $0x2398] sm:$0xff]  ;;  %v18195_v33 = vcombine.high %v17960_v4, %v17968_v19 }
 0x4c7   :  { %v23902_v59 = vadd.f32 %v7171_v38, %v23110_v20  ;;  %v7173_v39 = vpop.f32.mrb[58].mxu1  ;;  %8952 = vmatpush1.bf16.msra.mxu1 %v18116_v61  ;;  %v7133_v41 = vpop.f32.mrb[59].mxu0  ;;  %8912 = vmatprep.subr.bf16.mxu0 %v18131_v29  ;;  %v17929_v20 = vld [vmem:[%s27197_s3 + $0x2298] sm:$0xff]  ;;  %v18163_v50 = vcombine.high %v17928_v47, %v17936_v14  ;;  %v18162_v28 = vcombine.low %v17928_v47, %v17936_v14 }
 0x4c8   :  { %v7174_v45 = vpop.f32.mrb[59].mxu1  ;;  %8953 = vmatprep.subr.bf16.mxu1 %v18133_v52  ;;  %v18165_v37 = vcombine.high %v17929_v20, %v17937_v63  ;;  %v18164_v9 = vcombine.low %v17929_v20, %v17937_v63  ;;  %v17969_v61 = vld [vmem:[%s27197_s3 + $0x23d8] sm:$0xff]  ;;  %v18180_v52 = vcombine.low %v17945_v10, %v17953_v43  ;;  %v18194_v56 = vcombine.low %v17960_v4, %v17968_v19  ;;  %v17754_v41 = vld [vmem:[%s27197_s3 + $0x1d20] sm:$0xff] }
 0x4c9   :  { %v17977_v29 = vld [vmem:[%s27197_s3 + $0x2418] sm:$0x11]  ;;  %v18197_v22 = vcombine.high %v17961_v0, %v17969_v61  ;;  %v18210_v21 = vcombine.low %v17976_v11, %v17976_v11  ;;  %v18196_v38 = vcombine.low %v17961_v0, %v17969_v61  ;;  %v8780_v60 = vand.u32 %v18211_v12, %v20487_v62  ;;  %v17763_v45 = vld [vmem:[%s27197_s3 + $0x1d68] sm:$0xff]  ;;  %v17770_v63 = vld [vmem:[%s27197_s3 + $0x1da0] sm:$0xff] }
 0x4ca   :  { %8913 = vmatpush1.bf16.msra.mxu0 %v18130_v8  ;;  %v18213_v24 = vcombine.high %v17977_v29, %v17977_v29  ;;  %v18212_v8 = vcombine.low %v17977_v29, %v17977_v29  ;;  %v17786_v10 = vld [vmem:[%s27197_s3 + $0x1e20] sm:$0xff]  ;;  %v17803_v29 = vld [vmem:[%s27197_s3 + $0x1ea8] sm:$0xff] }
 0x4cb   :  { %8954 = vmatpush1.bf16.msra.mxu1 %v18132_v36  ;;  %8914 = vmatprep.subr.bf16.mxu0 %v18147_v27  ;;  %v17762_v36 = vld [vmem:[%s27197_s3 + $0x1d60] sm:$0xff]  ;;  %v17755_v27 = vld [vmem:[%s27197_s3 + $0x1d28] sm:$0xff] }
 0x4cc   :  { %8955 = vmatprep.subr.bf16.mxu1 %v18149_v46  ;;  %v8786_v39 = vand.u32 %v18213_v24, %v20487_v62  ;;  %v8777_v46 = vand.u32 %v18210_v21, %v20487_v62  ;;  %v8783_v47 = vand.u32 %v18212_v8, %v20487_v62  ;;  %v17991_v14 = vcombine.high %v17754_v41, %v17762_v36  ;;  %v17794_v43 = vld [vmem:[%s27197_s3 + $0x1e60] sm:$0xff]  ;;  %v17819_v21 = vld [vmem:[%s27197_s3 + $0x1f28] sm:$0xff] }
 0x4cd   :  { %v17993_v20 = vcombine.high %v17755_v27, %v17763_v45  ;;  %v17992_v57 = vcombine.low %v17755_v27, %v17763_v45  ;;  %v18023_v19 = vcombine.high %v17786_v10, %v17794_v43  ;;  %v17802_v0 = vld [vmem:[%s27197_s3 + $0x1ea0] sm:$0xff]  ;;  %v17835_v45 = vld [vmem:[%s27197_s3 + $0x1fa8] sm:$0xff] }
 0x4ce   :  { %8915 = vmatpush1.bf16.msra.mxu0 %v18146_v42  ;;  %v17778_v42 = vld [vmem:[%s27197_s3 + $0x1de0] sm:$0xff] }
 0x4cf   :  { %8956 = vmatpush1.bf16.msra.mxu1 %v18148_v1  ;;  %8916 = vmatprep.subr.bf16.mxu0 %v18163_v50  ;;  %v17990_v1 = vcombine.low %v17754_v41, %v17762_v36  ;;  %v17771_v50 = vld [vmem:[%s27197_s3 + $0x1da8] sm:$0xff]  ;;  %v18007_v7 = vcombine.high %v17770_v63, %v17778_v42  ;;  %v17810_v61 = vld [vmem:[%s27197_s3 + $0x1ee0] sm:$0xff] }
 0x4d0   :  { %8957 = vmatprep.subr.bf16.mxu1 %v18165_v37  ;;  %v17779_v37 = vld [vmem:[%s27197_s3 + $0x1de8] sm:$0xff]  ;;  %v18039_v12 = vcombine.high %v17802_v0, %v17810_v61  ;;  %v17818_v24 = vld [vmem:[%s27197_s3 + $0x1f20] sm:$0xff] }
 0x4d1   :  { %v18008_v4 = vcombine.low %v17771_v50, %v17779_v37  ;;  %v17834_v36 = vld [vmem:[%s27197_s3 + $0x1fa0] sm:$0xff] }
 0x4d2   :  { %8917 = vmatpush1.bf16.msra.mxu0 %v18162_v28  ;;  %v18009_v28 = vcombine.high %v17771_v50, %v17779_v37  ;;  %v17842_v27 = vld [vmem:[%s27197_s3 + $0x1fe0] sm:$0xff]  ;;  %v17851_v50 = vld [vmem:[%s27197_s3 + $0x2028] sm:$0xff] }
 0x4d3   :  { %8958 = vmatpush1.bf16.msra.mxu1 %v18164_v9  ;;  %8918 = vmatprep.subr.bf16.mxu0 %v18179_v18  ;;  %v17787_v9 = vld [vmem:[%s27197_s3 + $0x1e28] sm:$0xff] }
 0x4d4   :  { %8959 = vmatprep.subr.bf16.mxu1 %v18181_v58  ;;  %v17795_v18 = vld [vmem:[%s27197_s3 + $0x1e68] sm:$0xff]  ;;  %v18006_v58 = vcombine.low %v17770_v63, %v17778_v42  ;;  %v17850_v42 = vld [vmem:[%s27197_s3 + $0x2020] sm:$0xff] }
 0x4d5   :  { %v18025_v11 = vcombine.high %v17787_v9, %v17795_v18  ;;  %v17859_v37 = vld [vmem:[%s27197_s3 + $0x2068] sm:$0xff] }
 0x4d6   :  { %8919 = vmatpush1.bf16.msra.mxu0 %v18178_v15  ;;  %v17811_v15 = vld [vmem:[%s27197_s3 + $0x1ee8] sm:$0xff] }
 0x4d7   :  { %8960 = vmatpush1.bf16.msra.mxu1 %v18180_v52  ;;  %8920 = vmatprep.subr.bf16.mxu0 %v18195_v33  ;;  %v18022_v52 = vcombine.low %v17786_v10, %v17794_v43  ;;  %v18024_v33 = vcombine.low %v17787_v9, %v17795_v18  ;;  %v18040_v8 = vcombine.low %v17803_v29, %v17811_v15  ;;  %v17874_v9 = vld [vmem:[%s27197_s3 + $0x20e0] sm:$0xff]  ;;  %v17867_v18 = vld [vmem:[%s27197_s3 + $0x20a8] sm:$0xff] }
 0x4d8   :  { %8961 = vmatprep.subr.bf16.mxu1 %v18197_v22  ;;  %v18041_v22 = vcombine.high %v17803_v29, %v17811_v15  ;;  %v18089_v43 = vcombine.high %v17851_v50, %v17859_v37  ;;  %v17890_v29 = vld [vmem:[%s27197_s3 + $0x2160] sm:$0xff]  ;;  %v17883_v15 = vld [vmem:[%s27197_s3 + $0x2128] sm:$0xff] }
 0x4da   :  { %8921 = vmatpush1.bf16.msra.mxu0 %v18194_v56  ;;  %v17826_v56 = vld [vmem:[%s27197_s3 + $0x1f60] sm:$0xff] }
 0x4db   :  { %8962 = vmatpush1.bf16.msra.mxu1 %v18196_v38  ;;  %8922 = vmatprep.subr.bf16.mxu0 %v8780_v60  ;;  %v17827_v38 = vld [vmem:[%s27197_s3 + $0x1f68] sm:$0xff]  ;;  %v18038_v60 = vcombine.low %v17802_v0, %v17810_v61  ;;  %v17882_v61 = vld [vmem:[%s27197_s3 + $0x2120] sm:$0xff] }
 0x4dc   :  { %8963 = vmatprep.subr.bf16.mxu1 %v8786_v39  ;;  %v18055_v39 = vcombine.high %v17818_v24, %v17826_v56  ;;  %v18057_v41 = vcombine.high %v17819_v21, %v17827_v38 }
 0x4de   :  { %8923 = vmatpush1.bf16.msra.mxu0 %v8777_v46  ;;  %v17843_v46 = vld [vmem:[%s27197_s3 + $0x1fe8] sm:$0xff] }
 0x4df   :  { %8964 = vmatpush1.bf16.msra.mxu1 %v8783_v47  ;;  %8976 = vmatprep.subr.bf16.mxu0 %v17991_v14  ;;  %v18054_v47 = vcombine.low %v17818_v24, %v17826_v56  ;;  %v18056_v14 = vcombine.low %v17819_v21, %v17827_v38  ;;  %v18073_v63 = vcombine.high %v17835_v45, %v17843_v46  ;;  %v17898_v56 = vld [vmem:[%s27197_s3 + $0x21a0] sm:$0xff]  ;;  %v17899_v38 = vld [vmem:[%s27197_s3 + $0x21a8] sm:$0xff] }
 0x4e0   :  { %9017 = vmatprep.subr.bf16.mxu1 %v17993_v20  ;;  %v18071_v20 = vcombine.high %v17834_v36, %v17842_v27  ;;  %v17906_v21 = vld [vmem:[%s27197_s3 + $0x21e0] sm:$0xff] }
 0x4e1   :  { %8927 = vmatmul.mubr.bf16.vlgmr.msra.gmra.mrb[72].mxu0 %v23776_v53 }
 0x4e2   :  { %8968 = vmatmul.mubr.bf16.vlgmr.msra.gmra.mrb[72].mxu1 %v23776_v53  ;;  %8977 = vmatpush1.bf16.msra.mxu0 %v17990_v1  ;;  %v17858_v1 = vld [vmem:[%s27197_s3 + $0x2060] sm:$0xff] }
 0x4e3   :  { %18226 = vmatprep.mubr.msk.bf16.mxu0 %vm1835_vm2, %v23583_v31  ;;  %9018 = vmatpush1.bf16.msra.mxu1 %v17992_v57  ;;  %v18070_v57 = vcombine.low %v17834_v36, %v17842_v27  ;;  %v18087_v10 = vcombine.high %v17850_v42, %v17858_v1 }
 0x4e4   :  { %18227 = vmatprep.mubr.msk.bf16.mxu1 %vm1835_vm2, %v23583_v31  ;;  %8978 = vmatprep.subr.bf16.mxu0 %v18007_v7  ;;  %v18072_v7 = vcombine.low %v17835_v45, %v17843_v46  ;;  %v17914_v45 = vld [vmem:[%s27197_s3 + $0x2220] sm:$0xff] }
 0x4e5   :  { %9019 = vmatprep.subr.bf16.mxu1 %v18009_v28  ;;  %v17866_v28 = vld [vmem:[%s27197_s3 + $0x20a0] sm:$0xff] }
 0x4e6   :  { %8979 = vmatpush1.bf16.msra.mxu0 %v18006_v58  ;;  %v17875_v58 = vld [vmem:[%s27197_s3 + $0x20e8] sm:$0xff]  ;;  %v17922_v46 = vld [vmem:[%s27197_s3 + $0x2260] sm:$0xff] }
 0x4e7   :  { %9020 = vmatpush1.bf16.msra.mxu1 %v18008_v4  ;;  %8980 = vmatprep.subr.bf16.mxu0 %v18023_v19  ;;  %v18086_v4 = vcombine.low %v17850_v42, %v17858_v1  ;;  %v18088_v19 = vcombine.low %v17851_v50, %v17859_v37  ;;  %v18105_v0 = vcombine.high %v17867_v18, %v17875_v58  ;;  %v17923_v42 = vld [vmem:[%s27197_s3 + $0x2268] sm:$0xff] }
 0x4e8   :  { %9021 = vmatprep.subr.bf16.mxu1 %v18025_v11  ;;  %v18103_v11 = vcombine.high %v17866_v28, %v17874_v9 }
 0x4ea   :  { %8981 = vmatpush1.bf16.msra.mxu0 %v18022_v52  ;;  %v17891_v52 = vld [vmem:[%s27197_s3 + $0x2168] sm:$0xff] }
 0x4eb   :  { %9022 = vmatpush1.bf16.msra.mxu1 %v18024_v33  ;;  %8982 = vmatprep.subr.bf16.mxu0 %v18039_v12  ;;  %v18102_v33 = vcombine.low %v17866_v28, %v17874_v9  ;;  %v18104_v12 = vcombine.low %v17867_v18, %v17875_v58  ;;  %v18121_v24 = vcombine.high %v17883_v15, %v17891_v52  ;;  %v17938_v58 = vld [vmem:[%s27197_s3 + $0x22e0] sm:$0xff] }
 0x4ec   :  { %9023 = vmatprep.subr.bf16.mxu1 %v18041_v22  ;;  %v18119_v22 = vcombine.high %v17882_v61, %v17890_v29  ;;  %v18151_v9 = vcombine.high %v17914_v45, %v17922_v46 }
 0x4ee   :  { %8983 = vmatpush1.bf16.msra.mxu0 %v18038_v60  ;;  %v17907_v60 = vld [vmem:[%s27197_s3 + $0x21e8] sm:$0xff] }
 0x4ef   :  { %9024 = vmatpush1.bf16.msra.mxu1 %v18040_v8  ;;  %8984 = vmatprep.subr.bf16.mxu0 %v18055_v39  ;;  %v18118_v8 = vcombine.low %v17882_v61, %v17890_v29  ;;  %v18120_v39 = vcombine.low %v17883_v15, %v17891_v52  ;;  %v18137_v27 = vcombine.high %v17899_v38, %v17907_v60  ;;  %v17946_v29 = vld [vmem:[%s27197_s3 + $0x2320] sm:$0xff]  ;;  %v17947_v52 = vld [vmem:[%s27197_s3 + $0x2328] sm:$0xff] }
 0x4f0   :  { %9025 = vmatprep.subr.bf16.mxu1 %v18057_v41  ;;  %v18135_v41 = vcombine.high %v17898_v56, %v17906_v21  ;;  %v18136_v28 = vcombine.low %v17899_v38, %v17907_v60  ;;  %v17954_v15 = vld [vmem:[%s27197_s3 + $0x2360] sm:$0xff] }
 0x4f1   :  { %v17970_v38 = vld [vmem:[%s27197_s3 + $0x23e0] sm:$0xff] }
 0x4f2   :  { %8985 = vmatpush1.bf16.msra.mxu0 %v18054_v47  ;;  %v17978_v60 = vld [vmem:[%s27197_s3 + $0x2420] sm:$0x11] }
 0x4f3   :  { %9026 = vmatpush1.bf16.msra.mxu1 %v18056_v14  ;;  %8986 = vmatprep.subr.bf16.mxu0 %v18071_v20 }
 0x4f4   :  { %9027 = vmatprep.subr.bf16.mxu1 %v18073_v63  ;;  %v17915_v63 = vld [vmem:[%s27197_s3 + $0x2228] sm:$0xff] }
 0x4f6   :  { %8987 = vmatpush1.bf16.msra.mxu0 %v18070_v57 }
 0x4f7   :  { %9028 = vmatpush1.bf16.msra.mxu1 %v18072_v7  ;;  %8988 = vmatprep.subr.bf16.mxu0 %v18087_v10 }
 0x4f8   :  { %9029 = vmatprep.subr.bf16.mxu1 %v18089_v43 }
 0x4fa   :  { %8989 = vmatpush1.bf16.msra.mxu0 %v18086_v4  ;;  %v17939_v4 = vld [vmem:[%s27197_s3 + $0x22e8] sm:$0xff] }
 0x4fb   :  { %9030 = vmatpush1.bf16.msra.mxu1 %v18088_v19  ;;  %8990 = vmatprep.subr.bf16.mxu0 %v18103_v11  ;;  %v18150_v19 = vcombine.low %v17914_v45, %v17922_v46  ;;  %v18152_v11 = vcombine.low %v17915_v63, %v17923_v42  ;;  %v18215_v46 = vcombine.high %v17978_v60, %v17978_v60 }
 0x4fc   :  { %9031 = vmatprep.subr.bf16.mxu1 %v18105_v0 }
 0x4fe   :  { %8991 = vmatpush1.bf16.msra.mxu0 %v18102_v33  ;;  %v17955_v33 = vld [vmem:[%s27197_s3 + $0x2368] sm:$0xff] }
 0x4ff   :  { %9032 = vmatpush1.bf16.msra.mxu1 %v18104_v12  ;;  %8992 = vmatprep.subr.bf16.mxu0 %v18119_v22 }
 0x500   :  { %v7210_v36 = vpop.f32.mrb[60].mxu0  ;;  %9033 = vmatprep.subr.bf16.mxu1 %v18121_v24  ;;  %v18183_v24 = vcombine.high %v17946_v29, %v17954_v15 }
 0x501   :  { %v24083_v47 = vadd.f32 %v7210_v36, %v23291_v5  ;;  %v7251_v14 = vpop.f32.mrb[60].mxu1  ;;  %v7212_v20 = vpop.f32.mrb[61].mxu0  ;;  %v18134_v5 = vcombine.low %v17898_v56, %v17906_v21  ;;  %v18185_v56 = vcombine.high %v17947_v52, %v17955_v33  ;;  %v17962_v21 = vld [vmem:[%s27197_s3 + $0x23a0] sm:$0xff]  ;;  %v18182_v36 = vcombine.low %v17946_v29, %v17954_v15 }
 0x502   :  { %v24092_v1 = vadd.f32 %v7251_v14, %v23300_v23  ;;  %v24095_v50 = vadd.f32 %v7212_v20, %v23303_v25  ;;  %v7253_v37 = vpop.f32.mrb[61].mxu1  ;;  %v7214_v57 = vpop.f32.mrb[62].mxu0  ;;  %8993 = vmatpush1.bf16.msra.mxu0 %v18118_v8  ;;  %v18153_v23 = vcombine.high %v17915_v63, %v17923_v42  ;;  %v17930_v25 = vld [vmem:[%s27197_s3 + $0x22a0] sm:$0xff]  ;;  %v17963_v8 = vld [vmem:[%s27197_s3 + $0x23a8] sm:$0xff]  ;;  %v18199_v45 = vcombine.high %v17962_v21, %v17970_v38 }
 0x503   :  { %v24098_v7 = vadd.f32 %v7253_v37, %v23306_v13  ;;  %v7255_v10 = vpop.f32.mrb[62].mxu1  ;;  %9034 = vmatpush1.bf16.msra.mxu1 %v18120_v39  ;;  %v7215_v43 = vpop.f32.mrb[63].mxu0  ;;  %8994 = vmatprep.subr.bf16.mxu0 %v18135_v41  ;;  %v17931_v13 = vld [vmem:[%s27197_s3 + $0x22a8] sm:$0xff]  ;;  %v18167_v0 = vcombine.high %v17930_v25, %v17938_v58  ;;  %v18166_v12 = vcombine.low %v17930_v25, %v17938_v58 }
 0x504   :  { %v7256_v18 = vpop.f32.mrb[63].mxu1  ;;  %9035 = vmatprep.subr.bf16.mxu1 %v18137_v27  ;;  %v18169_v61 = vcombine.high %v17931_v13, %v17939_v4  ;;  %v18168_v22 = vcombine.low %v17931_v13, %v17939_v4  ;;  %v17971_v39 = vld [vmem:[%s27197_s3 + $0x23e8] sm:$0xff]  ;;  %v18184_v27 = vcombine.low %v17947_v52, %v17955_v33  ;;  %v18198_v63 = vcombine.low %v17962_v21, %v17970_v38  ;;  %v17756_v43 = vld [vmem:[%s27197_s3 + $0x1d30] sm:$0xff] }
 0x505   :  { %v17979_v41 = vld [vmem:[%s27197_s3 + $0x2428] sm:$0x11]  ;;  %v18201_v14 = vcombine.high %v17963_v8, %v17971_v39  ;;  %v18214_v42 = vcombine.low %v17978_v60, %v17978_v60  ;;  %v18200_v37 = vcombine.low %v17963_v8, %v17971_v39  ;;  %v8792_v57 = vand.u32 %v18215_v46, %v20487_v62  ;;  %v17765_v18 = vld [vmem:[%s27197_s3 + $0x1d78] sm:$0xff]  ;;  %v17772_v4 = vld [vmem:[%s27197_s3 + $0x1db0] sm:$0xff] }
 0x506   :  { %8995 = vmatpush1.bf16.msra.mxu0 %v18134_v5  ;;  %v18217_v20 = vcombine.high %v17979_v41, %v17979_v41  ;;  %v18216_v5 = vcombine.low %v17979_v41, %v17979_v41  ;;  %v17788_v52 = vld [vmem:[%s27197_s3 + $0x1e30] sm:$0xff]  ;;  %v17805_v41 = vld [vmem:[%s27197_s3 + $0x1eb8] sm:$0xff] }
 0x507   :  { %9036 = vmatpush1.bf16.msra.mxu1 %v18136_v28  ;;  %8996 = vmatprep.subr.bf16.mxu0 %v18151_v9  ;;  %v17764_v28 = vld [vmem:[%s27197_s3 + $0x1d70] sm:$0xff]  ;;  %v17757_v9 = vld [vmem:[%s27197_s3 + $0x1d38] sm:$0xff] }
 0x508   :  { %9037 = vmatprep.subr.bf16.mxu1 %v18153_v23  ;;  %v8798_v10 = vand.u32 %v18217_v20, %v20487_v62  ;;  %v8789_v23 = vand.u32 %v18214_v42, %v20487_v62  ;;  %v8795_v25 = vand.u32 %v18216_v5, %v20487_v62  ;;  %v17995_v58 = vcombine.high %v17756_v43, %v17764_v28  ;;  %v17796_v33 = vld [vmem:[%s27197_s3 + $0x1e70] sm:$0xff]  ;;  %v17829_v42 = vld [vmem:[%s27197_s3 + $0x1f78] sm:$0xff] }
 0x509   :  { %v17997_v13 = vcombine.high %v17757_v9, %v17765_v18  ;;  %v17996_v29 = vcombine.low %v17757_v9, %v17765_v18  ;;  %v18027_v38 = vcombine.high %v17788_v52, %v17796_v33  ;;  %v17804_v8 = vld [vmem:[%s27197_s3 + $0x1eb0] sm:$0xff]  ;;  %v17837_v9 = vld [vmem:[%s27197_s3 + $0x1fb8] sm:$0xff] }
 0x50a   :  { %8997 = vmatpush1.bf16.msra.mxu0 %v18150_v19  ;;  %v17780_v19 = vld [vmem:[%s27197_s3 + $0x1df0] sm:$0xff]  ;;  %v17845_v18 = vld [vmem:[%s27197_s3 + $0x1ff8] sm:$0xff] }
 0x50b   :  { %9038 = vmatpush1.bf16.msra.mxu1 %v18152_v11  ;;  %8998 = vmatprep.subr.bf16.mxu0 %v18167_v0  ;;  %v17994_v11 = vcombine.low %v17756_v43, %v17764_v28  ;;  %v17773_v0 = vld [vmem:[%s27197_s3 + $0x1db8] sm:$0xff]  ;;  %v18011_v15 = vcombine.high %v17772_v4, %v17780_v19  ;;  %v17812_v39 = vld [vmem:[%s27197_s3 + $0x1ef0] sm:$0xff] }
 0x50c   :  { %9039 = vmatprep.subr.bf16.mxu1 %v18169_v61  ;;  %v17781_v61 = vld [vmem:[%s27197_s3 + $0x1df8] sm:$0xff]  ;;  %v17828_v20 = vld [vmem:[%s27197_s3 + $0x1f70] sm:$0xff] }
 0x50d   :  { %v18012_v21 = vcombine.low %v17773_v0, %v17781_v61  ;;  %v17836_v43 = vld [vmem:[%s27197_s3 + $0x1fb0] sm:$0xff] }
 0x50e   :  { %8999 = vmatpush1.bf16.msra.mxu0 %v18166_v12  ;;  %v18013_v12 = vcombine.high %v17773_v0, %v17781_v61  ;;  %v17844_v28 = vld [vmem:[%s27197_s3 + $0x1ff0] sm:$0xff]  ;;  %v17861_v0 = vld [vmem:[%s27197_s3 + $0x2078] sm:$0xff] }
 0x50f   :  { %9040 = vmatpush1.bf16.msra.mxu1 %v18168_v22  ;;  %9000 = vmatprep.subr.bf16.mxu0 %v18183_v24  ;;  %v17789_v22 = vld [vmem:[%s27197_s3 + $0x1e38] sm:$0xff]  ;;  %v18074_v61 = vcombine.low %v17836_v43, %v17844_v28 }
 0x510   :  { %9041 = vmatprep.subr.bf16.mxu1 %v18185_v56  ;;  %v17797_v24 = vld [vmem:[%s27197_s3 + $0x1e78] sm:$0xff]  ;;  %v18010_v56 = vcombine.low %v17772_v4, %v17780_v19  ;;  %v17852_v4 = vld [vmem:[%s27197_s3 + $0x2030] sm:$0xff] }
 0x511   :  { %v18029_v60 = vcombine.high %v17789_v22, %v17797_v24  ;;  %v17860_v19 = vld [vmem:[%s27197_s3 + $0x2070] sm:$0xff] }
 0x512   :  { %9001 = vmatpush1.bf16.msra.mxu0 %v18182_v36  ;;  %v17813_v36 = vld [vmem:[%s27197_s3 + $0x1ef8] sm:$0xff] }
 0x513   :  { %9042 = vmatpush1.bf16.msra.mxu1 %v18184_v27  ;;  %9002 = vmatprep.subr.bf16.mxu0 %v18199_v45  ;;  %v18028_v27 = vcombine.low %v17789_v22, %v17797_v24  ;;  %v18043_v45 = vcombine.high %v17804_v8, %v17812_v39  ;;  %v18045_v46 = vcombine.high %v17805_v41, %v17813_v36  ;;  %v17869_v22 = vld [vmem:[%s27197_s3 + $0x20b8] sm:$0xff] }
 0x514   :  { %9043 = vmatprep.subr.bf16.mxu1 %v18201_v14  ;;  %v17820_v14 = vld [vmem:[%s27197_s3 + $0x1f30] sm:$0xff]  ;;  %v17877_v24 = vld [vmem:[%s27197_s3 + $0x20f8] sm:$0xff] }
 0x515   :  { %v18059_v5 = vcombine.high %v17820_v14, %v17828_v20 }
 0x516   :  { %9003 = vmatpush1.bf16.msra.mxu0 %v18198_v63  ;;  %v17821_v63 = vld [vmem:[%s27197_s3 + $0x1f38] sm:$0xff] }
 0x517   :  { %9044 = vmatpush1.bf16.msra.mxu1 %v18200_v37  ;;  %9004 = vmatprep.subr.bf16.mxu0 %v8792_v57  ;;  %v18042_v37 = vcombine.low %v17804_v8, %v17812_v39  ;;  %v18044_v57 = vcombine.low %v17805_v41, %v17813_v36  ;;  %v17884_v8 = vld [vmem:[%s27197_s3 + $0x2130] sm:$0xff]  ;;  %v17885_v41 = vld [vmem:[%s27197_s3 + $0x2138] sm:$0xff] }
 0x518   :  { %9045 = vmatprep.subr.bf16.mxu1 %v8798_v10  ;;  %v18061_v10 = vcombine.high %v17821_v63, %v17829_v42  ;;  %v17892_v39 = vld [vmem:[%s27197_s3 + $0x2170] sm:$0xff]  ;;  %v17893_v36 = vld [vmem:[%s27197_s3 + $0x2178] sm:$0xff] }
 0x51a   :  { %9005 = vmatpush1.bf16.msra.mxu0 %v8789_v23  ;;  %v18058_v23 = vcombine.low %v17820_v14, %v17828_v20  ;;  %v17900_v14 = vld [vmem:[%s27197_s3 + $0x21b0] sm:$0xff] }
 0x51b   :  { %9046 = vmatpush1.bf16.msra.mxu1 %v8795_v25  ;;  %9058 = vmatprep.subr.bf16.mxu0 %v17995_v58  ;;  %v18060_v25 = vcombine.low %v17821_v63, %v17829_v42  ;;  %v18075_v58 = vcombine.high %v17836_v43, %v17844_v28  ;;  %v17908_v20 = vld [vmem:[%s27197_s3 + $0x21f0] sm:$0xff]  ;;  %v17901_v63 = vld [vmem:[%s27197_s3 + $0x21b8] sm:$0xff] }
 0x51c   :  { %9099 = vmatprep.subr.bf16.mxu1 %v17997_v13  ;;  %v18077_v13 = vcombine.high %v17837_v9, %v17845_v18  ;;  %v17909_v42 = vld [vmem:[%s27197_s3 + $0x21f8] sm:$0xff]  ;;  %v17916_v28 = vld [vmem:[%s27197_s3 + $0x2230] sm:$0xff] }
 0x51d   :  { %9009 = vmatmul.mubr.bf16.vlgmr.msra.gmra.mrb[76].mxu0 %v23776_v53  ;;  %v18141_v43 = vcombine.high %v17901_v63, %v17909_v42 }
 0x51e   :  { %9050 = vmatmul.mubr.bf16.vlgmr.msra.gmra.mrb[76].mxu1 %v23776_v53  ;;  %9059 = vmatpush1.bf16.msra.mxu0 %v17994_v11  ;;  %v17853_v11 = vld [vmem:[%s27197_s3 + $0x2038] sm:$0xff] }
 0x51f   :  { %18228 = vmatprep.mubr.msk.bf16.mxu0 %vm1835_vm2, %v23583_v31  ;;  %9100 = vmatpush1.bf16.msra.mxu1 %v17996_v29  ;;  %v18076_v29 = vcombine.low %v17837_v9, %v17845_v18  ;;  %v17924_v9 = vld [vmem:[%s27197_s3 + $0x2270] sm:$0xff] }
 0x520   :  { %18229 = vmatprep.mubr.msk.bf16.mxu1 %vm1835_vm2, %v23583_v31  ;;  %9060 = vmatprep.subr.bf16.mxu0 %v18011_v15  ;;  %v18026_v31 = vcombine.low %v17788_v52, %v17796_v33  ;;  %v18091_v15 = vcombine.high %v17852_v4, %v17860_v19  ;;  %v18093_v52 = vcombine.high %v17853_v11, %v17861_v0  ;;  %v17868_v33 = vld [vmem:[%s27197_s3 + $0x20b0] sm:$0xff] }
 0x521   :  { %9101 = vmatprep.subr.bf16.mxu1 %v18013_v12  ;;  %v17876_v12 = vld [vmem:[%s27197_s3 + $0x20f0] sm:$0xff] }
 0x522   :  { %9061 = vmatpush1.bf16.msra.mxu0 %v18010_v56  ;;  %v18090_v56 = vcombine.low %v17852_v4, %v17860_v19 }
 0x523   :  { %9102 = vmatpush1.bf16.msra.mxu1 %v18012_v21  ;;  %9062 = vmatprep.subr.bf16.mxu0 %v18027_v38  ;;  %v18092_v21 = vcombine.low %v17853_v11, %v17861_v0  ;;  %v18107_v38 = vcombine.high %v17868_v33, %v17876_v12 }
 0x524   :  { %9103 = vmatprep.subr.bf16.mxu1 %v18029_v60  ;;  %v18109_v60 = vcombine.high %v17869_v22, %v17877_v24 }
 0x526   :  { %9063 = vmatpush1.bf16.msra.mxu0 %v18026_v31  ;;  %v18106_v31 = vcombine.low %v17868_v33, %v17876_v12  ;;  %v18155_v33 = vcombine.high %v17916_v28, %v17924_v9 }
 0x527   :  { %9104 = vmatpush1.bf16.msra.mxu1 %v18028_v27  ;;  %9064 = vmatprep.subr.bf16.mxu0 %v18043_v45  ;;  %v18108_v27 = vcombine.low %v17869_v22, %v17877_v24  ;;  %v18123_v45 = vcombine.high %v17884_v8, %v17892_v39  ;;  %v17940_v22 = vld [vmem:[%s27197_s3 + $0x22f0] sm:$0xff]  ;;  %v17941_v24 = vld [vmem:[%s27197_s3 + $0x22f8] sm:$0xff] }
 0x528   :  { %9105 = vmatprep.subr.bf16.mxu1 %v18045_v46  ;;  %v18125_v46 = vcombine.high %v17885_v41, %v17893_v36 }
 0x52a   :  { %9065 = vmatpush1.bf16.msra.mxu0 %v18042_v37  ;;  %v18122_v37 = vcombine.low %v17884_v8, %v17892_v39  ;;  %v17948_v8 = vld [vmem:[%s27197_s3 + $0x2330] sm:$0xff] }
 0x52b   :  { %9106 = vmatpush1.bf16.msra.mxu1 %v18044_v57  ;;  %9066 = vmatprep.subr.bf16.mxu0 %v18059_v5  ;;  %v18124_v57 = vcombine.low %v17885_v41, %v17893_v36  ;;  %v18139_v5 = vcombine.high %v17900_v14, %v17908_v20  ;;  %v17956_v39 = vld [vmem:[%s27197_s3 + $0x2370] sm:$0xff]  ;;  %v17949_v41 = vld [vmem:[%s27197_s3 + $0x2338] sm:$0xff] }
 0x52c   :  { %9107 = vmatprep.subr.bf16.mxu1 %v18061_v10  ;;  %v17957_v36 = vld [vmem:[%s27197_s3 + $0x2378] sm:$0xff] }
 0x52e   :  { %9067 = vmatpush1.bf16.msra.mxu0 %v18058_v23 }
 0x52f   :  { %9108 = vmatpush1.bf16.msra.mxu1 %v18060_v25  ;;  %9068 = vmatprep.subr.bf16.mxu0 %v18075_v58  ;;  %v17917_v58 = vld [vmem:[%s27197_s3 + $0x2238] sm:$0xff] }
 0x530   :  { %9109 = vmatprep.subr.bf16.mxu1 %v18077_v13  ;;  %v17925_v13 = vld [vmem:[%s27197_s3 + $0x2278] sm:$0xff] }
 0x532   :  { %9069 = vmatpush1.bf16.msra.mxu0 %v18074_v61 }
 0x533   :  { %9110 = vmatpush1.bf16.msra.mxu1 %v18076_v29  ;;  %9070 = vmatprep.subr.bf16.mxu0 %v18091_v15 }
 0x534   :  { %9111 = vmatprep.subr.bf16.mxu1 %v18093_v52  ;;  %v18140_v52 = vcombine.low %v17901_v63, %v17909_v42  ;;  %v17980_v63 = vld [vmem:[%s27197_s3 + $0x2430] sm:$0x11]  ;;  %v17965_v42 = vld [vmem:[%s27197_s3 + $0x23b8] sm:$0xff] }
 0x536   :  { %9071 = vmatpush1.bf16.msra.mxu0 %v18090_v56  ;;  %v18154_v56 = vcombine.low %v17916_v28, %v17924_v9  ;;  %v18219_v28 = vcombine.high %v17980_v63, %v17980_v63 }
 0x537   :  { %9112 = vmatpush1.bf16.msra.mxu1 %v18092_v21  ;;  %9072 = vmatprep.subr.bf16.mxu0 %v18107_v38  ;;  %v18156_v21 = vcombine.low %v17917_v58, %v17925_v13 }
 0x538   :  { %9113 = vmatprep.subr.bf16.mxu1 %v18109_v60 }
 0x53a   :  { %9073 = vmatpush1.bf16.msra.mxu0 %v18106_v31 }
 0x53b   :  { %9114 = vmatpush1.bf16.msra.mxu1 %v18108_v27  ;;  %9074 = vmatprep.subr.bf16.mxu0 %v18123_v45  ;;  %v18187_v45 = vcombine.high %v17948_v8, %v17956_v39 }
 0x53c   :  { %v7292_v10 = vpop.f32.mrb[64].mxu0  ;;  %9115 = vmatprep.subr.bf16.mxu1 %v18125_v46  ;;  %v18189_v46 = vcombine.high %v17949_v41, %v17957_v36 }
 0x53d   :  { %v24279_v18 = vadd.f32 %v7292_v10, %v23487_v2  ;;  %v7333_v23 = vpop.f32.mrb[64].mxu1  ;;  %v7294_v25 = vpop.f32.mrb[65].mxu0  ;;  %v18138_v2 = vcombine.low %v17900_v14, %v17908_v20  ;;  %v17964_v14 = vld [vmem:[%s27197_s3 + $0x23b0] sm:$0xff]  ;;  %v18188_v10 = vcombine.low %v17949_v41, %v17957_v36  ;;  %v18270_v41 = vld [vmem:[%s27197_s3 + $0x2580] sm:$0xff]  ;;  %v24375_v36 = vpack.c.bf16 %v20675_v26, %v20675_v26 }
 0x53e   :  { %v24288_v4 = vadd.f32 %v7333_v23, %v23496_v48  ;;  %v24291_v19 = vadd.f32 %v7294_v25, %v23499_v49  ;;  %v7335_v11 = vpop.f32.mrb[65].mxu1  ;;  %v7296_v0 = vpop.f32.mrb[66].mxu0  ;;  %9075 = vmatpush1.bf16.msra.mxu0 %v18122_v37  ;;  %v18157_v48 = vcombine.high %v17917_v58, %v17925_v13  ;;  %v17932_v49 = vld [vmem:[%s27197_s3 + $0x22b0] sm:$0xff]  ;;  %v17973_v37 = vld [vmem:[%s27197_s3 + $0x23f8] sm:$0xff]  ;;  %v18218_v58 = vcombine.low %v17980_v63, %v17980_v63  ;;  %v18278_v63 = vld [vmem:[%s27197_s3 + $0x25c0] sm:$0xff] }
 0x53f   :  { %v24294_v61 = vadd.f32 %v7335_v11, %v23502_v3  ;;  %v7337_v29 = vpop.f32.mrb[66].mxu1  ;;  %9116 = vmatpush1.bf16.msra.mxu1 %v18124_v57  ;;  %v7297_v15 = vpop.f32.mrb[67].mxu0  ;;  %9076 = vmatprep.subr.bf16.mxu0 %v18139_v5  ;;  %v17933_v3 = vld [vmem:[%s27197_s3 + $0x22b8] sm:$0xff]  ;;  %v18171_v38 = vcombine.high %v17932_v49, %v17940_v22  ;;  %v18170_v31 = vcombine.low %v17932_v49, %v17940_v22  ;;  %v17972_v20 = vld [vmem:[%s27197_s3 + $0x23f0] sm:$0xff] }
 0x540   :  { %v7338_v12 = vpop.f32.mrb[67].mxu1  ;;  %9117 = vmatprep.subr.bf16.mxu1 %v18141_v43  ;;  %v18173_v60 = vcombine.high %v17933_v3, %v17941_v24  ;;  %v18172_v27 = vcombine.low %v17933_v3, %v17941_v24  ;;  %v17981_v57 = vld [vmem:[%s27197_s3 + $0x2438] sm:$0x11]  ;;  %v18186_v5 = vcombine.low %v17948_v8, %v17956_v39  ;;  %v18203_v43 = vcombine.high %v17964_v14, %v17972_v20  ;;  %v18230_v29 = vld [vmem:[%s27197_s3 + $0x2440] sm:$0xff] }
 0x541   :  { %v18205_v9 = vcombine.high %v17965_v42, %v17973_v37  ;;  %v18221_v23 = vcombine.high %v17981_v57, %v17981_v57  ;;  %v18202_v25 = vcombine.low %v17964_v14, %v17972_v20  ;;  %v18204_v13 = vcombine.low %v17965_v42, %v17973_v37  ;;  %v18238_v15 = vld [vmem:[%s27197_s3 + $0x2480] sm:$0xff]  ;;  %v18279_v42 = vld [vmem:[%s27197_s3 + $0x25c8] sm:$0xff] }
 0x542   :  { %9077 = vmatpush1.bf16.msra.mxu0 %v18138_v2  ;;  %v8804_v11 = vand.u32 %v18219_v28, %v20487_v62  ;;  %v18220_v0 = vcombine.low %v17981_v57, %v17981_v57  ;;  %v8801_v12 = vand.u32 %v18218_v58, %v20487_v62  ;;  %v18463_v49 = vcombine.high %v18230_v29, %v18238_v15  ;;  %v18246_v3 = vld [vmem:[%s27197_s3 + $0x24c0] sm:$0xff]  ;;  %v18287_v37 = vld [vmem:[%s27197_s3 + $0x2608] sm:$0xff] }
 0x543   :  { %9118 = vmatpush1.bf16.msra.mxu1 %v18140_v52  ;;  %9078 = vmatprep.subr.bf16.mxu0 %v18155_v33  ;;  %v8810_v2 = vand.u32 %v18221_v23, %v20487_v62  ;;  %v18231_v52 = vld [vmem:[%s27197_s3 + $0x2448] sm:$0xff]  ;;  %v18254_v24 = vld [vmem:[%s27197_s3 + $0x2500] sm:$0xff] }
 0x544   :  { %9119 = vmatprep.subr.bf16.mxu1 %v18157_v48  ;;  %v18239_v33 = vld [vmem:[%s27197_s3 + $0x2488] sm:$0xff]  ;;  %v8807_v48 = vand.u32 %v18220_v0, %v20487_v62  ;;  %v18479_v8 = vcombine.high %v18246_v3, %v18254_v24  ;;  %v18262_v39 = vld [vmem:[%s27197_s3 + $0x2540] sm:$0xff] }
 0x545   :  { %v18465_v22 = vcombine.high %v18231_v52, %v18239_v33  ;;  %v18495_v26 = vcombine.high %v18262_v39, %v18270_v41  ;;  %v18494_v57 = vcombine.low %v18262_v39, %v18270_v41  ;;  %v18294_v28 = vld [vmem:[%s27197_s3 + $0x2640] sm:$0xff]  ;;  %v18295_v23 = vld [vmem:[%s27197_s3 + $0x2648] sm:$0xff] }
 0x546   :  { %9079 = vmatpush1.bf16.msra.mxu0 %v18154_v56  ;;  %v18462_v56 = vcombine.low %v18230_v29, %v18238_v15  ;;  %v18318_v29 = vld [vmem:[%s27197_s3 + $0x2700] sm:$0xff]  ;;  %v18311_v15 = vld [vmem:[%s27197_s3 + $0x26c8] sm:$0xff] }
 0x547   :  { %9120 = vmatpush1.bf16.msra.mxu1 %v18156_v21  ;;  %9080 = vmatprep.subr.bf16.mxu0 %v18171_v38  ;;  %v18247_v21 = vld [vmem:[%s27197_s3 + $0x24c8] sm:$0xff]  ;;  %v18342_v39 = vld [vmem:[%s27197_s3 + $0x27c0] sm:$0xff] }
 0x548   :  { %9121 = vmatprep.subr.bf16.mxu1 %v18173_v60  ;;  %v18255_v38 = vld [vmem:[%s27197_s3 + $0x2508] sm:$0xff]  ;;  %v18464_v60 = vcombine.low %v18231_v52, %v18239_v33  ;;  %v18350_v41 = vld [vmem:[%s27197_s3 + $0x2800] sm:$0xff] }
 0x549   :  { %v18480_v14 = vcombine.low %v18247_v21, %v18255_v38  ;;  %v18319_v52 = vld [vmem:[%s27197_s3 + $0x2708] sm:$0xff] }
 0x54a   :  { %9081 = vmatpush1.bf16.msra.mxu0 %v18170_v31  ;;  %v18481_v31 = vcombine.high %v18247_v21, %v18255_v38  ;;  %v18544_v38 = vcombine.low %v18311_v15, %v18319_v52 }
 0x54b   :  { %9122 = vmatpush1.bf16.msra.mxu1 %v18172_v27  ;;  %9082 = vmatprep.subr.bf16.mxu0 %v18187_v45  ;;  %v18263_v27 = vld [vmem:[%s27197_s3 + $0x2548] sm:$0xff] }
 0x54c   :  { %9123 = vmatprep.subr.bf16.mxu1 %v18189_v46  ;;  %v18271_v45 = vld [vmem:[%s27197_s3 + $0x2588] sm:$0xff]  ;;  %v18478_v46 = vcombine.low %v18246_v3, %v18254_v24  ;;  %v18334_v3 = vld [vmem:[%s27197_s3 + $0x2780] sm:$0xff] }
 0x54d   :  { %v18497_v20 = vcombine.high %v18263_v27, %v18271_v45  ;;  %v18327_v24 = vld [vmem:[%s27197_s3 + $0x2748] sm:$0xff] }
 0x54e   :  { %9083 = vmatpush1.bf16.msra.mxu0 %v18186_v5  ;;  %v18496_v5 = vcombine.low %v18263_v27, %v18271_v45  ;;  %v18351_v27 = vld [vmem:[%s27197_s3 + $0x2808] sm:$0xff] }
 0x54f   :  { %9124 = vmatpush1.bf16.msra.mxu1 %v18188_v10  ;;  %9084 = vmatprep.subr.bf16.mxu0 %v18203_v43  ;;  %v18513_v43 = vcombine.high %v18279_v42, %v18287_v37 }
 0x550   :  { %9125 = vmatprep.subr.bf16.mxu1 %v18205_v9  ;;  %v18302_v9 = vld [vmem:[%s27197_s3 + $0x2680] sm:$0xff] }
 0x551   :  { %v18526_v33 = vcombine.low %v18294_v28, %v18302_v9 }
 0x552   :  { %9085 = vmatpush1.bf16.msra.mxu0 %v18202_v25  ;;  %v18303_v25 = vld [vmem:[%s27197_s3 + $0x2688] sm:$0xff] }
 0x553   :  { %9126 = vmatpush1.bf16.msra.mxu1 %v18204_v13  ;;  %9086 = vmatprep.subr.bf16.mxu0 %v8804_v11  ;;  %v18512_v13 = vcombine.low %v18279_v42, %v18287_v37  ;;  %v18527_v11 = vcombine.high %v18294_v28, %v18302_v9  ;;  %v18529_v0 = vcombine.high %v18295_v23, %v18303_v25  ;;  %v18367_v42 = vld [vmem:[%s27197_s3 + $0x2888] sm:$0xff]  ;;  %v18382_v28 = vld [vmem:[%s27197_s3 + $0x2900] sm:$0xff] }
 0x554   :  { %9127 = vmatprep.subr.bf16.mxu1 %v8810_v2  ;;  %v18310_v2 = vld [vmem:[%s27197_s3 + $0x26c0] sm:$0xff]  ;;  %v18574_v37 = vcombine.low %v18342_v39, %v18350_v41  ;;  %v18375_v9 = vld [vmem:[%s27197_s3 + $0x28c8] sm:$0xff] }
 0x555   :  { %v18542_v21 = vcombine.low %v18310_v2, %v18318_v29 }
 0x556   :  { %9087 = vmatpush1.bf16.msra.mxu0 %v8801_v12  ;;  %v18528_v12 = vcombine.low %v18295_v23, %v18303_v25  ;;  %v18383_v23 = vld [vmem:[%s27197_s3 + $0x2908] sm:$0xff] }
 0x557   :  { %9128 = vmatpush1.bf16.msra.mxu1 %v8807_v48  ;;  %10612 = vmatprep.subr.bf16.mxu0 %v18463_v49  ;;  %v18543_v48 = vcombine.high %v18310_v2, %v18318_v29  ;;  %v18545_v49 = vcombine.high %v18311_v15, %v18319_v52  ;;  %v18390_v2 = vld [vmem:[%s27197_s3 + $0x2940] sm:$0xff] }
 0x558   :  { %10653 = vmatprep.subr.bf16.mxu1 %v18465_v22  ;;  %v18326_v22 = vld [vmem:[%s27197_s3 + $0x2740] sm:$0xff] }
 0x559   :  { %9091 = vmatmul.mubr.bf16.vlgmr.msra.gmra.mrb[80].mxu0 %v23776_v53  ;;  %v18558_v45 = vcombine.low %v18326_v22, %v18334_v3  ;;  %v18398_v29 = vld [vmem:[%s27197_s3 + $0x2980] sm:$0xff] }
 0x55a   :  { %9132 = vmatmul.mubr.bf16.vlgmr.msra.gmra.mrb[80].mxu1 %v23776_v53  ;;  %10613 = vmatpush1.bf16.msra.mxu0 %v18462_v56  ;;  %v18286_v53 = vld [vmem:[%s27197_s3 + $0x2600] sm:$0xff]  ;;  %v18335_v56 = vld [vmem:[%s27197_s3 + $0x2788] sm:$0xff] }
 0x55b   :  { %18702 = vmatprep.mubr.msk.bf16.mxu0 %vm1835_vm2, %v24375_v36  ;;  %10654 = vmatpush1.bf16.msra.mxu1 %v18464_v60  ;;  %v18511_v10 = vcombine.high %v18278_v63, %v18286_v53  ;;  %v18510_v58 = vcombine.low %v18278_v63, %v18286_v53  ;;  %v18559_v60 = vcombine.high %v18326_v22, %v18334_v3  ;;  %v18366_v63 = vld [vmem:[%s27197_s3 + $0x2880] sm:$0xff]  ;;  %v18359_v53 = vld [vmem:[%s27197_s3 + $0x2848] sm:$0xff] }
 0x55c   :  { %18703 = vmatprep.mubr.msk.bf16.mxu1 %vm1835_vm2, %v24375_v36  ;;  %10614 = vmatprep.subr.bf16.mxu0 %v18479_v8  ;;  %v18561_v8 = vcombine.high %v18327_v24, %v18335_v56 }
 0x55d   :  { %10655 = vmatprep.subr.bf16.mxu1 %v18481_v31  ;;  %v18343_v31 = vld [vmem:[%s27197_s3 + $0x27c8] sm:$0xff] }
 0x55e   :  { %10615 = vmatpush1.bf16.msra.mxu0 %v18478_v46  ;;  %v18560_v46 = vcombine.low %v18327_v24, %v18335_v56 }
 0x55f   :  { %10656 = vmatpush1.bf16.msra.mxu1 %v18480_v14  ;;  %10616 = vmatprep.subr.bf16.mxu0 %v18495_v26  ;;  %v18575_v14 = vcombine.high %v18342_v39, %v18350_v41  ;;  %v18577_v26 = vcombine.high %v18343_v31, %v18351_v27  ;;  %v18414_v41 = vld [vmem:[%s27197_s3 + $0x2a00] sm:$0xff] }
 0x560   :  { %10657 = vmatprep.subr.bf16.mxu1 %v18497_v20  ;;  %v18358_v20 = vld [vmem:[%s27197_s3 + $0x2840] sm:$0xff] }
 0x561   :  { %v18590_v25 = vcombine.low %v18358_v20, %v18366_v63 }
 0x562   :  { %10617 = vmatpush1.bf16.msra.mxu0 %v18494_v57  ;;  %v18576_v57 = vcombine.low %v18343_v31, %v18351_v27  ;;  %v18415_v31 = vld [vmem:[%s27197_s3 + $0x2a08] sm:$0xff]  ;;  %v18622_v27 = vcombine.low %v18390_v2, %v18398_v29 }
 0x563   :  { %10658 = vmatpush1.bf16.msra.mxu1 %v18496_v5  ;;  %10618 = vmatprep.subr.bf16.mxu0 %v18511_v10  ;;  %v18591_v5 = vcombine.high %v18358_v20, %v18366_v63  ;;  %v18593_v10 = vcombine.high %v18359_v53, %v18367_v42  ;;  %v18430_v20 = vld [vmem:[%s27197_s3 + $0x2a80] sm:$0xff]  ;;  %v18423_v63 = vld [vmem:[%s27197_s3 + $0x2a48] sm:$0xff] }
 0x564   :  { %10659 = vmatprep.subr.bf16.mxu1 %v18513_v43  ;;  %v18374_v43 = vld [vmem:[%s27197_s3 + $0x28c0] sm:$0xff] }
 0x566   :  { %10619 = vmatpush1.bf16.msra.mxu0 %v18510_v58  ;;  %v18592_v58 = vcombine.low %v18359_v53, %v18367_v42  ;;  %v18431_v53 = vld [vmem:[%s27197_s3 + $0x2a88] sm:$0xff] }
 0x567   :  { %10660 = vmatpush1.bf16.msra.mxu1 %v18512_v13  ;;  %10620 = vmatprep.subr.bf16.mxu0 %v18527_v11  ;;  %v18607_v13 = vcombine.high %v18374_v43, %v18382_v28 }
 0x568   :  { %10661 = vmatprep.subr.bf16.mxu1 %v18529_v0  ;;  %v18609_v0 = vcombine.high %v18375_v9, %v18383_v23 }
 0x56a   :  { %10621 = vmatpush1.bf16.msra.mxu0 %v18526_v33 }
 0x56b   :  { %10662 = vmatpush1.bf16.msra.mxu1 %v18528_v12  ;;  %10622 = vmatprep.subr.bf16.mxu0 %v18543_v48  ;;  %v18391_v12 = vld [vmem:[%s27197_s3 + $0x2948] sm:$0xff] }
 0x56c   :  { %10663 = vmatprep.subr.bf16.mxu1 %v18545_v49  ;;  %v18399_v48 = vld [vmem:[%s27197_s3 + $0x2988] sm:$0xff] }
 0x56e   :  { %10623 = vmatpush1.bf16.msra.mxu0 %v18542_v21 }
 0x56f   :  { %10664 = vmatpush1.bf16.msra.mxu1 %v18544_v38  ;;  %10624 = vmatprep.subr.bf16.mxu0 %v18559_v60  ;;  %v18608_v60 = vcombine.low %v18375_v9, %v18383_v23  ;;  %v18439_v9 = vld [vmem:[%s27197_s3 + $0x2ac8] sm:$0xff] }
 0x570   :  { %10665 = vmatprep.subr.bf16.mxu1 %v18561_v8  ;;  %v18623_v8 = vcombine.high %v18390_v2, %v18398_v29  ;;  %v18447_v23 = vld [vmem:[%s27197_s3 + $0x2b08] sm:$0xff] }
 0x571   :  { %v18673_v2 = vcombine.high %v18439_v9, %v18447_v23 }
 0x572   :  { %10625 = vmatpush1.bf16.msra.mxu0 %v18558_v45  ;;  %v18624_v45 = vcombine.low %v18391_v12, %v18399_v48 }
 0x573   :  { %10666 = vmatpush1.bf16.msra.mxu1 %v18560_v46  ;;  %10626 = vmatprep.subr.bf16.mxu0 %v18575_v14 }
 0x574   :  { %10667 = vmatprep.subr.bf16.mxu1 %v18577_v26  ;;  %v18422_v26 = vld [vmem:[%s27197_s3 + $0x2a40] sm:$0xff] }
 0x576   :  { %10627 = vmatpush1.bf16.msra.mxu0 %v18574_v37 }
 0x577   :  { %10668 = vmatpush1.bf16.msra.mxu1 %v18576_v57  ;;  %10628 = vmatprep.subr.bf16.mxu0 %v18591_v5  ;;  %v18655_v57 = vcombine.high %v18422_v26, %v18430_v20  ;;  %v18657_v5 = vcombine.high %v18423_v63, %v18431_v53 }
 0x578   :  { %v8846_v11 = vpop.f32.mrb[68].mxu0  ;;  %10669 = vmatprep.subr.bf16.mxu1 %v18593_v10  ;;  %v18438_v10 = vld [vmem:[%s27197_s3 + $0x2ac0] sm:$0xff] }
 0x579   :  { %v24479_v15 = vadd.f32 %v8846_v11, %v23687_v30  ;;  %v8887_v52 = vpop.f32.mrb[68].mxu1  ;;  %v8848_v33 = vpop.f32.mrb[69].mxu0  ;;  %v18606_v30 = vcombine.low %v18374_v43, %v18382_v28  ;;  %v18446_v43 = vld [vmem:[%s27197_s3 + $0x2b00] sm:$0xff] }
 0x57a   :  { %v24488_v49 = vadd.f32 %v8887_v52, %v23696_v55  ;;  %v24491_v22 = vadd.f32 %v8848_v33, %v23699_v54  ;;  %v8889_v3 = vpop.f32.mrb[69].mxu1  ;;  %v8850_v24 = vpop.f32.mrb[70].mxu0  ;;  %10629 = vmatpush1.bf16.msra.mxu0 %v18590_v25  ;;  %v18625_v55 = vcombine.high %v18391_v12, %v18399_v48  ;;  %v18406_v54 = vld [vmem:[%s27197_s3 + $0x29c0] sm:$0xff]  ;;  %v18455_v25 = vld [vmem:[%s27197_s3 + $0x2b48] sm:$0x11]  ;;  %v18671_v11 = vcombine.high %v18438_v10, %v18446_v43 }
 0x57b   :  { %v24494_v56 = vadd.f32 %v8889_v3, %v23702_v17  ;;  %v8891_v21 = vpop.f32.mrb[70].mxu1  ;;  %10670 = vmatpush1.bf16.msra.mxu1 %v18592_v58  ;;  %v8851_v38 = vpop.f32.mrb[71].mxu0  ;;  %10630 = vmatprep.subr.bf16.mxu0 %v18607_v13  ;;  %v18407_v17 = vld [vmem:[%s27197_s3 + $0x29c8] sm:$0xff]  ;;  %v18639_v46 = vcombine.high %v18406_v54, %v18414_v41  ;;  %v18638_v42 = vcombine.low %v18406_v54, %v18414_v41  ;;  %v18454_v28 = vld [vmem:[%s27197_s3 + $0x2b40] sm:$0x11]  ;;  %v18248_v41 = vld [vmem:[%s27197_s3 + $0x24d0] sm:$0xff] }
 0x57c   :  { %v8892_v39 = vpop.f32.mrb[71].mxu1  ;;  %10671 = vmatprep.subr.bf16.mxu1 %v18609_v0  ;;  %v18641_v14 = vcombine.high %v18407_v17, %v18415_v31  ;;  %v18640_v37 = vcombine.low %v18407_v17, %v18415_v31  ;;  %v18654_v58 = vcombine.low %v18422_v26, %v18430_v20  ;;  %v18656_v13 = vcombine.low %v18423_v63, %v18431_v53  ;;  %v18240_v21 = vld [vmem:[%s27197_s3 + $0x2490] sm:$0xff]  ;;  %v18233_v38 = vld [vmem:[%s27197_s3 + $0x2458] sm:$0xff] }
 0x57d   :  { %v18687_v0 = vcombine.high %v18454_v28, %v18454_v28  ;;  %v18689_v29 = vcombine.high %v18455_v25, %v18455_v25  ;;  %v18670_v52 = vcombine.low %v18438_v10, %v18446_v43  ;;  %v18686_v33 = vcombine.low %v18454_v28, %v18454_v28  ;;  %v18256_v17 = vld [vmem:[%s27197_s3 + $0x2510] sm:$0xff] }
 0x57e   :  { %10631 = vmatpush1.bf16.msra.mxu0 %v18606_v30  ;;  %v18672_v12 = vcombine.low %v18439_v9, %v18447_v23  ;;  %v18688_v3 = vcombine.low %v18455_v25, %v18455_v25  ;;  %v18232_v30 = vld [vmem:[%s27197_s3 + $0x2450] sm:$0xff]  ;;  %v18483_v26 = vcombine.high %v18248_v41, %v18256_v17  ;;  %v18281_v9 = vld [vmem:[%s27197_s3 + $0x25d8] sm:$0xff] }
 0x57f   :  { %10672 = vmatpush1.bf16.msra.mxu1 %v18608_v60  ;;  %10632 = vmatprep.subr.bf16.mxu0 %v18623_v8  ;;  %v10568_v48 = vand.u32 %v18687_v0, %v20487_v62  ;;  %v10574_v24 = vand.u32 %v18689_v29, %v20487_v62  ;;  %v18241_v60 = vld [vmem:[%s27197_s3 + $0x2498] sm:$0xff]  ;;  %v10565_v8 = vand.u32 %v18686_v33, %v20487_v62  ;;  %v18264_v20 = vld [vmem:[%s27197_s3 + $0x2550] sm:$0xff] }
 0x580   :  { %10673 = vmatprep.subr.bf16.mxu1 %v18625_v55  ;;  %v10571_v39 = vand.u32 %v18688_v3, %v20487_v62  ;;  %v18467_v55 = vcombine.high %v18232_v30, %v18240_v21  ;;  %v18469_v54 = vcombine.high %v18233_v38, %v18241_v60  ;;  %v18466_v31 = vcombine.low %v18232_v30, %v18240_v21  ;;  %v18272_v63 = vld [vmem:[%s27197_s3 + $0x2590] sm:$0xff]  ;;  %v18289_v23 = vld [vmem:[%s27197_s3 + $0x2618] sm:$0xff] }
 0x581   :  { %v18280_v43 = vld [vmem:[%s27197_s3 + $0x25d0] sm:$0xff]  ;;  %v18498_v25 = vcombine.low %v18264_v20, %v18272_v63  ;;  %v18297_v29 = vld [vmem:[%s27197_s3 + $0x2658] sm:$0xff] }
 0x582   :  { %10633 = vmatpush1.bf16.msra.mxu0 %v18622_v27  ;;  %v18249_v27 = vld [vmem:[%s27197_s3 + $0x24d8] sm:$0xff]  ;;  %v18288_v28 = vld [vmem:[%s27197_s3 + $0x2610] sm:$0xff] }
 0x583   :  { %10674 = vmatpush1.bf16.msra.mxu1 %v18624_v45  ;;  %10634 = vmatprep.subr.bf16.mxu0 %v18639_v46  ;;  %v18257_v45 = vld [vmem:[%s27197_s3 + $0x2518] sm:$0xff]  ;;  %v24568_v46 = vpack.c.bf16 %v20678_v32, %v20678_v32  ;;  %v18296_v0 = vld [vmem:[%s27197_s3 + $0x2650] sm:$0xff]  ;;  %v18514_v33 = vcombine.low %v18280_v43, %v18288_v28 }
 0x584   :  { %10675 = vmatprep.subr.bf16.mxu1 %v18641_v14  ;;  %v18468_v14 = vcombine.low %v18233_v38, %v18241_v60  ;;  %v18485_v53 = vcombine.high %v18249_v27, %v18257_v45  ;;  %v18265_v32 = vld [vmem:[%s27197_s3 + $0x2558] sm:$0xff]  ;;  %v18320_v30 = vld [vmem:[%s27197_s3 + $0x2710] sm:$0xff] }
 0x585   :  { %v18313_v21 = vld [vmem:[%s27197_s3 + $0x26d8] sm:$0xff] }
 0x586   :  { %10635 = vmatpush1.bf16.msra.mxu0 %v18638_v42  ;;  %v18273_v42 = vld [vmem:[%s27197_s3 + $0x2598] sm:$0xff] }
 0x587   :  { %10676 = vmatpush1.bf16.msra.mxu1 %v18640_v37  ;;  %10636 = vmatprep.subr.bf16.mxu0 %v18655_v57  ;;  %v18482_v37 = vcombine.low %v18248_v41, %v18256_v17  ;;  %v18484_v57 = vcombine.low %v18249_v27, %v18257_v45  ;;  %v18501_v10 = vcombine.high %v18265_v32, %v18273_v42  ;;  %v18321_v38 = vld [vmem:[%s27197_s3 + $0x2718] sm:$0xff]  ;;  %v18336_v41 = vld [vmem:[%s27197_s3 + $0x2790] sm:$0xff] }
 0x588   :  { %10677 = vmatprep.subr.bf16.mxu1 %v18657_v5  ;;  %v18499_v5 = vcombine.high %v18264_v20, %v18272_v63  ;;  %v18329_v17 = vld [vmem:[%s27197_s3 + $0x2758] sm:$0xff]  ;;  %v18548_v45 = vcombine.low %v18313_v21, %v18321_v38  ;;  %v18344_v20 = vld [vmem:[%s27197_s3 + $0x27d0] sm:$0xff] }
 0x589   :  { %v18352_v63 = vld [vmem:[%s27197_s3 + $0x2810] sm:$0xff] }
 0x58a   :  { %10637 = vmatpush1.bf16.msra.mxu0 %v18654_v58  ;;  %v18500_v58 = vcombine.low %v18265_v32, %v18273_v42  ;;  %v18353_v32 = vld [vmem:[%s27197_s3 + $0x2818] sm:$0xff] }
 0x58b   :  { %10678 = vmatpush1.bf16.msra.mxu1 %v18656_v13  ;;  %10638 = vmatprep.subr.bf16.mxu0 %v18671_v11  ;;  %v18515_v13 = vcombine.high %v18280_v43, %v18288_v28  ;;  %v18517_v11 = vcombine.high %v18281_v9, %v18289_v23  ;;  %v18368_v43 = vld [vmem:[%s27197_s3 + $0x2890] sm:$0xff]  ;;  %v18361_v28 = vld [vmem:[%s27197_s3 + $0x2858] sm:$0xff] }
 0x58c   :  { %10679 = vmatprep.subr.bf16.mxu1 %v18673_v2  ;;  %v18304_v2 = vld [vmem:[%s27197_s3 + $0x2690] sm:$0xff] }
 0x58d   :  { %v18530_v60 = vcombine.low %v18296_v0, %v18304_v2 }
 0x58e   :  { %10639 = vmatpush1.bf16.msra.mxu0 %v18670_v52  ;;  %v18305_v52 = vld [vmem:[%s27197_s3 + $0x2698] sm:$0xff] }
 0x58f   :  { %10680 = vmatpush1.bf16.msra.mxu1 %v18672_v12  ;;  %10640 = vmatprep.subr.bf16.mxu0 %v10568_v48  ;;  %v18516_v12 = vcombine.low %v18281_v9, %v18289_v23  ;;  %v18531_v48 = vcombine.high %v18296_v0, %v18304_v2  ;;  %v18533_v3 = vcombine.high %v18297_v29, %v18305_v52  ;;  %v18369_v9 = vld [vmem:[%s27197_s3 + $0x2898] sm:$0xff]  ;;  %v18384_v0 = vld [vmem:[%s27197_s3 + $0x2910] sm:$0xff] }
 0x590   :  { %10681 = vmatprep.subr.bf16.mxu1 %v10574_v24  ;;  %v18312_v24 = vld [vmem:[%s27197_s3 + $0x26d0] sm:$0xff]  ;;  %v18578_v23 = vcombine.low %v18344_v20, %v18352_v63  ;;  %v18377_v2 = vld [vmem:[%s27197_s3 + $0x28d8] sm:$0xff] }
 0x591   :  { %v18546_v27 = vcombine.low %v18312_v24, %v18320_v30 }
 0x592   :  { %10641 = vmatpush1.bf16.msra.mxu0 %v10565_v8  ;;  %v18532_v8 = vcombine.low %v18297_v29, %v18305_v52  ;;  %v18385_v29 = vld [vmem:[%s27197_s3 + $0x2918] sm:$0xff] }
 0x593   :  { %10682 = vmatpush1.bf16.msra.mxu1 %v10571_v39  ;;  %10694 = vmatprep.subr.bf16.mxu0 %v18467_v55  ;;  %v18547_v39 = vcombine.high %v18312_v24, %v18320_v30  ;;  %v18549_v55 = vcombine.high %v18313_v21, %v18321_v38  ;;  %v18392_v24 = vld [vmem:[%s27197_s3 + $0x2950] sm:$0xff] }
 0x594   :  { %10735 = vmatprep.subr.bf16.mxu1 %v18469_v54  ;;  %v18328_v54 = vld [vmem:[%s27197_s3 + $0x2750] sm:$0xff] }
 0x595   :  { %10645 = vmatmul.mubr.bf16.vlgmr.msra.gmra.mrb[84].mxu0 %v24568_v46  ;;  %v18562_v42 = vcombine.low %v18328_v54, %v18336_v41  ;;  %v18400_v30 = vld [vmem:[%s27197_s3 + $0x2990] sm:$0xff] }
 0x596   :  { %10686 = vmatmul.mubr.bf16.vlgmr.msra.gmra.mrb[84].mxu1 %v24568_v46  ;;  %10695 = vmatpush1.bf16.msra.mxu0 %v18466_v31  ;;  %v18337_v31 = vld [vmem:[%s27197_s3 + $0x2798] sm:$0xff] }
 0x597   :  { %18704 = vmatprep.mubr.msk.bf16.mxu0 %vm1835_vm2, %v24375_v36  ;;  %10736 = vmatpush1.bf16.msra.mxu1 %v18468_v14  ;;  %v18563_v14 = vcombine.high %v18328_v54, %v18336_v41 }
 0x598   :  { %18705 = vmatprep.mubr.msk.bf16.mxu1 %vm1835_vm2, %v24375_v36  ;;  %10696 = vmatprep.subr.bf16.mxu0 %v18483_v26  ;;  %v18565_v26 = vcombine.high %v18329_v17, %v18337_v31 }
 0x599   :  { %10737 = vmatprep.subr.bf16.mxu1 %v18485_v53  ;;  %v18345_v53 = vld [vmem:[%s27197_s3 + $0x27d8] sm:$0xff] }
 0x59a   :  { %10697 = vmatpush1.bf16.msra.mxu0 %v18482_v37  ;;  %v18564_v37 = vcombine.low %v18329_v17, %v18337_v31 }
 0x59b   :  { %10738 = vmatpush1.bf16.msra.mxu1 %v18484_v57  ;;  %10698 = vmatprep.subr.bf16.mxu0 %v18499_v5  ;;  %v18579_v57 = vcombine.high %v18344_v20, %v18352_v63  ;;  %v18581_v5 = vcombine.high %v18345_v53, %v18353_v32  ;;  %v18416_v63 = vld [vmem:[%s27197_s3 + $0x2a10] sm:$0xff] }
 0x59c   :  { %10739 = vmatprep.subr.bf16.mxu1 %v18501_v10  ;;  %v18360_v10 = vld [vmem:[%s27197_s3 + $0x2850] sm:$0xff] }
 0x59d   :  { %v18594_v52 = vcombine.low %v18360_v10, %v18368_v43 }
 0x59e   :  { %10699 = vmatpush1.bf16.msra.mxu0 %v18498_v25  ;;  %v18580_v25 = vcombine.low %v18345_v53, %v18353_v32  ;;  %v18417_v53 = vld [vmem:[%s27197_s3 + $0x2a18] sm:$0xff]  ;;  %v18626_v32 = vcombine.low %v18392_v24, %v18400_v30 }
 0x59f   :  { %10740 = vmatpush1.bf16.msra.mxu1 %v18500_v58  ;;  %10700 = vmatprep.subr.bf16.mxu0 %v18515_v13  ;;  %v18595_v58 = vcombine.high %v18360_v10, %v18368_v43  ;;  %v18597_v13 = vcombine.high %v18361_v28, %v18369_v9  ;;  %v18432_v10 = vld [vmem:[%s27197_s3 + $0x2a90] sm:$0xff]  ;;  %v18425_v43 = vld [vmem:[%s27197_s3 + $0x2a58] sm:$0xff] }
 0x5a0   :  { %10741 = vmatprep.subr.bf16.mxu1 %v18517_v11  ;;  %v18376_v11 = vld [vmem:[%s27197_s3 + $0x28d0] sm:$0xff] }
 0x5a2   :  { %10701 = vmatpush1.bf16.msra.mxu0 %v18514_v33  ;;  %v18596_v33 = vcombine.low %v18361_v28, %v18369_v9  ;;  %v18433_v28 = vld [vmem:[%s27197_s3 + $0x2a98] sm:$0xff] }
 0x5a3   :  { %10742 = vmatpush1.bf16.msra.mxu1 %v18516_v12  ;;  %10702 = vmatprep.subr.bf16.mxu0 %v18531_v48  ;;  %v18611_v12 = vcombine.high %v18376_v11, %v18384_v0 }
 0x5a4   :  { %10743 = vmatprep.subr.bf16.mxu1 %v18533_v3  ;;  %v18613_v3 = vcombine.high %v18377_v2, %v18385_v29 }
 0x5a6   :  { %10703 = vmatpush1.bf16.msra.mxu0 %v18530_v60 }
 0x5a7   :  { %10744 = vmatpush1.bf16.msra.mxu1 %v18532_v8  ;;  %10704 = vmatprep.subr.bf16.mxu0 %v18547_v39  ;;  %v18393_v8 = vld [vmem:[%s27197_s3 + $0x2958] sm:$0xff] }
 0x5a8   :  { %10745 = vmatprep.subr.bf16.mxu1 %v18549_v55  ;;  %v18401_v39 = vld [vmem:[%s27197_s3 + $0x2998] sm:$0xff] }
 0x5aa   :  { %10705 = vmatpush1.bf16.msra.mxu0 %v18546_v27 }
 0x5ab   :  { %10746 = vmatpush1.bf16.msra.mxu1 %v18548_v45  ;;  %10706 = vmatprep.subr.bf16.mxu0 %v18563_v14  ;;  %v18612_v14 = vcombine.low %v18377_v2, %v18385_v29  ;;  %v18441_v2 = vld [vmem:[%s27197_s3 + $0x2ad8] sm:$0xff] }
 0x5ac   :  { %10747 = vmatprep.subr.bf16.mxu1 %v18565_v26  ;;  %v18627_v26 = vcombine.high %v18392_v24, %v18400_v30  ;;  %v18449_v29 = vld [vmem:[%s27197_s3 + $0x2b18] sm:$0xff] }
 0x5ad   :  { %v18677_v24 = vcombine.high %v18441_v2, %v18449_v29 }
 0x5ae   :  { %10707 = vmatpush1.bf16.msra.mxu0 %v18562_v42  ;;  %v18628_v42 = vcombine.low %v18393_v8, %v18401_v39 }
 0x5af   :  { %10748 = vmatpush1.bf16.msra.mxu1 %v18564_v37  ;;  %10708 = vmatprep.subr.bf16.mxu0 %v18579_v57 }
 0x5b0   :  { %10749 = vmatprep.subr.bf16.mxu1 %v18581_v5  ;;  %v18424_v5 = vld [vmem:[%s27197_s3 + $0x2a50] sm:$0xff] }
 0x5b2   :  { %10709 = vmatpush1.bf16.msra.mxu0 %v18578_v23 }
 0x5b3   :  { %10750 = vmatpush1.bf16.msra.mxu1 %v18580_v25  ;;  %10710 = vmatprep.subr.bf16.mxu0 %v18595_v58  ;;  %v18659_v25 = vcombine.high %v18424_v5, %v18432_v10  ;;  %v18661_v58 = vcombine.high %v18425_v43, %v18433_v28 }
 0x5b4   :  { %v8928_v48 = vpop.f32.mrb[72].mxu0  ;;  %10751 = vmatprep.subr.bf16.mxu1 %v18597_v13  ;;  %v18440_v13 = vld [vmem:[%s27197_s3 + $0x2ad0] sm:$0xff] }
 0x5b5   :  { %v24679_v21 = vadd.f32 %v8928_v48, %v23887_v16  ;;  %v8969_v38 = vpop.f32.mrb[72].mxu1  ;;  %v8930_v60 = vpop.f32.mrb[73].mxu0  ;;  %v18610_v16 = vcombine.low %v18376_v11, %v18384_v0  ;;  %v18448_v11 = vld [vmem:[%s27197_s3 + $0x2b10] sm:$0xff] }
 0x5b6   :  { %v24688_v55 = vadd.f32 %v8969_v38, %v23896_v6  ;;  %v24691_v54 = vadd.f32 %v8930_v60, %v23899_v51  ;;  %v8971_v41 = vpop.f32.mrb[73].mxu1  ;;  %v8932_v17 = vpop.f32.mrb[74].mxu0  ;;  %10711 = vmatpush1.bf16.msra.mxu0 %v18594_v52  ;;  %v18629_v6 = vcombine.high %v18393_v8, %v18401_v39  ;;  %v18408_v51 = vld [vmem:[%s27197_s3 + $0x29d0] sm:$0xff]  ;;  %v18457_v52 = vld [vmem:[%s27197_s3 + $0x2b58] sm:$0x11]  ;;  %v18675_v48 = vcombine.high %v18440_v13, %v18448_v11 }
 0x5b7   :  { %v24694_v31 = vadd.f32 %v8971_v41, %v23902_v59  ;;  %v8973_v27 = vpop.f32.mrb[74].mxu1  ;;  %10752 = vmatpush1.bf16.msra.mxu1 %v18596_v33  ;;  %v8933_v45 = vpop.f32.mrb[75].mxu0  ;;  %10712 = vmatprep.subr.bf16.mxu0 %v18611_v12  ;;  %v18409_v59 = vld [vmem:[%s27197_s3 + $0x29d8] sm:$0xff]  ;;  %v18643_v37 = vcombine.high %v18408_v51, %v18416_v63  ;;  %v18642_v9 = vcombine.low %v18408_v51, %v18416_v63  ;;  %v18456_v0 = vld [vmem:[%s27197_s3 + $0x2b50] sm:$0x11]  ;;  %v18250_v63 = vld [vmem:[%s27197_s3 + $0x24e0] sm:$0xff] }
 0x5b8   :  { %v8974_v20 = vpop.f32.mrb[75].mxu1  ;;  %10753 = vmatprep.subr.bf16.mxu1 %v18613_v3  ;;  %v18645_v57 = vcombine.high %v18409_v59, %v18417_v53  ;;  %v18644_v23 = vcombine.low %v18409_v59, %v18417_v53  ;;  %v18658_v33 = vcombine.low %v18424_v5, %v18432_v10  ;;  %v18660_v12 = vcombine.low %v18425_v43, %v18433_v28  ;;  %v18242_v27 = vld [vmem:[%s27197_s3 + $0x24a0] sm:$0xff]  ;;  %v18235_v45 = vld [vmem:[%s27197_s3 + $0x2468] sm:$0xff] }
 0x5b9   :  { %v18691_v3 = vcombine.high %v18456_v0, %v18456_v0  ;;  %v18693_v30 = vcombine.high %v18457_v52, %v18457_v52  ;;  %v18674_v38 = vcombine.low %v18440_v13, %v18448_v11  ;;  %v18690_v60 = vcombine.low %v18456_v0, %v18456_v0  ;;  %v18258_v59 = vld [vmem:[%s27197_s3 + $0x2520] sm:$0xff]  ;;  %v18267_v28 = vld [vmem:[%s27197_s3 + $0x2568] sm:$0xff] }
 0x5ba   :  { %10713 = vmatpush1.bf16.msra.mxu0 %v18610_v16  ;;  %v18676_v8 = vcombine.low %v18441_v2, %v18449_v29  ;;  %v18692_v41 = vcombine.low %v18457_v52, %v18457_v52  ;;  %v18234_v16 = vld [vmem:[%s27197_s3 + $0x2460] sm:$0xff]  ;;  %v18283_v2 = vld [vmem:[%s27197_s3 + $0x25e8] sm:$0xff] }
 0x5bb   :  { %10754 = vmatpush1.bf16.msra.mxu1 %v18612_v14  ;;  %10714 = vmatprep.subr.bf16.mxu0 %v18627_v26  ;;  %v10580_v39 = vand.u32 %v18691_v3, %v20487_v62  ;;  %v10586_v17 = vand.u32 %v18693_v30, %v20487_v62  ;;  %v18243_v14 = vld [vmem:[%s27197_s3 + $0x24a8] sm:$0xff]  ;;  %v10577_v26 = vand.u32 %v18690_v60, %v20487_v62  ;;  %v18266_v5 = vld [vmem:[%s27197_s3 + $0x2560] sm:$0xff] }
 0x5bc   :  { %10755 = vmatprep.subr.bf16.mxu1 %v18629_v6  ;;  %v10583_v20 = vand.u32 %v18692_v41, %v20487_v62  ;;  %v18471_v6 = vcombine.high %v18234_v16, %v18242_v27  ;;  %v18473_v51 = vcombine.high %v18235_v45, %v18243_v14  ;;  %v18470_v53 = vcombine.low %v18234_v16, %v18242_v27  ;;  %v18274_v10 = vld [vmem:[%s27197_s3 + $0x25a0] sm:$0xff]  ;;  %v18291_v29 = vld [vmem:[%s27197_s3 + $0x2628] sm:$0xff] }
 0x5bd   :  { %v18282_v11 = vld [vmem:[%s27197_s3 + $0x25e0] sm:$0xff]  ;;  %v18502_v52 = vcombine.low %v18266_v5, %v18274_v10  ;;  %v18299_v30 = vld [vmem:[%s27197_s3 + $0x2668] sm:$0xff] }
 0x5be   :  { %10715 = vmatpush1.bf16.msra.mxu0 %v18626_v32  ;;  %v18251_v32 = vld [vmem:[%s27197_s3 + $0x24e8] sm:$0xff]  ;;  %v18290_v0 = vld [vmem:[%s27197_s3 + $0x2620] sm:$0xff] }
 0x5bf   :  { %10756 = vmatpush1.bf16.msra.mxu1 %v18628_v42  ;;  %10716 = vmatprep.subr.bf16.mxu0 %v18643_v37  ;;  %v18259_v42 = vld [vmem:[%s27197_s3 + $0x2528] sm:$0xff]  ;;  %v18472_v37 = vcombine.low %v18235_v45, %v18243_v14  ;;  %v18298_v3 = vld [vmem:[%s27197_s3 + $0x2660] sm:$0xff]  ;;  %v18518_v60 = vcombine.low %v18282_v11, %v18290_v0 }
 0x5c0   :  { %10757 = vmatprep.subr.bf16.mxu1 %v18645_v57  ;;  %v18487_v57 = vcombine.high %v18250_v63, %v18258_v59  ;;  %v18489_v43 = vcombine.high %v18251_v32, %v18259_v42  ;;  %v18322_v16 = vld [vmem:[%s27197_s3 + $0x2720] sm:$0xff]  ;;  %v18315_v27 = vld [vmem:[%s27197_s3 + $0x26e8] sm:$0xff] }
 0x5c1   :  { %v18323_v45 = vld [vmem:[%s27197_s3 + $0x2728] sm:$0xff] }
 0x5c2   :  { %10717 = vmatpush1.bf16.msra.mxu0 %v18642_v9  ;;  %v18275_v9 = vld [vmem:[%s27197_s3 + $0x25a8] sm:$0xff] }
 0x5c3   :  { %10758 = vmatpush1.bf16.msra.mxu1 %v18644_v23  ;;  %10718 = vmatprep.subr.bf16.mxu0 %v18659_v25  ;;  %v18486_v23 = vcombine.low %v18250_v63, %v18258_v59  ;;  %v18488_v25 = vcombine.low %v18251_v32, %v18259_v42  ;;  %v18505_v13 = vcombine.high %v18267_v28, %v18275_v9  ;;  %v18338_v63 = vld [vmem:[%s27197_s3 + $0x27a0] sm:$0xff]  ;;  %v18331_v59 = vld [vmem:[%s27197_s3 + $0x2768] sm:$0xff] }
 0x5c4   :  { %10759 = vmatprep.subr.bf16.mxu1 %v18661_v58  ;;  %v18503_v58 = vcombine.high %v18266_v5, %v18274_v10  ;;  %v18552_v42 = vcombine.low %v18315_v27, %v18323_v45  ;;  %v18346_v5 = vld [vmem:[%s27197_s3 + $0x27e0] sm:$0xff] }
 0x5c5   :  { %v18354_v10 = vld [vmem:[%s27197_s3 + $0x2820] sm:$0xff] }
 0x5c6   :  { %10719 = vmatpush1.bf16.msra.mxu0 %v18658_v33  ;;  %v18504_v33 = vcombine.low %v18267_v28, %v18275_v9  ;;  %v18355_v28 = vld [vmem:[%s27197_s3 + $0x2828] sm:$0xff] }
 0x5c7   :  { %10760 = vmatpush1.bf16.msra.mxu1 %v18660_v12  ;;  %10720 = vmatprep.subr.bf16.mxu0 %v18675_v48  ;;  %v18519_v12 = vcombine.high %v18282_v11, %v18290_v0  ;;  %v18521_v48 = vcombine.high %v18283_v2, %v18291_v29  ;;  %v18370_v11 = vld [vmem:[%s27197_s3 + $0x28a0] sm:$0xff]  ;;  %v18363_v0 = vld [vmem:[%s27197_s3 + $0x2868] sm:$0xff] }
 0x5c8   :  { %10761 = vmatprep.subr.bf16.mxu1 %v18677_v24  ;;  %v18306_v24 = vld [vmem:[%s27197_s3 + $0x26a0] sm:$0xff] }
 0x5c9   :  { %v18534_v14 = vcombine.low %v18298_v3, %v18306_v24 }
 0x5ca   :  { %10721 = vmatpush1.bf16.msra.mxu0 %v18674_v38  ;;  %v18307_v38 = vld [vmem:[%s27197_s3 + $0x26a8] sm:$0xff] }
 0x5cb   :  { %10762 = vmatpush1.bf16.msra.mxu1 %v18676_v8  ;;  %10722 = vmatprep.subr.bf16.mxu0 %v10580_v39  ;;  %v18520_v8 = vcombine.low %v18283_v2, %v18291_v29  ;;  %v18535_v39 = vcombine.high %v18298_v3, %v18306_v24  ;;  %v18537_v41 = vcombine.high %v18299_v30, %v18307_v38  ;;  %v18371_v2 = vld [vmem:[%s27197_s3 + $0x28a8] sm:$0xff]  ;;  %v18386_v3 = vld [vmem:[%s27197_s3 + $0x2920] sm:$0xff] }
 0x5cc   :  { %10763 = vmatprep.subr.bf16.mxu1 %v10586_v17  ;;  %v18314_v17 = vld [vmem:[%s27197_s3 + $0x26e0] sm:$0xff]  ;;  %v18582_v29 = vcombine.low %v18346_v5, %v18354_v10  ;;  %v18379_v24 = vld [vmem:[%s27197_s3 + $0x28e8] sm:$0xff] }
 0x5cd   :  { %v18550_v32 = vcombine.low %v18314_v17, %v18322_v16 }
 0x5ce   :  { %10723 = vmatpush1.bf16.msra.mxu0 %v10577_v26  ;;  %v18536_v26 = vcombine.low %v18299_v30, %v18307_v38  ;;  %v18387_v30 = vld [vmem:[%s27197_s3 + $0x2928] sm:$0xff] }
 0x5cf   :  { %10764 = vmatpush1.bf16.msra.mxu1 %v10583_v20  ;;  %10776 = vmatprep.subr.bf16.mxu0 %v18471_v6  ;;  %v18551_v20 = vcombine.high %v18314_v17, %v18322_v16  ;;  %v18553_v6 = vcombine.high %v18315_v27, %v18323_v45  ;;  %v18394_v17 = vld [vmem:[%s27197_s3 + $0x2960] sm:$0xff] }
 0x5d0   :  { %10817 = vmatprep.subr.bf16.mxu1 %v18473_v51  ;;  %v18330_v51 = vld [vmem:[%s27197_s3 + $0x2760] sm:$0xff] }
 0x5d1   :  { %10727 = vmatmul.mubr.bf16.vlgmr.msra.gmra.mrb[88].mxu0 %v24568_v46  ;;  %v18566_v9 = vcombine.low %v18330_v51, %v18338_v63  ;;  %v18402_v16 = vld [vmem:[%s27197_s3 + $0x29a0] sm:$0xff] }
 0x5d2   :  { %10768 = vmatmul.mubr.bf16.vlgmr.msra.gmra.mrb[88].mxu1 %v24568_v46  ;;  %10777 = vmatpush1.bf16.msra.mxu0 %v18470_v53  ;;  %v18339_v53 = vld [vmem:[%s27197_s3 + $0x27a8] sm:$0xff] }
 0x5d3   :  { %18706 = vmatprep.mubr.msk.bf16.mxu0 %vm1835_vm2, %v24375_v36  ;;  %10818 = vmatpush1.bf16.msra.mxu1 %v18472_v37  ;;  %v18567_v37 = vcombine.high %v18330_v51, %v18338_v63 }
 0x5d4   :  { %18707 = vmatprep.mubr.msk.bf16.mxu1 %vm1835_vm2, %v24375_v36  ;;  %10778 = vmatprep.subr.bf16.mxu0 %v18487_v57  ;;  %v18569_v57 = vcombine.high %v18331_v59, %v18339_v53 }
 0x5d5   :  { %10819 = vmatprep.subr.bf16.mxu1 %v18489_v43  ;;  %v18347_v43 = vld [vmem:[%s27197_s3 + $0x27e8] sm:$0xff] }
 0x5d6   :  { %10779 = vmatpush1.bf16.msra.mxu0 %v18486_v23  ;;  %v18568_v23 = vcombine.low %v18331_v59, %v18339_v53 }
 0x5d7   :  { %10820 = vmatpush1.bf16.msra.mxu1 %v18488_v25  ;;  %10780 = vmatprep.subr.bf16.mxu0 %v18503_v58  ;;  %v18583_v25 = vcombine.high %v18346_v5, %v18354_v10  ;;  %v18585_v58 = vcombine.high %v18347_v43, %v18355_v28  ;;  %v18418_v10 = vld [vmem:[%s27197_s3 + $0x2a20] sm:$0xff] }
 0x5d8   :  { %10821 = vmatprep.subr.bf16.mxu1 %v18505_v13  ;;  %v18362_v13 = vld [vmem:[%s27197_s3 + $0x2860] sm:$0xff] }
 0x5d9   :  { %v18598_v38 = vcombine.low %v18362_v13, %v18370_v11 }
 0x5da   :  { %10781 = vmatpush1.bf16.msra.mxu0 %v18502_v52  ;;  %v18584_v52 = vcombine.low %v18347_v43, %v18355_v28  ;;  %v18419_v43 = vld [vmem:[%s27197_s3 + $0x2a28] sm:$0xff]  ;;  %v18630_v28 = vcombine.low %v18394_v17, %v18402_v16 }
 0x5db   :  { %10822 = vmatpush1.bf16.msra.mxu1 %v18504_v33  ;;  %10782 = vmatprep.subr.bf16.mxu0 %v18519_v12  ;;  %v18599_v33 = vcombine.high %v18362_v13, %v18370_v11  ;;  %v18601_v12 = vcombine.high %v18363_v0, %v18371_v2  ;;  %v18434_v13 = vld [vmem:[%s27197_s3 + $0x2aa0] sm:$0xff]  ;;  %v18427_v11 = vld [vmem:[%s27197_s3 + $0x2a68] sm:$0xff] }
 0x5dc   :  { %10823 = vmatprep.subr.bf16.mxu1 %v18521_v48  ;;  %v18378_v48 = vld [vmem:[%s27197_s3 + $0x28e0] sm:$0xff] }
 0x5de   :  { %10783 = vmatpush1.bf16.msra.mxu0 %v18518_v60  ;;  %v18600_v60 = vcombine.low %v18363_v0, %v18371_v2  ;;  %v18435_v0 = vld [vmem:[%s27197_s3 + $0x2aa8] sm:$0xff] }
 0x5df   :  { %10824 = vmatpush1.bf16.msra.mxu1 %v18520_v8  ;;  %10784 = vmatprep.subr.bf16.mxu0 %v18535_v39  ;;  %v18615_v8 = vcombine.high %v18378_v48, %v18386_v3 }
 0x5e0   :  { %10825 = vmatprep.subr.bf16.mxu1 %v18537_v41  ;;  %v18617_v41 = vcombine.high %v18379_v24, %v18387_v30 }
 0x5e2   :  { %10785 = vmatpush1.bf16.msra.mxu0 %v18534_v14 }
 0x5e3   :  { %10826 = vmatpush1.bf16.msra.mxu1 %v18536_v26  ;;  %10786 = vmatprep.subr.bf16.mxu0 %v18551_v20  ;;  %v18395_v26 = vld [vmem:[%s27197_s3 + $0x2968] sm:$0xff] }
 0x5e4   :  { %10827 = vmatprep.subr.bf16.mxu1 %v18553_v6  ;;  %v18403_v20 = vld [vmem:[%s27197_s3 + $0x29a8] sm:$0xff] }
 0x5e6   :  { %10787 = vmatpush1.bf16.msra.mxu0 %v18550_v32 }
 0x5e7   :  { %10828 = vmatpush1.bf16.msra.mxu1 %v18552_v42  ;;  %10788 = vmatprep.subr.bf16.mxu0 %v18567_v37  ;;  %v18616_v37 = vcombine.low %v18379_v24, %v18387_v30  ;;  %v18443_v24 = vld [vmem:[%s27197_s3 + $0x2ae8] sm:$0xff] }
 0x5e8   :  { %10829 = vmatprep.subr.bf16.mxu1 %v18569_v57  ;;  %v18631_v57 = vcombine.high %v18394_v17, %v18402_v16  ;;  %v18451_v30 = vld [vmem:[%s27197_s3 + $0x2b28] sm:$0xff] }
 0x5e9   :  { %v18681_v17 = vcombine.high %v18443_v24, %v18451_v30 }
 0x5ea   :  { %10789 = vmatpush1.bf16.msra.mxu0 %v18566_v9  ;;  %v18632_v9 = vcombine.low %v18395_v26, %v18403_v20 }
 0x5eb   :  { %10830 = vmatpush1.bf16.msra.mxu1 %v18568_v23  ;;  %10790 = vmatprep.subr.bf16.mxu0 %v18583_v25 }
 0x5ec   :  { %10831 = vmatprep.subr.bf16.mxu1 %v18585_v58  ;;  %v18426_v58 = vld [vmem:[%s27197_s3 + $0x2a60] sm:$0xff] }
 0x5ee   :  { %10791 = vmatpush1.bf16.msra.mxu0 %v18582_v29 }
 0x5ef   :  { %10832 = vmatpush1.bf16.msra.mxu1 %v18584_v52  ;;  %10792 = vmatprep.subr.bf16.mxu0 %v18599_v33  ;;  %v18663_v52 = vcombine.high %v18426_v58, %v18434_v13  ;;  %v18665_v33 = vcombine.high %v18427_v11, %v18435_v0 }
 0x5f0   :  { %v9010_v39 = vpop.f32.mrb[76].mxu0  ;;  %10833 = vmatprep.subr.bf16.mxu1 %v18601_v12  ;;  %v18442_v12 = vld [vmem:[%s27197_s3 + $0x2ae0] sm:$0xff] }
 0x5f1   :  { %v24875_v27 = vadd.f32 %v9010_v39, %v24083_v47  ;;  %v9051_v45 = vpop.f32.mrb[76].mxu1  ;;  %v9012_v14 = vpop.f32.mrb[77].mxu0  ;;  %v18614_v47 = vcombine.low %v18378_v48, %v18386_v3  ;;  %v18450_v48 = vld [vmem:[%s27197_s3 + $0x2b20] sm:$0xff] }
 0x5f2   :  { %v24884_v6 = vadd.f32 %v9051_v45, %v24092_v1  ;;  %v24887_v51 = vadd.f32 %v9012_v14, %v24095_v50  ;;  %v9053_v63 = vpop.f32.mrb[77].mxu1  ;;  %v9014_v59 = vpop.f32.mrb[78].mxu0  ;;  %10793 = vmatpush1.bf16.msra.mxu0 %v18598_v38  ;;  %v18633_v1 = vcombine.high %v18395_v26, %v18403_v20  ;;  %v18410_v50 = vld [vmem:[%s27197_s3 + $0x29e0] sm:$0xff]  ;;  %v18459_v38 = vld [vmem:[%s27197_s3 + $0x2b68] sm:$0x11]  ;;  %v18679_v39 = vcombine.high %v18442_v12, %v18450_v48 }
 0x5f3   :  { %v24890_v53 = vadd.f32 %v9053_v63, %v24098_v7  ;;  %v9055_v32 = vpop.f32.mrb[78].mxu1  ;;  %10834 = vmatpush1.bf16.msra.mxu1 %v18600_v60  ;;  %v9015_v42 = vpop.f32.mrb[79].mxu0  ;;  %10794 = vmatprep.subr.bf16.mxu0 %v18615_v8  ;;  %v18411_v7 = vld [vmem:[%s27197_s3 + $0x29e8] sm:$0xff]  ;;  %v18647_v23 = vcombine.high %v18410_v50, %v18418_v10  ;;  %v18646_v2 = vcombine.low %v18410_v50, %v18418_v10  ;;  %v18458_v3 = vld [vmem:[%s27197_s3 + $0x2b60] sm:$0x11]  ;;  %v18252_v10 = vld [vmem:[%s27197_s3 + $0x24f0] sm:$0xff] }
 0x5f4   :  { %v9056_v5 = vpop.f32.mrb[79].mxu1  ;;  %10835 = vmatprep.subr.bf16.mxu1 %v18617_v41  ;;  %v18649_v25 = vcombine.high %v18411_v7, %v18419_v43  ;;  %v18648_v29 = vcombine.low %v18411_v7, %v18419_v43  ;;  %v18662_v60 = vcombine.low %v18426_v58, %v18434_v13  ;;  %v18664_v8 = vcombine.low %v18427_v11, %v18435_v0  ;;  %v18244_v32 = vld [vmem:[%s27197_s3 + $0x24b0] sm:$0xff]  ;;  %v18237_v42 = vld [vmem:[%s27197_s3 + $0x2478] sm:$0xff] }
 0x5f5   :  { %v18695_v41 = vcombine.high %v18458_v3, %v18458_v3  ;;  %v18697_v16 = vcombine.high %v18459_v38, %v18459_v38  ;;  %v18678_v45 = vcombine.low %v18442_v12, %v18450_v48  ;;  %v18694_v14 = vcombine.low %v18458_v3, %v18458_v3  ;;  %v18260_v7 = vld [vmem:[%s27197_s3 + $0x2530] sm:$0xff]  ;;  %v18269_v0 = vld [vmem:[%s27197_s3 + $0x2578] sm:$0xff] }
 0x5f6   :  { %10795 = vmatpush1.bf16.msra.mxu0 %v18614_v47  ;;  %v18680_v26 = vcombine.low %v18443_v24, %v18451_v30  ;;  %v18696_v63 = vcombine.low %v18459_v38, %v18459_v38  ;;  %v18236_v47 = vld [vmem:[%s27197_s3 + $0x2470] sm:$0xff]  ;;  %v18285_v24 = vld [vmem:[%s27197_s3 + $0x25f8] sm:$0xff] }
 0x5f7   :  { %10836 = vmatpush1.bf16.msra.mxu1 %v18616_v37  ;;  %10796 = vmatprep.subr.bf16.mxu0 %v18631_v57  ;;  %v10592_v20 = vand.u32 %v18695_v41, %v20487_v62  ;;  %v10598_v59 = vand.u32 %v18697_v16, %v20487_v62  ;;  %v18245_v37 = vld [vmem:[%s27197_s3 + $0x24b8] sm:$0xff]  ;;  %v10589_v57 = vand.u32 %v18694_v14, %v20487_v62  ;;  %v18268_v58 = vld [vmem:[%s27197_s3 + $0x2570] sm:$0xff] }
 0x5f8   :  { %10837 = vmatprep.subr.bf16.mxu1 %v18633_v1  ;;  %v10595_v5 = vand.u32 %v18696_v63, %v20487_v62  ;;  %v18475_v1 = vcombine.high %v18236_v47, %v18244_v32  ;;  %v18477_v50 = vcombine.high %v18237_v42, %v18245_v37  ;;  %v18474_v43 = vcombine.low %v18236_v47, %v18244_v32  ;;  %v18276_v13 = vld [vmem:[%s27197_s3 + $0x25b0] sm:$0xff]  ;;  %v18293_v30 = vld [vmem:[%s27197_s3 + $0x2638] sm:$0xff] }
 0x5f9   :  { %v18284_v48 = vld [vmem:[%s27197_s3 + $0x25f0] sm:$0xff]  ;;  %v18309_v16 = vld [vmem:[%s27197_s3 + $0x26b8] sm:$0xff]  ;;  %v18524_v14 = vcombine.low %v18285_v24, %v18293_v30 }
 0x5fa   :  { %10797 = vmatpush1.bf16.msra.mxu0 %v18630_v28  ;;  %v18253_v28 = vld [vmem:[%s27197_s3 + $0x24f8] sm:$0xff]  ;;  %v18292_v3 = vld [vmem:[%s27197_s3 + $0x2630] sm:$0xff] }
 0x5fb   :  { %10838 = vmatpush1.bf16.msra.mxu1 %v18632_v9  ;;  %10798 = vmatprep.subr.bf16.mxu0 %v18647_v23  ;;  %v18261_v9 = vld [vmem:[%s27197_s3 + $0x2538] sm:$0xff]  ;;  %v18476_v23 = vcombine.low %v18237_v42, %v18245_v37  ;;  %v18308_v41 = vld [vmem:[%s27197_s3 + $0x26b0] sm:$0xff] }
 0x5fc   :  { %10839 = vmatprep.subr.bf16.mxu1 %v18649_v25  ;;  %v18491_v25 = vcombine.high %v18252_v10, %v18260_v7  ;;  %v18493_v11 = vcombine.high %v18253_v28, %v18261_v9  ;;  %v18316_v63 = vld [vmem:[%s27197_s3 + $0x26f0] sm:$0xff]  ;;  %v18317_v47 = vld [vmem:[%s27197_s3 + $0x26f8] sm:$0xff] }
 0x5fd   :  { %v18325_v32 = vld [vmem:[%s27197_s3 + $0x2738] sm:$0xff] }
 0x5fe   :  { %10799 = vmatpush1.bf16.msra.mxu0 %v18646_v2  ;;  %v18277_v2 = vld [vmem:[%s27197_s3 + $0x25b8] sm:$0xff] }
 0x5ff   :  { %10840 = vmatpush1.bf16.msra.mxu1 %v18648_v29  ;;  %10800 = vmatprep.subr.bf16.mxu0 %v18663_v52  ;;  %v18490_v29 = vcombine.low %v18252_v10, %v18260_v7  ;;  %v18492_v52 = vcombine.low %v18253_v28, %v18261_v9  ;;  %v18509_v12 = vcombine.high %v18269_v0, %v18277_v2  ;;  %v18333_v10 = vld [vmem:[%s27197_s3 + $0x2778] sm:$0xff] }
 0x600   :  { %10841 = vmatprep.subr.bf16.mxu1 %v18665_v33  ;;  %v18507_v33 = vcombine.high %v18268_v58, %v18276_v13  ;;  %v18508_v38 = vcombine.low %v18269_v0, %v18277_v2  ;;  %v18341_v7 = vld [vmem:[%s27197_s3 + $0x27b8] sm:$0xff]  ;;  %v18556_v28 = vcombine.low %v18317_v47, %v18325_v32 }
 0x601   :  { %v18572_v2 = vcombine.low %v18333_v10, %v18341_v7 }
 0x602   :  { %10801 = vmatpush1.bf16.msra.mxu0 %v18662_v60  ;;  %v18523_v60 = vcombine.high %v18284_v48, %v18292_v3 }
 0x603   :  { %10842 = vmatpush1.bf16.msra.mxu1 %v18664_v8  ;;  %10802 = vmatprep.subr.bf16.mxu0 %v18679_v39  ;;  %v18525_v8 = vcombine.high %v18285_v24, %v18293_v30  ;;  %v18300_v39 = vld [vmem:[%s27197_s3 + $0x2670] sm:$0xff] }
 0x604   :  { %10843 = vmatprep.subr.bf16.mxu1 %v18681_v17  ;;  %v18301_v17 = vld [vmem:[%s27197_s3 + $0x2678] sm:$0xff]  ;;  %v18538_v42 = vcombine.low %v18300_v39, %v18308_v41 }
 0x605   :  { %v18540_v37 = vcombine.low %v18301_v17, %v18309_v16 }
 0x606   :  { %10803 = vmatpush1.bf16.msra.mxu0 %v18678_v45  ;;  %v18522_v45 = vcombine.low %v18284_v48, %v18292_v3  ;;  %v18365_v48 = vld [vmem:[%s27197_s3 + $0x2878] sm:$0xff] }
 0x607   :  { %10844 = vmatpush1.bf16.msra.mxu1 %v18680_v26  ;;  %10804 = vmatprep.subr.bf16.mxu0 %v10592_v20  ;;  %v18539_v26 = vcombine.high %v18300_v39, %v18308_v41  ;;  %v18541_v20 = vcombine.high %v18301_v17, %v18309_v16  ;;  %v18373_v3 = vld [vmem:[%s27197_s3 + $0x28b8] sm:$0xff] }
 0x608   :  { %10845 = vmatprep.subr.bf16.mxu1 %v10598_v59  ;;  %v18324_v59 = vld [vmem:[%s27197_s3 + $0x2730] sm:$0xff]  ;;  %v18381_v39 = vld [vmem:[%s27197_s3 + $0x28f8] sm:$0xff]  ;;  %v18604_v16 = vcombine.low %v18365_v48, %v18373_v3 }
 0x609   :  { %v18389_v41 = vld [vmem:[%s27197_s3 + $0x2938] sm:$0xff] }
 0x60a   :  { %10805 = vmatpush1.bf16.msra.mxu0 %v10589_v57  ;;  %v18555_v57 = vcombine.high %v18316_v63, %v18324_v59 }
 0x60b   :  { %10846 = vmatpush1.bf16.msra.mxu1 %v10595_v5  ;;  %10858 = vmatprep.subr.bf16.mxu0 %v18475_v1  ;;  %v18557_v5 = vcombine.high %v18317_v47, %v18325_v32  ;;  %v18332_v1 = vld [vmem:[%s27197_s3 + $0x2770] sm:$0xff] }
 0x60c   :  { %10899 = vmatprep.subr.bf16.mxu1 %v18477_v50  ;;  %v18340_v50 = vld [vmem:[%s27197_s3 + $0x27b0] sm:$0xff] }
 0x60d   :  { %10809 = vmatmul.mubr.bf16.vlgmr.msra.gmra.mrb[92].mxu0 %v24568_v46  ;;  %v18571_v9 = vcombine.high %v18332_v1, %v18340_v50  ;;  %v18570_v0 = vcombine.low %v18332_v1, %v18340_v50 }
 0x60e   :  { %10850 = vmatmul.mubr.bf16.vlgmr.msra.gmra.mrb[92].mxu1 %v24568_v46  ;;  %10859 = vmatpush1.bf16.msra.mxu0 %v18474_v43  ;;  %v18554_v43 = vcombine.low %v18316_v63, %v18324_v59  ;;  %v18404_v63 = vld [vmem:[%s27197_s3 + $0x29b0] sm:$0xff] }
 0x60f   :  { %18708 = vmatprep.mubr.msk.bf16.mxu0 %vm1835_vm2, %v24375_v36  ;;  %10900 = vmatpush1.bf16.msra.mxu1 %v18476_v23  ;;  %v18573_v23 = vcombine.high %v18333_v10, %v18341_v7 }
 0x610   :  { %18709 = vmatprep.mubr.msk.bf16.mxu1 %vm1835_vm2, %v24375_v36  ;;  %10860 = vmatprep.subr.bf16.mxu0 %v18491_v25  ;;  %v18506_v36 = vcombine.low %v18268_v58, %v18276_v13  ;;  %v18348_v25 = vld [vmem:[%s27197_s3 + $0x27f0] sm:$0xff]  ;;  %v18349_v13 = vld [vmem:[%s27197_s3 + $0x27f8] sm:$0xff] }
 0x611   :  { %10901 = vmatprep.subr.bf16.mxu1 %v18493_v11  ;;  %v18356_v58 = vld [vmem:[%s27197_s3 + $0x2830] sm:$0xff]  ;;  %v18357_v11 = vld [vmem:[%s27197_s3 + $0x2838] sm:$0xff] }
 0x612   :  { %10861 = vmatpush1.bf16.msra.mxu0 %v18490_v29  ;;  %v18587_v29 = vcombine.high %v18348_v25, %v18356_v58  ;;  %v18586_v24 = vcombine.low %v18348_v25, %v18356_v58  ;;  %v18588_v30 = vcombine.low %v18349_v13, %v18357_v11  ;;  %v18420_v25 = vld [vmem:[%s27197_s3 + $0x2a30] sm:$0xff]  ;;  %v18421_v58 = vld [vmem:[%s27197_s3 + $0x2a38] sm:$0xff] }
 0x613   :  { %10902 = vmatpush1.bf16.msra.mxu1 %v18492_v52  ;;  %10862 = vmatprep.subr.bf16.mxu0 %v18507_v33  ;;  %v18589_v52 = vcombine.high %v18349_v13, %v18357_v11  ;;  %v18364_v33 = vld [vmem:[%s27197_s3 + $0x2870] sm:$0xff] }
 0x614   :  { %10903 = vmatprep.subr.bf16.mxu1 %v18509_v12  ;;  %v18372_v12 = vld [vmem:[%s27197_s3 + $0x28b0] sm:$0xff] }
 0x615   :  { %v18602_v17 = vcombine.low %v18364_v33, %v18372_v12 }
 0x616   :  { %10863 = vmatpush1.bf16.msra.mxu0 %v18506_v36  ;;  %v18603_v36 = vcombine.high %v18364_v33, %v18372_v12  ;;  %v18429_v33 = vld [vmem:[%s27197_s3 + $0x2a78] sm:$0xff] }
 0x617   :  { %10904 = vmatpush1.bf16.msra.mxu1 %v18508_v38  ;;  %10864 = vmatprep.subr.bf16.mxu0 %v18523_v60  ;;  %v18605_v38 = vcombine.high %v18365_v48, %v18373_v3  ;;  %v18380_v60 = vld [vmem:[%s27197_s3 + $0x28f0] sm:$0xff]  ;;  %v18437_v12 = vld [vmem:[%s27197_s3 + $0x2ab8] sm:$0xff] }
 0x618   :  { %10905 = vmatprep.subr.bf16.mxu1 %v18525_v8  ;;  %v18388_v8 = vld [vmem:[%s27197_s3 + $0x2930] sm:$0xff] }
 0x61a   :  { %10865 = vmatpush1.bf16.msra.mxu0 %v18522_v45  ;;  %v18619_v45 = vcombine.high %v18380_v60, %v18388_v8 }
 0x61b   :  { %10906 = vmatpush1.bf16.msra.mxu1 %v18524_v14  ;;  %10866 = vmatprep.subr.bf16.mxu0 %v18539_v26  ;;  %v18621_v26 = vcombine.high %v18381_v39, %v18389_v41 }
 0x61c   :  { %10907 = vmatprep.subr.bf16.mxu1 %v18541_v20  ;;  %v18396_v20 = vld [vmem:[%s27197_s3 + $0x2970] sm:$0xff] }
 0x61d   :  { %v18634_v13 = vcombine.low %v18396_v20, %v18404_v63 }
 0x61e   :  { %10867 = vmatpush1.bf16.msra.mxu0 %v18538_v42  ;;  %v18397_v42 = vld [vmem:[%s27197_s3 + $0x2978] sm:$0xff] }
 0x61f   :  { %10908 = vmatpush1.bf16.msra.mxu1 %v18540_v37  ;;  %10868 = vmatprep.subr.bf16.mxu0 %v18555_v57  ;;  %v18405_v37 = vld [vmem:[%s27197_s3 + $0x29b8] sm:$0xff] }
 0x620   :  { %10909 = vmatprep.subr.bf16.mxu1 %v18557_v5  ;;  %v18636_v11 = vcombine.low %v18397_v42, %v18405_v37 }
 0x622   :  { %10869 = vmatpush1.bf16.msra.mxu0 %v18554_v43 }
 0x623   :  { %10910 = vmatpush1.bf16.msra.mxu1 %v18556_v28  ;;  %10870 = vmatprep.subr.bf16.mxu0 %v18571_v9  ;;  %v18620_v28 = vcombine.low %v18381_v39, %v18389_v41  ;;  %v18635_v9 = vcombine.high %v18396_v20, %v18404_v63  ;;  %v18453_v39 = vld [vmem:[%s27197_s3 + $0x2b38] sm:$0xff] }
 0x624   :  { %10911 = vmatprep.subr.bf16.mxu1 %v18573_v23  ;;  %v18461_v41 = vld [vmem:[%s27197_s3 + $0x2b78] sm:$0x11] }
 0x625   :  { %v18701_v20 = vcombine.high %v18461_v41, %v18461_v41 }
 0x626   :  { %10871 = vmatpush1.bf16.msra.mxu0 %v18570_v0 }
 0x627   :  { %10912 = vmatpush1.bf16.msra.mxu1 %v18572_v2  ;;  %10872 = vmatprep.subr.bf16.mxu0 %v18587_v29  ;;  %v18428_v29 = vld [vmem:[%s27197_s3 + $0x2a70] sm:$0xff] }
 0x628   :  { %10913 = vmatprep.subr.bf16.mxu1 %v18589_v52  ;;  %v18436_v52 = vld [vmem:[%s27197_s3 + $0x2ab0] sm:$0xff] }
 0x62a   :  { %10873 = vmatpush1.bf16.msra.mxu0 %v18586_v24  ;;  %v18667_v24 = vcombine.high %v18428_v29, %v18436_v52 }
 0x62b   :  { %10914 = vmatpush1.bf16.msra.mxu1 %v18588_v30  ;;  %10874 = vmatprep.subr.bf16.mxu0 %v18603_v36  ;;  %v18669_v30 = vcombine.high %v18429_v33, %v18437_v12  ;;  %v18444_v36 = vld [vmem:[%s27197_s3 + $0x2af0] sm:$0xff] }
 0x62c   :  { %v9092_v14 = vpop.f32.mrb[80].mxu0  ;;  %10915 = vmatprep.subr.bf16.mxu1 %v18605_v38  ;;  %v18452_v38 = vld [vmem:[%s27197_s3 + $0x2b30] sm:$0xff] }
 0x62d   :  { %v25071_v59 = vadd.f32 %v9092_v14, %v24279_v18  ;;  %v9133_v47 = vpop.f32.mrb[80].mxu1  ;;  %v9094_v32 = vpop.f32.mrb[81].mxu0  ;;  %v18618_v18 = vcombine.low %v18380_v60, %v18388_v8  ;;  %v18460_v60 = vld [vmem:[%s27197_s3 + $0x2b70] sm:$0x11]  ;;  %v18445_v8 = vld [vmem:[%s27197_s3 + $0x2af8] sm:$0xff]  ;;  %v18682_v63 = vcombine.low %v18444_v36, %v18452_v38 }
 0x62e   :  { %v25080_v57 = vadd.f32 %v9133_v47, %v24288_v4  ;;  %v25083_v5 = vadd.f32 %v9094_v32, %v24291_v19  ;;  %v9135_v1 = vpop.f32.mrb[81].mxu1  ;;  %v9096_v50 = vpop.f32.mrb[82].mxu0  ;;  %10875 = vmatpush1.bf16.msra.mxu0 %v18602_v17  ;;  %v18637_v4 = vcombine.high %v18397_v42, %v18405_v37  ;;  %v18412_v19 = vld [vmem:[%s27197_s3 + $0x29f0] sm:$0xff]  ;;  %v18666_v17 = vcombine.low %v18428_v29, %v18436_v52  ;;  %v18750_v29 = vld [vmem:[%s27197_s3 + $0x2cc0] sm:$0xff] }
 0x62f   :  { %v25086_v10 = vadd.f32 %v9135_v1, %v24294_v61  ;;  %v9137_v7 = vpop.f32.mrb[82].mxu1  ;;  %10916 = vmatpush1.bf16.msra.mxu1 %v18604_v16  ;;  %v9097_v43 = vpop.f32.mrb[83].mxu0  ;;  %10876 = vmatprep.subr.bf16.mxu0 %v18619_v45  ;;  %v18413_v61 = vld [vmem:[%s27197_s3 + $0x29f8] sm:$0xff]  ;;  %v18651_v0 = vcombine.high %v18412_v19, %v18420_v25  ;;  %v18650_v48 = vcombine.low %v18412_v19, %v18420_v25  ;;  %v18710_v50 = vld [vmem:[%s27197_s3 + $0x2b80] sm:$0xff] }
 0x630   :  { %v9138_v23 = vpop.f32.mrb[83].mxu1  ;;  %10917 = vmatprep.subr.bf16.mxu1 %v18621_v26  ;;  %v18653_v2 = vcombine.high %v18413_v61, %v18421_v58  ;;  %v18652_v3 = vcombine.low %v18413_v61, %v18421_v58  ;;  %v18668_v16 = vcombine.low %v18429_v33, %v18437_v12  ;;  %v18683_v45 = vcombine.high %v18444_v36, %v18452_v38  ;;  %v18711_v7 = vld [vmem:[%s27197_s3 + $0x2b88] sm:$0xff]  ;;  %v18726_v19 = vld [vmem:[%s27197_s3 + $0x2c00] sm:$0xff] }
 0x631   :  { %v18699_v14 = vcombine.high %v18460_v60, %v18460_v60  ;;  %v18685_v26 = vcombine.high %v18445_v8, %v18453_v39  ;;  %v18698_v47 = vcombine.low %v18460_v60, %v18460_v60  ;;  %v18684_v32 = vcombine.low %v18445_v8, %v18453_v39  ;;  %v18719_v43 = vld [vmem:[%s27197_s3 + $0x2bc8] sm:$0xff]  ;;  %v18734_v25 = vld [vmem:[%s27197_s3 + $0x2c40] sm:$0xff] }
 0x632   :  { %10877 = vmatpush1.bf16.msra.mxu0 %v18618_v18  ;;  %v18700_v37 = vcombine.low %v18461_v41, %v18461_v41  ;;  %v10610_v1 = vand.u32 %v18701_v20, %v20487_v62  ;;  %v18718_v18 = vld [vmem:[%s27197_s3 + $0x2bc0] sm:$0xff]  ;;  %v18727_v58 = vld [vmem:[%s27197_s3 + $0x2c08] sm:$0xff]  ;;  %v25167_v52 = vpack.c.bf16 %v20690_v34, %v20690_v34 }
 0x633   :  { %10918 = vmatpush1.bf16.msra.mxu1 %v18620_v28  ;;  %10878 = vmatprep.subr.bf16.mxu0 %v18635_v9  ;;  %v10604_v42 = vand.u32 %v18699_v14, %v20487_v62  ;;  %v10601_v28 = vand.u32 %v18698_v47, %v20487_v62  ;;  %v18943_v23 = vcombine.high %v18710_v50, %v18718_v18  ;;  %v18743_v12 = vld [vmem:[%s27197_s3 + $0x2c88] sm:$0xff]  ;;  %v18758_v36 = vld [vmem:[%s27197_s3 + $0x2d00] sm:$0xff] }
 0x634   :  { %10919 = vmatprep.subr.bf16.mxu1 %v18637_v4  ;;  %v10607_v9 = vand.u32 %v18700_v37, %v20487_v62  ;;  %v18945_v4 = vcombine.high %v18711_v7, %v18719_v43  ;;  %v18942_v61 = vcombine.low %v18710_v50, %v18718_v18  ;;  %v18759_v38 = vld [vmem:[%s27197_s3 + $0x2d08] sm:$0xff]  ;;  %v18798_v37 = vld [vmem:[%s27197_s3 + $0x2e40] sm:$0xff] }
 0x635   :  { %v18767_v60 = vld [vmem:[%s27197_s3 + $0x2d48] sm:$0xff] }
 0x636   :  { %10879 = vmatpush1.bf16.msra.mxu0 %v18634_v13  ;;  %v18735_v13 = vld [vmem:[%s27197_s3 + $0x2c48] sm:$0xff] }
 0x637   :  { %10920 = vmatpush1.bf16.msra.mxu1 %v18636_v11  ;;  %10880 = vmatprep.subr.bf16.mxu0 %v18651_v0  ;;  %v18944_v11 = vcombine.low %v18711_v7, %v18719_v43  ;;  %v18959_v0 = vcombine.high %v18726_v19, %v18734_v25  ;;  %v18961_v33 = vcombine.high %v18727_v58, %v18735_v13  ;;  %v18775_v14 = vld [vmem:[%s27197_s3 + $0x2d88] sm:$0xff] }
 0x638   :  { %10921 = vmatprep.subr.bf16.mxu1 %v18653_v2  ;;  %v18742_v2 = vld [vmem:[%s27197_s3 + $0x2c80] sm:$0xff]  ;;  %v18799_v50 = vld [vmem:[%s27197_s3 + $0x2e48] sm:$0xff] }
 0x639   :  { %v18975_v34 = vcombine.high %v18742_v2, %v18750_v29  ;;  %v18974_v8 = vcombine.low %v18742_v2, %v18750_v29  ;;  %v18823_v2 = vld [vmem:[%s27197_s3 + $0x2f08] sm:$0xff] }
 0x63a   :  { %10881 = vmatpush1.bf16.msra.mxu0 %v18650_v48  ;;  %v18751_v48 = vld [vmem:[%s27197_s3 + $0x2cc8] sm:$0xff] }
 0x63b   :  { %10922 = vmatpush1.bf16.msra.mxu1 %v18652_v3  ;;  %10882 = vmatprep.subr.bf16.mxu0 %v18667_v24  ;;  %v18958_v3 = vcombine.low %v18726_v19, %v18734_v25  ;;  %v18960_v24 = vcombine.low %v18727_v58, %v18735_v13  ;;  %v18976_v39 = vcombine.low %v18743_v12, %v18751_v48  ;;  %v18815_v19 = vld [vmem:[%s27197_s3 + $0x2ec8] sm:$0xff] }
 0x63c   :  { %10923 = vmatprep.subr.bf16.mxu1 %v18669_v30  ;;  %v18977_v30 = vcombine.high %v18743_v12, %v18751_v48  ;;  %v18831_v29 = vld [vmem:[%s27197_s3 + $0x2f48] sm:$0xff] }
 0x63e   :  { %10883 = vmatpush1.bf16.msra.mxu0 %v18666_v17  ;;  %v18993_v17 = vcombine.high %v18759_v38, %v18767_v60 }
 0x63f   :  { %10924 = vmatpush1.bf16.msra.mxu1 %v18668_v16  ;;  %10884 = vmatprep.subr.bf16.mxu0 %v18683_v45  ;;  %v18774_v16 = vld [vmem:[%s27197_s3 + $0x2d80] sm:$0xff] }
 0x640   :  { %10925 = vmatprep.subr.bf16.mxu1 %v18685_v26  ;;  %v18782_v45 = vld [vmem:[%s27197_s3 + $0x2dc0] sm:$0xff]  ;;  %v18783_v26 = vld [vmem:[%s27197_s3 + $0x2dc8] sm:$0xff] }
 0x641   :  { %v19007_v47 = vcombine.high %v18774_v16, %v18782_v45  ;;  %v19006_v18 = vcombine.low %v18774_v16, %v18782_v45  ;;  %v19008_v7 = vcombine.low %v18775_v14, %v18783_v26  ;;  %v18863_v16 = vld [vmem:[%s27197_s3 + $0x3048] sm:$0xff] }
 0x642   :  { %10885 = vmatpush1.bf16.msra.mxu0 %v18682_v63  ;;  %v18992_v63 = vcombine.low %v18759_v38, %v18767_v60  ;;  %v19056_v38 = vcombine.low %v18823_v2, %v18831_v29 }
 0x643   :  { %10926 = vmatpush1.bf16.msra.mxu1 %v18684_v32  ;;  %10886 = vmatprep.subr.bf16.mxu0 %v10604_v42  ;;  %v19009_v32 = vcombine.high %v18775_v14, %v18783_v26  ;;  %v18790_v42 = vld [vmem:[%s27197_s3 + $0x2e00] sm:$0xff] }
 0x644   :  { %10927 = vmatprep.subr.bf16.mxu1 %v10610_v1  ;;  %v18791_v1 = vld [vmem:[%s27197_s3 + $0x2e08] sm:$0xff]  ;;  %v19023_v43 = vcombine.high %v18790_v42, %v18798_v37  ;;  %v19022_v25 = vcombine.low %v18790_v42, %v18798_v37 }
 0x646   :  { %10887 = vmatpush1.bf16.msra.mxu0 %v10601_v28  ;;  %v19025_v28 = vcombine.high %v18791_v1, %v18799_v50 }
 0x647   :  { %10928 = vmatpush1.bf16.msra.mxu1 %v10607_v9  ;;  %12412 = vmatprep.subr.bf16.mxu0 %v18943_v23  ;;  %v18806_v9 = vld [vmem:[%s27197_s3 + $0x2e80] sm:$0xff] }
 0x648   :  { %12453 = vmatprep.subr.bf16.mxu1 %v18945_v4  ;;  %v18814_v23 = vld [vmem:[%s27197_s3 + $0x2ec0] sm:$0xff]  ;;  %v18807_v4 = vld [vmem:[%s27197_s3 + $0x2e88] sm:$0xff] }
 0x649   :  { %10891 = vmatmul.mubr.bf16.vlgmr.msra.gmra.mrb[96].mxu0 %v24568_v46  ;;  %v19039_v58 = vcombine.high %v18806_v9, %v18814_v23  ;;  %v19041_v13 = vcombine.high %v18807_v4, %v18815_v19  ;;  %v19040_v12 = vcombine.low %v18807_v4, %v18815_v19 }
 0x64a   :  { %10932 = vmatmul.mubr.bf16.vlgmr.msra.gmra.mrb[96].mxu1 %v24568_v46  ;;  %12413 = vmatpush1.bf16.msra.mxu0 %v18942_v61  ;;  %v18766_v46 = vld [vmem:[%s27197_s3 + $0x2d40] sm:$0xff]  ;;  %v19024_v61 = vcombine.low %v18791_v1, %v18799_v50  ;;  %v18871_v50 = vld [vmem:[%s27197_s3 + $0x3088] sm:$0xff] }
 0x64b   :  { %19182 = vmatprep.mubr.msk.bf16.mxu0 %vm1835_vm2, %v25167_v52  ;;  %12454 = vmatpush1.bf16.msra.mxu1 %v18944_v11  ;;  %v18991_v41 = vcombine.high %v18758_v36, %v18766_v46  ;;  %v18990_v20 = vcombine.low %v18758_v36, %v18766_v46  ;;  %v18822_v11 = vld [vmem:[%s27197_s3 + $0x2f00] sm:$0xff]  ;;  %v18847_v36 = vld [vmem:[%s27197_s3 + $0x2fc8] sm:$0xff] }
 0x64c   :  { %19183 = vmatprep.mubr.msk.bf16.mxu1 %vm1835_vm2, %v25167_v52  ;;  %12414 = vmatprep.subr.bf16.mxu0 %v18959_v0  ;;  %v18830_v0 = vld [vmem:[%s27197_s3 + $0x2f40] sm:$0xff] }
 0x64d   :  { %12455 = vmatprep.subr.bf16.mxu1 %v18961_v33  ;;  %v19038_v33 = vcombine.low %v18806_v9, %v18814_v23  ;;  %v19055_v48 = vcombine.high %v18822_v11, %v18830_v0  ;;  %v19054_v46 = vcombine.low %v18822_v11, %v18830_v0  ;;  %v18895_v11 = vld [vmem:[%s27197_s3 + $0x3148] sm:$0xff] }
 0x64e   :  { %12415 = vmatpush1.bf16.msra.mxu0 %v18958_v3  ;;  %v19057_v3 = vcombine.high %v18823_v2, %v18831_v29 }
 0x64f   :  { %12456 = vmatpush1.bf16.msra.mxu1 %v18960_v24  ;;  %12416 = vmatprep.subr.bf16.mxu0 %v18975_v34  ;;  %v18838_v24 = vld [vmem:[%s27197_s3 + $0x2f80] sm:$0xff] }
 0x650   :  { %12457 = vmatprep.subr.bf16.mxu1 %v18977_v30  ;;  %v18846_v34 = vld [vmem:[%s27197_s3 + $0x2fc0] sm:$0xff]  ;;  %v18839_v30 = vld [vmem:[%s27197_s3 + $0x2f88] sm:$0xff] }
 0x651   :  { %v19071_v60 = vcombine.high %v18838_v24, %v18846_v34  ;;  %v19070_v45 = vcombine.low %v18838_v24, %v18846_v34  ;;  %v19072_v14 = vcombine.low %v18839_v30, %v18847_v36  ;;  %v18911_v24 = vld [vmem:[%s27197_s3 + $0x31c8] sm:$0xff] }
 0x652   :  { %12417 = vmatpush1.bf16.msra.mxu0 %v18974_v8  ;;  %v19073_v8 = vcombine.high %v18839_v30, %v18847_v36 }
 0x653   :  { %12458 = vmatpush1.bf16.msra.mxu1 %v18976_v39  ;;  %12418 = vmatprep.subr.bf16.mxu0 %v18991_v41  ;;  %v18854_v39 = vld [vmem:[%s27197_s3 + $0x3000] sm:$0xff] }
 0x654   :  { %12459 = vmatprep.subr.bf16.mxu1 %v18993_v17  ;;  %v18862_v41 = vld [vmem:[%s27197_s3 + $0x3040] sm:$0xff]  ;;  %v18855_v17 = vld [vmem:[%s27197_s3 + $0x3008] sm:$0xff] }
 0x655   :  { %v19087_v26 = vcombine.high %v18854_v39, %v18862_v41 }
 0x656   :  { %12419 = vmatpush1.bf16.msra.mxu0 %v18990_v20 }
 0x657   :  { %12460 = vmatpush1.bf16.msra.mxu1 %v18992_v63  ;;  %12420 = vmatprep.subr.bf16.mxu0 %v19007_v47  ;;  %v19089_v63 = vcombine.high %v18855_v17, %v18863_v16  ;;  %v18870_v47 = vld [vmem:[%s27197_s3 + $0x3080] sm:$0xff] }
 0x658   :  { %12461 = vmatprep.subr.bf16.mxu1 %v19009_v32  ;;  %v18878_v32 = vld [vmem:[%s27197_s3 + $0x30c0] sm:$0xff] }
 0x659   :  { %v19102_v0 = vcombine.low %v18870_v47, %v18878_v32 }
 0x65a   :  { %12421 = vmatpush1.bf16.msra.mxu0 %v19006_v18  ;;  %v18879_v18 = vld [vmem:[%s27197_s3 + $0x30c8] sm:$0xff] }
 0x65b   :  { %12462 = vmatpush1.bf16.msra.mxu1 %v19008_v7  ;;  %12422 = vmatprep.subr.bf16.mxu0 %v19023_v43  ;;  %v19104_v2 = vcombine.low %v18871_v50, %v18879_v18 }
 0x65c   :  { %12463 = vmatprep.subr.bf16.mxu1 %v19025_v28 }
 0x65e   :  { %12423 = vmatpush1.bf16.msra.mxu0 %v19022_v25  ;;  %v19088_v25 = vcombine.low %v18855_v17, %v18863_v16  ;;  %v18935_v17 = vld [vmem:[%s27197_s3 + $0x3288] sm:$0x11] }
 0x65f   :  { %12464 = vmatpush1.bf16.msra.mxu1 %v19024_v61  ;;  %12424 = vmatprep.subr.bf16.mxu0 %v19039_v58  ;;  %v19103_v61 = vcombine.high %v18870_v47, %v18878_v32 }
 0x660   :  { %12465 = vmatprep.subr.bf16.mxu1 %v19041_v13  ;;  %v18894_v13 = vld [vmem:[%s27197_s3 + $0x3140] sm:$0xff] }
 0x662   :  { %12425 = vmatpush1.bf16.msra.mxu0 %v19038_v33 }
 0x663   :  { %12466 = vmatpush1.bf16.msra.mxu1 %v19040_v12  ;;  %12426 = vmatprep.subr.bf16.mxu0 %v19055_v48  ;;  %v18902_v12 = vld [vmem:[%s27197_s3 + $0x3180] sm:$0xff] }
 0x664   :  { %12467 = vmatprep.subr.bf16.mxu1 %v19057_v3  ;;  %v18910_v48 = vld [vmem:[%s27197_s3 + $0x31c0] sm:$0xff]  ;;  %v18903_v3 = vld [vmem:[%s27197_s3 + $0x3188] sm:$0xff] }
 0x665   :  { %v19135_v36 = vcombine.high %v18902_v12, %v18910_v48  ;;  %v19134_v16 = vcombine.low %v18902_v12, %v18910_v48  ;;  %v18752_v12 = vld [vmem:[%s27197_s3 + $0x2cd0] sm:$0xff] }
 0x666   :  { %12427 = vmatpush1.bf16.msra.mxu0 %v19054_v46  ;;  %v19137_v46 = vcombine.high %v18903_v3, %v18911_v24 }
 0x667   :  { %12468 = vmatpush1.bf16.msra.mxu1 %v19056_v38  ;;  %12428 = vmatprep.subr.bf16.mxu0 %v19071_v60  ;;  %v18918_v38 = vld [vmem:[%s27197_s3 + $0x3200] sm:$0xff] }
 0x668   :  { %v10646_v20 = vpop.f32.mrb[84].mxu0  ;;  %12469 = vmatprep.subr.bf16.mxu1 %v19073_v8  ;;  %v18926_v60 = vld [vmem:[%s27197_s3 + $0x3240] sm:$0xff] }
 0x669   :  { %v25271_v42 = vadd.f32 %v10646_v20, %v24479_v15  ;;  %v10687_v37 = vpop.f32.mrb[84].mxu1  ;;  %v10648_v1 = vpop.f32.mrb[85].mxu0  ;;  %v19086_v15 = vcombine.low %v18854_v39, %v18862_v41  ;;  %v18934_v8 = vld [vmem:[%s27197_s3 + $0x3280] sm:$0x11]  ;;  %v18919_v39 = vld [vmem:[%s27197_s3 + $0x3208] sm:$0xff]  ;;  %v19150_v47 = vcombine.low %v18918_v38, %v18926_v60 }
 0x66a   :  { %v25280_v7 = vadd.f32 %v10687_v37, %v24488_v49  ;;  %v25283_v43 = vadd.f32 %v10648_v1, %v24491_v22  ;;  %v10689_v28 = vpop.f32.mrb[85].mxu1  ;;  %v10650_v9 = vpop.f32.mrb[86].mxu0  ;;  %12429 = vmatpush1.bf16.msra.mxu0 %v19070_v45  ;;  %v19105_v49 = vcombine.high %v18871_v50, %v18879_v18  ;;  %v18886_v22 = vld [vmem:[%s27197_s3 + $0x3100] sm:$0xff]  ;;  %v18927_v41 = vld [vmem:[%s27197_s3 + $0x3248] sm:$0xff]  ;;  %v19136_v45 = vcombine.low %v18903_v3, %v18911_v24  ;;  %v18753_v3 = vld [vmem:[%s27197_s3 + $0x2cd8] sm:$0xff] }
 0x66b   :  { %v25286_v23 = vadd.f32 %v10689_v28, %v24494_v56  ;;  %v10691_v4 = vpop.f32.mrb[86].mxu1  ;;  %12470 = vmatpush1.bf16.msra.mxu1 %v19072_v14  ;;  %v10651_v19 = vpop.f32.mrb[87].mxu0  ;;  %12430 = vmatprep.subr.bf16.mxu0 %v19087_v26  ;;  %v18887_v56 = vld [vmem:[%s27197_s3 + $0x3108] sm:$0xff]  ;;  %v19119_v29 = vcombine.high %v18886_v22, %v18894_v13  ;;  %v19118_v34 = vcombine.low %v18886_v22, %v18894_v13  ;;  %v18712_v28 = vld [vmem:[%s27197_s3 + $0x2b90] sm:$0xff] }
 0x66c   :  { %v10692_v58 = vpop.f32.mrb[87].mxu1  ;;  %12471 = vmatprep.subr.bf16.mxu1 %v19089_v63  ;;  %v19121_v33 = vcombine.high %v18887_v56, %v18895_v11  ;;  %v19120_v30 = vcombine.low %v18887_v56, %v18895_v11  ;;  %v19151_v14 = vcombine.high %v18918_v38, %v18926_v60  ;;  %v19167_v26 = vcombine.high %v18934_v8, %v18934_v8  ;;  %v18720_v9 = vld [vmem:[%s27197_s3 + $0x2bd0] sm:$0xff]  ;;  %v18721_v4 = vld [vmem:[%s27197_s3 + $0x2bd8] sm:$0xff] }
 0x66d   :  { %v19153_v20 = vcombine.high %v18919_v39, %v18927_v41  ;;  %v19169_v63 = vcombine.high %v18935_v17, %v18935_v17  ;;  %v19166_v32 = vcombine.low %v18934_v8, %v18934_v8  ;;  %v19152_v37 = vcombine.low %v18919_v39, %v18927_v41  ;;  %v18736_v22 = vld [vmem:[%s27197_s3 + $0x2c50] sm:$0xff]  ;;  %v18729_v56 = vld [vmem:[%s27197_s3 + $0x2c18] sm:$0xff] }
 0x66e   :  { %12431 = vmatpush1.bf16.msra.mxu0 %v19086_v15  ;;  %v12368_v1 = vand.u32 %v19167_v26, %v20487_v62  ;;  %v19168_v50 = vcombine.low %v18935_v17, %v18935_v17  ;;  %v18713_v15 = vld [vmem:[%s27197_s3 + $0x2b98] sm:$0xff]  ;;  %v18946_v13 = vcombine.low %v18712_v28, %v18720_v9  ;;  %v18768_v38 = vld [vmem:[%s27197_s3 + $0x2d50] sm:$0xff] }
 0x66f   :  { %12472 = vmatpush1.bf16.msra.mxu1 %v19088_v25  ;;  %12432 = vmatprep.subr.bf16.mxu0 %v19103_v61  ;;  %v12374_v18 = vand.u32 %v19169_v63, %v20487_v62  ;;  %v12365_v19 = vand.u32 %v19166_v32, %v20487_v62  ;;  %v18947_v61 = vcombine.high %v18712_v28, %v18720_v9  ;;  %v18737_v11 = vld [vmem:[%s27197_s3 + $0x2c58] sm:$0xff] }
 0x670   :  { %12473 = vmatprep.subr.bf16.mxu1 %v19105_v49  ;;  %v12371_v25 = vand.u32 %v19168_v50, %v20487_v62  ;;  %v18949_v58 = vcombine.high %v18713_v15, %v18721_v4  ;;  %v18728_v49 = vld [vmem:[%s27197_s3 + $0x2c10] sm:$0xff]  ;;  %v18965_v48 = vcombine.high %v18729_v56, %v18737_v11  ;;  %v18761_v60 = vld [vmem:[%s27197_s3 + $0x2d18] sm:$0xff] }
 0x671   :  { %v18962_v24 = vcombine.low %v18728_v49, %v18736_v22  ;;  %v18769_v8 = vld [vmem:[%s27197_s3 + $0x2d58] sm:$0xff]  ;;  %v18800_v50 = vld [vmem:[%s27197_s3 + $0x2e50] sm:$0xff] }
 0x672   :  { %12433 = vmatpush1.bf16.msra.mxu0 %v19102_v0  ;;  %v25360_v0 = vpack.c.bf16 %v20693_v35, %v20693_v35  ;;  %v18745_v35 = vld [vmem:[%s27197_s3 + $0x2c98] sm:$0xff] }
 0x673   :  { %12474 = vmatpush1.bf16.msra.mxu1 %v19104_v2  ;;  %12434 = vmatprep.subr.bf16.mxu0 %v19119_v29  ;;  %v18948_v2 = vcombine.low %v18713_v15, %v18721_v4  ;;  %v18963_v29 = vcombine.high %v18728_v49, %v18736_v22  ;;  %v18980_v41 = vcombine.low %v18745_v35, %v18753_v3  ;;  %v18777_v26 = vld [vmem:[%s27197_s3 + $0x2d98] sm:$0xff] }
 0x674   :  { %12475 = vmatprep.subr.bf16.mxu1 %v19121_v33  ;;  %v18744_v33 = vld [vmem:[%s27197_s3 + $0x2c90] sm:$0xff]  ;;  %v18801_v28 = vld [vmem:[%s27197_s3 + $0x2e58] sm:$0xff] }
 0x675   :  { %v18978_v39 = vcombine.low %v18744_v33, %v18752_v12  ;;  %v18817_v49 = vld [vmem:[%s27197_s3 + $0x2ed8] sm:$0xff] }
 0x676   :  { %12435 = vmatpush1.bf16.msra.mxu0 %v19118_v34  ;;  %v18964_v34 = vcombine.low %v18729_v56, %v18737_v11 }
 0x677   :  { %12476 = vmatpush1.bf16.msra.mxu1 %v19120_v30  ;;  %12436 = vmatprep.subr.bf16.mxu0 %v19135_v36  ;;  %v18979_v30 = vcombine.high %v18744_v33, %v18752_v12  ;;  %v18981_v36 = vcombine.high %v18745_v35, %v18753_v3  ;;  %v18825_v33 = vld [vmem:[%s27197_s3 + $0x2f18] sm:$0xff] }
 0x678   :  { %12477 = vmatprep.subr.bf16.mxu1 %v19137_v46  ;;  %v18760_v46 = vld [vmem:[%s27197_s3 + $0x2d10] sm:$0xff]  ;;  %v18833_v12 = vld [vmem:[%s27197_s3 + $0x2f58] sm:$0xff] }
 0x679   :  { %v18995_v17 = vcombine.high %v18760_v46, %v18768_v38  ;;  %v18994_v63 = vcombine.low %v18760_v46, %v18768_v38  ;;  %v18849_v46 = vld [vmem:[%s27197_s3 + $0x2fd8] sm:$0xff] }
 0x67a   :  { %12437 = vmatpush1.bf16.msra.mxu0 %v19134_v16  ;;  %v18997_v16 = vcombine.high %v18761_v60, %v18769_v8 }
 0x67b   :  { %12478 = vmatpush1.bf16.msra.mxu1 %v19136_v45  ;;  %12438 = vmatprep.subr.bf16.mxu0 %v19151_v14  ;;  %v18776_v45 = vld [vmem:[%s27197_s3 + $0x2d90] sm:$0xff] }
 0x67c   :  { %12479 = vmatprep.subr.bf16.mxu1 %v19153_v20  ;;  %v18784_v14 = vld [vmem:[%s27197_s3 + $0x2dd0] sm:$0xff]  ;;  %v18785_v20 = vld [vmem:[%s27197_s3 + $0x2dd8] sm:$0xff] }
 0x67d   :  { %v19011_v32 = vcombine.high %v18776_v45, %v18784_v14  ;;  %v19010_v9 = vcombine.low %v18776_v45, %v18784_v14  ;;  %v19012_v15 = vcombine.low %v18777_v26, %v18785_v20  ;;  %v18865_v45 = vld [vmem:[%s27197_s3 + $0x3058] sm:$0xff] }
 0x67e   :  { %12439 = vmatpush1.bf16.msra.mxu0 %v19150_v47  ;;  %v18996_v47 = vcombine.low %v18761_v60, %v18769_v8  ;;  %v19060_v60 = vcombine.low %v18825_v33, %v18833_v12 }
 0x67f   :  { %12480 = vmatpush1.bf16.msra.mxu1 %v19152_v37  ;;  %12440 = vmatprep.subr.bf16.mxu0 %v12368_v1  ;;  %v19013_v37 = vcombine.high %v18777_v26, %v18785_v20  ;;  %v18792_v1 = vld [vmem:[%s27197_s3 + $0x2e10] sm:$0xff] }
 0x680   :  { %12481 = vmatprep.subr.bf16.mxu1 %v12374_v18  ;;  %v18793_v18 = vld [vmem:[%s27197_s3 + $0x2e18] sm:$0xff]  ;;  %v19027_v4 = vcombine.high %v18792_v1, %v18800_v50  ;;  %v19026_v22 = vcombine.low %v18792_v1, %v18800_v50 }
 0x682   :  { %12441 = vmatpush1.bf16.msra.mxu0 %v12365_v19  ;;  %v19029_v19 = vcombine.high %v18793_v18, %v18801_v28 }
 0x683   :  { %12482 = vmatpush1.bf16.msra.mxu1 %v12371_v25  ;;  %12494 = vmatprep.subr.bf16.mxu0 %v18947_v61  ;;  %v18808_v25 = vld [vmem:[%s27197_s3 + $0x2e90] sm:$0xff] }
 0x684   :  { %12535 = vmatprep.subr.bf16.mxu1 %v18949_v58  ;;  %v18816_v61 = vld [vmem:[%s27197_s3 + $0x2ed0] sm:$0xff]  ;;  %v18809_v58 = vld [vmem:[%s27197_s3 + $0x2e98] sm:$0xff] }
 0x685   :  { %12445 = vmatmul.mubr.bf16.vlgmr.msra.gmra.mrb[100].mxu0 %v25360_v0  ;;  %v19043_v56 = vcombine.high %v18808_v25, %v18816_v61  ;;  %v19045_v11 = vcombine.high %v18809_v58, %v18817_v49  ;;  %v19044_v35 = vcombine.low %v18809_v58, %v18817_v49 }
 0x686   :  { %12486 = vmatmul.mubr.bf16.vlgmr.msra.gmra.mrb[100].mxu1 %v25360_v0  ;;  %12495 = vmatpush1.bf16.msra.mxu0 %v18946_v13  ;;  %v19028_v13 = vcombine.low %v18793_v18, %v18801_v28  ;;  %v18873_v28 = vld [vmem:[%s27197_s3 + $0x3098] sm:$0xff] }
 0x687   :  { %19184 = vmatprep.mubr.msk.bf16.mxu0 %vm1835_vm2, %v25167_v52  ;;  %12536 = vmatpush1.bf16.msra.mxu1 %v18948_v2  ;;  %v18824_v2 = vld [vmem:[%s27197_s3 + $0x2f10] sm:$0xff] }
 0x688   :  { %19185 = vmatprep.mubr.msk.bf16.mxu1 %vm1835_vm2, %v25167_v52  ;;  %12496 = vmatprep.subr.bf16.mxu0 %v18963_v29  ;;  %v18832_v29 = vld [vmem:[%s27197_s3 + $0x2f50] sm:$0xff] }
 0x689   :  { %12537 = vmatprep.subr.bf16.mxu1 %v18965_v48  ;;  %v19042_v48 = vcombine.low %v18808_v25, %v18816_v61  ;;  %v19059_v3 = vcombine.high %v18824_v2, %v18832_v29  ;;  %v19058_v38 = vcombine.low %v18824_v2, %v18832_v29  ;;  %v18897_v2 = vld [vmem:[%s27197_s3 + $0x3158] sm:$0xff] }
 0x68a   :  { %12497 = vmatpush1.bf16.msra.mxu0 %v18962_v24  ;;  %v19061_v24 = vcombine.high %v18825_v33, %v18833_v12 }
 0x68b   :  { %12538 = vmatpush1.bf16.msra.mxu1 %v18964_v34  ;;  %12498 = vmatprep.subr.bf16.mxu0 %v18979_v30  ;;  %v18840_v34 = vld [vmem:[%s27197_s3 + $0x2f90] sm:$0xff] }
 0x68c   :  { %12539 = vmatprep.subr.bf16.mxu1 %v18981_v36  ;;  %v18848_v30 = vld [vmem:[%s27197_s3 + $0x2fd0] sm:$0xff]  ;;  %v18841_v36 = vld [vmem:[%s27197_s3 + $0x2f98] sm:$0xff] }
 0x68d   :  { %v19075_v8 = vcombine.high %v18840_v34, %v18848_v30  ;;  %v19074_v14 = vcombine.low %v18840_v34, %v18848_v30  ;;  %v19076_v26 = vcombine.low %v18841_v36, %v18849_v46  ;;  %v18913_v34 = vld [vmem:[%s27197_s3 + $0x31d8] sm:$0xff] }
 0x68e   :  { %12499 = vmatpush1.bf16.msra.mxu0 %v18978_v39  ;;  %v19077_v39 = vcombine.high %v18841_v36, %v18849_v46 }
 0x68f   :  { %12540 = vmatpush1.bf16.msra.mxu1 %v18980_v41  ;;  %12500 = vmatprep.subr.bf16.mxu0 %v18995_v17  ;;  %v18856_v41 = vld [vmem:[%s27197_s3 + $0x3010] sm:$0xff] }
 0x690   :  { %12541 = vmatprep.subr.bf16.mxu1 %v18997_v16  ;;  %v18864_v17 = vld [vmem:[%s27197_s3 + $0x3050] sm:$0xff]  ;;  %v18857_v16 = vld [vmem:[%s27197_s3 + $0x3018] sm:$0xff] }
 0x691   :  { %v19091_v20 = vcombine.high %v18856_v41, %v18864_v17 }
 0x692   :  { %12501 = vmatpush1.bf16.msra.mxu0 %v18994_v63 }
 0x693   :  { %12542 = vmatpush1.bf16.msra.mxu1 %v18996_v47  ;;  %12502 = vmatprep.subr.bf16.mxu0 %v19011_v32  ;;  %v19093_v47 = vcombine.high %v18857_v16, %v18865_v45  ;;  %v18872_v32 = vld [vmem:[%s27197_s3 + $0x3090] sm:$0xff] }
 0x694   :  { %12543 = vmatprep.subr.bf16.mxu1 %v19013_v37  ;;  %v18880_v37 = vld [vmem:[%s27197_s3 + $0x30d0] sm:$0xff] }
 0x695   :  { %v19106_v29 = vcombine.low %v18872_v32, %v18880_v37 }
 0x696   :  { %12503 = vmatpush1.bf16.msra.mxu0 %v19010_v9  ;;  %v18881_v9 = vld [vmem:[%s27197_s3 + $0x30d8] sm:$0xff] }
 0x697   :  { %12544 = vmatpush1.bf16.msra.mxu1 %v19012_v15  ;;  %12504 = vmatprep.subr.bf16.mxu0 %v19027_v4  ;;  %v19108_v33 = vcombine.low %v18873_v28, %v18881_v9 }
 0x698   :  { %12545 = vmatprep.subr.bf16.mxu1 %v19029_v19 }
 0x69a   :  { %12505 = vmatpush1.bf16.msra.mxu0 %v19026_v22  ;;  %v19092_v22 = vcombine.low %v18857_v16, %v18865_v45  ;;  %v18937_v16 = vld [vmem:[%s27197_s3 + $0x3298] sm:$0x11] }
 0x69b   :  { %12546 = vmatpush1.bf16.msra.mxu1 %v19028_v13  ;;  %12506 = vmatprep.subr.bf16.mxu0 %v19043_v56  ;;  %v19107_v13 = vcombine.high %v18872_v32, %v18880_v37 }
 0x69c   :  { %12547 = vmatprep.subr.bf16.mxu1 %v19045_v11  ;;  %v18896_v11 = vld [vmem:[%s27197_s3 + $0x3150] sm:$0xff] }
 0x69e   :  { %12507 = vmatpush1.bf16.msra.mxu0 %v19042_v48 }
 0x69f   :  { %12548 = vmatpush1.bf16.msra.mxu1 %v19044_v35  ;;  %12508 = vmatprep.subr.bf16.mxu0 %v19059_v3  ;;  %v18904_v35 = vld [vmem:[%s27197_s3 + $0x3190] sm:$0xff] }
 0x6a0   :  { %12549 = vmatprep.subr.bf16.mxu1 %v19061_v24  ;;  %v18912_v3 = vld [vmem:[%s27197_s3 + $0x31d0] sm:$0xff]  ;;  %v18905_v24 = vld [vmem:[%s27197_s3 + $0x3198] sm:$0xff] }
 0x6a1   :  { %v19139_v46 = vcombine.high %v18904_v35, %v18912_v3  ;;  %v19138_v45 = vcombine.low %v18904_v35, %v18912_v3  ;;  %v18747_v3 = vld [vmem:[%s27197_s3 + $0x2ca8] sm:$0xff] }
 0x6a2   :  { %12509 = vmatpush1.bf16.msra.mxu0 %v19058_v38  ;;  %v19141_v38 = vcombine.high %v18905_v24, %v18913_v34 }
 0x6a3   :  { %12550 = vmatpush1.bf16.msra.mxu1 %v19060_v60  ;;  %12510 = vmatprep.subr.bf16.mxu0 %v19075_v8  ;;  %v18920_v60 = vld [vmem:[%s27197_s3 + $0x3210] sm:$0xff] }
 0x6a4   :  { %v10728_v63 = vpop.f32.mrb[88].mxu0  ;;  %12551 = vmatprep.subr.bf16.mxu1 %v19077_v39  ;;  %v18928_v8 = vld [vmem:[%s27197_s3 + $0x3250] sm:$0xff] }
 0x6a5   :  { %v25471_v1 = vadd.f32 %v10728_v63, %v24679_v21  ;;  %v10769_v50 = vpop.f32.mrb[88].mxu1  ;;  %v10730_v18 = vpop.f32.mrb[89].mxu0  ;;  %v19090_v21 = vcombine.low %v18856_v41, %v18864_v17  ;;  %v18936_v39 = vld [vmem:[%s27197_s3 + $0x3290] sm:$0x11]  ;;  %v18921_v41 = vld [vmem:[%s27197_s3 + $0x3218] sm:$0xff]  ;;  %v19154_v32 = vcombine.low %v18920_v60, %v18928_v8 }
 0x6a6   :  { %v25480_v15 = vadd.f32 %v10769_v50, %v24688_v55  ;;  %v25483_v4 = vadd.f32 %v10730_v18, %v24691_v54  ;;  %v10771_v19 = vpop.f32.mrb[89].mxu1  ;;  %v10732_v25 = vpop.f32.mrb[90].mxu0  ;;  %12511 = vmatpush1.bf16.msra.mxu0 %v19074_v14  ;;  %v19109_v55 = vcombine.high %v18873_v28, %v18881_v9  ;;  %v18888_v54 = vld [vmem:[%s27197_s3 + $0x3110] sm:$0xff]  ;;  %v18929_v17 = vld [vmem:[%s27197_s3 + $0x3258] sm:$0xff]  ;;  %v19140_v14 = vcombine.low %v18905_v24, %v18913_v34  ;;  %v18755_v24 = vld [vmem:[%s27197_s3 + $0x2ce8] sm:$0xff] }
 0x6a7   :  { %v25486_v61 = vadd.f32 %v10771_v19, %v24694_v31  ;;  %v10773_v58 = vpop.f32.mrb[90].mxu1  ;;  %12552 = vmatpush1.bf16.msra.mxu1 %v19076_v26  ;;  %v10733_v49 = vpop.f32.mrb[91].mxu0  ;;  %12512 = vmatprep.subr.bf16.mxu0 %v19091_v20  ;;  %v18889_v31 = vld [vmem:[%s27197_s3 + $0x3118] sm:$0xff]  ;;  %v19123_v12 = vcombine.high %v18888_v54, %v18896_v11  ;;  %v19122_v30 = vcombine.low %v18888_v54, %v18896_v11  ;;  %v18714_v19 = vld [vmem:[%s27197_s3 + $0x2ba0] sm:$0xff] }
 0x6a8   :  { %v10774_v56 = vpop.f32.mrb[91].mxu1  ;;  %12553 = vmatprep.subr.bf16.mxu1 %v19093_v47  ;;  %v19125_v48 = vcombine.high %v18889_v31, %v18897_v2  ;;  %v19124_v36 = vcombine.low %v18889_v31, %v18897_v2  ;;  %v19155_v26 = vcombine.high %v18920_v60, %v18928_v8  ;;  %v19171_v20 = vcombine.high %v18936_v39, %v18936_v39  ;;  %v18722_v25 = vld [vmem:[%s27197_s3 + $0x2be0] sm:$0xff]  ;;  %v18723_v58 = vld [vmem:[%s27197_s3 + $0x2be8] sm:$0xff] }
 0x6a9   :  { %v19157_v63 = vcombine.high %v18921_v41, %v18929_v17  ;;  %v19173_v47 = vcombine.high %v18937_v16, %v18937_v16  ;;  %v19170_v37 = vcombine.low %v18936_v39, %v18936_v39  ;;  %v19156_v50 = vcombine.low %v18921_v41, %v18929_v17  ;;  %v18738_v54 = vld [vmem:[%s27197_s3 + $0x2c60] sm:$0xff]  ;;  %v18731_v31 = vld [vmem:[%s27197_s3 + $0x2c28] sm:$0xff] }
 0x6aa   :  { %12513 = vmatpush1.bf16.msra.mxu0 %v19090_v21  ;;  %v12380_v18 = vand.u32 %v19171_v20, %v20487_v62  ;;  %v19172_v28 = vcombine.low %v18937_v16, %v18937_v16  ;;  %v18715_v21 = vld [vmem:[%s27197_s3 + $0x2ba8] sm:$0xff]  ;;  %v18950_v11 = vcombine.low %v18714_v19, %v18722_v25  ;;  %v18770_v60 = vld [vmem:[%s27197_s3 + $0x2d60] sm:$0xff]  ;;  %v18984_v17 = vcombine.low %v18747_v3, %v18755_v24 }
 0x6ab   :  { %12554 = vmatpush1.bf16.msra.mxu1 %v19092_v22  ;;  %12514 = vmatprep.subr.bf16.mxu0 %v19107_v13  ;;  %v12386_v9 = vand.u32 %v19173_v47, %v20487_v62  ;;  %v12377_v49 = vand.u32 %v19170_v37, %v20487_v62  ;;  %v18951_v13 = vcombine.high %v18714_v19, %v18722_v25  ;;  %v18739_v2 = vld [vmem:[%s27197_s3 + $0x2c68] sm:$0xff] }
 0x6ac   :  { %12555 = vmatprep.subr.bf16.mxu1 %v19109_v55  ;;  %v12383_v22 = vand.u32 %v19172_v28, %v20487_v62  ;;  %v18953_v56 = vcombine.high %v18715_v21, %v18723_v58  ;;  %v18730_v55 = vld [vmem:[%s27197_s3 + $0x2c20] sm:$0xff]  ;;  %v18969_v35 = vcombine.high %v18731_v31, %v18739_v2  ;;  %v18763_v8 = vld [vmem:[%s27197_s3 + $0x2d28] sm:$0xff] }
 0x6ad   :  { %v18966_v34 = vcombine.low %v18730_v55, %v18738_v54  ;;  %v18771_v39 = vld [vmem:[%s27197_s3 + $0x2d68] sm:$0xff]  ;;  %v18802_v28 = vld [vmem:[%s27197_s3 + $0x2e60] sm:$0xff] }
 0x6ae   :  { %12515 = vmatpush1.bf16.msra.mxu0 %v19106_v29  ;;  %v18952_v29 = vcombine.low %v18715_v21, %v18723_v58  ;;  %v18779_v20 = vld [vmem:[%s27197_s3 + $0x2da8] sm:$0xff] }
 0x6af   :  { %12556 = vmatpush1.bf16.msra.mxu1 %v19108_v33  ;;  %12516 = vmatprep.subr.bf16.mxu0 %v19123_v12  ;;  %v18967_v33 = vcombine.high %v18730_v55, %v18738_v54  ;;  %v18746_v12 = vld [vmem:[%s27197_s3 + $0x2ca0] sm:$0xff]  ;;  %v18803_v19 = vld [vmem:[%s27197_s3 + $0x2e68] sm:$0xff] }
 0x6b0   :  { %12557 = vmatprep.subr.bf16.mxu1 %v19125_v48  ;;  %v18754_v48 = vld [vmem:[%s27197_s3 + $0x2ce0] sm:$0xff]  ;;  %v18819_v55 = vld [vmem:[%s27197_s3 + $0x2ee8] sm:$0xff] }
 0x6b1   :  { %v18982_v41 = vcombine.low %v18746_v12, %v18754_v48 }
 0x6b2   :  { %12517 = vmatpush1.bf16.msra.mxu0 %v19122_v30  ;;  %v18968_v30 = vcombine.low %v18731_v31, %v18739_v2 }
 0x6b3   :  { %12558 = vmatpush1.bf16.msra.mxu1 %v19124_v36  ;;  %12518 = vmatprep.subr.bf16.mxu0 %v19139_v46  ;;  %v18983_v36 = vcombine.high %v18746_v12, %v18754_v48  ;;  %v18985_v46 = vcombine.high %v18747_v3, %v18755_v24  ;;  %v18827_v12 = vld [vmem:[%s27197_s3 + $0x2f28] sm:$0xff] }
 0x6b4   :  { %12559 = vmatprep.subr.bf16.mxu1 %v19141_v38  ;;  %v18762_v38 = vld [vmem:[%s27197_s3 + $0x2d20] sm:$0xff]  ;;  %v18835_v48 = vld [vmem:[%s27197_s3 + $0x2f68] sm:$0xff] }
 0x6b5   :  { %v18999_v16 = vcombine.high %v18762_v38, %v18770_v60  ;;  %v18998_v47 = vcombine.low %v18762_v38, %v18770_v60  ;;  %v18851_v38 = vld [vmem:[%s27197_s3 + $0x2fe8] sm:$0xff] }
 0x6b6   :  { %12519 = vmatpush1.bf16.msra.mxu0 %v19138_v45  ;;  %v19001_v45 = vcombine.high %v18763_v8, %v18771_v39 }
 0x6b7   :  { %12560 = vmatpush1.bf16.msra.mxu1 %v19140_v14  ;;  %12520 = vmatprep.subr.bf16.mxu0 %v19155_v26  ;;  %v18778_v14 = vld [vmem:[%s27197_s3 + $0x2da0] sm:$0xff] }
 0x6b8   :  { %12561 = vmatprep.subr.bf16.mxu1 %v19157_v63  ;;  %v18786_v26 = vld [vmem:[%s27197_s3 + $0x2de0] sm:$0xff]  ;;  %v18787_v63 = vld [vmem:[%s27197_s3 + $0x2de8] sm:$0xff] }
 0x6b9   :  { %v19015_v37 = vcombine.high %v18778_v14, %v18786_v26  ;;  %v19014_v25 = vcombine.low %v18778_v14, %v18786_v26  ;;  %v19016_v21 = vcombine.low %v18779_v20, %v18787_v63  ;;  %v18867_v14 = vld [vmem:[%s27197_s3 + $0x3068] sm:$0xff] }
 0x6ba   :  { %12521 = vmatpush1.bf16.msra.mxu0 %v19154_v32  ;;  %v19000_v32 = vcombine.low %v18763_v8, %v18771_v39  ;;  %v19064_v8 = vcombine.low %v18827_v12, %v18835_v48 }
 0x6bb   :  { %12562 = vmatpush1.bf16.msra.mxu1 %v19156_v50  ;;  %12522 = vmatprep.subr.bf16.mxu0 %v12380_v18  ;;  %v19017_v50 = vcombine.high %v18779_v20, %v18787_v63  ;;  %v18794_v18 = vld [vmem:[%s27197_s3 + $0x2e20] sm:$0xff] }
 0x6bc   :  { %12563 = vmatprep.subr.bf16.mxu1 %v12386_v9  ;;  %v18795_v9 = vld [vmem:[%s27197_s3 + $0x2e28] sm:$0xff]  ;;  %v19031_v58 = vcombine.high %v18794_v18, %v18802_v28  ;;  %v19030_v54 = vcombine.low %v18794_v18, %v18802_v28 }
 0x6be   :  { %12523 = vmatpush1.bf16.msra.mxu0 %v12377_v49  ;;  %v19033_v49 = vcombine.high %v18795_v9, %v18803_v19 }
 0x6bf   :  { %12564 = vmatpush1.bf16.msra.mxu1 %v12383_v22  ;;  %12576 = vmatprep.subr.bf16.mxu0 %v18951_v13  ;;  %v18810_v22 = vld [vmem:[%s27197_s3 + $0x2ea0] sm:$0xff] }
 0x6c0   :  { %12617 = vmatprep.subr.bf16.mxu1 %v18953_v56  ;;  %v18818_v13 = vld [vmem:[%s27197_s3 + $0x2ee0] sm:$0xff]  ;;  %v18811_v56 = vld [vmem:[%s27197_s3 + $0x2ea8] sm:$0xff] }
 0x6c1   :  { %12527 = vmatmul.mubr.bf16.vlgmr.msra.gmra.mrb[104].mxu0 %v25360_v0  ;;  %v19047_v31 = vcombine.high %v18810_v22, %v18818_v13  ;;  %v19049_v2 = vcombine.high %v18811_v56, %v18819_v55  ;;  %v19048_v3 = vcombine.low %v18811_v56, %v18819_v55 }
 0x6c2   :  { %12568 = vmatmul.mubr.bf16.vlgmr.msra.gmra.mrb[104].mxu1 %v25360_v0  ;;  %12577 = vmatpush1.bf16.msra.mxu0 %v18950_v11  ;;  %v19032_v11 = vcombine.low %v18795_v9, %v18803_v19  ;;  %v18875_v19 = vld [vmem:[%s27197_s3 + $0x30a8] sm:$0xff] }
 0x6c3   :  { %19186 = vmatprep.mubr.msk.bf16.mxu0 %vm1835_vm2, %v25167_v52  ;;  %12618 = vmatpush1.bf16.msra.mxu1 %v18952_v29  ;;  %v18826_v29 = vld [vmem:[%s27197_s3 + $0x2f20] sm:$0xff] }
 0x6c4   :  { %19187 = vmatprep.mubr.msk.bf16.mxu1 %vm1835_vm2, %v25167_v52  ;;  %12578 = vmatprep.subr.bf16.mxu0 %v18967_v33  ;;  %v18834_v33 = vld [vmem:[%s27197_s3 + $0x2f60] sm:$0xff] }
 0x6c5   :  { %12619 = vmatprep.subr.bf16.mxu1 %v18969_v35  ;;  %v19046_v35 = vcombine.low %v18810_v22, %v18818_v13  ;;  %v19063_v24 = vcombine.high %v18826_v29, %v18834_v33  ;;  %v19062_v60 = vcombine.low %v18826_v29, %v18834_v33  ;;  %v18899_v29 = vld [vmem:[%s27197_s3 + $0x3168] sm:$0xff] }
 0x6c6   :  { %12579 = vmatpush1.bf16.msra.mxu0 %v18966_v34  ;;  %v19065_v34 = vcombine.high %v18827_v12, %v18835_v48 }
 0x6c7   :  { %12620 = vmatpush1.bf16.msra.mxu1 %v18968_v30  ;;  %12580 = vmatprep.subr.bf16.mxu0 %v18983_v36  ;;  %v18842_v30 = vld [vmem:[%s27197_s3 + $0x2fa0] sm:$0xff] }
 0x6c8   :  { %12621 = vmatprep.subr.bf16.mxu1 %v18985_v46  ;;  %v18850_v36 = vld [vmem:[%s27197_s3 + $0x2fe0] sm:$0xff]  ;;  %v18843_v46 = vld [vmem:[%s27197_s3 + $0x2fa8] sm:$0xff] }
 0x6c9   :  { %v19079_v39 = vcombine.high %v18842_v30, %v18850_v36  ;;  %v19078_v26 = vcombine.low %v18842_v30, %v18850_v36  ;;  %v19080_v20 = vcombine.low %v18843_v46, %v18851_v38  ;;  %v18915_v30 = vld [vmem:[%s27197_s3 + $0x31e8] sm:$0xff] }
 0x6ca   :  { %12581 = vmatpush1.bf16.msra.mxu0 %v18982_v41  ;;  %v19081_v41 = vcombine.high %v18843_v46, %v18851_v38 }
 0x6cb   :  { %12622 = vmatpush1.bf16.msra.mxu1 %v18984_v17  ;;  %12582 = vmatprep.subr.bf16.mxu0 %v18999_v16  ;;  %v18858_v17 = vld [vmem:[%s27197_s3 + $0x3020] sm:$0xff] }
 0x6cc   :  { %12623 = vmatprep.subr.bf16.mxu1 %v19001_v45  ;;  %v18866_v16 = vld [vmem:[%s27197_s3 + $0x3060] sm:$0xff]  ;;  %v18859_v45 = vld [vmem:[%s27197_s3 + $0x3028] sm:$0xff] }
 0x6cd   :  { %v19095_v63 = vcombine.high %v18858_v17, %v18866_v16 }
 0x6ce   :  { %12583 = vmatpush1.bf16.msra.mxu0 %v18998_v47 }
 0x6cf   :  { %12624 = vmatpush1.bf16.msra.mxu1 %v19000_v32  ;;  %12584 = vmatprep.subr.bf16.mxu0 %v19015_v37  ;;  %v19097_v32 = vcombine.high %v18859_v45, %v18867_v14  ;;  %v18874_v37 = vld [vmem:[%s27197_s3 + $0x30a0] sm:$0xff] }
 0x6d0   :  { %12625 = vmatprep.subr.bf16.mxu1 %v19017_v50  ;;  %v18882_v50 = vld [vmem:[%s27197_s3 + $0x30e0] sm:$0xff] }
 0x6d1   :  { %v19110_v33 = vcombine.low %v18874_v37, %v18882_v50 }
 0x6d2   :  { %12585 = vmatpush1.bf16.msra.mxu0 %v19014_v25  ;;  %v18883_v25 = vld [vmem:[%s27197_s3 + $0x30e8] sm:$0xff] }
 0x6d3   :  { %12626 = vmatpush1.bf16.msra.mxu1 %v19016_v21  ;;  %12586 = vmatprep.subr.bf16.mxu0 %v19031_v58  ;;  %v19112_v12 = vcombine.low %v18875_v19, %v18883_v25 }
 0x6d4   :  { %12627 = vmatprep.subr.bf16.mxu1 %v19033_v49 }
 0x6d6   :  { %12587 = vmatpush1.bf16.msra.mxu0 %v19030_v54  ;;  %v19096_v54 = vcombine.low %v18859_v45, %v18867_v14  ;;  %v18939_v45 = vld [vmem:[%s27197_s3 + $0x32a8] sm:$0x11] }
 0x6d7   :  { %12628 = vmatpush1.bf16.msra.mxu1 %v19032_v11  ;;  %12588 = vmatprep.subr.bf16.mxu0 %v19047_v31  ;;  %v19111_v11 = vcombine.high %v18874_v37, %v18882_v50 }
 0x6d8   :  { %12629 = vmatprep.subr.bf16.mxu1 %v19049_v2  ;;  %v18898_v2 = vld [vmem:[%s27197_s3 + $0x3160] sm:$0xff] }
 0x6da   :  { %12589 = vmatpush1.bf16.msra.mxu0 %v19046_v35 }
 0x6db   :  { %12630 = vmatpush1.bf16.msra.mxu1 %v19048_v3  ;;  %12590 = vmatprep.subr.bf16.mxu0 %v19063_v24  ;;  %v18906_v3 = vld [vmem:[%s27197_s3 + $0x31a0] sm:$0xff] }
 0x6dc   :  { %12631 = vmatprep.subr.bf16.mxu1 %v19065_v34  ;;  %v18914_v24 = vld [vmem:[%s27197_s3 + $0x31e0] sm:$0xff]  ;;  %v18907_v34 = vld [vmem:[%s27197_s3 + $0x31a8] sm:$0xff] }
 0x6dd   :  { %v19143_v38 = vcombine.high %v18906_v3, %v18914_v24  ;;  %v19142_v14 = vcombine.low %v18906_v3, %v18914_v24  ;;  %v18749_v24 = vld [vmem:[%s27197_s3 + $0x2cb8] sm:$0xff] }
 0x6de   :  { %12591 = vmatpush1.bf16.msra.mxu0 %v19062_v60  ;;  %v19145_v60 = vcombine.high %v18907_v34, %v18915_v30 }
 0x6df   :  { %12632 = vmatpush1.bf16.msra.mxu1 %v19064_v8  ;;  %12592 = vmatprep.subr.bf16.mxu0 %v19079_v39  ;;  %v18922_v8 = vld [vmem:[%s27197_s3 + $0x3220] sm:$0xff] }
 0x6e0   :  { %v10810_v47 = vpop.f32.mrb[92].mxu0  ;;  %12633 = vmatprep.subr.bf16.mxu1 %v19081_v41  ;;  %v18930_v39 = vld [vmem:[%s27197_s3 + $0x3260] sm:$0xff] }
 0x6e1   :  { %v25667_v18 = vadd.f32 %v10810_v47, %v24875_v27  ;;  %v10851_v28 = vpop.f32.mrb[92].mxu1  ;;  %v10812_v9 = vpop.f32.mrb[93].mxu0  ;;  %v19094_v27 = vcombine.low %v18858_v17, %v18866_v16  ;;  %v18938_v41 = vld [vmem:[%s27197_s3 + $0x32a0] sm:$0x11]  ;;  %v18923_v17 = vld [vmem:[%s27197_s3 + $0x3228] sm:$0xff]  ;;  %v19158_v37 = vcombine.low %v18922_v8, %v18930_v39 }
 0x6e2   :  { %v25676_v21 = vadd.f32 %v10851_v28, %v24884_v6  ;;  %v25679_v58 = vadd.f32 %v10812_v9, %v24887_v51  ;;  %v10853_v49 = vpop.f32.mrb[93].mxu1  ;;  %v10814_v22 = vpop.f32.mrb[94].mxu0  ;;  %12593 = vmatpush1.bf16.msra.mxu0 %v19078_v26  ;;  %v19113_v6 = vcombine.high %v18875_v19, %v18883_v25  ;;  %v18890_v51 = vld [vmem:[%s27197_s3 + $0x3120] sm:$0xff]  ;;  %v18931_v16 = vld [vmem:[%s27197_s3 + $0x3268] sm:$0xff]  ;;  %v19144_v26 = vcombine.low %v18907_v34, %v18915_v30  ;;  %v18757_v34 = vld [vmem:[%s27197_s3 + $0x2cf8] sm:$0xff] }
 0x6e3   :  { %v25682_v13 = vadd.f32 %v10853_v49, %v24890_v53  ;;  %v10855_v56 = vpop.f32.mrb[94].mxu1  ;;  %12634 = vmatpush1.bf16.msra.mxu1 %v19080_v20  ;;  %v10815_v55 = vpop.f32.mrb[95].mxu0  ;;  %12594 = vmatprep.subr.bf16.mxu0 %v19095_v63  ;;  %v18891_v53 = vld [vmem:[%s27197_s3 + $0x3128] sm:$0xff]  ;;  %v19127_v48 = vcombine.high %v18890_v51, %v18898_v2  ;;  %v19126_v36 = vcombine.low %v18890_v51, %v18898_v2  ;;  %v18716_v49 = vld [vmem:[%s27197_s3 + $0x2bb0] sm:$0xff] }
 0x6e4   :  { %v10856_v31 = vpop.f32.mrb[95].mxu1  ;;  %12635 = vmatprep.subr.bf16.mxu1 %v19097_v32  ;;  %v19129_v35 = vcombine.high %v18891_v53, %v18899_v29  ;;  %v19128_v46 = vcombine.low %v18891_v53, %v18899_v29  ;;  %v19159_v20 = vcombine.high %v18922_v8, %v18930_v39  ;;  %v19175_v63 = vcombine.high %v18938_v41, %v18938_v41  ;;  %v18724_v22 = vld [vmem:[%s27197_s3 + $0x2bf0] sm:$0xff]  ;;  %v18725_v56 = vld [vmem:[%s27197_s3 + $0x2bf8] sm:$0xff] }
 0x6e5   :  { %v19161_v47 = vcombine.high %v18923_v17, %v18931_v16  ;;  %v19177_v32 = vcombine.high %v18939_v45, %v18939_v45  ;;  %v19174_v50 = vcombine.low %v18938_v41, %v18938_v41  ;;  %v19160_v28 = vcombine.low %v18923_v17, %v18931_v16  ;;  %v18740_v51 = vld [vmem:[%s27197_s3 + $0x2c70] sm:$0xff]  ;;  %v18733_v53 = vld [vmem:[%s27197_s3 + $0x2c38] sm:$0xff] }
 0x6e6   :  { %12595 = vmatpush1.bf16.msra.mxu0 %v19094_v27  ;;  %v12392_v9 = vand.u32 %v19175_v63, %v20487_v62  ;;  %v19176_v19 = vcombine.low %v18939_v45, %v18939_v45  ;;  %v18717_v27 = vld [vmem:[%s27197_s3 + $0x2bb8] sm:$0xff]  ;;  %v18954_v2 = vcombine.low %v18716_v49, %v18724_v22  ;;  %v18772_v8 = vld [vmem:[%s27197_s3 + $0x2d70] sm:$0xff]  ;;  %v18988_v17 = vcombine.low %v18749_v24, %v18757_v34 }
 0x6e7   :  { %12636 = vmatpush1.bf16.msra.mxu1 %v19096_v54  ;;  %12596 = vmatprep.subr.bf16.mxu0 %v19111_v11  ;;  %v12398_v25 = vand.u32 %v19177_v32, %v20487_v62  ;;  %v12389_v55 = vand.u32 %v19174_v50, %v20487_v62  ;;  %v18955_v11 = vcombine.high %v18716_v49, %v18724_v22  ;;  %v18741_v29 = vld [vmem:[%s27197_s3 + $0x2c78] sm:$0xff] }
 0x6e8   :  { %12637 = vmatprep.subr.bf16.mxu1 %v19113_v6  ;;  %v12395_v54 = vand.u32 %v19176_v19, %v20487_v62  ;;  %v18957_v31 = vcombine.high %v18717_v27, %v18725_v56  ;;  %v18732_v6 = vld [vmem:[%s27197_s3 + $0x2c30] sm:$0xff]  ;;  %v18973_v3 = vcombine.high %v18733_v53, %v18741_v29  ;;  %v18765_v39 = vld [vmem:[%s27197_s3 + $0x2d38] sm:$0xff] }
 0x6e9   :  { %v18970_v30 = vcombine.low %v18732_v6, %v18740_v51  ;;  %v18773_v41 = vld [vmem:[%s27197_s3 + $0x2d78] sm:$0xff] }
 0x6ea   :  { %12597 = vmatpush1.bf16.msra.mxu0 %v19110_v33  ;;  %v18956_v33 = vcombine.low %v18717_v27, %v18725_v56  ;;  %v19005_v45 = vcombine.high %v18765_v39, %v18773_v41  ;;  %v18789_v63 = vld [vmem:[%s27197_s3 + $0x2df8] sm:$0xff]  ;;  %v19004_v32 = vcombine.low %v18765_v39, %v18773_v41 }
 0x6eb   :  { %12638 = vmatpush1.bf16.msra.mxu1 %v19112_v12  ;;  %12598 = vmatprep.subr.bf16.mxu0 %v19127_v48  ;;  %v18971_v12 = vcombine.high %v18732_v6, %v18740_v51  ;;  %v18748_v48 = vld [vmem:[%s27197_s3 + $0x2cb0] sm:$0xff]  ;;  %v18797_v19 = vld [vmem:[%s27197_s3 + $0x2e38] sm:$0xff] }
 0x6ec   :  { %12639 = vmatprep.subr.bf16.mxu1 %v19129_v35  ;;  %v18756_v35 = vld [vmem:[%s27197_s3 + $0x2cf0] sm:$0xff] }
 0x6ee   :  { %12599 = vmatpush1.bf16.msra.mxu0 %v19126_v36  ;;  %v18972_v36 = vcombine.low %v18733_v53, %v18741_v29  ;;  %v18828_v29 = vld [vmem:[%s27197_s3 + $0x2f30] sm:$0xff] }
 0x6ef   :  { %12640 = vmatpush1.bf16.msra.mxu1 %v19128_v46  ;;  %12600 = vmatprep.subr.bf16.mxu0 %v19143_v38  ;;  %v18987_v46 = vcombine.high %v18748_v48, %v18756_v35  ;;  %v18989_v38 = vcombine.high %v18749_v24, %v18757_v34 }
 0x6f0   :  { %12641 = vmatprep.subr.bf16.mxu1 %v19145_v60  ;;  %v18764_v60 = vld [vmem:[%s27197_s3 + $0x2d30] sm:$0xff] }
 0x6f1   :  { %v19003_v16 = vcombine.high %v18764_v60, %v18772_v8 }
 0x6f2   :  { %12601 = vmatpush1.bf16.msra.mxu0 %v19142_v14  ;;  %v18780_v14 = vld [vmem:[%s27197_s3 + $0x2db0] sm:$0xff] }
 0x6f3   :  { %12642 = vmatpush1.bf16.msra.mxu1 %v19144_v26  ;;  %12602 = vmatprep.subr.bf16.mxu0 %v19159_v20  ;;  %v18788_v26 = vld [vmem:[%s27197_s3 + $0x2df0] sm:$0xff]  ;;  %v18781_v20 = vld [vmem:[%s27197_s3 + $0x2db8] sm:$0xff] }
 0x6f4   :  { %12643 = vmatprep.subr.bf16.mxu1 %v19161_v47  ;;  %v19002_v47 = vcombine.low %v18764_v60, %v18772_v8  ;;  %v19021_v50 = vcombine.high %v18781_v20, %v18789_v63  ;;  %v19018_v49 = vcombine.low %v18780_v14, %v18788_v26  ;;  %v19020_v22 = vcombine.low %v18781_v20, %v18789_v63 }
 0x6f6   :  { %12603 = vmatpush1.bf16.msra.mxu0 %v19158_v37  ;;  %v19019_v37 = vcombine.high %v18780_v14, %v18788_v26 }
 0x6f7   :  { %12644 = vmatpush1.bf16.msra.mxu1 %v19160_v28  ;;  %12604 = vmatprep.subr.bf16.mxu0 %v12392_v9  ;;  %v18796_v28 = vld [vmem:[%s27197_s3 + $0x2e30] sm:$0xff] }
 0x6f8   :  { %12645 = vmatprep.subr.bf16.mxu1 %v12398_v25  ;;  %v18804_v9 = vld [vmem:[%s27197_s3 + $0x2e70] sm:$0xff]  ;;  %v18805_v25 = vld [vmem:[%s27197_s3 + $0x2e78] sm:$0xff] }
 0x6f9   :  { %v19035_v27 = vcombine.high %v18796_v28, %v18804_v9  ;;  %v19037_v56 = vcombine.high %v18797_v19, %v18805_v25  ;;  %v19034_v6 = vcombine.low %v18796_v28, %v18804_v9  ;;  %v19036_v51 = vcombine.low %v18797_v19, %v18805_v25  ;;  %v18877_v19 = vld [vmem:[%s27197_s3 + $0x30b8] sm:$0xff] }
 0x6fa   :  { %12605 = vmatpush1.bf16.msra.mxu0 %v12389_v55  ;;  %v18812_v55 = vld [vmem:[%s27197_s3 + $0x2eb0] sm:$0xff]  ;;  %v18885_v25 = vld [vmem:[%s27197_s3 + $0x30f8] sm:$0xff] }
 0x6fb   :  { %12646 = vmatpush1.bf16.msra.mxu1 %v12395_v54  ;;  %12658 = vmatprep.subr.bf16.mxu0 %v18955_v11  ;;  %v18820_v54 = vld [vmem:[%s27197_s3 + $0x2ef0] sm:$0xff]  ;;  %v18813_v11 = vld [vmem:[%s27197_s3 + $0x2eb8] sm:$0xff] }
 0x6fc   :  { %12699 = vmatprep.subr.bf16.mxu1 %v18957_v31  ;;  %v18821_v31 = vld [vmem:[%s27197_s3 + $0x2ef8] sm:$0xff] }
 0x6fd   :  { %12609 = vmatmul.mubr.bf16.vlgmr.msra.gmra.mrb[108].mxu0 %v25360_v0  ;;  %v19053_v53 = vcombine.high %v18813_v11, %v18821_v31 }
 0x6fe   :  { %12650 = vmatmul.mubr.bf16.vlgmr.msra.gmra.mrb[108].mxu1 %v25360_v0  ;;  %12659 = vmatpush1.bf16.msra.mxu0 %v18954_v2  ;;  %v19051_v2 = vcombine.high %v18812_v55, %v18820_v54 }
 0x6ff   :  { %19188 = vmatprep.mubr.msk.bf16.mxu0 %vm1835_vm2, %v25167_v52  ;;  %12700 = vmatpush1.bf16.msra.mxu1 %v18956_v33  ;;  %v18836_v33 = vld [vmem:[%s27197_s3 + $0x2f70] sm:$0xff] }
 0x700   :  { %19189 = vmatprep.mubr.msk.bf16.mxu1 %vm1835_vm2, %v25167_v52  ;;  %12660 = vmatprep.subr.bf16.mxu0 %v18971_v12  ;;  %v18986_v52 = vcombine.low %v18748_v48, %v18756_v35  ;;  %v18829_v12 = vld [vmem:[%s27197_s3 + $0x2f38] sm:$0xff]  ;;  %v19050_v35 = vcombine.low %v18812_v55, %v18820_v54  ;;  %v19067_v24 = vcombine.high %v18828_v29, %v18836_v33 }
 0x701   :  { %12701 = vmatprep.subr.bf16.mxu1 %v18973_v3  ;;  %v18837_v48 = vld [vmem:[%s27197_s3 + $0x2f78] sm:$0xff]  ;;  %v19052_v3 = vcombine.low %v18813_v11, %v18821_v31  ;;  %v19066_v60 = vcombine.low %v18828_v29, %v18836_v33  ;;  %v19116_v33 = vcombine.low %v18877_v19, %v18885_v25 }
 0x702   :  { %12661 = vmatpush1.bf16.msra.mxu0 %v18970_v30  ;;  %v19069_v34 = vcombine.high %v18829_v12, %v18837_v48  ;;  %v18844_v30 = vld [vmem:[%s27197_s3 + $0x2fb0] sm:$0xff]  ;;  %v19068_v8 = vcombine.low %v18829_v12, %v18837_v48 }
 0x703   :  { %12702 = vmatpush1.bf16.msra.mxu1 %v18972_v36  ;;  %12662 = vmatprep.subr.bf16.mxu0 %v18987_v46  ;;  %v18852_v36 = vld [vmem:[%s27197_s3 + $0x2ff0] sm:$0xff]  ;;  %v18845_v46 = vld [vmem:[%s27197_s3 + $0x2fb8] sm:$0xff] }
 0x704   :  { %12703 = vmatprep.subr.bf16.mxu1 %v18989_v38  ;;  %v18853_v38 = vld [vmem:[%s27197_s3 + $0x2ff8] sm:$0xff]  ;;  %v19083_v39 = vcombine.high %v18844_v30, %v18852_v36  ;;  %v19082_v14 = vcombine.low %v18844_v30, %v18852_v36 }
 0x705   :  { %v19085_v41 = vcombine.high %v18845_v46, %v18853_v38  ;;  %v19084_v26 = vcombine.low %v18845_v46, %v18853_v38 }
 0x706   :  { %12663 = vmatpush1.bf16.msra.mxu0 %v18986_v52  ;;  %v18860_v52 = vld [vmem:[%s27197_s3 + $0x3030] sm:$0xff] }
 0x707   :  { %12704 = vmatpush1.bf16.msra.mxu1 %v18988_v17  ;;  %12664 = vmatprep.subr.bf16.mxu0 %v19003_v16  ;;  %v18868_v17 = vld [vmem:[%s27197_s3 + $0x3070] sm:$0xff]  ;;  %v18861_v16 = vld [vmem:[%s27197_s3 + $0x3038] sm:$0xff] }
 0x708   :  { %12705 = vmatprep.subr.bf16.mxu1 %v19005_v45  ;;  %v18869_v45 = vld [vmem:[%s27197_s3 + $0x3078] sm:$0xff]  ;;  %v19099_v20 = vcombine.high %v18860_v52, %v18868_v17 }
 0x709   :  { %v19100_v31 = vcombine.low %v18861_v16, %v18869_v45 }
 0x70a   :  { %12665 = vmatpush1.bf16.msra.mxu0 %v19002_v47  ;;  %v19101_v47 = vcombine.high %v18861_v16, %v18869_v45 }
 0x70b   :  { %12706 = vmatpush1.bf16.msra.mxu1 %v19004_v32  ;;  %12666 = vmatprep.subr.bf16.mxu0 %v19019_v37  ;;  %v18876_v32 = vld [vmem:[%s27197_s3 + $0x30b0] sm:$0xff] }
 0x70c   :  { %12707 = vmatprep.subr.bf16.mxu1 %v19021_v50  ;;  %v18884_v37 = vld [vmem:[%s27197_s3 + $0x30f0] sm:$0xff] }
 0x70d   :  { %v19114_v29 = vcombine.low %v18876_v32, %v18884_v37 }
 0x70e   :  { %12667 = vmatpush1.bf16.msra.mxu0 %v19018_v49 }
 0x70f   :  { %12708 = vmatpush1.bf16.msra.mxu1 %v19020_v22  ;;  %12668 = vmatprep.subr.bf16.mxu0 %v19035_v27 }
 0x710   :  { %12709 = vmatprep.subr.bf16.mxu1 %v19037_v56 }
 0x712   :  { %12669 = vmatpush1.bf16.msra.mxu0 %v19034_v6  ;;  %v19115_v6 = vcombine.high %v18876_v32, %v18884_v37 }
 0x713   :  { %12710 = vmatpush1.bf16.msra.mxu1 %v19036_v51  ;;  %12670 = vmatprep.subr.bf16.mxu0 %v19051_v2  ;;  %v18900_v2 = vld [vmem:[%s27197_s3 + $0x3170] sm:$0xff] }
 0x714   :  { %12711 = vmatprep.subr.bf16.mxu1 %v19053_v53  ;;  %v18901_v53 = vld [vmem:[%s27197_s3 + $0x3178] sm:$0xff] }
 0x716   :  { %12671 = vmatpush1.bf16.msra.mxu0 %v19050_v35  ;;  %v18908_v35 = vld [vmem:[%s27197_s3 + $0x31b0] sm:$0xff] }
 0x717   :  { %12712 = vmatpush1.bf16.msra.mxu1 %v19052_v3  ;;  %12672 = vmatprep.subr.bf16.mxu0 %v19067_v24  ;;  %v18916_v3 = vld [vmem:[%s27197_s3 + $0x31f0] sm:$0xff]  ;;  %v18909_v24 = vld [vmem:[%s27197_s3 + $0x31b8] sm:$0xff] }
 0x718   :  { %12713 = vmatprep.subr.bf16.mxu1 %v19069_v34  ;;  %v18917_v34 = vld [vmem:[%s27197_s3 + $0x31f8] sm:$0xff]  ;;  %v19147_v46 = vcombine.high %v18908_v35, %v18916_v3  ;;  %v19146_v16 = vcombine.low %v18908_v35, %v18916_v3  ;;  %v19223_v3 = vld [vmem:[%s27197_s3 + $0x33c8] sm:$0xff] }
 0x719   :  { %v19149_v38 = vcombine.high %v18909_v24, %v18917_v34  ;;  %v19148_v45 = vcombine.low %v18909_v24, %v18917_v34  ;;  %v19231_v24 = vld [vmem:[%s27197_s3 + $0x3408] sm:$0xff] }
 0x71a   :  { %12673 = vmatpush1.bf16.msra.mxu0 %v19066_v60  ;;  %v18924_v60 = vld [vmem:[%s27197_s3 + $0x3230] sm:$0xff] }
 0x71b   :  { %12714 = vmatpush1.bf16.msra.mxu1 %v19068_v8  ;;  %12674 = vmatprep.subr.bf16.mxu0 %v19083_v39  ;;  %v18932_v8 = vld [vmem:[%s27197_s3 + $0x3270] sm:$0xff] }
 0x71c   :  { %v10892_v63 = vpop.f32.mrb[96].mxu0  ;;  %12715 = vmatprep.subr.bf16.mxu1 %v19085_v41  ;;  %v18940_v39 = vld [vmem:[%s27197_s3 + $0x32b0] sm:$0x11]  ;;  %v18925_v41 = vld [vmem:[%s27197_s3 + $0x3238] sm:$0xff] }
 0x71d   :  { %v25863_v50 = vadd.f32 %v10892_v63, %v25071_v59  ;;  %v10933_v28 = vpop.f32.mrb[96].mxu1  ;;  %v10894_v9 = vpop.f32.mrb[97].mxu0  ;;  %v19098_v59 = vcombine.low %v18860_v52, %v18868_v17  ;;  %v18933_v52 = vld [vmem:[%s27197_s3 + $0x3278] sm:$0xff]  ;;  %v19178_v32 = vcombine.low %v18940_v39, %v18940_v39 }
 0x71e   :  { %v25872_v49 = vadd.f32 %v10933_v28, %v25080_v57  ;;  %v25875_v22 = vadd.f32 %v10894_v9, %v25083_v5  ;;  %v10935_v27 = vpop.f32.mrb[97].mxu1  ;;  %v10896_v56 = vpop.f32.mrb[98].mxu0  ;;  %12675 = vmatpush1.bf16.msra.mxu0 %v19082_v14  ;;  %v19117_v57 = vcombine.high %v18877_v19, %v18885_v25  ;;  %v18892_v5 = vld [vmem:[%s27197_s3 + $0x3130] sm:$0xff]  ;;  %v18941_v17 = vld [vmem:[%s27197_s3 + $0x32b8] sm:$0x11]  ;;  %v19163_v14 = vcombine.high %v18924_v60, %v18932_v8  ;;  %v19190_v25 = vld [vmem:[%s27197_s3 + $0x32c0] sm:$0xff] }
 0x71f   :  { %v25878_v55 = vadd.f32 %v10935_v27, %v25086_v10  ;;  %v10937_v54 = vpop.f32.mrb[98].mxu1  ;;  %12716 = vmatpush1.bf16.msra.mxu1 %v19084_v26  ;;  %v10897_v11 = vpop.f32.mrb[99].mxu0  ;;  %12676 = vmatprep.subr.bf16.mxu0 %v19099_v20  ;;  %v18893_v10 = vld [vmem:[%s27197_s3 + $0x3138] sm:$0xff]  ;;  %v19131_v12 = vcombine.high %v18892_v5, %v18900_v2  ;;  %v19130_v30 = vcombine.low %v18892_v5, %v18900_v2  ;;  %v19198_v27 = vld [vmem:[%s27197_s3 + $0x3300] sm:$0xff]  ;;  %v19191_v56 = vld [vmem:[%s27197_s3 + $0x32c8] sm:$0xff] }
 0x720   :  { %v10938_v51 = vpop.f32.mrb[99].mxu1  ;;  %12717 = vmatprep.subr.bf16.mxu1 %v19101_v47  ;;  %v19133_v48 = vcombine.high %v18893_v10, %v18901_v53  ;;  %v19132_v36 = vcombine.low %v18893_v10, %v18901_v53  ;;  %v19179_v26 = vcombine.high %v18940_v39, %v18940_v39  ;;  %v19165_v20 = vcombine.high %v18925_v41, %v18933_v52  ;;  %v19207_v2 = vld [vmem:[%s27197_s3 + $0x3348] sm:$0xff] }
 0x721   :  { %v19181_v63 = vcombine.high %v18941_v17, %v18941_v17  ;;  %v19162_v47 = vcombine.low %v18924_v60, %v18932_v8  ;;  %v19164_v37 = vcombine.low %v18925_v41, %v18933_v52  ;;  %v19180_v9 = vcombine.low %v18941_v17, %v18941_v17  ;;  %v19206_v51 = vld [vmem:[%s27197_s3 + $0x3340] sm:$0xff]  ;;  %v19215_v10 = vld [vmem:[%s27197_s3 + $0x3388] sm:$0xff] }
 0x722   :  { %12677 = vmatpush1.bf16.msra.mxu0 %v19098_v59  ;;  %v12404_v28 = vand.u32 %v19179_v26, %v20487_v62  ;;  %v19199_v59 = vld [vmem:[%s27197_s3 + $0x3308] sm:$0xff]  ;;  %v12401_v54 = vand.u32 %v19178_v32, %v20487_v62  ;;  %v19422_v5 = vcombine.low %v19190_v25, %v19198_v27  ;;  %v19441_v35 = vcombine.high %v19207_v2, %v19215_v10  ;;  %v19254_v17 = vld [vmem:[%s27197_s3 + $0x34c0] sm:$0xff] }
 0x723   :  { %12718 = vmatpush1.bf16.msra.mxu1 %v19100_v31  ;;  %12678 = vmatprep.subr.bf16.mxu0 %v19115_v6  ;;  %v12410_v19 = vand.u32 %v19181_v63, %v20487_v62  ;;  %v12407_v11 = vand.u32 %v19180_v9, %v20487_v62  ;;  %v19423_v31 = vcombine.high %v19190_v25, %v19198_v27  ;;  %v19247_v60 = vld [vmem:[%s27197_s3 + $0x3488] sm:$0xff]  ;;  %v19270_v32 = vld [vmem:[%s27197_s3 + $0x3540] sm:$0xff] }
 0x724   :  { %12719 = vmatprep.subr.bf16.mxu1 %v19117_v57  ;;  %v19425_v6 = vcombine.high %v19191_v56, %v19199_v59  ;;  %v19214_v57 = vld [vmem:[%s27197_s3 + $0x3380] sm:$0xff]  ;;  %v19424_v53 = vcombine.low %v19191_v56, %v19199_v59  ;;  %v19456_v39 = vcombine.low %v19223_v3, %v19231_v24  ;;  %v19279_v9 = vld [vmem:[%s27197_s3 + $0x3588] sm:$0xff] }
 0x725   :  { %v19438_v34 = vcombine.low %v19206_v51, %v19214_v57  ;;  %v19286_v59 = vld [vmem:[%s27197_s3 + $0x35c0] sm:$0xff] }
 0x726   :  { %12679 = vmatpush1.bf16.msra.mxu0 %v19114_v29  ;;  %v19439_v29 = vcombine.high %v19206_v51, %v19214_v57 }
 0x727   :  { %12720 = vmatpush1.bf16.msra.mxu1 %v19116_v33  ;;  %12680 = vmatprep.subr.bf16.mxu0 %v19131_v12  ;;  %v19222_v33 = vld [vmem:[%s27197_s3 + $0x33c0] sm:$0xff] }
 0x728   :  { %12721 = vmatprep.subr.bf16.mxu1 %v19133_v48  ;;  %v19230_v12 = vld [vmem:[%s27197_s3 + $0x3400] sm:$0xff]  ;;  %v25959_v48 = vpack.c.bf16 %v20699_v40, %v20699_v40 }
 0x729   :  { %v19455_v40 = vcombine.high %v19222_v33, %v19230_v12  ;;  %v19454_v8 = vcombine.low %v19222_v33, %v19230_v12 }
 0x72a   :  { %12681 = vmatpush1.bf16.msra.mxu0 %v19130_v30  ;;  %v19440_v30 = vcombine.low %v19207_v2, %v19215_v10  ;;  %v19302_v2 = vld [vmem:[%s27197_s3 + $0x3640] sm:$0xff] }
 0x72b   :  { %12722 = vmatpush1.bf16.msra.mxu1 %v19132_v36  ;;  %12682 = vmatprep.subr.bf16.mxu0 %v19147_v46  ;;  %v19457_v36 = vcombine.high %v19223_v3, %v19231_v24  ;;  %v19238_v46 = vld [vmem:[%s27197_s3 + $0x3440] sm:$0xff] }
 0x72c   :  { %12723 = vmatprep.subr.bf16.mxu1 %v19149_v38  ;;  %v19239_v38 = vld [vmem:[%s27197_s3 + $0x3448] sm:$0xff]  ;;  %v19310_v10 = vld [vmem:[%s27197_s3 + $0x3680] sm:$0xff] }
 0x72d   :  { %v19473_v52 = vcombine.high %v19239_v38, %v19247_v60  ;;  %v19318_v24 = vld [vmem:[%s27197_s3 + $0x36c0] sm:$0xff] }
 0x72e   :  { %12683 = vmatpush1.bf16.msra.mxu0 %v19146_v16  ;;  %v19262_v16 = vld [vmem:[%s27197_s3 + $0x3500] sm:$0xff] }
 0x72f   :  { %12724 = vmatpush1.bf16.msra.mxu1 %v19148_v45  ;;  %12684 = vmatprep.subr.bf16.mxu0 %v19163_v14  ;;  %v19255_v45 = vld [vmem:[%s27197_s3 + $0x34c8] sm:$0xff]  ;;  %v19487_v63 = vcombine.high %v19254_v17, %v19262_v16 }
 0x730   :  { %12725 = vmatprep.subr.bf16.mxu1 %v19165_v20  ;;  %v19263_v14 = vld [vmem:[%s27197_s3 + $0x3508] sm:$0xff]  ;;  %v19472_v20 = vcombine.low %v19239_v38, %v19247_v60  ;;  %v19334_v60 = vld [vmem:[%s27197_s3 + $0x3740] sm:$0xff] }
 0x731   :  { %v19488_v25 = vcombine.low %v19255_v45, %v19263_v14 }
 0x732   :  { %12685 = vmatpush1.bf16.msra.mxu0 %v19162_v47  ;;  %v19489_v47 = vcombine.high %v19255_v45, %v19263_v14 }
 0x733   :  { %12726 = vmatpush1.bf16.msra.mxu1 %v19164_v37  ;;  %12686 = vmatprep.subr.bf16.mxu0 %v12404_v28  ;;  %v19278_v37 = vld [vmem:[%s27197_s3 + $0x3580] sm:$0xff]  ;;  %v19271_v28 = vld [vmem:[%s27197_s3 + $0x3548] sm:$0xff] }
 0x734   :  { %12727 = vmatprep.subr.bf16.mxu1 %v12410_v19  ;;  %v19486_v19 = vcombine.low %v19254_v17, %v19262_v16  ;;  %v19503_v27 = vcombine.high %v19270_v32, %v19278_v37  ;;  %v19505_v56 = vcombine.high %v19271_v28, %v19279_v9  ;;  %v19504_v51 = vcombine.low %v19271_v28, %v19279_v9  ;;  %v19359_v28 = vld [vmem:[%s27197_s3 + $0x3808] sm:$0xff] }
 0x736   :  { %12687 = vmatpush1.bf16.msra.mxu0 %v12401_v54  ;;  %v19294_v54 = vld [vmem:[%s27197_s3 + $0x3600] sm:$0xff] }
 0x737   :  { %12728 = vmatpush1.bf16.msra.mxu1 %v12407_v11  ;;  %14212 = vmatprep.subr.bf16.mxu0 %v19423_v31  ;;  %v19287_v11 = vld [vmem:[%s27197_s3 + $0x35c8] sm:$0xff]  ;;  %v19519_v57 = vcombine.high %v19286_v59, %v19294_v54  ;;  %v19518_v33 = vcombine.low %v19286_v59, %v19294_v54 }
 0x738   :  { %14253 = vmatprep.subr.bf16.mxu1 %v19425_v6  ;;  %v19295_v31 = vld [vmem:[%s27197_s3 + $0x3608] sm:$0xff]  ;;  %v19502_v6 = vcombine.low %v19270_v32, %v19278_v37 }
 0x739   :  { %12691 = vmatmul.mubr.bf16.vlgmr.msra.gmra.mrb[112].mxu0 %v25360_v0  ;;  %v19520_v12 = vcombine.low %v19287_v11, %v19295_v31  ;;  %v19351_v37 = vld [vmem:[%s27197_s3 + $0x37c8] sm:$0xff] }
 0x73a   :  { %12732 = vmatmul.mubr.bf16.vlgmr.msra.gmra.mrb[112].mxu1 %v25360_v0  ;;  %14213 = vmatpush1.bf16.msra.mxu0 %v19422_v5  ;;  %v19246_v0 = vld [vmem:[%s27197_s3 + $0x3480] sm:$0xff]  ;;  %v19521_v5 = vcombine.high %v19287_v11, %v19295_v31 }
 0x73b   :  { %19662 = vmatprep.mubr.msk.bf16.mxu0 %vm1835_vm2, %v25959_v48  ;;  %14254 = vmatpush1.bf16.msra.mxu1 %v19424_v53  ;;  %v19471_v41 = vcombine.high %v19238_v46, %v19246_v0  ;;  %v19470_v26 = vcombine.low %v19238_v46, %v19246_v0  ;;  %v19303_v53 = vld [vmem:[%s27197_s3 + $0x3648] sm:$0xff] }
 0x73c   :  { %19663 = vmatprep.mubr.msk.bf16.mxu1 %vm1835_vm2, %v25959_v48  ;;  %14214 = vmatprep.subr.bf16.mxu0 %v19439_v29  ;;  %v19311_v29 = vld [vmem:[%s27197_s3 + $0x3688] sm:$0xff] }
 0x73d   :  { %14255 = vmatprep.subr.bf16.mxu1 %v19441_v35  ;;  %v19535_v35 = vcombine.high %v19302_v2, %v19310_v10  ;;  %v19537_v3 = vcombine.high %v19303_v53, %v19311_v29  ;;  %v19536_v46 = vcombine.low %v19303_v53, %v19311_v29  ;;  %v19382_v29 = vld [vmem:[%s27197_s3 + $0x38c0] sm:$0xff] }
 0x73e   :  { %14215 = vmatpush1.bf16.msra.mxu0 %v19438_v34  ;;  %v19326_v34 = vld [vmem:[%s27197_s3 + $0x3700] sm:$0xff] }
 0x73f   :  { %14256 = vmatpush1.bf16.msra.mxu1 %v19440_v30  ;;  %14216 = vmatprep.subr.bf16.mxu0 %v19455_v40  ;;  %v19319_v30 = vld [vmem:[%s27197_s3 + $0x36c8] sm:$0xff]  ;;  %v19551_v0 = vcombine.high %v19318_v24, %v19326_v34 }
 0x740   :  { %14257 = vmatprep.subr.bf16.mxu1 %v19457_v36  ;;  %v19327_v40 = vld [vmem:[%s27197_s3 + $0x3708] sm:$0xff]  ;;  %v19534_v36 = vcombine.low %v19302_v2, %v19310_v10  ;;  %v19584_v2 = vcombine.low %v19351_v37, %v19359_v28 }
 0x741   :  { %v19553_v38 = vcombine.high %v19319_v30, %v19327_v40  ;;  %v19552_v17 = vcombine.low %v19319_v30, %v19327_v40  ;;  %v19398_v40 = vld [vmem:[%s27197_s3 + $0x3940] sm:$0xff] }
 0x742   :  { %14217 = vmatpush1.bf16.msra.mxu0 %v19454_v8  ;;  %v19342_v8 = vld [vmem:[%s27197_s3 + $0x3780] sm:$0xff] }
 0x743   :  { %14258 = vmatpush1.bf16.msra.mxu1 %v19456_v39  ;;  %14218 = vmatprep.subr.bf16.mxu0 %v19471_v41  ;;  %v19335_v39 = vld [vmem:[%s27197_s3 + $0x3748] sm:$0xff]  ;;  %v19567_v16 = vcombine.high %v19334_v60, %v19342_v8 }
 0x744   :  { %14259 = vmatprep.subr.bf16.mxu1 %v19473_v52  ;;  %v19343_v41 = vld [vmem:[%s27197_s3 + $0x3788] sm:$0xff]  ;;  %v19550_v52 = vcombine.low %v19318_v24, %v19326_v34 }
 0x745   :  { %v19569_v14 = vcombine.high %v19335_v39, %v19343_v41  ;;  %v19568_v11 = vcombine.low %v19335_v39, %v19343_v41 }
 0x746   :  { %14219 = vmatpush1.bf16.msra.mxu0 %v19470_v26  ;;  %v19350_v26 = vld [vmem:[%s27197_s3 + $0x37c0] sm:$0xff] }
 0x747   :  { %14260 = vmatpush1.bf16.msra.mxu1 %v19472_v20  ;;  %14220 = vmatprep.subr.bf16.mxu0 %v19487_v63  ;;  %v19358_v20 = vld [vmem:[%s27197_s3 + $0x3800] sm:$0xff] }
 0x748   :  { %14261 = vmatprep.subr.bf16.mxu1 %v19489_v47  ;;  %v19583_v31 = vcombine.high %v19350_v26, %v19358_v20 }
 0x74a   :  { %14221 = vmatpush1.bf16.msra.mxu0 %v19486_v19 }
 0x74b   :  { %14262 = vmatpush1.bf16.msra.mxu1 %v19488_v25  ;;  %14222 = vmatprep.subr.bf16.mxu0 %v19503_v27 }
 0x74c   :  { %14263 = vmatprep.subr.bf16.mxu1 %v19505_v56 }
 0x74e   :  { %14223 = vmatpush1.bf16.msra.mxu0 %v19502_v6 }
 0x74f   :  { %14264 = vmatpush1.bf16.msra.mxu1 %v19504_v51  ;;  %14224 = vmatprep.subr.bf16.mxu0 %v19519_v57  ;;  %v19374_v51 = vld [vmem:[%s27197_s3 + $0x3880] sm:$0xff]  ;;  %v19375_v57 = vld [vmem:[%s27197_s3 + $0x3888] sm:$0xff] }
 0x750   :  { %14265 = vmatprep.subr.bf16.mxu1 %v19521_v5  ;;  %v19582_v5 = vcombine.low %v19350_v26, %v19358_v20 }
 0x752   :  { %14225 = vmatpush1.bf16.msra.mxu0 %v19518_v33  ;;  %v19390_v33 = vld [vmem:[%s27197_s3 + $0x3900] sm:$0xff] }
 0x753   :  { %14266 = vmatpush1.bf16.msra.mxu1 %v19520_v12  ;;  %14226 = vmatprep.subr.bf16.mxu0 %v19535_v35  ;;  %v19383_v12 = vld [vmem:[%s27197_s3 + $0x38c8] sm:$0xff]  ;;  %v19615_v34 = vcombine.high %v19382_v29, %v19390_v33 }
 0x754   :  { %14267 = vmatprep.subr.bf16.mxu1 %v19537_v3  ;;  %v19391_v35 = vld [vmem:[%s27197_s3 + $0x3908] sm:$0xff] }
 0x755   :  { %v19617_v30 = vcombine.high %v19383_v12, %v19391_v35  ;;  %v19616_v39 = vcombine.low %v19383_v12, %v19391_v35 }
 0x756   :  { %14227 = vmatpush1.bf16.msra.mxu0 %v19534_v36  ;;  %v19406_v36 = vld [vmem:[%s27197_s3 + $0x3980] sm:$0xff] }
 0x757   :  { %14268 = vmatpush1.bf16.msra.mxu1 %v19536_v46  ;;  %14228 = vmatprep.subr.bf16.mxu0 %v19551_v0  ;;  %v19414_v46 = vld [vmem:[%s27197_s3 + $0x39c0] sm:$0x11]  ;;  %v19399_v0 = vld [vmem:[%s27197_s3 + $0x3948] sm:$0xff]  ;;  %v19631_v41 = vcombine.high %v19398_v40, %v19406_v36 }
 0x758   :  { %v12446_v45 = vpop.f32.mrb[100].mxu0  ;;  %14269 = vmatprep.subr.bf16.mxu1 %v19553_v38  ;;  %v19407_v38 = vld [vmem:[%s27197_s3 + $0x3988] sm:$0xff] }
 0x759   :  { %v26063_v63 = vadd.f32 %v12446_v45, %v25271_v42  ;;  %v12487_v47 = vpop.f32.mrb[100].mxu1  ;;  %v12448_v32 = vpop.f32.mrb[101].mxu0  ;;  %v19566_v42 = vcombine.low %v19334_v60, %v19342_v8  ;;  %v19415_v60 = vld [vmem:[%s27197_s3 + $0x39c8] sm:$0x11]  ;;  %v19614_v8 = vcombine.low %v19382_v29, %v19390_v33  ;;  %v19630_v45 = vcombine.low %v19398_v40, %v19406_v36  ;;  %v19233_v29 = vld [vmem:[%s27197_s3 + $0x3418] sm:$0xff] }
 0x75a   :  { %v26072_v9 = vadd.f32 %v12487_v47, %v25280_v7  ;;  %v26075_v19 = vadd.f32 %v12448_v32, %v25283_v43  ;;  %v12489_v25 = vpop.f32.mrb[101].mxu1  ;;  %v12450_v27 = vpop.f32.mrb[102].mxu0  ;;  %14229 = vmatpush1.bf16.msra.mxu0 %v19550_v52  ;;  %v19585_v7 = vcombine.high %v19351_v37, %v19359_v28  ;;  %v19366_v43 = vld [vmem:[%s27197_s3 + $0x3840] sm:$0xff]  ;;  %v19647_v52 = vcombine.high %v19414_v46, %v19414_v46  ;;  %v19192_v37 = vld [vmem:[%s27197_s3 + $0x32d0] sm:$0xff]  ;;  %v19249_v40 = vld [vmem:[%s27197_s3 + $0x3498] sm:$0xff] }
 0x75b   :  { %v26078_v56 = vadd.f32 %v12489_v25, %v25286_v23  ;;  %v12491_v59 = vpop.f32.mrb[102].mxu1  ;;  %14270 = vmatpush1.bf16.msra.mxu1 %v19552_v17  ;;  %v12451_v54 = vpop.f32.mrb[103].mxu0  ;;  %14230 = vmatprep.subr.bf16.mxu0 %v19567_v16  ;;  %v19367_v23 = vld [vmem:[%s27197_s3 + $0x3848] sm:$0xff]  ;;  %v19599_v10 = vcombine.high %v19366_v43, %v19374_v51  ;;  %v19598_v3 = vcombine.low %v19366_v43, %v19374_v51  ;;  %v19200_v28 = vld [vmem:[%s27197_s3 + $0x3310] sm:$0xff]  ;;  %v19193_v25 = vld [vmem:[%s27197_s3 + $0x32d8] sm:$0xff] }
 0x75c   :  { %v12492_v6 = vpop.f32.mrb[103].mxu1  ;;  %14271 = vmatprep.subr.bf16.mxu1 %v19569_v14  ;;  %v19601_v53 = vcombine.high %v19367_v23, %v19375_v57  ;;  %v19600_v24 = vcombine.low %v19367_v23, %v19375_v57  ;;  %v19633_v17 = vcombine.high %v19399_v0, %v19407_v38  ;;  %v19649_v16 = vcombine.high %v19415_v60, %v19415_v60  ;;  %v19201_v27 = vld [vmem:[%s27197_s3 + $0x3318] sm:$0xff] }
 0x75d   :  { %v19646_v14 = vcombine.low %v19414_v46, %v19414_v46  ;;  %v19632_v26 = vcombine.low %v19399_v0, %v19407_v38  ;;  %v14168_v20 = vand.u32 %v19647_v52, %v20487_v62  ;;  %v19648_v47 = vcombine.low %v19415_v60, %v19415_v60  ;;  %v19216_v6 = vld [vmem:[%s27197_s3 + $0x3390] sm:$0xff]  ;;  %v19209_v43 = vld [vmem:[%s27197_s3 + $0x3358] sm:$0xff] }
 0x75e   :  { %14231 = vmatpush1.bf16.msra.mxu0 %v19566_v42  ;;  %v14174_v32 = vand.u32 %v19649_v16, %v20487_v62  ;;  %v19427_v54 = vcombine.high %v19192_v37, %v19200_v28  ;;  %v19217_v51 = vld [vmem:[%s27197_s3 + $0x3398] sm:$0xff]  ;;  %v26152_v23 = vpack.c.bf16 %v20705_v44, %v20705_v44  ;;  %v19428_v57 = vcombine.low %v19193_v25, %v19201_v27  ;;  %v19256_v60 = vld [vmem:[%s27197_s3 + $0x34d0] sm:$0xff] }
 0x75f   :  { %14272 = vmatpush1.bf16.msra.mxu1 %v19568_v11  ;;  %14232 = vmatprep.subr.bf16.mxu0 %v19583_v31  ;;  %v14165_v42 = vand.u32 %v19646_v14, %v20487_v62  ;;  %v14171_v59 = vand.u32 %v19648_v47, %v20487_v62  ;;  %v19429_v11 = vcombine.high %v19193_v25, %v19201_v27  ;;  %v19208_v31 = vld [vmem:[%s27197_s3 + $0x3350] sm:$0xff]  ;;  %v19225_v44 = vld [vmem:[%s27197_s3 + $0x33d8] sm:$0xff] }
 0x760   :  { %14273 = vmatprep.subr.bf16.mxu1 %v19585_v7  ;;  %v19426_v7 = vcombine.low %v19192_v37, %v19200_v28  ;;  %v19442_v33 = vcombine.low %v19208_v31, %v19216_v6  ;;  %v19444_v12 = vcombine.low %v19209_v43, %v19217_v51  ;;  %v19460_v46 = vcombine.low %v19225_v44, %v19233_v29  ;;  %v19272_v14 = vld [vmem:[%s27197_s3 + $0x3550] sm:$0xff]  ;;  %v19281_v47 = vld [vmem:[%s27197_s3 + $0x3598] sm:$0xff] }
 0x761   :  { %v19288_v27 = vld [vmem:[%s27197_s3 + $0x35d0] sm:$0xff] }
 0x762   :  { %14233 = vmatpush1.bf16.msra.mxu0 %v19582_v5  ;;  %v19443_v5 = vcombine.high %v19208_v31, %v19216_v6 }
 0x763   :  { %14274 = vmatpush1.bf16.msra.mxu1 %v19584_v2  ;;  %14234 = vmatprep.subr.bf16.mxu0 %v19599_v10  ;;  %v19224_v2 = vld [vmem:[%s27197_s3 + $0x33d0] sm:$0xff] }
 0x764   :  { %14275 = vmatprep.subr.bf16.mxu1 %v19601_v53  ;;  %v19232_v10 = vld [vmem:[%s27197_s3 + $0x3410] sm:$0xff]  ;;  %v19445_v53 = vcombine.high %v19209_v43, %v19217_v51 }
 0x765   :  { %v19459_v35 = vcombine.high %v19224_v2, %v19232_v10  ;;  %v19458_v36 = vcombine.low %v19224_v2, %v19232_v10  ;;  %v19304_v43 = vld [vmem:[%s27197_s3 + $0x3650] sm:$0xff] }
 0x766   :  { %14235 = vmatpush1.bf16.msra.mxu0 %v19598_v3  ;;  %v19461_v3 = vcombine.high %v19225_v44, %v19233_v29  ;;  %v19312_v51 = vld [vmem:[%s27197_s3 + $0x3690] sm:$0xff] }
 0x767   :  { %14276 = vmatpush1.bf16.msra.mxu1 %v19600_v24  ;;  %14236 = vmatprep.subr.bf16.mxu0 %v19615_v34  ;;  %v19240_v24 = vld [vmem:[%s27197_s3 + $0x3450] sm:$0xff] }
 0x768   :  { %14277 = vmatprep.subr.bf16.mxu1 %v19617_v30  ;;  %v19248_v34 = vld [vmem:[%s27197_s3 + $0x3490] sm:$0xff]  ;;  %v19241_v30 = vld [vmem:[%s27197_s3 + $0x3458] sm:$0xff] }
 0x769   :  { %v19475_v0 = vcombine.high %v19240_v24, %v19248_v34  ;;  %v19477_v38 = vcombine.high %v19241_v30, %v19249_v40  ;;  %v19474_v52 = vcombine.low %v19240_v24, %v19248_v34  ;;  %v19320_v29 = vld [vmem:[%s27197_s3 + $0x36d0] sm:$0xff] }
 0x76a   :  { %14237 = vmatpush1.bf16.msra.mxu0 %v19614_v8  ;;  %v19264_v8 = vld [vmem:[%s27197_s3 + $0x3510] sm:$0xff] }
 0x76b   :  { %14278 = vmatpush1.bf16.msra.mxu1 %v19616_v39  ;;  %14238 = vmatprep.subr.bf16.mxu0 %v19631_v41  ;;  %v19257_v39 = vld [vmem:[%s27197_s3 + $0x34d8] sm:$0xff]  ;;  %v19491_v16 = vcombine.high %v19256_v60, %v19264_v8 }
 0x76c   :  { %14279 = vmatprep.subr.bf16.mxu1 %v19633_v17  ;;  %v19265_v41 = vld [vmem:[%s27197_s3 + $0x3518] sm:$0xff]  ;;  %v19476_v17 = vcombine.low %v19241_v30, %v19249_v40  ;;  %v19336_v40 = vld [vmem:[%s27197_s3 + $0x3750] sm:$0xff] }
 0x76d   :  { %v19492_v37 = vcombine.low %v19257_v39, %v19265_v41 }
 0x76e   :  { %14239 = vmatpush1.bf16.msra.mxu0 %v19630_v45  ;;  %v19493_v45 = vcombine.high %v19257_v39, %v19265_v41 }
 0x76f   :  { %14280 = vmatpush1.bf16.msra.mxu1 %v19632_v26  ;;  %14240 = vmatprep.subr.bf16.mxu0 %v14168_v20  ;;  %v19280_v26 = vld [vmem:[%s27197_s3 + $0x3590] sm:$0xff]  ;;  %v19273_v20 = vld [vmem:[%s27197_s3 + $0x3558] sm:$0xff] }
 0x770   :  { %14281 = vmatprep.subr.bf16.mxu1 %v14174_v32  ;;  %v19490_v32 = vcombine.low %v19256_v60, %v19264_v8  ;;  %v19507_v28 = vcombine.high %v19272_v14, %v19280_v26  ;;  %v19509_v25 = vcombine.high %v19273_v20, %v19281_v47  ;;  %v19508_v31 = vcombine.low %v19273_v20, %v19281_v47  ;;  %v19361_v20 = vld [vmem:[%s27197_s3 + $0x3818] sm:$0xff] }
 0x772   :  { %14241 = vmatpush1.bf16.msra.mxu0 %v14165_v42  ;;  %v19296_v42 = vld [vmem:[%s27197_s3 + $0x3610] sm:$0xff] }
 0x773   :  { %14282 = vmatpush1.bf16.msra.mxu1 %v14171_v59  ;;  %14294 = vmatprep.subr.bf16.mxu0 %v19427_v54  ;;  %v19289_v59 = vld [vmem:[%s27197_s3 + $0x35d8] sm:$0xff]  ;;  %v19523_v6 = vcombine.high %v19288_v27, %v19296_v42  ;;  %v19522_v2 = vcombine.low %v19288_v27, %v19296_v42 }
 0x774   :  { %14335 = vmatprep.subr.bf16.mxu1 %v19429_v11  ;;  %v19297_v54 = vld [vmem:[%s27197_s3 + $0x3618] sm:$0xff]  ;;  %v19506_v11 = vcombine.low %v19272_v14, %v19280_v26 }
 0x775   :  { %14245 = vmatmul.mubr.bf16.vlgmr.msra.gmra.mrb[116].mxu0 %v26152_v23  ;;  %v19524_v10 = vcombine.low %v19289_v59, %v19297_v54  ;;  %v19353_v26 = vld [vmem:[%s27197_s3 + $0x37d8] sm:$0xff] }
 0x776   :  { %14286 = vmatmul.mubr.bf16.vlgmr.msra.gmra.mrb[116].mxu1 %v26152_v23  ;;  %14295 = vmatpush1.bf16.msra.mxu0 %v19426_v7  ;;  %v19525_v7 = vcombine.high %v19289_v59, %v19297_v54 }
 0x777   :  { %19664 = vmatprep.mubr.msk.bf16.mxu0 %vm1835_vm2, %v25959_v48  ;;  %14336 = vmatpush1.bf16.msra.mxu1 %v19428_v57  ;;  %v19305_v57 = vld [vmem:[%s27197_s3 + $0x3658] sm:$0xff] }
 0x778   :  { %19665 = vmatprep.mubr.msk.bf16.mxu1 %vm1835_vm2, %v25959_v48  ;;  %14296 = vmatprep.subr.bf16.mxu0 %v19443_v5  ;;  %v19313_v5 = vld [vmem:[%s27197_s3 + $0x3698] sm:$0xff] }
 0x779   :  { %14337 = vmatprep.subr.bf16.mxu1 %v19445_v53  ;;  %v19539_v53 = vcombine.high %v19304_v43, %v19312_v51  ;;  %v19541_v44 = vcombine.high %v19305_v57, %v19313_v5  ;;  %v19540_v24 = vcombine.low %v19305_v57, %v19313_v5  ;;  %v19384_v5 = vld [vmem:[%s27197_s3 + $0x38d0] sm:$0xff] }
 0x77a   :  { %14297 = vmatpush1.bf16.msra.mxu0 %v19442_v33  ;;  %v19328_v33 = vld [vmem:[%s27197_s3 + $0x3710] sm:$0xff] }
 0x77b   :  { %14338 = vmatpush1.bf16.msra.mxu1 %v19444_v12  ;;  %14298 = vmatprep.subr.bf16.mxu0 %v19459_v35  ;;  %v19321_v12 = vld [vmem:[%s27197_s3 + $0x36d8] sm:$0xff]  ;;  %v19555_v34 = vcombine.high %v19320_v29, %v19328_v33 }
 0x77c   :  { %14339 = vmatprep.subr.bf16.mxu1 %v19461_v3  ;;  %v19329_v35 = vld [vmem:[%s27197_s3 + $0x3718] sm:$0xff]  ;;  %v19538_v3 = vcombine.low %v19304_v43, %v19312_v51  ;;  %v19588_v43 = vcombine.low %v19353_v26, %v19361_v20 }
 0x77d   :  { %v19557_v30 = vcombine.high %v19321_v12, %v19329_v35  ;;  %v19556_v60 = vcombine.low %v19321_v12, %v19329_v35  ;;  %v19400_v35 = vld [vmem:[%s27197_s3 + $0x3950] sm:$0xff] }
 0x77e   :  { %14299 = vmatpush1.bf16.msra.mxu0 %v19458_v36  ;;  %v19344_v36 = vld [vmem:[%s27197_s3 + $0x3790] sm:$0xff] }
 0x77f   :  { %14340 = vmatpush1.bf16.msra.mxu1 %v19460_v46  ;;  %14300 = vmatprep.subr.bf16.mxu0 %v19475_v0  ;;  %v19337_v46 = vld [vmem:[%s27197_s3 + $0x3758] sm:$0xff]  ;;  %v19571_v8 = vcombine.high %v19336_v40, %v19344_v36 }
 0x780   :  { %14341 = vmatprep.subr.bf16.mxu1 %v19477_v38  ;;  %v19345_v0 = vld [vmem:[%s27197_s3 + $0x3798] sm:$0xff]  ;;  %v19554_v38 = vcombine.low %v19320_v29, %v19328_v33 }
 0x781   :  { %v19573_v41 = vcombine.high %v19337_v46, %v19345_v0  ;;  %v19572_v59 = vcombine.low %v19337_v46, %v19345_v0 }
 0x782   :  { %14301 = vmatpush1.bf16.msra.mxu0 %v19474_v52  ;;  %v19352_v52 = vld [vmem:[%s27197_s3 + $0x37d0] sm:$0xff] }
 0x783   :  { %14342 = vmatpush1.bf16.msra.mxu1 %v19476_v17  ;;  %14302 = vmatprep.subr.bf16.mxu0 %v19491_v16  ;;  %v19360_v17 = vld [vmem:[%s27197_s3 + $0x3810] sm:$0xff] }
 0x784   :  { %14343 = vmatprep.subr.bf16.mxu1 %v19493_v45  ;;  %v19587_v54 = vcombine.high %v19352_v52, %v19360_v17 }
 0x786   :  { %14303 = vmatpush1.bf16.msra.mxu0 %v19490_v32 }
 0x787   :  { %14344 = vmatpush1.bf16.msra.mxu1 %v19492_v37  ;;  %14304 = vmatprep.subr.bf16.mxu0 %v19507_v28 }
 0x788   :  { %14345 = vmatprep.subr.bf16.mxu1 %v19509_v25 }
 0x78a   :  { %14305 = vmatpush1.bf16.msra.mxu0 %v19506_v11 }
 0x78b   :  { %14346 = vmatpush1.bf16.msra.mxu1 %v19508_v31  ;;  %14306 = vmatprep.subr.bf16.mxu0 %v19523_v6  ;;  %v19376_v31 = vld [vmem:[%s27197_s3 + $0x3890] sm:$0xff]  ;;  %v19377_v6 = vld [vmem:[%s27197_s3 + $0x3898] sm:$0xff] }
 0x78c   :  { %14347 = vmatprep.subr.bf16.mxu1 %v19525_v7  ;;  %v19586_v7 = vcombine.low %v19352_v52, %v19360_v17 }
 0x78e   :  { %14307 = vmatpush1.bf16.msra.mxu0 %v19522_v2  ;;  %v19392_v2 = vld [vmem:[%s27197_s3 + $0x3910] sm:$0xff] }
 0x78f   :  { %14348 = vmatpush1.bf16.msra.mxu1 %v19524_v10  ;;  %14308 = vmatprep.subr.bf16.mxu0 %v19539_v53  ;;  %v19385_v10 = vld [vmem:[%s27197_s3 + $0x38d8] sm:$0xff]  ;;  %v19619_v33 = vcombine.high %v19384_v5, %v19392_v2 }
 0x790   :  { %14349 = vmatprep.subr.bf16.mxu1 %v19541_v44  ;;  %v19393_v53 = vld [vmem:[%s27197_s3 + $0x3918] sm:$0xff] }
 0x791   :  { %v19621_v12 = vcombine.high %v19385_v10, %v19393_v53  ;;  %v19620_v46 = vcombine.low %v19385_v10, %v19393_v53  ;;  %v19242_v10 = vld [vmem:[%s27197_s3 + $0x3460] sm:$0xff] }
 0x792   :  { %14309 = vmatpush1.bf16.msra.mxu0 %v19538_v3  ;;  %v19408_v3 = vld [vmem:[%s27197_s3 + $0x3990] sm:$0xff] }
 0x793   :  { %14350 = vmatpush1.bf16.msra.mxu1 %v19540_v24  ;;  %14310 = vmatprep.subr.bf16.mxu0 %v19555_v34  ;;  %v19416_v24 = vld [vmem:[%s27197_s3 + $0x39d0] sm:$0x11]  ;;  %v19401_v34 = vld [vmem:[%s27197_s3 + $0x3958] sm:$0xff]  ;;  %v19635_v0 = vcombine.high %v19400_v35, %v19408_v3 }
 0x794   :  { %v12528_v39 = vpop.f32.mrb[104].mxu0  ;;  %14351 = vmatprep.subr.bf16.mxu1 %v19557_v30  ;;  %v19409_v30 = vld [vmem:[%s27197_s3 + $0x3998] sm:$0xff] }
 0x795   :  { %v26263_v16 = vadd.f32 %v12528_v39, %v25471_v1  ;;  %v12569_v45 = vpop.f32.mrb[104].mxu1  ;;  %v12530_v14 = vpop.f32.mrb[105].mxu0  ;;  %v19570_v1 = vcombine.low %v19336_v40, %v19344_v36  ;;  %v19417_v40 = vld [vmem:[%s27197_s3 + $0x39d8] sm:$0x11]  ;;  %v19618_v36 = vcombine.low %v19384_v5, %v19392_v2  ;;  %v19634_v39 = vcombine.low %v19400_v35, %v19408_v3  ;;  %v19235_v5 = vld [vmem:[%s27197_s3 + $0x3428] sm:$0xff] }
 0x796   :  { %v26272_v47 = vadd.f32 %v12569_v45, %v25480_v15  ;;  %v26275_v32 = vadd.f32 %v12530_v14, %v25483_v4  ;;  %v12571_v37 = vpop.f32.mrb[105].mxu1  ;;  %v12532_v28 = vpop.f32.mrb[106].mxu0  ;;  %14311 = vmatpush1.bf16.msra.mxu0 %v19554_v38  ;;  %v19589_v15 = vcombine.high %v19353_v26, %v19361_v20  ;;  %v19368_v4 = vld [vmem:[%s27197_s3 + $0x3850] sm:$0xff]  ;;  %v19651_v38 = vcombine.high %v19416_v24, %v19416_v24  ;;  %v19194_v26 = vld [vmem:[%s27197_s3 + $0x32e0] sm:$0xff]  ;;  %v19251_v35 = vld [vmem:[%s27197_s3 + $0x34a8] sm:$0xff] }
 0x797   :  { %v26278_v25 = vadd.f32 %v12571_v37, %v25486_v61  ;;  %v12573_v27 = vpop.f32.mrb[106].mxu1  ;;  %14352 = vmatpush1.bf16.msra.mxu1 %v19556_v60  ;;  %v12533_v42 = vpop.f32.mrb[107].mxu0  ;;  %14312 = vmatprep.subr.bf16.mxu0 %v19571_v8  ;;  %v19369_v61 = vld [vmem:[%s27197_s3 + $0x3858] sm:$0xff]  ;;  %v19603_v51 = vcombine.high %v19368_v4, %v19376_v31  ;;  %v19602_v44 = vcombine.low %v19368_v4, %v19376_v31  ;;  %v19202_v20 = vld [vmem:[%s27197_s3 + $0x3320] sm:$0xff]  ;;  %v19195_v37 = vld [vmem:[%s27197_s3 + $0x32e8] sm:$0xff] }
 0x798   :  { %v12574_v11 = vpop.f32.mrb[107].mxu1  ;;  %14353 = vmatprep.subr.bf16.mxu1 %v19573_v41  ;;  %v19605_v57 = vcombine.high %v19369_v61, %v19377_v6  ;;  %v19604_v29 = vcombine.low %v19369_v61, %v19377_v6  ;;  %v19637_v60 = vcombine.high %v19401_v34, %v19409_v30  ;;  %v19653_v8 = vcombine.high %v19417_v40, %v19417_v40  ;;  %v19203_v28 = vld [vmem:[%s27197_s3 + $0x3328] sm:$0xff]  ;;  %v19226_v61 = vld [vmem:[%s27197_s3 + $0x33e0] sm:$0xff] }
 0x799   :  { %v19650_v41 = vcombine.low %v19416_v24, %v19416_v24  ;;  %v19636_v52 = vcombine.low %v19401_v34, %v19409_v30  ;;  %v14180_v17 = vand.u32 %v19651_v38, %v20487_v62  ;;  %v19652_v45 = vcombine.low %v19417_v40, %v19417_v40  ;;  %v19219_v4 = vld [vmem:[%s27197_s3 + $0x33a8] sm:$0xff]  ;;  %v19258_v24 = vld [vmem:[%s27197_s3 + $0x34e0] sm:$0xff] }
 0x79a   :  { %14313 = vmatpush1.bf16.msra.mxu0 %v19570_v1  ;;  %v14186_v14 = vand.u32 %v19653_v8, %v20487_v62  ;;  %v19431_v42 = vcombine.high %v19194_v26, %v19202_v20  ;;  %v19433_v11 = vcombine.high %v19195_v37, %v19203_v28  ;;  %v19430_v31 = vcombine.low %v19194_v26, %v19202_v20  ;;  %v19266_v40 = vld [vmem:[%s27197_s3 + $0x3520] sm:$0xff] }
 0x79b   :  { %14354 = vmatpush1.bf16.msra.mxu1 %v19572_v59  ;;  %14314 = vmatprep.subr.bf16.mxu0 %v19587_v54  ;;  %v14177_v1 = vand.u32 %v19650_v41, %v20487_v62  ;;  %v14183_v27 = vand.u32 %v19652_v45, %v20487_v62  ;;  %v19210_v59 = vld [vmem:[%s27197_s3 + $0x3360] sm:$0xff]  ;;  %v19432_v6 = vcombine.low %v19195_v37, %v19203_v28  ;;  %v19283_v45 = vld [vmem:[%s27197_s3 + $0x35a8] sm:$0xff] }
 0x79c   :  { %14355 = vmatprep.subr.bf16.mxu1 %v19589_v15  ;;  %v19218_v54 = vld [vmem:[%s27197_s3 + $0x33a0] sm:$0xff]  ;;  %v19211_v15 = vld [vmem:[%s27197_s3 + $0x3368] sm:$0xff] }
 0x79d   :  { %v19446_v2 = vcombine.low %v19210_v59, %v19218_v54  ;;  %v19448_v53 = vcombine.low %v19211_v15, %v19219_v4  ;;  %v19282_v41 = vld [vmem:[%s27197_s3 + $0x35a0] sm:$0xff] }
 0x79e   :  { %14315 = vmatpush1.bf16.msra.mxu0 %v19586_v7  ;;  %v19234_v7 = vld [vmem:[%s27197_s3 + $0x3420] sm:$0xff] }
 0x79f   :  { %14356 = vmatpush1.bf16.msra.mxu1 %v19588_v43  ;;  %14316 = vmatprep.subr.bf16.mxu0 %v19603_v51  ;;  %v19447_v43 = vcombine.high %v19210_v59, %v19218_v54  ;;  %v19227_v51 = vld [vmem:[%s27197_s3 + $0x33e8] sm:$0xff]  ;;  %v19462_v3 = vcombine.low %v19226_v61, %v19234_v7  ;;  %v19290_v26 = vld [vmem:[%s27197_s3 + $0x35e0] sm:$0xff] }
 0x7a0   :  { %14357 = vmatprep.subr.bf16.mxu1 %v19605_v57  ;;  %v19449_v57 = vcombine.high %v19211_v15, %v19219_v4  ;;  %v19464_v34 = vcombine.low %v19227_v51, %v19235_v5  ;;  %v19298_v20 = vld [vmem:[%s27197_s3 + $0x3620] sm:$0xff] }
 0x7a1   :  { %v19306_v54 = vld [vmem:[%s27197_s3 + $0x3660] sm:$0xff]  ;;  %v19527_v4 = vcombine.high %v19290_v26, %v19298_v20 }
 0x7a2   :  { %14317 = vmatpush1.bf16.msra.mxu0 %v19602_v44  ;;  %v19463_v44 = vcombine.high %v19226_v61, %v19234_v7  ;;  %v19315_v61 = vld [vmem:[%s27197_s3 + $0x36a8] sm:$0xff]  ;;  %v19526_v7 = vcombine.low %v19290_v26, %v19298_v20 }
 0x7a3   :  { %14358 = vmatpush1.bf16.msra.mxu1 %v19604_v29  ;;  %14318 = vmatprep.subr.bf16.mxu0 %v19619_v33  ;;  %v19250_v29 = vld [vmem:[%s27197_s3 + $0x34a0] sm:$0xff]  ;;  %v19465_v33 = vcombine.high %v19227_v51, %v19235_v5 }
 0x7a4   :  { %14359 = vmatprep.subr.bf16.mxu1 %v19621_v12  ;;  %v19243_v12 = vld [vmem:[%s27197_s3 + $0x3468] sm:$0xff]  ;;  %v19479_v30 = vcombine.high %v19242_v10, %v19250_v29  ;;  %v19478_v38 = vcombine.low %v19242_v10, %v19250_v29  ;;  %v19330_v51 = vld [vmem:[%s27197_s3 + $0x3720] sm:$0xff] }
 0x7a5   :  { %v19480_v8 = vcombine.low %v19243_v12, %v19251_v35  ;;  %v19338_v29 = vld [vmem:[%s27197_s3 + $0x3760] sm:$0xff] }
 0x7a6   :  { %14319 = vmatpush1.bf16.msra.mxu0 %v19618_v36  ;;  %v19481_v36 = vcombine.high %v19243_v12, %v19251_v35 }
 0x7a7   :  { %14360 = vmatpush1.bf16.msra.mxu1 %v19620_v46  ;;  %14320 = vmatprep.subr.bf16.mxu0 %v19635_v0  ;;  %v19259_v46 = vld [vmem:[%s27197_s3 + $0x34e8] sm:$0xff] }
 0x7a8   :  { %14361 = vmatprep.subr.bf16.mxu1 %v19637_v60  ;;  %v19267_v0 = vld [vmem:[%s27197_s3 + $0x3528] sm:$0xff]  ;;  %v19274_v60 = vld [vmem:[%s27197_s3 + $0x3560] sm:$0xff] }
 0x7a9   :  { %v19496_v37 = vcombine.low %v19259_v46, %v19267_v0  ;;  %v19511_v28 = vcombine.high %v19274_v60, %v19282_v41  ;;  %v19510_v59 = vcombine.low %v19274_v60, %v19282_v41  ;;  %v19362_v60 = vld [vmem:[%s27197_s3 + $0x3820] sm:$0xff] }
 0x7aa   :  { %14321 = vmatpush1.bf16.msra.mxu0 %v19634_v39  ;;  %v19495_v39 = vcombine.high %v19258_v24, %v19266_v40 }
 0x7ab   :  { %14362 = vmatpush1.bf16.msra.mxu1 %v19636_v52  ;;  %14322 = vmatprep.subr.bf16.mxu0 %v14180_v17  ;;  %v19497_v52 = vcombine.high %v19259_v46, %v19267_v0  ;;  %v19275_v17 = vld [vmem:[%s27197_s3 + $0x3568] sm:$0xff] }
 0x7ac   :  { %14363 = vmatprep.subr.bf16.mxu1 %v14186_v14  ;;  %v19494_v14 = vcombine.low %v19258_v24, %v19266_v40  ;;  %v19512_v15 = vcombine.low %v19275_v17, %v19283_v45 }
 0x7ae   :  { %14323 = vmatpush1.bf16.msra.mxu0 %v14177_v1  ;;  %v19291_v1 = vld [vmem:[%s27197_s3 + $0x35e8] sm:$0xff] }
 0x7af   :  { %14364 = vmatpush1.bf16.msra.mxu1 %v14183_v27  ;;  %14376 = vmatprep.subr.bf16.mxu0 %v19431_v42  ;;  %v19513_v27 = vcombine.high %v19275_v17, %v19283_v45  ;;  %v19299_v42 = vld [vmem:[%s27197_s3 + $0x3628] sm:$0xff] }
 0x7b0   :  { %14417 = vmatprep.subr.bf16.mxu1 %v19433_v11  ;;  %v19314_v11 = vld [vmem:[%s27197_s3 + $0x36a0] sm:$0xff]  ;;  %v19363_v17 = vld [vmem:[%s27197_s3 + $0x3828] sm:$0xff] }
 0x7b1   :  { %14327 = vmatmul.mubr.bf16.vlgmr.msra.gmra.mrb[120].mxu0 %v26152_v23  ;;  %v19543_v5 = vcombine.high %v19306_v54, %v19314_v11 }
 0x7b2   :  { %14368 = vmatmul.mubr.bf16.vlgmr.msra.gmra.mrb[120].mxu1 %v26152_v23  ;;  %14377 = vmatpush1.bf16.msra.mxu0 %v19430_v31  ;;  %v19307_v31 = vld [vmem:[%s27197_s3 + $0x3668] sm:$0xff] }
 0x7b3   :  { %19666 = vmatprep.mubr.msk.bf16.mxu0 %vm1835_vm2, %v25959_v48  ;;  %14418 = vmatpush1.bf16.msra.mxu1 %v19432_v6  ;;  %v19529_v6 = vcombine.high %v19291_v1, %v19299_v42  ;;  %v19545_v10 = vcombine.high %v19307_v31, %v19315_v61  ;;  %v19544_v12 = vcombine.low %v19307_v31, %v19315_v61 }
 0x7b4   :  { %19667 = vmatprep.mubr.msk.bf16.mxu1 %vm1835_vm2, %v25959_v48  ;;  %14378 = vmatprep.subr.bf16.mxu0 %v19447_v43  ;;  %v19322_v43 = vld [vmem:[%s27197_s3 + $0x36e0] sm:$0xff] }
 0x7b5   :  { %14419 = vmatprep.subr.bf16.mxu1 %v19449_v57  ;;  %v19528_v57 = vcombine.low %v19291_v1, %v19299_v42  ;;  %v19559_v35 = vcombine.high %v19322_v43, %v19330_v51 }
 0x7b6   :  { %14379 = vmatpush1.bf16.msra.mxu0 %v19446_v2  ;;  %v19323_v2 = vld [vmem:[%s27197_s3 + $0x36e8] sm:$0xff] }
 0x7b7   :  { %14420 = vmatpush1.bf16.msra.mxu1 %v19448_v53  ;;  %14380 = vmatprep.subr.bf16.mxu0 %v19463_v44  ;;  %v19331_v53 = vld [vmem:[%s27197_s3 + $0x3728] sm:$0xff]  ;;  %v19542_v44 = vcombine.low %v19306_v54, %v19314_v11  ;;  %v19378_v54 = vld [vmem:[%s27197_s3 + $0x38a0] sm:$0xff] }
 0x7b8   :  { %14421 = vmatprep.subr.bf16.mxu1 %v19465_v33  ;;  %v19346_v33 = vld [vmem:[%s27197_s3 + $0x37a0] sm:$0xff]  ;;  %v19561_v24 = vcombine.high %v19323_v2, %v19331_v53  ;;  %v19560_v40 = vcombine.low %v19323_v2, %v19331_v53  ;;  %v19379_v11 = vld [vmem:[%s27197_s3 + $0x38a8] sm:$0xff] }
 0x7b9   :  { %v19410_v2 = vld [vmem:[%s27197_s3 + $0x39a0] sm:$0xff] }
 0x7ba   :  { %14381 = vmatpush1.bf16.msra.mxu0 %v19462_v3  ;;  %v19339_v3 = vld [vmem:[%s27197_s3 + $0x3768] sm:$0xff] }
 0x7bb   :  { %14422 = vmatpush1.bf16.msra.mxu1 %v19464_v34  ;;  %14382 = vmatprep.subr.bf16.mxu0 %v19479_v30  ;;  %v19347_v34 = vld [vmem:[%s27197_s3 + $0x37a8] sm:$0xff]  ;;  %v19558_v30 = vcombine.low %v19322_v43, %v19330_v51 }
 0x7bc   :  { %14423 = vmatprep.subr.bf16.mxu1 %v19481_v36  ;;  %v19575_v36 = vcombine.high %v19338_v29, %v19346_v33  ;;  %v19577_v0 = vcombine.high %v19339_v3, %v19347_v34  ;;  %v19387_v43 = vld [vmem:[%s27197_s3 + $0x38e8] sm:$0xff] }
 0x7bd   :  { %v19395_v51 = vld [vmem:[%s27197_s3 + $0x3928] sm:$0xff] }
 0x7be   :  { %14383 = vmatpush1.bf16.msra.mxu0 %v19478_v38  ;;  %v19354_v38 = vld [vmem:[%s27197_s3 + $0x37e0] sm:$0xff] }
 0x7bf   :  { %14424 = vmatpush1.bf16.msra.mxu1 %v19480_v8  ;;  %14384 = vmatprep.subr.bf16.mxu0 %v19495_v39  ;;  %v19591_v42 = vcombine.high %v19354_v38, %v19362_v60 }
 0x7c0   :  { %14425 = vmatprep.subr.bf16.mxu1 %v19497_v52  ;;  %v19355_v52 = vld [vmem:[%s27197_s3 + $0x37e8] sm:$0xff] }
 0x7c1   :  { %v19592_v31 = vcombine.low %v19355_v52, %v19363_v17 }
 0x7c2   :  { %14385 = vmatpush1.bf16.msra.mxu0 %v19494_v14 }
 0x7c3   :  { %14426 = vmatpush1.bf16.msra.mxu1 %v19496_v37  ;;  %14386 = vmatprep.subr.bf16.mxu0 %v19511_v28 }
 0x7c4   :  { %14427 = vmatprep.subr.bf16.mxu1 %v19513_v27  ;;  %v19576_v27 = vcombine.low %v19339_v3, %v19347_v34 }
 0x7c6   :  { %14387 = vmatpush1.bf16.msra.mxu0 %v19510_v59 }
 0x7c7   :  { %14428 = vmatpush1.bf16.msra.mxu1 %v19512_v15  ;;  %14388 = vmatprep.subr.bf16.mxu0 %v19527_v4  ;;  %v19590_v15 = vcombine.low %v19354_v38, %v19362_v60  ;;  %v19386_v4 = vld [vmem:[%s27197_s3 + $0x38e0] sm:$0xff]  ;;  %v19196_v38 = vld [vmem:[%s27197_s3 + $0x32f0] sm:$0xff] }
 0x7c8   :  { %14429 = vmatprep.subr.bf16.mxu1 %v19529_v6 }
 0x7ca   :  { %14389 = vmatpush1.bf16.msra.mxu0 %v19526_v7  ;;  %v19394_v7 = vld [vmem:[%s27197_s3 + $0x3920] sm:$0xff] }
 0x7cb   :  { %14430 = vmatpush1.bf16.msra.mxu1 %v19528_v57  ;;  %14390 = vmatprep.subr.bf16.mxu0 %v19543_v5  ;;  %v19402_v5 = vld [vmem:[%s27197_s3 + $0x3960] sm:$0xff]  ;;  %v19623_v53 = vcombine.high %v19386_v4, %v19394_v7  ;;  %v19622_v3 = vcombine.low %v19386_v4, %v19394_v7  ;;  %v19229_v4 = vld [vmem:[%s27197_s3 + $0x33f8] sm:$0xff] }
 0x7cc   :  { %14431 = vmatprep.subr.bf16.mxu1 %v19545_v10  ;;  %v19639_v34 = vcombine.high %v19402_v5, %v19410_v2 }
 0x7ce   :  { %14391 = vmatpush1.bf16.msra.mxu0 %v19542_v44  ;;  %v19403_v44 = vld [vmem:[%s27197_s3 + $0x3968] sm:$0xff] }
 0x7cf   :  { %14432 = vmatpush1.bf16.msra.mxu1 %v19544_v12  ;;  %14392 = vmatprep.subr.bf16.mxu0 %v19559_v35  ;;  %v19411_v12 = vld [vmem:[%s27197_s3 + $0x39a8] sm:$0xff] }
 0x7d0   :  { %v12610_v46 = vpop.f32.mrb[108].mxu0  ;;  %14433 = vmatprep.subr.bf16.mxu1 %v19561_v24  ;;  %v19419_v35 = vld [vmem:[%s27197_s3 + $0x39e8] sm:$0x11]  ;;  %v19624_v24 = vcombine.low %v19387_v43, %v19395_v51  ;;  %v19640_v60 = vcombine.low %v19403_v44, %v19411_v12 }
 0x7d1   :  { %v26459_v8 = vadd.f32 %v12610_v46, %v25667_v18  ;;  %v12651_v39 = vpop.f32.mrb[108].mxu1  ;;  %v12612_v41 = vpop.f32.mrb[109].mxu0  ;;  %v19574_v18 = vcombine.low %v19338_v29, %v19346_v33  ;;  %v19625_v29 = vcombine.high %v19387_v43, %v19395_v51  ;;  %v19418_v33 = vld [vmem:[%s27197_s3 + $0x39e0] sm:$0x11]  ;;  %v19638_v46 = vcombine.low %v19402_v5, %v19410_v2  ;;  %v19244_v43 = vld [vmem:[%s27197_s3 + $0x3470] sm:$0xff]  ;;  %v19245_v2 = vld [vmem:[%s27197_s3 + $0x3478] sm:$0xff] }
 0x7d2   :  { %v26468_v45 = vadd.f32 %v12651_v39, %v25676_v21  ;;  %v26471_v14 = vadd.f32 %v12612_v41, %v25679_v58  ;;  %v12653_v26 = vpop.f32.mrb[109].mxu1  ;;  %v12614_v20 = vpop.f32.mrb[110].mxu0  ;;  %14393 = vmatpush1.bf16.msra.mxu0 %v19558_v30  ;;  %v19593_v21 = vcombine.high %v19355_v52, %v19363_v17  ;;  %v19370_v58 = vld [vmem:[%s27197_s3 + $0x3860] sm:$0xff]  ;;  %v19655_v30 = vcombine.high %v19418_v33, %v19418_v33  ;;  %v19204_v17 = vld [vmem:[%s27197_s3 + $0x3330] sm:$0xff] }
 0x7d3   :  { %v26474_v37 = vadd.f32 %v12653_v26, %v25682_v13  ;;  %v12655_v28 = vpop.f32.mrb[110].mxu1  ;;  %14434 = vmatpush1.bf16.msra.mxu1 %v19560_v40  ;;  %v12615_v1 = vpop.f32.mrb[111].mxu0  ;;  %14394 = vmatprep.subr.bf16.mxu0 %v19575_v36  ;;  %v19371_v13 = vld [vmem:[%s27197_s3 + $0x3868] sm:$0xff]  ;;  %v19607_v61 = vcombine.high %v19370_v58, %v19378_v54  ;;  %v19606_v57 = vcombine.low %v19370_v58, %v19378_v54  ;;  %v19197_v26 = vld [vmem:[%s27197_s3 + $0x32f8] sm:$0xff]  ;;  %v19252_v51 = vld [vmem:[%s27197_s3 + $0x34b0] sm:$0xff] }
 0x7d4   :  { %v12656_v59 = vpop.f32.mrb[111].mxu1  ;;  %14435 = vmatprep.subr.bf16.mxu1 %v19577_v0  ;;  %v19609_v6 = vcombine.high %v19371_v13, %v19379_v11  ;;  %v19608_v10 = vcombine.low %v19371_v13, %v19379_v11  ;;  %v19641_v40 = vcombine.high %v19403_v44, %v19411_v12  ;;  %v19657_v36 = vcombine.high %v19419_v35, %v19419_v35  ;;  %v19205_v20 = vld [vmem:[%s27197_s3 + $0x3338] sm:$0xff]  ;;  %v19228_v13 = vld [vmem:[%s27197_s3 + $0x33f0] sm:$0xff] }
 0x7d5   :  { %v19654_v0 = vcombine.low %v19418_v33, %v19418_v33  ;;  %v14192_v39 = vand.u32 %v19655_v30, %v20487_v62  ;;  %v19656_v41 = vcombine.low %v19419_v35, %v19419_v35  ;;  %v19435_v1 = vcombine.high %v19196_v38, %v19204_v17  ;;  %v19221_v58 = vld [vmem:[%s27197_s3 + $0x33b8] sm:$0xff]  ;;  %v19236_v11 = vld [vmem:[%s27197_s3 + $0x3430] sm:$0xff] }
 0x7d6   :  { %14395 = vmatpush1.bf16.msra.mxu0 %v19574_v18  ;;  %v14198_v52 = vand.u32 %v19657_v36, %v20487_v62  ;;  %v19437_v59 = vcombine.high %v19197_v26, %v19205_v20  ;;  %v19434_v54 = vcombine.low %v19196_v38, %v19204_v17  ;;  %v19467_v5 = vcombine.high %v19228_v13, %v19236_v11  ;;  %v19268_v33 = vld [vmem:[%s27197_s3 + $0x3530] sm:$0xff]  ;;  %v19285_v38 = vld [vmem:[%s27197_s3 + $0x35b8] sm:$0xff] }
 0x7d7   :  { %14436 = vmatpush1.bf16.msra.mxu1 %v19576_v27  ;;  %14396 = vmatprep.subr.bf16.mxu0 %v19591_v42  ;;  %v14189_v18 = vand.u32 %v19654_v0, %v20487_v62  ;;  %v14195_v28 = vand.u32 %v19656_v41, %v20487_v62  ;;  %v19212_v27 = vld [vmem:[%s27197_s3 + $0x3370] sm:$0xff]  ;;  %v19466_v44 = vcombine.low %v19228_v13, %v19236_v11  ;;  %v19277_v0 = vld [vmem:[%s27197_s3 + $0x3578] sm:$0xff] }
 0x7d8   :  { %14437 = vmatprep.subr.bf16.mxu1 %v19593_v21  ;;  %v19220_v42 = vld [vmem:[%s27197_s3 + $0x33b0] sm:$0xff]  ;;  %v19213_v21 = vld [vmem:[%s27197_s3 + $0x3378] sm:$0xff]  ;;  %v19483_v35 = vcombine.high %v19244_v43, %v19252_v51 }
 0x7d9   :  { %v19450_v7 = vcombine.low %v19212_v27, %v19220_v42  ;;  %v19276_v30 = vld [vmem:[%s27197_s3 + $0x3570] sm:$0xff] }
 0x7da   :  { %14397 = vmatpush1.bf16.msra.mxu0 %v19590_v15  ;;  %v19436_v15 = vcombine.low %v19197_v26, %v19205_v20  ;;  %v19292_v41 = vld [vmem:[%s27197_s3 + $0x35f0] sm:$0xff]  ;;  %v19293_v20 = vld [vmem:[%s27197_s3 + $0x35f8] sm:$0xff] }
 0x7db   :  { %14438 = vmatpush1.bf16.msra.mxu1 %v19592_v31  ;;  %14398 = vmatprep.subr.bf16.mxu0 %v19607_v61  ;;  %v19237_v31 = vld [vmem:[%s27197_s3 + $0x3438] sm:$0xff]  ;;  %v19451_v61 = vcombine.high %v19212_v27, %v19220_v42  ;;  %v19308_v27 = vld [vmem:[%s27197_s3 + $0x3670] sm:$0xff] }
 0x7dc   :  { %14439 = vmatprep.subr.bf16.mxu1 %v19609_v6  ;;  %v19453_v6 = vcombine.high %v19213_v21, %v19221_v58  ;;  %v19468_v12 = vcombine.low %v19229_v4, %v19237_v31  ;;  %v19316_v42 = vld [vmem:[%s27197_s3 + $0x36b0] sm:$0xff] }
 0x7de   :  { %14399 = vmatpush1.bf16.msra.mxu0 %v19606_v57  ;;  %v19452_v57 = vcombine.low %v19213_v21, %v19221_v58  ;;  %v19309_v58 = vld [vmem:[%s27197_s3 + $0x3678] sm:$0xff] }
 0x7df   :  { %14440 = vmatpush1.bf16.msra.mxu1 %v19608_v10  ;;  %14400 = vmatprep.subr.bf16.mxu0 %v19623_v53  ;;  %v19253_v10 = vld [vmem:[%s27197_s3 + $0x34b8] sm:$0xff]  ;;  %v19469_v53 = vcombine.high %v19229_v4, %v19237_v31  ;;  %v19332_v4 = vld [vmem:[%s27197_s3 + $0x3730] sm:$0xff] }
 0x7e0   :  { %14441 = vmatprep.subr.bf16.mxu1 %v19625_v29  ;;  %v19260_v29 = vld [vmem:[%s27197_s3 + $0x34f0] sm:$0xff]  ;;  %v19484_v36 = vcombine.low %v19245_v2, %v19253_v10 }
 0x7e2   :  { %14401 = vmatpush1.bf16.msra.mxu0 %v19622_v3  ;;  %v19269_v3 = vld [vmem:[%s27197_s3 + $0x3538] sm:$0xff] }
 0x7e3   :  { %14442 = vmatpush1.bf16.msra.mxu1 %v19624_v24  ;;  %14402 = vmatprep.subr.bf16.mxu0 %v19639_v34  ;;  %v19485_v24 = vcombine.high %v19245_v2, %v19253_v10  ;;  %v19482_v34 = vcombine.low %v19244_v43, %v19252_v51  ;;  %v19333_v43 = vld [vmem:[%s27197_s3 + $0x3738] sm:$0xff]  ;;  %v19546_v51 = vcombine.low %v19308_v27, %v19316_v42 }
 0x7e4   :  { %14443 = vmatprep.subr.bf16.mxu1 %v19641_v40  ;;  %v19284_v40 = vld [vmem:[%s27197_s3 + $0x35b0] sm:$0xff] }
 0x7e5   :  { %v19515_v26 = vcombine.high %v19276_v30, %v19284_v40 }
 0x7e6   :  { %14403 = vmatpush1.bf16.msra.mxu0 %v19638_v46  ;;  %v19499_v46 = vcombine.high %v19260_v29, %v19268_v33 }
 0x7e7   :  { %14444 = vmatpush1.bf16.msra.mxu1 %v19640_v60  ;;  %14404 = vmatprep.subr.bf16.mxu0 %v14192_v39  ;;  %v19498_v39 = vcombine.low %v19260_v29, %v19268_v33 }
 0x7e8   :  { %14445 = vmatprep.subr.bf16.mxu1 %v14198_v52  ;;  %v19300_v52 = vld [vmem:[%s27197_s3 + $0x3630] sm:$0xff] }
 0x7e9   :  { %v19531_v21 = vcombine.high %v19292_v41, %v19300_v52  ;;  %v19530_v11 = vcombine.low %v19292_v41, %v19300_v52 }
 0x7ea   :  { %14405 = vmatpush1.bf16.msra.mxu0 %v14189_v18  ;;  %v19301_v18 = vld [vmem:[%s27197_s3 + $0x3638] sm:$0xff] }
 0x7eb   :  { %14446 = vmatpush1.bf16.msra.mxu1 %v14195_v28  ;;  %14458 = vmatprep.subr.bf16.mxu0 %v19435_v1  ;;  %v19517_v28 = vcombine.high %v19277_v0, %v19285_v38  ;;  %v19514_v1 = vcombine.low %v19276_v30, %v19284_v40  ;;  %v19533_v13 = vcombine.high %v19293_v20, %v19301_v18 }
 0x7ec   :  { %14499 = vmatprep.subr.bf16.mxu1 %v19437_v59  ;;  %v19516_v59 = vcombine.low %v19277_v0, %v19285_v38  ;;  %v19532_v31 = vcombine.low %v19293_v20, %v19301_v18  ;;  %v19365_v0 = vld [vmem:[%s27197_s3 + $0x3838] sm:$0xff] }
 0x7ed   :  { %14409 = vmatmul.mubr.bf16.vlgmr.msra.gmra.mrb[124].mxu0 %v26152_v23 }
 0x7ee   :  { %14450 = vmatmul.mubr.bf16.vlgmr.msra.gmra.mrb[124].mxu1 %v26152_v23  ;;  %14459 = vmatpush1.bf16.msra.mxu0 %v19434_v54  ;;  %v19317_v54 = vld [vmem:[%s27197_s3 + $0x36b8] sm:$0xff] }
 0x7ef   :  { %19668 = vmatprep.mubr.msk.bf16.mxu0 %vm1835_vm2, %v25959_v48  ;;  %14500 = vmatpush1.bf16.msra.mxu1 %v19436_v15  ;;  %v19324_v15 = vld [vmem:[%s27197_s3 + $0x36f0] sm:$0xff]  ;;  %v19548_v2 = vcombine.low %v19309_v58, %v19317_v54 }
 0x7f0   :  { %19669 = vmatprep.mubr.msk.bf16.mxu1 %vm1835_vm2, %v25959_v48  ;;  %14460 = vmatprep.subr.bf16.mxu0 %v19451_v61  ;;  %v19261_v48 = vld [vmem:[%s27197_s3 + $0x34f8] sm:$0xff]  ;;  %v19547_v61 = vcombine.high %v19308_v27, %v19316_v42  ;;  %v19563_v10 = vcombine.high %v19324_v15, %v19332_v4  ;;  %v19562_v33 = vcombine.low %v19324_v15, %v19332_v4 }
 0x7f1   :  { %14501 = vmatprep.subr.bf16.mxu1 %v19453_v6  ;;  %v19501_v60 = vcombine.high %v19261_v48, %v19269_v3  ;;  %v19500_v17 = vcombine.low %v19261_v48, %v19269_v3  ;;  %v19325_v6 = vld [vmem:[%s27197_s3 + $0x36f8] sm:$0xff] }
 0x7f2   :  { %14461 = vmatpush1.bf16.msra.mxu0 %v19450_v7  ;;  %v19549_v7 = vcombine.high %v19309_v58, %v19317_v54  ;;  %v19565_v29 = vcombine.high %v19325_v6, %v19333_v43  ;;  %v19381_v27 = vld [vmem:[%s27197_s3 + $0x38b8] sm:$0xff] }
 0x7f3   :  { %14502 = vmatpush1.bf16.msra.mxu1 %v19452_v57  ;;  %14462 = vmatprep.subr.bf16.mxu0 %v19467_v5  ;;  %v19340_v57 = vld [vmem:[%s27197_s3 + $0x3770] sm:$0xff]  ;;  %v19397_v15 = vld [vmem:[%s27197_s3 + $0x3938] sm:$0xff] }
 0x7f4   :  { %14503 = vmatprep.subr.bf16.mxu1 %v19469_v53  ;;  %v19348_v5 = vld [vmem:[%s27197_s3 + $0x37b0] sm:$0xff]  ;;  %v19341_v53 = vld [vmem:[%s27197_s3 + $0x3778] sm:$0xff] }
 0x7f6   :  { %14463 = vmatpush1.bf16.msra.mxu0 %v19466_v44  ;;  %v19349_v44 = vld [vmem:[%s27197_s3 + $0x37b8] sm:$0xff] }
 0x7f7   :  { %14504 = vmatpush1.bf16.msra.mxu1 %v19468_v12  ;;  %14464 = vmatprep.subr.bf16.mxu0 %v19483_v35  ;;  %v19564_v12 = vcombine.low %v19325_v6, %v19333_v43  ;;  %v19579_v35 = vcombine.high %v19340_v57, %v19348_v5  ;;  %v19581_v3 = vcombine.high %v19341_v53, %v19349_v44  ;;  %v19405_v43 = vld [vmem:[%s27197_s3 + $0x3978] sm:$0xff] }
 0x7f8   :  { %14505 = vmatprep.subr.bf16.mxu1 %v19485_v24  ;;  %v19356_v24 = vld [vmem:[%s27197_s3 + $0x37f0] sm:$0xff]  ;;  %v19580_v20 = vcombine.low %v19341_v53, %v19349_v44 }
 0x7fa   :  { %14465 = vmatpush1.bf16.msra.mxu0 %v19482_v34  ;;  %v19364_v34 = vld [vmem:[%s27197_s3 + $0x3830] sm:$0xff] }
 0x7fb   :  { %14506 = vmatpush1.bf16.msra.mxu1 %v19484_v36  ;;  %14466 = vmatprep.subr.bf16.mxu0 %v19499_v46  ;;  %v19357_v46 = vld [vmem:[%s27197_s3 + $0x37f8] sm:$0xff]  ;;  %v19595_v18 = vcombine.high %v19356_v24, %v19364_v34  ;;  %v19594_v42 = vcombine.low %v19356_v24, %v19364_v34 }
 0x7fc   :  { %14507 = vmatprep.subr.bf16.mxu1 %v19501_v60 }
 0x7fe   :  { %14467 = vmatpush1.bf16.msra.mxu0 %v19498_v39 }
 0x7ff   :  { %14508 = vmatpush1.bf16.msra.mxu1 %v19500_v17  ;;  %14468 = vmatprep.subr.bf16.mxu0 %v19515_v26 }
 0x800   :  { %14509 = vmatprep.subr.bf16.mxu1 %v19517_v28 }
 0x802   :  { %14469 = vmatpush1.bf16.msra.mxu0 %v19514_v1  ;;  %v19380_v1 = vld [vmem:[%s27197_s3 + $0x38b0] sm:$0xff] }
 0x803   :  { %14510 = vmatpush1.bf16.msra.mxu1 %v19516_v59  ;;  %14470 = vmatprep.subr.bf16.mxu0 %v19531_v21  ;;  %v19388_v59 = vld [vmem:[%s27197_s3 + $0x38f0] sm:$0xff]  ;;  %v19596_v21 = vcombine.low %v19357_v46, %v19365_v0 }
 0x804   :  { %14511 = vmatprep.subr.bf16.mxu1 %v19533_v13  ;;  %v19396_v13 = vld [vmem:[%s27197_s3 + $0x3930] sm:$0xff] }
 0x806   :  { %14471 = vmatpush1.bf16.msra.mxu0 %v19530_v11  ;;  %v19389_v11 = vld [vmem:[%s27197_s3 + $0x38f8] sm:$0xff] }
 0x807   :  { %14512 = vmatpush1.bf16.msra.mxu1 %v19532_v31  ;;  %14472 = vmatprep.subr.bf16.mxu0 %v19547_v61  ;;  %v19404_v31 = vld [vmem:[%s27197_s3 + $0x3970] sm:$0xff]  ;;  %v19628_v53 = vcombine.low %v19389_v11, %v19397_v15 }
 0x808   :  { %14513 = vmatprep.subr.bf16.mxu1 %v19549_v7  ;;  %v19412_v61 = vld [vmem:[%s27197_s3 + $0x39b0] sm:$0xff]  ;;  %v19627_v7 = vcombine.high %v19388_v59, %v19396_v13 }
 0x809   :  { %v19643_v44 = vcombine.high %v19404_v31, %v19412_v61 }
 0x80a   :  { %14473 = vmatpush1.bf16.msra.mxu0 %v19546_v51  ;;  %v19629_v51 = vcombine.high %v19389_v11, %v19397_v15  ;;  %v20136_v11 = vld [vmem:[%s27198_s5 + $0x28] sm:$0xff]   ;;  %v14560_v15 = vlaneseq }
 0x80b   :  { %14514 = vmatpush1.bf16.msra.mxu1 %v19548_v2  ;;  %14474 = vmatprep.subr.bf16.mxu0 %v19563_v10  ;;  %v19421_v2 = vld [vmem:[%s27197_s3 + $0x39f8] sm:$0x11]  ;;  %v19626_v10 = vcombine.low %v19388_v59, %v19396_v13  ;;  %v20131_v59 = vld [vmem:[%s27198_s5 + $0xe0] sm:$0xff]   ;;  %v20135_v13 = vld [vmem:[%s27198_s5 + $0xe8] sm:$0xff]  }
 0x80c   :  { %v12692_v48 = vpop.f32.mrb[112].mxu0  ;;  %14515 = vmatprep.subr.bf16.mxu1 %v19565_v29  ;;  %v19660_v34 = vcombine.low %v19421_v2, %v19421_v2 }
 0x80d   :  { %v26655_v30 = vadd.f32 %v12692_v48, %v25863_v50  ;;  %v12733_v40 = vpop.f32.mrb[112].mxu1  ;;  %v12694_v36 = vpop.f32.mrb[113].mxu0  ;;  %v19578_v50 = vcombine.low %v19340_v57, %v19348_v5  ;;  %v19420_v57 = vld [vmem:[%s27197_s3 + $0x39f0] sm:$0x11]  ;;  %v19413_v5 = vld [vmem:[%s27197_s3 + $0x39b8] sm:$0xff] }
 0x80e   :  { %v26664_v38 = vadd.f32 %v12733_v40, %v25872_v49  ;;  %v26667_v60 = vadd.f32 %v12694_v36, %v25875_v22  ;;  %v12735_v39 = vpop.f32.mrb[113].mxu1  ;;  %v12696_v41 = vpop.f32.mrb[114].mxu0  ;;  %14475 = vmatpush1.bf16.msra.mxu0 %v19562_v33  ;;  %v19597_v49 = vcombine.high %v19357_v46, %v19365_v0  ;;  %v19372_v22 = vld [vmem:[%s27197_s3 + $0x3870] sm:$0xff]  ;;  %v19659_v29 = vcombine.high %v19420_v57, %v19420_v57  ;;  %v20114_v0 = vld [vmem:[%s27198_s5 + $0x40] sm:$0xff]  }
 0x80f   :  { %v26670_v52 = vadd.f32 %v12735_v39, %v25878_v55  ;;  %v12737_v17 = vpop.f32.mrb[114].mxu1  ;;  %14516 = vmatpush1.bf16.msra.mxu1 %v19564_v12  ;;  %v12697_v26 = vpop.f32.mrb[115].mxu0  ;;  %14476 = vmatprep.subr.bf16.mxu0 %v19579_v35  ;;  %v19373_v55 = vld [vmem:[%s27197_s3 + $0x3878] sm:$0xff]  ;;  %v19611_v58 = vcombine.high %v19372_v22, %v19380_v1  ;;  %v19610_v4 = vcombine.low %v19372_v22, %v19380_v1  ;;  %v20115_v39 = vld [vmem:[%s27198_s5 + $0xc0] sm:$0xff]  }
 0x810   :  { %v12738_v28 = vpop.f32.mrb[115].mxu1  ;;  %14517 = vmatprep.subr.bf16.mxu1 %v19581_v3  ;;  %v19613_v54 = vcombine.high %v19373_v55, %v19381_v27  ;;  %v19612_v6 = vcombine.low %v19373_v55, %v19381_v27  ;;  %v19645_v33 = vcombine.high %v19405_v43, %v19413_v5  ;;  %v19661_v12 = vcombine.high %v19421_v2, %v19421_v2  ;;  %v20116_v41 = vld [vmem:[%s27198_s5] sm:$0xff]   ;;  %v20119_v17 = vld [vmem:[%s27198_s5 + $0xc8] sm:$0xff]   ;;  %v20126_v22 = vld [vmem:[%s27198_s5 + $0x58] sm:$0xff]  }
 0x811   :  { %v19642_v35 = vcombine.low %v19404_v31, %v19412_v61  ;;  %v19658_v48 = vcombine.low %v19420_v57, %v19420_v57  ;;  %v19644_v3 = vcombine.low %v19405_v43, %v19413_v5  ;;  %v14204_v24 = vand.u32 %v19659_v29, %v20487_v62  ;;  %v20120_v26 = vld [vmem:[%s27198_s5 + $0x8] sm:$0xff]   ;;  %v20124_v28 = vld [vmem:[%s27198_s5 + $0x10] sm:$0xff]   ;;  %v20127_v1 = vld [vmem:[%s27198_s5 + $0xd8] sm:$0xff]  }
 0x812   :  { %14477 = vmatpush1.bf16.msra.mxu0 %v19578_v50  ;;  %v14210_v40 = vand.u32 %v19661_v12, %v20487_v62  ;;  %v14207_v46 = vand.u32 %v19660_v34, %v20487_v62  ;;  %v20118_v50 = vld [vmem:[%s27198_s5 + $0x48] sm:$0xff]   ;;  %v20128_v55 = vld [vmem:[%s27198_s5 + $0x18] sm:$0xff]   ;;  %v20138_v31 = vld [vmem:[%s27198_s5 + $0x70] sm:$0xff]  }
 0x813   :  { %14518 = vmatpush1.bf16.msra.mxu1 %v19580_v20  ;;  %14478 = vmatprep.subr.bf16.mxu0 %v19595_v18  ;;  %v14201_v36 = vand.u32 %v19658_v48, %v20487_v62  ;;  %v20117_v62 = vld [vmem:[%s27198_s5 + $0x80] sm:$0xff]   ;;  %v20121_v20 = vld [vmem:[%s27198_s5 + $0x88] sm:$0xff]   ;;  %v20122_v18 = vld [vmem:[%s27198_s5 + $0x50] sm:$0xff]  }
 0x814   :  { %14519 = vmatprep.subr.bf16.mxu1 %v19597_v49  ;;  %v20125_v49 = vld [vmem:[%s27198_s5 + $0x90] sm:$0xff]   ;;  %v20129_v27 = vld [vmem:[%s27198_s5 + $0x98] sm:$0xff]   ;;  %v20147_v12 = vld [vmem:[%s27198_s5 + $0x1c0] sm:$0xff]  }
 0x815   :  { %v20139_v61 = vld [vmem:[%s27198_s5 + $0xf0] sm:$0xff]   ;;  %v20143_v57 = vld [vmem:[%s27198_s5 + $0xf8] sm:$0xff]  }
 0x816   :  { %14479 = vmatpush1.bf16.msra.mxu0 %v19594_v42  ;;  %v20130_v42 = vld [vmem:[%s27198_s5 + $0x60] sm:$0xff]   ;;  %v20141_v43 = vld [vmem:[%s27198_s5 + $0xb0] sm:$0xff]   ;;  %v20144_v5 = vld [vmem:[%s27198_s5 + $0x38] sm:$0xff]  }
 0x817   :  { %14520 = vmatpush1.bf16.msra.mxu1 %v19596_v21  ;;  %14480 = vmatprep.subr.bf16.mxu0 %v19611_v58  ;;  %v20132_v21 = vld [vmem:[%s27198_s5 + $0x20] sm:$0xff]  }
 0x818   :  { %14521 = vmatprep.subr.bf16.mxu1 %v19613_v54  ;;  %v20133_v58 = vld [vmem:[%s27198_s5 + $0xa0] sm:$0xff]   ;;  %v20134_v54 = vld [vmem:[%s27198_s5 + $0x68] sm:$0xff]  }
 0x81a   :  { %14481 = vmatpush1.bf16.msra.mxu0 %v19610_v4  ;;  %v20137_v4 = vld [vmem:[%s27198_s5 + $0xa8] sm:$0xff]  }
 0x81b   :  { %14522 = vmatpush1.bf16.msra.mxu1 %v19612_v6  ;;  %14482 = vmatprep.subr.bf16.mxu0 %v19627_v7  ;;  %v20140_v6 = vld [vmem:[%s27198_s5 + $0x30] sm:$0xff]   ;;  %v26801_v7 = vshrl.u32 %v14560_v15, 7 }
 0x81c   :  { %14523 = vmatprep.subr.bf16.mxu1 %v19629_v51  ;;  %v20142_v51 = vld [vmem:[%s27198_s5 + $0x78] sm:$0xff]   ;;  %v20154_v15 = vld [vmem:[%s27198_s5 + $0x150] sm:$0xff]  }
 0x81d   :  { %v14562_v2 = vsub.s32 0, %v26801_v7  ;;  %v14570_v29 = vsub.s32 2, %v26801_v7 }
 0x81e   :  { %14483 = vmatpush1.bf16.msra.mxu0 %v19626_v10  ;;  %v20145_v10 = vld [vmem:[%s27198_s5 + $0xb8] sm:$0xff]  }
 0x81f   :  { %14524 = vmatpush1.bf16.msra.mxu1 %v19628_v53  ;;  %14484 = vmatprep.subr.bf16.mxu0 %v19643_v44  ;;  %v20146_v53 = vld [vmem:[%s27198_s5 + $0x140] sm:$0xff]  }
 0x820   :  { %14525 = vmatprep.subr.bf16.mxu1 %v19645_v33  ;;  %v26825_v44 = vld [vmem:[%s27199_s4] sm:$0xff]  ;;  %v14566_v33 = vsub.s32 1, %v26801_v7 }
 0x821   :  { %v14563_v48 = vrot.slane %v26825_v44, %v14562_v2 }
 0x822   :  { %14485 = vmatpush1.bf16.msra.mxu0 %v19642_v35  ;;  %v14574_v35 = vsub.s32 3, %v26801_v7  ;;  %v14567_v34 = vrot.slane %v26825_v44, %v14566_v33 }
 0x823   :  { %14526 = vmatpush1.bf16.msra.mxu1 %v19644_v3  ;;  %14486 = vmatprep.subr.bf16.mxu0 %v14204_v24  ;;  %v14571_v24 = vrot.slane %v26825_v44, %v14570_v29 }
 0x824   :  { %14527 = vmatprep.subr.bf16.mxu1 %v14210_v40 }
 0x826   :  { %14487 = vmatpush1.bf16.msra.mxu0 %v14201_v36 }
 0x827   :  { %14528 = vmatpush1.bf16.msra.mxu1 %v14207_v46  ;;  %19799 = vmatprep.subr.bf16.mxu0 %v20114_v0  ;;  %v14575_v0 = vrot.slane %v26825_v44, %v14574_v35 }
 0x828   :  { %19821 = vmatprep.subr.bf16.mxu1 %v20115_v39 }
 0x829   :  { %14491 = vmatmul.mubr.bf16.vlgmr.msra.gmra.mrb[128].mxu0 %v26152_v23 }
 0x82a   :  { %14532 = vmatmul.mubr.bf16.vlgmr.msra.gmra.mrb[128].mxu1 %v26152_v23  ;;  %19800 = vmatpush3.bf16.msra.mxu0 %v20116_v41  ;;  %v20123_v23 = vld [vmem:[%s27198_s5 + $0xd0] sm:$0xff]  }
 0x82b   :  { %19822 = vmatpush3.bf16.msra.mxu1 %v20117_v62  ;;  %19801 = vmatprep.subr.bf16.mxu0 %v20118_v50 }
 0x82c   :  { %19823 = vmatprep.subr.bf16.mxu1 %v20119_v17 }
 0x82e   :  { %19802 = vmatpush3.bf16.msra.mxu0 %v20120_v26 }
 0x82f   :  { %19824 = vmatpush3.bf16.msra.mxu1 %v20121_v20  ;;  %19803 = vmatprep.subr.bf16.mxu0 %v20122_v18 }
 0x830   :  { %19825 = vmatprep.subr.bf16.mxu1 %v20123_v23 }
 0x832   :  { %19804 = vmatpush3.bf16.msra.mxu0 %v20124_v28 }
 0x833   :  { %19826 = vmatpush3.bf16.msra.mxu1 %v20125_v49  ;;  %19805 = vmatprep.subr.bf16.mxu0 %v20126_v22 }
 0x834   :  { %19827 = vmatprep.subr.bf16.mxu1 %v20127_v1 }
 0x836   :  { %19806 = vmatpush3.bf16.msra.mxu0 %v20128_v55 }
 0x837   :  { %19828 = vmatpush3.bf16.msra.mxu1 %v20129_v27  ;;  %19807 = vmatprep.subr.bf16.mxu0 %v20130_v42 }
 0x838   :  { %19829 = vmatprep.subr.bf16.mxu1 %v20131_v59 }
 0x83a   :  { %19808 = vmatpush3.bf16.msra.mxu0 %v20132_v21  ;;  %v20150_v21 = vld [vmem:[%s27198_s5 + $0x148] sm:$0xff]  }
 0x83b   :  { %19830 = vmatpush3.bf16.msra.mxu1 %v20133_v58  ;;  %19809 = vmatprep.subr.bf16.mxu0 %v20134_v54  ;;  %v20151_v54 = vld [vmem:[%s27198_s5 + $0x1c8] sm:$0xff]  }
 0x83c   :  { %19831 = vmatprep.subr.bf16.mxu1 %v20135_v13  ;;  %v20152_v13 = vld [vmem:[%s27198_s5 + $0x108] sm:$0xff]  }
 0x83e   :  { %19810 = vmatpush3.bf16.msra.mxu0 %v20136_v11  ;;  %v20153_v11 = vld [vmem:[%s27198_s5 + $0x188] sm:$0xff]  }
 0x83f   :  { %19832 = vmatpush3.bf16.msra.mxu1 %v20137_v4  ;;  %19811 = vmatprep.subr.bf16.mxu0 %v20138_v31  ;;  %v20155_v4 = vld [vmem:[%s27198_s5 + $0x1d0] sm:$0xff]  }
 0x840   :  { %19833 = vmatprep.subr.bf16.mxu1 %v20139_v61  ;;  %v20156_v31 = vld [vmem:[%s27198_s5 + $0x110] sm:$0xff]  }
 0x841   :  { %v20157_v61 = vld [vmem:[%s27198_s5 + $0x190] sm:$0xff]  }
 0x842   :  { %19812 = vmatpush3.bf16.msra.mxu0 %v20140_v6  ;;  %v20158_v6 = vld [vmem:[%s27198_s5 + $0x158] sm:$0xff]  }
 0x843   :  { %19834 = vmatpush3.bf16.msra.mxu1 %v20141_v43  ;;  %19813 = vmatprep.subr.bf16.mxu0 %v20142_v51  ;;  %v20159_v43 = vld [vmem:[%s27198_s5 + $0x1d8] sm:$0xff]  }
 0x844   :  { %19835 = vmatprep.subr.bf16.mxu1 %v20143_v57  ;;  %v20160_v51 = vld [vmem:[%s27198_s5 + $0x118] sm:$0xff]  }
 0x845   :  { %v20161_v57 = vld [vmem:[%s27198_s5 + $0x198] sm:$0xff]  }
 0x846   :  { %19814 = vmatpush3.bf16.msra.mxu0 %v20144_v5  ;;  %v20162_v5 = vld [vmem:[%s27198_s5 + $0x160] sm:$0xff]  }
 0x847   :  { %19836 = vmatpush3.bf16.msra.mxu1 %v20145_v10  ;;  %19843 = vmatprep.subr.bf16.mxu0 %v20146_v53  ;;  %v20163_v10 = vld [vmem:[%s27198_s5 + $0x1e0] sm:$0xff]  }
 0x848   :  { %v14246_v3 = vpop.f32.mrb[116].mxu0  ;;  %19865 = vmatprep.subr.bf16.mxu1 %v20147_v12  ;;  %v20164_v53 = vld [vmem:[%s27198_s5 + $0x120] sm:$0xff]  }
 0x849   :  { %v14540_v40 = vadd.f32 %v14246_v3, %v26063_v63  ;;  %v14287_v36 = vpop.f32.mrb[116].mxu1  ;;  %v14248_v46 = vpop.f32.mrb[117].mxu0  ;;  %v20165_v12 = vld [vmem:[%s27198_s5 + $0x1a0] sm:$0xff]   ;;  %v20167_v3 = vld [vmem:[%s27198_s5 + $0x1e8] sm:$0xff]  }
 0x84a   :  { %v14542_v39 = vadd.f32 %v14287_v36, %v26072_v9  ;;  %v14541_v41 = vadd.f32 %v14248_v46, %v26075_v19  ;;  %v14289_v62 = vpop.f32.mrb[117].mxu1  ;;  %v14250_v50 = vpop.f32.mrb[118].mxu0  ;;  %v20148_v9 = vld [vmem:[%s27198_s5 + $0x100] sm:$0xff]   ;;  %v20171_v36 = vld [vmem:[%s27198_s5 + $0x1f0] sm:$0xff]  }
 0x84b   :  { %v14640_v17 = vadd.f32 %v14563_v48, %v14540_v40  ;;  %v14543_v26 = vadd.f32 %v14289_v62, %v26078_v56  ;;  %v14291_v20 = vpop.f32.mrb[118].mxu1  ;;  %v14251_v18 = vpop.f32.mrb[119].mxu0  ;;  %v20149_v56 = vld [vmem:[%s27198_s5 + $0x180] sm:$0xff]   ;;  %v20166_v48 = vld [vmem:[%s27198_s5 + $0x168] sm:$0xff]   ;;  %v20170_v40 = vld [vmem:[%s27198_s5 + $0x170] sm:$0xff]  }
 0x84c   :  { %v14642_v23 = vadd.f32 %v14571_v24, %v14542_v39  ;;  %v14641_v28 = vadd.f32 %v14567_v34, %v14541_v41  ;;  %v14292_v63 = vpop.f32.mrb[119].mxu1  ;;  %v20168_v24 = vld [vmem:[%s27198_s5 + $0x128] sm:$0xff]   ;;  %v20172_v46 = vld [vmem:[%s27198_s5 + $0x130] sm:$0xff]   ;;  %v20174_v39 = vld [vmem:[%s27198_s5 + $0x178] sm:$0xff]   ;;  %v14578_v20 = vsub.s32 4, %v26801_v7  ;;  %v14586_v18 = vsub.s32 6, %v26801_v7 }
 0x84d   :  { %v14656_v49 = vmax.f32 %v14640_v17, 0.0  ;;  %v14643_v22 = vadd.f32 %v14575_v0, %v14543_v26  ;;  %v20169_v34 = vld [vmem:[%s27198_s5 + $0x1a8] sm:$0xff]   ;;  %v20173_v0 = vld [vmem:[%s27198_s5 + $0x1b0] sm:$0xff]   ;;  %v20175_v41 = vld [vmem:[%s27198_s5 + $0x1f8] sm:$0xff]  }
 0x84e   :  { %v14658_v1 = vmax.f32 %v14642_v23, 0.0  ;;  %v14657_v55 = vmax.f32 %v14641_v28, 0.0  ;;  %v20176_v62 = vld [vmem:[%s27198_s5 + $0x138] sm:$0xff]   ;;  %v20178_v17 = vld [vmem:[%s27198_s5 + $0x240] sm:$0xff]   ;;  %v14582_v23 = vsub.s32 5, %v26801_v7  ;;  %v14590_v28 = vsub.s32 7, %v26801_v7 }
 0x84f   :  { %v14659_v27 = vmax.f32 %v14643_v22, 0.0  ;;  %v14672_v19 = vpack.c.bf16 %v14656_v49, %v14656_v49  ;;  %v20177_v50 = vld [vmem:[%s27198_s5 + $0x1b8] sm:$0xff]   ;;  %v20179_v26 = vld [vmem:[%s27198_s5 + $0x2c0] sm:$0xff]   ;;  %v14579_v63 = vrot.slane %v26825_v44, %v14578_v20  ;;  %v14587_v22 = vrot.slane %v26825_v44, %v14586_v18 }
 0x850   :  { %v14673_v42 = vpack.c.bf16 %v14657_v55, %v14657_v55  ;;  %v14674_v58 = vpack.c.bf16 %v14658_v1, %v14658_v1  ;;  %v14583_v1 = vrot.slane %v26825_v44, %v14582_v23 }
 0x851   :  { %v14675_v59 = vpack.c.bf16 %v14659_v27, %v14659_v27 }
 0x852   :  { %15744 = vmatprep.mubr.bf16.mxu0 %v14673_v42 }
 0x853   :  { %15784 = vmatprep.mubr.bf16.mxu1 %v14675_v59  ;;  %15745 = vmatmul.mubr.bf16.vlgmr.msra.gmra.mrb[132].mxu0 %v14672_v19 }
 0x854   :  { %15785 = vmatmul.mubr.bf16.vlgmr.msra.gmra.mrb[132].mxu1 %v14674_v58  ;;  %19844 = vmatpush3.bf16.msra.mxu0 %v20148_v9  ;;  %v14591_v9 = vrot.slane %v26825_v44, %v14590_v28 }
 0x855   :  { %19866 = vmatpush3.bf16.msra.mxu1 %v20149_v56  ;;  %19845 = vmatprep.subr.bf16.mxu0 %v20150_v21 }
 0x856   :  { %19867 = vmatprep.subr.bf16.mxu1 %v20151_v54 }
 0x858   :  { %19846 = vmatpush3.bf16.msra.mxu0 %v20152_v13 }
 0x859   :  { %19868 = vmatpush3.bf16.msra.mxu1 %v20153_v11  ;;  %19847 = vmatprep.subr.bf16.mxu0 %v20154_v15 }
 0x85a   :  { %19869 = vmatprep.subr.bf16.mxu1 %v20155_v4 }
 0x85c   :  { %19848 = vmatpush3.bf16.msra.mxu0 %v20156_v31 }
 0x85d   :  { %19870 = vmatpush3.bf16.msra.mxu1 %v20157_v61  ;;  %19849 = vmatprep.subr.bf16.mxu0 %v20158_v6 }
 0x85e   :  { %19871 = vmatprep.subr.bf16.mxu1 %v20159_v43 }
 0x860   :  { %19850 = vmatpush3.bf16.msra.mxu0 %v20160_v51 }
 0x861   :  { %19872 = vmatpush3.bf16.msra.mxu1 %v20161_v57  ;;  %19851 = vmatprep.subr.bf16.mxu0 %v20162_v5  ;;  %v20182_v5 = vld [vmem:[%s27198_s5 + $0x248] sm:$0xff]  }
 0x862   :  { %19873 = vmatprep.subr.bf16.mxu1 %v20163_v10 }
 0x864   :  { %19852 = vmatpush3.bf16.msra.mxu0 %v20164_v53  ;;  %v20183_v53 = vld [vmem:[%s27198_s5 + $0x2c8] sm:$0xff]  }
 0x865   :  { %19874 = vmatpush3.bf16.msra.mxu1 %v20165_v12  ;;  %19853 = vmatprep.subr.bf16.mxu0 %v20166_v48  ;;  %v20184_v12 = vld [vmem:[%s27198_s5 + $0x208] sm:$0xff]  }
 0x866   :  { %19875 = vmatprep.subr.bf16.mxu1 %v20167_v3  ;;  %v20185_v48 = vld [vmem:[%s27198_s5 + $0x288] sm:$0xff]   ;;  %v20186_v3 = vld [vmem:[%s27198_s5 + $0x250] sm:$0xff]  }
 0x868   :  { %19854 = vmatpush3.bf16.msra.mxu0 %v20168_v24  ;;  %v20187_v24 = vld [vmem:[%s27198_s5 + $0x2d0] sm:$0xff]  }
 0x869   :  { %19876 = vmatpush3.bf16.msra.mxu1 %v20169_v34  ;;  %19855 = vmatprep.subr.bf16.mxu0 %v20170_v40  ;;  %v20188_v34 = vld [vmem:[%s27198_s5 + $0x210] sm:$0xff]  }
 0x86a   :  { %19877 = vmatprep.subr.bf16.mxu1 %v20171_v36  ;;  %v20189_v40 = vld [vmem:[%s27198_s5 + $0x290] sm:$0xff]   ;;  %v20190_v36 = vld [vmem:[%s27198_s5 + $0x258] sm:$0xff]  }
 0x86c   :  { %19856 = vmatpush3.bf16.msra.mxu0 %v20172_v46  ;;  %v20191_v46 = vld [vmem:[%s27198_s5 + $0x2d8] sm:$0xff]  }
 0x86d   :  { %19878 = vmatpush3.bf16.msra.mxu1 %v20173_v0  ;;  %19857 = vmatprep.subr.bf16.mxu0 %v20174_v39  ;;  %v20192_v0 = vld [vmem:[%s27198_s5 + $0x218] sm:$0xff]  }
 0x86e   :  { %19879 = vmatprep.subr.bf16.mxu1 %v20175_v41  ;;  %v20193_v39 = vld [vmem:[%s27198_s5 + $0x298] sm:$0xff]   ;;  %v20194_v41 = vld [vmem:[%s27198_s5 + $0x260] sm:$0xff]  }
 0x870   :  { %19858 = vmatpush3.bf16.msra.mxu0 %v20176_v62  ;;  %v20195_v62 = vld [vmem:[%s27198_s5 + $0x2e0] sm:$0xff]  }
 0x871   :  { %19880 = vmatpush3.bf16.msra.mxu1 %v20177_v50  ;;  %19887 = vmatprep.subr.bf16.mxu0 %v20178_v17  ;;  %v20196_v50 = vld [vmem:[%s27198_s5 + $0x220] sm:$0xff]  }
 0x872   :  { %19909 = vmatprep.subr.bf16.mxu1 %v20179_v26  ;;  %v20197_v17 = vld [vmem:[%s27198_s5 + $0x2a0] sm:$0xff]   ;;  %v20198_v26 = vld [vmem:[%s27198_s5 + $0x268] sm:$0xff]  }
 0x884   :  { %v14328_v49 = vpop.f32.mrb[120].mxu0 }
 0x885   :  { %v14544_v55 = vadd.f32 %v14328_v49, %v26263_v16  ;;  %v14369_v27 = vpop.f32.mrb[120].mxu1  ;;  %v14330_v42 = vpop.f32.mrb[121].mxu0  ;;  %v20200_v49 = vld [vmem:[%s27198_s5 + $0x228] sm:$0xff]  }
 0x886   :  { %v14546_v19 = vadd.f32 %v14369_v27, %v26272_v47  ;;  %v14545_v59 = vadd.f32 %v14330_v42, %v26275_v32  ;;  %v14371_v56 = vpop.f32.mrb[121].mxu1  ;;  %v14332_v21 = vpop.f32.mrb[122].mxu0  ;;  %v20180_v47 = vld [vmem:[%s27198_s5 + $0x200] sm:$0xff]   ;;  %v20204_v27 = vld [vmem:[%s27198_s5 + $0x230] sm:$0xff]  }
 0x887   :  { %v14644_v58 = vadd.f32 %v14579_v63, %v14544_v55  ;;  %v14547_v54 = vadd.f32 %v14371_v56, %v26278_v25  ;;  %v14373_v13 = vpop.f32.mrb[122].mxu1  ;;  %v14333_v11 = vpop.f32.mrb[123].mxu0  ;;  %v20181_v25 = vld [vmem:[%s27198_s5 + $0x280] sm:$0xff]   ;;  %v20199_v63 = vld [vmem:[%s27198_s5 + $0x2e8] sm:$0xff]   ;;  %v20203_v55 = vld [vmem:[%s27198_s5 + $0x2f0] sm:$0xff]  }
 0x888   :  { %v14646_v15 = vadd.f32 %v14587_v22, %v14546_v19  ;;  %v14645_v4 = vadd.f32 %v14583_v1, %v14545_v59  ;;  %v14374_v16 = vpop.f32.mrb[123].mxu1  ;;  %v20201_v22 = vld [vmem:[%s27198_s5 + $0x2a8] sm:$0xff]   ;;  %v20202_v1 = vld [vmem:[%s27198_s5 + $0x270] sm:$0xff]   ;;  %v20207_v19 = vld [vmem:[%s27198_s5 + $0x2f8] sm:$0xff]  }
 0x889   :  { %v14660_v31 = vmax.f32 %v14644_v58, 0.0  ;;  %v14647_v61 = vadd.f32 %v14591_v9, %v14547_v54  ;;  %v20205_v42 = vld [vmem:[%s27198_s5 + $0x2b0] sm:$0xff]   ;;  %v20206_v9 = vld [vmem:[%s27198_s5 + $0x278] sm:$0xff]   ;;  %v20210_v21 = vld [vmem:[%s27198_s5 + $0x340] sm:$0xff]  }
 0x88a   :  { %v14662_v6 = vmax.f32 %v14646_v15, 0.0  ;;  %v14661_v43 = vmax.f32 %v14645_v4, 0.0  ;;  %v20208_v59 = vld [vmem:[%s27198_s5 + $0x238] sm:$0xff]   ;;  %v20211_v58 = vld [vmem:[%s27198_s5 + $0x3c0] sm:$0xff]   ;;  %v27064_v54 = vld [vmem:[%s27199_s4 + $0x8] sm:$0xff] }
 0x88b   :  { %v14663_v51 = vmax.f32 %v14647_v61, 0.0  ;;  %v14676_v32 = vpack.c.bf16 %v14660_v31, %v14660_v31  ;;  %v20209_v56 = vld [vmem:[%s27198_s5 + $0x2b8] sm:$0xff]   ;;  %v14595_v13 = vrot.slane %v27064_v54, %v14562_v2  ;;  %v14603_v15 = vrot.slane %v27064_v54, %v14570_v29 }
 0x88c   :  { %v14677_v44 = vpack.c.bf16 %v14661_v43, %v14661_v43  ;;  %v14678_v10 = vpack.c.bf16 %v14662_v6, %v14662_v6  ;;  %v14599_v4 = vrot.slane %v27064_v54, %v14566_v33  ;;  %v14607_v6 = vrot.slane %v27064_v54, %v14574_v35 }
 0x88d   :  { %v14679_v57 = vpack.c.bf16 %v14663_v51, %v14663_v51 }
 0x88e   :  { %15824 = vmatprep.mubr.bf16.mxu0 %v14677_v44 }
 0x88f   :  { %15864 = vmatprep.mubr.bf16.mxu1 %v14679_v57  ;;  %15825 = vmatmul.mubr.bf16.vlgmr.msra.gmra.mrb[136].mxu0 %v14676_v32 }
 0x890   :  { %15865 = vmatmul.mubr.bf16.vlgmr.msra.gmra.mrb[136].mxu1 %v14678_v10  ;;  %19888 = vmatpush3.bf16.msra.mxu0 %v20180_v47 }
 0x891   :  { %19910 = vmatpush3.bf16.msra.mxu1 %v20181_v25  ;;  %19889 = vmatprep.subr.bf16.mxu0 %v20182_v5 }
 0x892   :  { %19911 = vmatprep.subr.bf16.mxu1 %v20183_v53 }
 0x894   :  { %19890 = vmatpush3.bf16.msra.mxu0 %v20184_v12 }
 0x895   :  { %19912 = vmatpush3.bf16.msra.mxu1 %v20185_v48  ;;  %19891 = vmatprep.subr.bf16.mxu0 %v20186_v3 }
 0x896   :  { %19913 = vmatprep.subr.bf16.mxu1 %v20187_v24  ;;  %v20214_v24 = vld [vmem:[%s27198_s5 + $0x348] sm:$0xff]  }
 0x898   :  { %19892 = vmatpush3.bf16.msra.mxu0 %v20188_v34 }
 0x899   :  { %19914 = vmatpush3.bf16.msra.mxu1 %v20189_v40  ;;  %19893 = vmatprep.subr.bf16.mxu0 %v20190_v36  ;;  %v20215_v40 = vld [vmem:[%s27198_s5 + $0x3c8] sm:$0xff]  }
 0x89a   :  { %19915 = vmatprep.subr.bf16.mxu1 %v20191_v46  ;;  %v20216_v36 = vld [vmem:[%s27198_s5 + $0x308] sm:$0xff]  }
 0x89b   :  { %v20217_v46 = vld [vmem:[%s27198_s5 + $0x388] sm:$0xff]  }
 0x89c   :  { %19894 = vmatpush3.bf16.msra.mxu0 %v20192_v0  ;;  %v20218_v0 = vld [vmem:[%s27198_s5 + $0x350] sm:$0xff]  }
 0x89d   :  { %19916 = vmatpush3.bf16.msra.mxu1 %v20193_v39  ;;  %19895 = vmatprep.subr.bf16.mxu0 %v20194_v41  ;;  %v20219_v39 = vld [vmem:[%s27198_s5 + $0x3d0] sm:$0xff]  }
 0x89e   :  { %19917 = vmatprep.subr.bf16.mxu1 %v20195_v62  ;;  %v20220_v41 = vld [vmem:[%s27198_s5 + $0x310] sm:$0xff]  }
 0x89f   :  { %v20221_v62 = vld [vmem:[%s27198_s5 + $0x390] sm:$0xff]  }
 0x8a0   :  { %19896 = vmatpush3.bf16.msra.mxu0 %v20196_v50  ;;  %v20222_v50 = vld [vmem:[%s27198_s5 + $0x358] sm:$0xff]  }
 0x8a1   :  { %19918 = vmatpush3.bf16.msra.mxu1 %v20197_v17  ;;  %19897 = vmatprep.subr.bf16.mxu0 %v20198_v26  ;;  %v20223_v17 = vld [vmem:[%s27198_s5 + $0x3d8] sm:$0xff]  }
 0x8a2   :  { %19919 = vmatprep.subr.bf16.mxu1 %v20199_v63  ;;  %v20224_v26 = vld [vmem:[%s27198_s5 + $0x318] sm:$0xff]  }
 0x8a3   :  { %v20225_v63 = vld [vmem:[%s27198_s5 + $0x398] sm:$0xff]  }
 0x8a4   :  { %19898 = vmatpush3.bf16.msra.mxu0 %v20200_v49  ;;  %v20226_v49 = vld [vmem:[%s27198_s5 + $0x360] sm:$0xff]  }
 0x8a5   :  { %19920 = vmatpush3.bf16.msra.mxu1 %v20201_v22  ;;  %19899 = vmatprep.subr.bf16.mxu0 %v20202_v1  ;;  %v20227_v22 = vld [vmem:[%s27198_s5 + $0x3e0] sm:$0xff]  }
 0x8a6   :  { %19921 = vmatprep.subr.bf16.mxu1 %v20203_v55  ;;  %v20228_v1 = vld [vmem:[%s27198_s5 + $0x320] sm:$0xff]  }
 0x8a7   :  { %v20229_v55 = vld [vmem:[%s27198_s5 + $0x3a0] sm:$0xff]  }
 0x8a8   :  { %19900 = vmatpush3.bf16.msra.mxu0 %v20204_v27  ;;  %v20230_v27 = vld [vmem:[%s27198_s5 + $0x368] sm:$0xff]  }
 0x8a9   :  { %19922 = vmatpush3.bf16.msra.mxu1 %v20205_v42  ;;  %19901 = vmatprep.subr.bf16.mxu0 %v20206_v9  ;;  %v20231_v42 = vld [vmem:[%s27198_s5 + $0x3e8] sm:$0xff]  }
 0x8aa   :  { %19923 = vmatprep.subr.bf16.mxu1 %v20207_v19  ;;  %v20232_v9 = vld [vmem:[%s27198_s5 + $0x328] sm:$0xff]  }
 0x8ab   :  { %v20233_v19 = vld [vmem:[%s27198_s5 + $0x3a8] sm:$0xff]  }
 0x8ac   :  { %19902 = vmatpush3.bf16.msra.mxu0 %v20208_v59  ;;  %v20234_v59 = vld [vmem:[%s27198_s5 + $0x370] sm:$0xff]  }
 0x8ad   :  { %19924 = vmatpush3.bf16.msra.mxu1 %v20209_v56  ;;  %19931 = vmatprep.subr.bf16.mxu0 %v20210_v21  ;;  %v20235_v56 = vld [vmem:[%s27198_s5 + $0x3f0] sm:$0xff]  }
 0x8ae   :  { %19953 = vmatprep.subr.bf16.mxu1 %v20211_v58  ;;  %v20236_v21 = vld [vmem:[%s27198_s5 + $0x330] sm:$0xff]  }
 0x8af   :  { %v20237_v58 = vld [vmem:[%s27198_s5 + $0x3b0] sm:$0xff]  }
 0x8c0   :  { %v14410_v11 = vpop.f32.mrb[124].mxu0 }
 0x8c1   :  { %v14548_v16 = vadd.f32 %v14410_v11, %v26459_v8  ;;  %v14451_v31 = vpop.f32.mrb[124].mxu1  ;;  %v14412_v61 = vpop.f32.mrb[125].mxu0  ;;  %v20239_v11 = vld [vmem:[%s27198_s5 + $0x3f8] sm:$0xff]  }
 0x8c2   :  { %v14550_v43 = vadd.f32 %v14451_v31, %v26468_v45  ;;  %v14549_v2 = vadd.f32 %v14412_v61, %v26471_v14  ;;  %v14453_v51 = vpop.f32.mrb[125].mxu1  ;;  %v14414_v44 = vpop.f32.mrb[126].mxu0  ;;  %v20212_v45 = vld [vmem:[%s27198_s5 + $0x300] sm:$0xff]   ;;  %v14619_v61 = vrot.slane %v27064_v54, %v14586_v18 }
 0x8c3   :  { %v14648_v47 = vadd.f32 %v14595_v13, %v14548_v16  ;;  %v14551_v29 = vadd.f32 %v14453_v51, %v26474_v37  ;;  %v14455_v32 = vpop.f32.mrb[126].mxu1  ;;  %v14415_v57 = vpop.f32.mrb[127].mxu0  ;;  %v20213_v37 = vld [vmem:[%s27198_s5 + $0x380] sm:$0xff]   ;;  %v20238_v13 = vld [vmem:[%s27198_s5 + $0x378] sm:$0xff]   ;;  %v14611_v16 = vrot.slane %v27064_v54, %v14578_v20  ;;  %v14623_v44 = vrot.slane %v27064_v54, %v14590_v28 }
 0x8c4   :  { %v14650_v33 = vadd.f32 %v14603_v15, %v14550_v43  ;;  %v14649_v25 = vadd.f32 %v14599_v4, %v14549_v2  ;;  %v14456_v8 = vpop.f32.mrb[127].mxu1  ;;  %v20240_v15 = vld [vmem:[%s27198_s5 + $0x338] sm:$0xff]  }
 0x8c5   :  { %v14664_v5 = vmax.f32 %v14648_v47, 0.0  ;;  %v14651_v10 = vadd.f32 %v14607_v6, %v14551_v29  ;;  %v20241_v4 = vld [vmem:[%s27198_s5 + $0x3b8] sm:$0xff]   ;;  %v14615_v6 = vrot.slane %v27064_v54, %v14582_v23 }
 0x8c6   :  { %v14666_v53 = vmax.f32 %v14650_v33, 0.0  ;;  %v14665_v12 = vmax.f32 %v14649_v25, 0.0 }
 0x8c7   :  { %v14667_v48 = vmax.f32 %v14651_v10, 0.0  ;;  %v14680_v14 = vpack.c.bf16 %v14664_v5, %v14664_v5 }
 0x8c8   :  { %v14681_v35 = vpack.c.bf16 %v14665_v12, %v14665_v12  ;;  %v14682_v34 = vpack.c.bf16 %v14666_v53, %v14666_v53 }
 0x8c9   :  { %v14683_v3 = vpack.c.bf16 %v14667_v48, %v14667_v48 }
 0x8ca   :  { %15904 = vmatprep.mubr.bf16.mxu0 %v14681_v35 }
 0x8cb   :  { %15944 = vmatprep.mubr.bf16.mxu1 %v14683_v3  ;;  %15905 = vmatmul.mubr.bf16.vlgmr.msra.gmra.mrb[140].mxu0 %v14680_v14 }
 0x8cc   :  { %15945 = vmatmul.mubr.bf16.vlgmr.msra.gmra.mrb[140].mxu1 %v14682_v34  ;;  %19932 = vmatpush3.bf16.msra.mxu0 %v20212_v45 }
 0x8cd   :  { %19954 = vmatpush3.bf16.msra.mxu1 %v20213_v37  ;;  %19933 = vmatprep.subr.bf16.mxu0 %v20214_v24 }
 0x8ce   :  { %19955 = vmatprep.subr.bf16.mxu1 %v20215_v40 }
 0x8d0   :  { %19934 = vmatpush3.bf16.msra.mxu0 %v20216_v36 }
 0x8d1   :  { %19956 = vmatpush3.bf16.msra.mxu1 %v20217_v46  ;;  %19935 = vmatprep.subr.bf16.mxu0 %v20218_v0 }
 0x8d2   :  { %19957 = vmatprep.subr.bf16.mxu1 %v20219_v39 }
 0x8d4   :  { %19936 = vmatpush3.bf16.msra.mxu0 %v20220_v41 }
 0x8d5   :  { %19958 = vmatpush3.bf16.msra.mxu1 %v20221_v62  ;;  %19937 = vmatprep.subr.bf16.mxu0 %v20222_v50 }
 0x8d6   :  { %19959 = vmatprep.subr.bf16.mxu1 %v20223_v17 }
 0x8d8   :  { %19938 = vmatpush3.bf16.msra.mxu0 %v20224_v26 }
 0x8d9   :  { %19960 = vmatpush3.bf16.msra.mxu1 %v20225_v63  ;;  %19939 = vmatprep.subr.bf16.mxu0 %v20226_v49 }
 0x8da   :  { %19961 = vmatprep.subr.bf16.mxu1 %v20227_v22 }
 0x8dc   :  { %19940 = vmatpush3.bf16.msra.mxu0 %v20228_v1 }
 0x8dd   :  { %19962 = vmatpush3.bf16.msra.mxu1 %v20229_v55  ;;  %19941 = vmatprep.subr.bf16.mxu0 %v20230_v27 }
 0x8de   :  { %19963 = vmatprep.subr.bf16.mxu1 %v20231_v42 }
 0x8e0   :  { %19942 = vmatpush3.bf16.msra.mxu0 %v20232_v9 }
 0x8e1   :  { %19964 = vmatpush3.bf16.msra.mxu1 %v20233_v19  ;;  %19943 = vmatprep.subr.bf16.mxu0 %v20234_v59 }
 0x8e2   :  { %19965 = vmatprep.subr.bf16.mxu1 %v20235_v56 }
 0x8e4   :  { %19944 = vmatpush3.bf16.msra.mxu0 %v20236_v21 }
 0x8e5   :  { %19966 = vmatpush3.bf16.msra.mxu1 %v20237_v58  ;;  %19945 = vmatprep.subr.bf16.mxu0 %v20238_v13 }
 0x8e6   :  { %19967 = vmatprep.subr.bf16.mxu1 %v20239_v11 }
 0x8e8   :  { %19946 = vmatpush3.bf16.msra.mxu0 %v20240_v15 }
 0x8e9   :  { %19968 = vmatpush3.bf16.msra.mxu1 %v20241_v4 }
 0x8fc   :  { %v14492_v31 = vpop.f32.mrb[128].mxu0 }
 0x8fd   :  { %v14552_v43 = vadd.f32 %v14492_v31, %v26655_v30  ;;  %v14533_v2 = vpop.f32.mrb[128].mxu1  ;;  %v14494_v51 = vpop.f32.mrb[129].mxu0 }
 0x8fe   :  { %v14554_v47 = vadd.f32 %v14533_v2, %v26664_v38  ;;  %v14553_v20 = vadd.f32 %v14494_v51, %v26667_v60  ;;  %v14535_v29 = vpop.f32.mrb[129].mxu1  ;;  %v14496_v32 = vpop.f32.mrb[130].mxu0 }
 0x8ff   :  { %v14652_v57 = vadd.f32 %v14611_v16, %v14552_v43  ;;  %v14555_v18 = vadd.f32 %v14535_v29, %v26670_v52  ;;  %v14537_v33 = vpop.f32.mrb[130].mxu1  ;;  %v14497_v25 = vpop.f32.mrb[131].mxu0  ;;  %v19798_v29 = vld [vmem:[%s27200_s6] ss:$0 sm:$0xff] }
 0x900   :  { %v14654_v23 = vadd.f32 %v14619_v61, %v14554_v47  ;;  %v14653_v8 = vadd.f32 %v14615_v6, %v14553_v20  ;;  %v14538_v30 = vpop.f32.mrb[131].mxu1 }
 0x901   :  { %v14668_v5 = vmax.f32 %v14652_v57, 0.0  ;;  %v14655_v10 = vadd.f32 %v14623_v44, %v14555_v18 }
 0x902   :  { %v14670_v53 = vmax.f32 %v14654_v23, 0.0  ;;  %v14669_v7 = vmax.f32 %v14653_v8, 0.0 }
 0x903   :  { %v14671_v12 = vmax.f32 %v14655_v10, 0.0  ;;  %v14684_v54 = vpack.c.bf16 %v14668_v5, %v14668_v5 }
 0x904   :  { %v14685_v28 = vpack.c.bf16 %v14669_v7, %v14669_v7  ;;  %v14686_v48 = vpack.c.bf16 %v14670_v53, %v14670_v53 }
 0x905   :  { %v14687_v38 = vpack.c.bf16 %v14671_v12, %v14671_v12 }
 0x906   :  { %15984 = vmatprep.mubr.bf16.mxu0 %v14685_v28 }
 0x907   :  { %16024 = vmatprep.mubr.bf16.mxu1 %v14687_v38  ;;  %15985 = vmatmul.mubr.bf16.vlgmr.msra.gmra.mrb[144].mxu0 %v14684_v54 }
 0x908   :  { %16025 = vmatmul.mubr.bf16.vlgmr.msra.gmra.mrb[144].mxu1 %v14686_v48 }
 0x926   :  { %v19815_v60 = vpop.f32.mrb[132].mxu0 }
 0x927   :  { %v19837_v52 = vpop.f32.mrb[132].mxu1  ;;  %v19816_v35 = vpop.f32.mrb[133].mxu0 }
 0x928   :  { %v19817_v45 = vadd.f32 %v19816_v35, %v19815_v60  ;;  %v19838_v14 = vpop.f32.mrb[133].mxu1  ;;  %v19818_v3 = vpop.f32.mrb[134].mxu0 }
 0x929   :  { %v19839_v37 = vadd.f32 %v19838_v14, %v19837_v52  ;;  %v19840_v24 = vpop.f32.mrb[134].mxu1  ;;  %v19819_v34 = vpop.f32.mrb[135].mxu0 }
 0x92a   :  { %v19841_v40 = vpop.f32.mrb[135].mxu1 }
 0x92b   :  { %v15787_v36 = vadd.f32 %v19839_v37, %v19817_v45 }
 0x962   :  { %v19859_v46 = vpop.f32.mrb[136].mxu0 }
 0x963   :  { %v19881_v0 = vpop.f32.mrb[136].mxu1  ;;  %v19860_v39 = vpop.f32.mrb[137].mxu0 }
 0x964   :  { %v19861_v41 = vadd.f32 %v19860_v39, %v19859_v46  ;;  %v19882_v62 = vpop.f32.mrb[137].mxu1  ;;  %v19862_v50 = vpop.f32.mrb[138].mxu0 }
 0x965   :  { %v19883_v17 = vadd.f32 %v19882_v62, %v19881_v0  ;;  %v19884_v26 = vpop.f32.mrb[138].mxu1  ;;  %v19863_v63 = vpop.f32.mrb[139].mxu0 }
 0x966   :  { %v15827_v49 = vadd.f32 %v19861_v41, %v15787_v36  ;;  %v19885_v22 = vpop.f32.mrb[139].mxu1 }
 0x968   :  { %v15867_v1 = vadd.f32 %v19883_v17, %v15827_v49 }
 0x99e   :  { %v19903_v55 = vpop.f32.mrb[140].mxu0 }
 0x99f   :  { %v19925_v27 = vpop.f32.mrb[140].mxu1  ;;  %v19904_v42 = vpop.f32.mrb[141].mxu0 }
 0x9a0   :  { %v19905_v9 = vadd.f32 %v19904_v42, %v19903_v55  ;;  %v19926_v19 = vpop.f32.mrb[141].mxu1  ;;  %v19906_v59 = vpop.f32.mrb[142].mxu0 }
 0x9a1   :  { %v19927_v56 = vadd.f32 %v19926_v19, %v19925_v27  ;;  %v19928_v21 = vpop.f32.mrb[142].mxu1  ;;  %v19907_v58 = vpop.f32.mrb[143].mxu0 }
 0x9a2   :  { %v15907_v13 = vadd.f32 %v19905_v9, %v15867_v1  ;;  %v19929_v11 = vpop.f32.mrb[143].mxu1 }
 0x9a4   :  { %v15947_v15 = vadd.f32 %v19927_v56, %v15907_v13 }
 0x9da   :  { %v19947_v4 = vpop.f32.mrb[144].mxu0 }
 0x9db   :  { %v19969_v16 = vpop.f32.mrb[144].mxu1  ;;  %v19948_v31 = vpop.f32.mrb[145].mxu0 }
 0x9dc   :  { %v19949_v61 = vadd.f32 %v19948_v31, %v19947_v4  ;;  %v19970_v6 = vpop.f32.mrb[145].mxu1  ;;  %v19950_v43 = vpop.f32.mrb[146].mxu0 }
 0x9dd   :  { %v19971_v2 = vadd.f32 %v19970_v6, %v19969_v16  ;;  %v19972_v51 = vpop.f32.mrb[146].mxu1  ;;  %v19951_v44 = vpop.f32.mrb[147].mxu0 }
 0x9de   :  { %v15987_v47 = vadd.f32 %v19949_v61, %v15947_v15  ;;  %v19973_v20 = vpop.f32.mrb[147].mxu1 }
 0x9e0   :  { %v16027_v32 = vadd.f32 %v19971_v2, %v15987_v47 }
 0x9e2   :  { %v16043_v57 = vadd.f32 %v19798_v29, %v16027_v32 }
 0x9e4   :  { %16045 = vst.msk [vmem:[%s27201_s7] sm:$0x3] %vm16044_vm3, %v16043_v57 }

</bundles_post_ra>
